<compile_context>
chip_gen: v7x
topology: tpu7x:2x2x1
jax: 0.10.0
libtpu: 0.0.40
codegen_flags: <defaults>
</compile_context>

<pallas_src>
import functools
import math

import jax
import jax.numpy as jnp
from jax.experimental import pallas as pl
from jax.experimental.pallas import tpu as pltpu


# --------------------------- in-kernel helpers -------------------------------

def _layernorm(x, g, b, eps):
    """LayerNorm over the last (lane) axis, all statistics in f32."""
    mu = jnp.mean(x, axis=-1, keepdims=True)
    xc = x - mu
    var = jnp.mean(xc * xc, axis=-1, keepdims=True)
    return xc * jax.lax.rsqrt(var + eps) * g + b


# --------------------------- fused conv stack kernel -------------------------

def _conv_stack_kernel(x_ref, w1_ref, b1_ref, w2_ref, b2_ref, o_ref, *,
                       K, stride, pool, Lc1, L1p, Lc2, L2p):
    """conv1 (stride) + maxpool(pool) + conv2 (stride) + maxpool(pool), one batch.

    x_ref : (1, L + 2*pad, Cin) zero-padded input, channels-last
    w*_ref: (K, Cin_l, Cout_l) bf16   b*_ref: (1, Cout_l) f32
    o_ref : (1, L2p, C2)
    """
    f32 = jnp.float32
    bf16 = jnp.bfloat16
    C1 = w1_ref.shape[2]
    C2 = w2_ref.shape[2]
    pad = K // 2
    sp = stride * pool

    def _subsample_pool(y, n_out):
        # out[j] = max_t y[sp*j + stride*t]; one-hot row gathers ride the MXU.
        col = jax.lax.broadcasted_iota(jnp.int32, (n_out, y.shape[0]), 1)
        row = jax.lax.broadcasted_iota(jnp.int32, (n_out, y.shape[0]), 0)
        out = None
        for t in range(pool):
            sel = (col == sp * row + stride * t).astype(f32)
            g = jnp.dot(sel, y, preferred_element_type=f32)
            out = g if out is None else jnp.maximum(out, g)
        return out

    # ---- conv1 at stride 1 over the padded input (contiguous slices only) ----
    x = x_ref[0]                                            # (Lp, Cin) f32
    y1 = jnp.zeros((Lc1, C1), f32)
    for k in range(K):
        xk = x[k:k + Lc1, :].astype(bf16)
        y1 = y1 + jnp.dot(xk, w1_ref[k], preferred_element_type=f32)
    # fused stride-2 subsample + MaxPool1d(pool); bias is position-invariant so
    # adding it after the max is exact.
    p1 = _subsample_pool(y1, L1p) + b1_ref[...]             # (L1p, C1)

    # ---- conv2 at stride 1; zero padding realised by shifted one-hot gathers --
    col2 = jax.lax.broadcasted_iota(jnp.int32, (Lc2, L1p), 1)
    row2 = jax.lax.broadcasted_iota(jnp.int32, (Lc2, L1p), 0)
    y2 = jnp.zeros((Lc2, C2), f32)
    for k in range(K):
        shift = (col2 == row2 + (k - pad)).astype(f32)      # rows out of range -> 0
        xk = jnp.dot(shift, p1, preferred_element_type=f32).astype(bf16)
        y2 = y2 + jnp.dot(xk, w2_ref[k], preferred_element_type=f32)
    out = _subsample_pool(y2, L2p) + b2_ref[...]            # (L2p, C2)

    o_ref[...] = out.astype(o_ref.dtype)[None, :, :]


def conv_pool_stack(x, w1, b1, w2, b2, *, stride=2, pool=2):
    """x: (B, L, Cin) -> (B, L2p, C2), matching Conv1d/MaxPool1d semantics."""
    B, L, Cin = x.shape
    K, _, C1 = w1.shape
    _, _, C2 = w2.shape
    pad = K // 2
    Lp = L + 2 * pad
    Lc1 = Lp - K + 1
    Lout1 = (L + 2 * pad - K) // stride + 1
    # TODO(synk): non pool-divisible lengths (PyTorch floors); not needed here.
    assert Lout1 % pool == 0
    L1p = Lout1 // pool
    Lc2 = L1p + 2 * pad - K + 1
    Lout2 = (L1p + 2 * pad - K) // stride + 1
    assert Lout2 % pool == 0
    L2p = Lout2 // pool

    x_pad = jnp.pad(x, ((0, 0), (pad, pad), (0, 0)))

    kernel = functools.partial(_conv_stack_kernel, K=K, stride=stride, pool=pool,
                               Lc1=Lc1, L1p=L1p, Lc2=Lc2, L2p=L2p)
    return pl.pallas_call(
        kernel,
        out_shape=jax.ShapeDtypeStruct((B, L2p, C2), jnp.float32),
        grid_spec=pltpu.PrefetchScalarGridSpec(
            num_scalar_prefetch=0,
            grid=(B,),
            in_specs=[
                pl.BlockSpec((1, Lp, Cin), lambda b: (b, 0, 0)),
                pl.BlockSpec((K, Cin, C1), lambda b: (0, 0, 0)),
                pl.BlockSpec((1, C1), lambda b: (0, 0)),
                pl.BlockSpec((K, C1, C2), lambda b: (0, 0, 0)),
                pl.BlockSpec((1, C2), lambda b: (0, 0)),
            ],
            out_specs=pl.BlockSpec((1, L2p, C2), lambda b: (b, 0, 0)),
        ),
        compiler_params=pltpu.CompilerParams(dimension_semantics=("parallel",)),
    )(x_pad, w1, b1, w2, b2)


# --------------------------- fused transformer layer kernel ------------------

def _tf_layer_kernel(x_ref, wqkv_ref, bqkv_ref, wo_ref, bo_ref,
                     ln1g_ref, ln1b_ref, fw1_ref, fb1_ref, fw2_ref, fb2_ref,
                     ln2g_ref, ln2b_ref, o_ref, *, nhead, eps):
    """One post-norm nn.TransformerEncoderLayer for one batch element."""
    f32 = jnp.float32
    bf16 = jnp.bfloat16
    S, D = x_ref.shape[1], x_ref.shape[2]
    Dh = D // nhead
    scale = 1.0 / math.sqrt(Dh)

    x = x_ref[0].astype(f32)                                           # (S, D)

    # ---- QKV projection (bf16 MXU operands, f32 accumulation) ----
    qkv = jnp.dot(x.astype(bf16), wqkv_ref[...],
                  preferred_element_type=f32) + bqkv_ref[...]          # (S, 3D)
    q = qkv[:, 0:D]
    k = qkv[:, D:2 * D]
    v = qkv[:, 2 * D:3 * D]
    kt = k.T                                                           # (D, S)

    # ---- multi-head attention; heads separated with lane masks so every
    #      operand stays 128 lanes wide (no 32-wide slices / transposes) ----
    lane = jax.lax.broadcasted_iota(jnp.int32, (1, D), 1)
    o = jnp.zeros((S, D), f32)
    for h in range(nhead):
        m = jnp.logical_and(lane >= h * Dh, lane < (h + 1) * Dh)
        qh = jnp.where(m, q, 0.0)
        s = jnp.dot(qh, kt, preferred_element_type=f32) * scale        # (S, S)
        s = s - jnp.max(s, axis=-1, keepdims=True)
        p = jnp.exp(s)
        p = p * pl.reciprocal(jnp.sum(p, axis=-1, keepdims=True), approx=True)
        o = o + jnp.dot(p, jnp.where(m, v, 0.0), preferred_element_type=f32)

    attn = jnp.dot(o.astype(bf16), wo_ref[...],
                   preferred_element_type=f32) + bo_ref[...]
    x1 = _layernorm(x + attn, ln1g_ref[...], ln1b_ref[...], eps)

    # ---- feed-forward (ReLU) ----
    hid = jnp.dot(x1.astype(bf16), fw1_ref[...],
                  preferred_element_type=f32) + fb1_ref[...]
    hid = jnp.maximum(hid, 0.0)
    ff = jnp.dot(hid.astype(bf16), fw2_ref[...],
                 preferred_element_type=f32) + fb2_ref[...]
    x2 = _layernorm(x1 + ff, ln2g_ref[...], ln2b_ref[...], eps)

    o_ref[...] = x2.astype(o_ref.dtype)[None, :, :]


def transformer_layer(x, lp, *, nhead, eps=1e-5):
    B, S, D = x.shape
    F = lp["lin1_w"].shape[1]
    kernel = functools.partial(_tf_layer_kernel, nhead=nhead, eps=eps)
    return pl.pallas_call(
        kernel,
        out_shape=jax.ShapeDtypeStruct((B, S, D), jnp.float32),
        grid_spec=pltpu.PrefetchScalarGridSpec(
            num_scalar_prefetch=0,
            grid=(B,),
            in_specs=[
                pl.BlockSpec((1, S, D), lambda b: (b, 0, 0)),
                pl.BlockSpec((D, 3 * D), lambda b: (0, 0)),
                pl.BlockSpec((1, 3 * D), lambda b: (0, 0)),
                pl.BlockSpec((D, D), lambda b: (0, 0)),
                pl.BlockSpec((1, D), lambda b: (0, 0)),
                pl.BlockSpec((1, D), lambda b: (0, 0)),
                pl.BlockSpec((1, D), lambda b: (0, 0)),
                pl.BlockSpec((D, F), lambda b: (0, 0)),
                pl.BlockSpec((1, F), lambda b: (0, 0)),
                pl.BlockSpec((F, D), lambda b: (0, 0)),
                pl.BlockSpec((1, D), lambda b: (0, 0)),
                pl.BlockSpec((1, D), lambda b: (0, 0)),
                pl.BlockSpec((1, D), lambda b: (0, 0)),
            ],
            out_specs=pl.BlockSpec((1, S, D), lambda b: (b, 0, 0)),
        ),
        compiler_params=pltpu.CompilerParams(dimension_semantics=("parallel",)),
    )(x, lp["in_proj_w"], lp["in_proj_b"], lp["out_proj_w"], lp["out_proj_b"],
      lp["ln1_g"], lp["ln1_b"], lp["lin1_w"], lp["lin1_b"],
      lp["lin2_w"], lp["lin2_b"], lp["ln2_g"], lp["ln2_b"])


# --------------------------- module forward ----------------------------------

def multi_stroke_encoder_forward(stroke, kparams, *, mode="tf", nhead=4,
                                 stride=2, pool_stride=2):
    """stroke: (B, L, input_dim) -> (B, S, 2*num_filters)."""
    x = conv_pool_stack(stroke, kparams["conv1_w"], kparams["conv1_b"],
                        kparams["conv2_w"], kparams["conv2_b"],
                        stride=stride, pool=pool_stride)
    if mode == "tf":
        for lp in kparams["tf_layers"]:
            x = transformer_layer(x, lp, nhead=nhead)
    elif mode == "rnn":
        # TODO(synk): GRU branch (sequential recurrence) not implemented as a Pallas kernel.
        raise NotImplementedError("mode='rnn' not implemented")
    else:
        assert mode == "neither"
    return x


# --------------------------- parameters --------------------------------------

def init_params(key, *, input_dim=128, num_filters=64, kernel_size=3,
                num_layers=3, dim_feedforward=2048):
    """PyTorch-layout parameters (used by the pure-JAX reference)."""
    d_model = num_filters * 2
    keys = jax.random.split(key, 4 + num_layers)

    def nrm(k, shape, scale=0.05):
        return scale * jax.random.normal(k, shape, dtype=jnp.float32)

    params = {
        "conv1_w": nrm(keys[0], (num_filters, input_dim, kernel_size)),
        "conv1_b": nrm(keys[1], (num_filters,)),
        "conv2_w": nrm(keys[2], (num_filters * 2, num_filters, kernel_size)),
        "conv2_b": nrm(keys[3], (num_filters * 2,)),
        "tf_layers": [],
    }
    for i in range(num_layers):
        lk = jax.random.split(keys[4 + i], 8)
        params["tf_layers"].append({
            "in_proj_w": nrm(lk[0], (3 * d_model, d_model)),
            "in_proj_b": nrm(lk[1], (3 * d_model,)),
            "out_proj_w": nrm(lk[2], (d_model, d_model)),
            "out_proj_b": nrm(lk[3], (d_model,)),
            "lin1_w": nrm(lk[4], (dim_feedforward, d_model)),
            "lin1_b": nrm(lk[5], (dim_feedforward,)),
            "lin2_w": nrm(lk[6], (d_model, dim_feedforward)),
            "lin2_b": nrm(lk[7], (d_model,)),
            "ln1_g": jnp.ones((d_model,), jnp.float32),
            "ln1_b": jnp.zeros((d_model,), jnp.float32),
            "ln2_g": jnp.ones((d_model,), jnp.float32),
            "ln2_b": jnp.zeros((d_model,), jnp.float32),
        })
    return params


def prepare_kernel_params(params):
    """One-time layout conversion: (K,N) matmul weights in bf16, biases (1,N) f32.

    Done once outside the forward pass so no .T / .reshape / .astype glue is
    emitted per step.
    """
    f32, bf16 = jnp.float32, jnp.bfloat16
    kp = {
        "conv1_w": jnp.transpose(params["conv1_w"], (2, 1, 0)).astype(bf16),
        "conv1_b": params["conv1_b"].reshape(1, -1).astype(f32),
        "conv2_w": jnp.transpose(params["conv2_w"], (2, 1, 0)).astype(bf16),
        "conv2_b": params["conv2_b"].reshape(1, -1).astype(f32),
        "tf_layers": [],
    }
    for lp in params["tf_layers"]:
        kp["tf_layers"].append({
            "in_proj_w": lp["in_proj_w"].T.astype(bf16),
            "in_proj_b": lp["in_proj_b"].reshape(1, -1).astype(f32),
            "out_proj_w": lp["out_proj_w"].T.astype(bf16),
            "out_proj_b": lp["out_proj_b"].reshape(1, -1).astype(f32),
            "lin1_w": lp["lin1_w"].T.astype(bf16),
            "lin1_b": lp["lin1_b"].reshape(1, -1).astype(f32),
            "lin2_w": lp["lin2_w"].T.astype(bf16),
            "lin2_b": lp["lin2_b"].reshape(1, -1).astype(f32),
            "ln1_g": lp["ln1_g"].reshape(1, -1).astype(f32),
            "ln1_b": lp["ln1_b"].reshape(1, -1).astype(f32),
            "ln2_g": lp["ln2_g"].reshape(1, -1).astype(f32),
            "ln2_b": lp["ln2_b"].reshape(1, -1).astype(f32),
        })
    return kp


# --------------------------- pure-JAX f32 reference ---------------------------

def _ref_forward(stroke, params, *, nhead=4, stride=2, padding=1, pool=2, eps=1e-5):
    def conv(x, w, b):
        y = jax.lax.conv_general_dilated(
            x, jnp.transpose(w, (2, 1, 0)),
            window_strides=(stride,), padding=[(padding, padding)],
            dimension_numbers=("NWC", "WIO", "NWC"))
        return y + b

    def mp(x):
        L = x.shape[1] // pool * pool
        x = x[:, :L, :]
        out = x[:, 0::pool, :]
        for i in range(1, pool):
            out = jnp.maximum(out, x[:, i::pool, :])
        return out

    def ln(x, g, b):
        m = jnp.mean(x, axis=-1, keepdims=True)
        v = jnp.mean((x - m) ** 2, axis=-1, keepdims=True)
        return (x - m) / jnp.sqrt(v + eps) * g + b

    x = mp(conv(stroke, params["conv1_w"], params["conv1_b"]))
    x = mp(conv(x, params["conv2_w"], params["conv2_b"]))
    B, S, D = x.shape
    H = nhead
    Dh = D // H
    for p in params["tf_layers"]:
        qkv = x @ p["in_proj_w"].T + p["in_proj_b"]
        q, k, v = jnp.split(qkv, 3, axis=-1)

        def heads(t):
            return t.reshape(B, S, H, Dh).transpose(0, 2, 1, 3)

        q, k, v = heads(q), heads(k), heads(v)
        s = jnp.einsum("bhqd,bhkd->bhqk", q, k) / math.sqrt(Dh)
        a = jax.nn.softmax(s, axis=-1)
        o = jnp.einsum("bhqk,bhkd->bhqd", a, v).transpose(0, 2, 1, 3).reshape(B, S, D)
        attn = o @ p["out_proj_w"].T + p["out_proj_b"]
        x = ln(x + attn, p["ln1_g"], p["ln1_b"])
        h = jnp.maximum(x @ p["lin1_w"].T + p["lin1_b"], 0.0)
        ff = h @ p["lin2_w"].T + p["lin2_b"]
        x = ln(x + ff, p["ln2_g"], p["ln2_b"])
    return x


# --------------------------- main ---------------------------------------------

if __name__ == "__main__":
    key = jax.random.PRNGKey(0)
    pkey, xkey = jax.random.split(key)

    B, L, input_dim = 2, 64, 128          # consistent with the module defaults
    num_filters, nhead, num_layers = 64, 4, 3
    d_model = num_filters * 2             # 128

    params = init_params(pkey, input_dim=input_dim, num_filters=num_filters,
                         num_layers=num_layers)
    kparams = prepare_kernel_params(params)
    stroke = jax.random.normal(xkey, (B, L, input_dim), dtype=jnp.float32)

    fwd = jax.jit(lambda s, p: multi_stroke_encoder_forward(s, p, mode="tf",
                                                            nhead=nhead))
    out = jax.block_until_ready(fwd(stroke, kparams))

    # L=64 -> conv1(s=2): 32 -> pool: 16 -> conv2(s=2): 8 -> pool: 4
    assert out.shape == (B, 4, d_model), out.shape
    assert bool(jnp.all(jnp.isfinite(out)))

    ref = jax.block_until_ready(_ref_forward(stroke, params, nhead=nhead))
    max_err = float(jnp.max(jnp.abs(out - ref)))
    mean_err = float(jnp.mean(jnp.abs(out - ref)))
    # bf16 MXU operands (f32 accumulation) + approx reciprocal -> looser
    # tolerance than the pure-f32 variant, per review guidance.
    assert max_err < 2e-1, f"max err vs f32 reference: {max_err}"
    assert mean_err < 5e-2, f"mean err vs f32 reference: {mean_err}"

    print("KERNEL_OK")
</pallas_src>

<mosaic_0001>
module attributes {stable_mosaic.version = 11 : i64} {
  func.func @_tf_layer_kernel(%arg0: i32, %arg1: memref<1x4x128xf32, #tpu.memory_space<vmem>>, %arg2: memref<128x384xbf16, #tpu.memory_space<vmem>>, %arg3: memref<1x384xf32, #tpu.memory_space<vmem>>, %arg4: memref<128x128xbf16, #tpu.memory_space<vmem>>, %arg5: memref<1x128xf32, #tpu.memory_space<vmem>>, %arg6: memref<1x128xf32, #tpu.memory_space<vmem>>, %arg7: memref<1x128xf32, #tpu.memory_space<vmem>>, %arg8: memref<128x2048xbf16, #tpu.memory_space<vmem>>, %arg9: memref<1x2048xf32, #tpu.memory_space<vmem>>, %arg10: memref<2048x128xbf16, #tpu.memory_space<vmem>>, %arg11: memref<1x128xf32, #tpu.memory_space<vmem>>, %arg12: memref<1x128xf32, #tpu.memory_space<vmem>>, %arg13: memref<1x128xf32, #tpu.memory_space<vmem>>, %arg14: memref<1x4x128xf32, #tpu.memory_space<vmem>>) attributes {dimension_semantics = [#tpu.dimension_semantics<parallel>], iteration_bounds = array<i64: 2>, scalar_prefetch = 0 : i64, scratch_operands = 0 : i64, tpu.core_type = #tpu.core_type<tc>, window_params = [{transform_indices = @transform_0, window_bounds = array<i64: 1, 4, 128>}, {pipeline_mode = #tpu.pipeline_mode<synchronous>, transform_indices = @transform_1, window_bounds = array<i64: 128, 384>}, {pipeline_mode = #tpu.pipeline_mode<synchronous>, transform_indices = @transform_2, window_bounds = array<i64: 1, 384>}, {pipeline_mode = #tpu.pipeline_mode<synchronous>, transform_indices = @transform_3, window_bounds = array<i64: 128, 128>}, {pipeline_mode = #tpu.pipeline_mode<synchronous>, transform_indices = @transform_4, window_bounds = array<i64: 1, 128>}, {pipeline_mode = #tpu.pipeline_mode<synchronous>, transform_indices = @transform_5, window_bounds = array<i64: 1, 128>}, {pipeline_mode = #tpu.pipeline_mode<synchronous>, transform_indices = @transform_6, window_bounds = array<i64: 1, 128>}, {pipeline_mode = #tpu.pipeline_mode<synchronous>, transform_indices = @transform_7, window_bounds = array<i64: 128, 2048>}, {pipeline_mode = #tpu.pipeline_mode<synchronous>, transform_indices = @transform_8, window_bounds = array<i64: 1, 2048>}, {pipeline_mode = #tpu.pipeline_mode<synchronous>, transform_indices = @transform_9, window_bounds = array<i64: 2048, 128>}, {pipeline_mode = #tpu.pipeline_mode<synchronous>, transform_indices = @transform_10, window_bounds = array<i64: 1, 128>}, {pipeline_mode = #tpu.pipeline_mode<synchronous>, transform_indices = @transform_11, window_bounds = array<i64: 1, 128>}, {pipeline_mode = #tpu.pipeline_mode<synchronous>, transform_indices = @transform_12, window_bounds = array<i64: 1, 128>}, {transform_indices = @transform_13, window_bounds = array<i64: 1, 4, 128>}]} {
    %c0 = arith.constant 0 : index
    %c0_0 = arith.constant 0 : index
    %c0_1 = arith.constant 0 : index
    %0 = vector.load %arg1[%c0, %c0_0, %c0_1] : memref<1x4x128xf32, #tpu.memory_space<vmem>>, vector<1x4x128xf32>
    %1 = vector.shape_cast %0 : vector<1x4x128xf32> to vector<4x128xf32>
    %2 = arith.truncf %1 : vector<4x128xf32> to vector<4x128xbf16>
    %c0_2 = arith.constant 0 : index
    %c0_3 = arith.constant 0 : index
    %3 = vector.load %arg2[%c0_2, %c0_3] : memref<128x384xbf16, #tpu.memory_space<vmem>>, vector<128x384xbf16>
    %cst = arith.constant dense<0.000000e+00> : vector<4x384xf32>
    %4 = tpu.matmul %2, %3, %cst {dimension_numbers = #tpu.dot_dimension_numbers<[1], [0], [0], [1], [0, 0, 1, 1], [], []>} : vector<4x128xbf16>, vector<128x384xbf16>, vector<4x384xf32> -> vector<4x384xf32>
    %c0_4 = arith.constant 0 : index
    %c0_5 = arith.constant 0 : index
    %5 = vector.load %arg3[%c0_4, %c0_5] : memref<1x384xf32, #tpu.memory_space<vmem>>, vector<1x384xf32>
    %6 = vector.broadcast %5 : vector<1x384xf32> to vector<4x384xf32>
    %7 = arith.addf %4, %6 : vector<4x384xf32>
    %8 = vector.extract_strided_slice %7 {offsets = [0, 0], sizes = [4, 128], strides = [1, 1]} : vector<4x384xf32> to vector<4x128xf32>
    %9 = vector.extract_strided_slice %7 {offsets = [0, 128], sizes = [4, 128], strides = [1, 1]} : vector<4x384xf32> to vector<4x128xf32>
    %10 = vector.extract_strided_slice %7 {offsets = [0, 256], sizes = [4, 128], strides = [1, 1]} : vector<4x384xf32> to vector<4x128xf32>
    %11 = tpu.transpose %9, [1, 0] : vector<4x128xf32> -> vector<128x4xf32>
    %12 = tpu.iota {dimensions = array<i32: 1>} : vector<1x128xi32>
    %cst_6 = arith.constant 0.000000e+00 : f32
    %13 = vector.broadcast %cst_6 : f32 to vector<4x128xf32>
    %c0_i32 = arith.constant 0 : i32
    %14 = vector.broadcast %c0_i32 : i32 to vector<1x128xi32>
    %15 = arith.cmpi sge, %12, %14 : vector<1x128xi32>
    %c32_i32 = arith.constant 32 : i32
    %16 = vector.broadcast %c32_i32 : i32 to vector<1x128xi32>
    %17 = arith.cmpi slt, %12, %16 : vector<1x128xi32>
    %18 = arith.andi %15, %17 : vector<1x128xi1>
    %cst_7 = arith.constant 0.000000e+00 : f32
    %19 = vector.shape_cast %18 : vector<1x128xi1> to vector<1x128xi1>
    %20 = vector.broadcast %19 : vector<1x128xi1> to vector<4x128xi1>
    %21 = vector.broadcast %cst_7 : f32 to vector<4x128xf32>
    %22 = arith.select %20, %8, %21 : vector<4x128xi1>, vector<4x128xf32>
    %cst_8 = arith.constant dense<0.000000e+00> : vector<4x4xf32>
    %23 = tpu.matmul %22, %11, %cst_8 {dimension_numbers = #tpu.dot_dimension_numbers<[1], [0], [0], [1], [0, 0, 1, 1], [], []>} : vector<4x128xf32>, vector<128x4xf32>, vector<4x4xf32> -> vector<4x4xf32>
    %cst_9 = arith.constant 0.176776692 : f32
    %24 = vector.broadcast %cst_9 : f32 to vector<4x4xf32>
    %25 = arith.mulf %23, %24 : vector<4x4xf32>
    %cst_10 = arith.constant dense<0xFF800000> : vector<4xf32>
    %26 = vector.multi_reduction <maximumf>, %25, %cst_10 [1] : vector<4x4xf32> to vector<4xf32>
    %27 = vector.shape_cast %26 : vector<4xf32> to vector<4x1xf32>
    %28 = vector.broadcast %27 : vector<4x1xf32> to vector<4x4xf32>
    %29 = arith.subf %25, %28 : vector<4x4xf32>
    %30 = math.exp %29 : vector<4x4xf32>
    %cst_11 = arith.constant dense<0.000000e+00> : vector<4xf32>
    %31 = vector.multi_reduction <add>, %30, %cst_11 [1] : vector<4x4xf32> to vector<4xf32>
    %32 = vector.shape_cast %31 : vector<4xf32> to vector<4x1xf32>
    %33 = tpu.reciprocal %32 {approx = true} : vector<4x1xf32> -> vector<4x1xf32>
    %34 = vector.broadcast %33 : vector<4x1xf32> to vector<4x4xf32>
    %35 = arith.mulf %30, %34 : vector<4x4xf32>
    %cst_12 = arith.constant 0.000000e+00 : f32
    %36 = vector.shape_cast %18 : vector<1x128xi1> to vector<1x128xi1>
    %37 = vector.broadcast %36 : vector<1x128xi1> to vector<4x128xi1>
    %38 = vector.broadcast %cst_12 : f32 to vector<4x128xf32>
    %39 = arith.select %37, %10, %38 : vector<4x128xi1>, vector<4x128xf32>
    %cst_13 = arith.constant dense<0.000000e+00> : vector<4x128xf32>
    %40 = tpu.matmul %35, %39, %cst_13 {dimension_numbers = #tpu.dot_dimension_numbers<[1], [0], [0], [1], [0, 0, 1, 1], [], []>} : vector<4x4xf32>, vector<4x128xf32>, vector<4x128xf32> -> vector<4x128xf32>
    %41 = arith.addf %13, %40 : vector<4x128xf32>
    %c32_i32_14 = arith.constant 32 : i32
    %42 = vector.broadcast %c32_i32_14 : i32 to vector<1x128xi32>
    %43 = arith.cmpi sge, %12, %42 : vector<1x128xi32>
    %c64_i32 = arith.constant 64 : i32
    %44 = vector.broadcast %c64_i32 : i32 to vector<1x128xi32>
    %45 = arith.cmpi slt, %12, %44 : vector<1x128xi32>
    %46 = arith.andi %43, %45 : vector<1x128xi1>
    %cst_15 = arith.constant 0.000000e+00 : f32
    %47 = vector.shape_cast %46 : vector<1x128xi1> to vector<1x128xi1>
    %48 = vector.broadcast %47 : vector<1x128xi1> to vector<4x128xi1>
    %49 = vector.broadcast %cst_15 : f32 to vector<4x128xf32>
    %50 = arith.select %48, %8, %49 : vector<4x128xi1>, vector<4x128xf32>
    %cst_16 = arith.constant dense<0.000000e+00> : vector<4x4xf32>
    %51 = tpu.matmul %50, %11, %cst_16 {dimension_numbers = #tpu.dot_dimension_numbers<[1], [0], [0], [1], [0, 0, 1, 1], [], []>} : vector<4x128xf32>, vector<128x4xf32>, vector<4x4xf32> -> vector<4x4xf32>
    %cst_17 = arith.constant 0.176776692 : f32
    %52 = vector.broadcast %cst_17 : f32 to vector<4x4xf32>
    %53 = arith.mulf %51, %52 : vector<4x4xf32>
    %cst_18 = arith.constant dense<0xFF800000> : vector<4xf32>
    %54 = vector.multi_reduction <maximumf>, %53, %cst_18 [1] : vector<4x4xf32> to vector<4xf32>
    %55 = vector.shape_cast %54 : vector<4xf32> to vector<4x1xf32>
    %56 = vector.broadcast %55 : vector<4x1xf32> to vector<4x4xf32>
    %57 = arith.subf %53, %56 : vector<4x4xf32>
    %58 = math.exp %57 : vector<4x4xf32>
    %cst_19 = arith.constant dense<0.000000e+00> : vector<4xf32>
    %59 = vector.multi_reduction <add>, %58, %cst_19 [1] : vector<4x4xf32> to vector<4xf32>
    %60 = vector.shape_cast %59 : vector<4xf32> to vector<4x1xf32>
    %61 = tpu.reciprocal %60 {approx = true} : vector<4x1xf32> -> vector<4x1xf32>
    %62 = vector.broadcast %61 : vector<4x1xf32> to vector<4x4xf32>
    %63 = arith.mulf %58, %62 : vector<4x4xf32>
    %cst_20 = arith.constant 0.000000e+00 : f32
    %64 = vector.shape_cast %46 : vector<1x128xi1> to vector<1x128xi1>
    %65 = vector.broadcast %64 : vector<1x128xi1> to vector<4x128xi1>
    %66 = vector.broadcast %cst_20 : f32 to vector<4x128xf32>
    %67 = arith.select %65, %10, %66 : vector<4x128xi1>, vector<4x128xf32>
    %cst_21 = arith.constant dense<0.000000e+00> : vector<4x128xf32>
    %68 = tpu.matmul %63, %67, %cst_21 {dimension_numbers = #tpu.dot_dimension_numbers<[1], [0], [0], [1], [0, 0, 1, 1], [], []>} : vector<4x4xf32>, vector<4x128xf32>, vector<4x128xf32> -> vector<4x128xf32>
    %69 = arith.addf %41, %68 : vector<4x128xf32>
    %c64_i32_22 = arith.constant 64 : i32
    %70 = vector.broadcast %c64_i32_22 : i32 to vector<1x128xi32>
    %71 = arith.cmpi sge, %12, %70 : vector<1x128xi32>
    %c96_i32 = arith.constant 96 : i32
    %72 = vector.broadcast %c96_i32 : i32 to vector<1x128xi32>
    %73 = arith.cmpi slt, %12, %72 : vector<1x128xi32>
    %74 = arith.andi %71, %73 : vector<1x128xi1>
    %cst_23 = arith.constant 0.000000e+00 : f32
    %75 = vector.shape_cast %74 : vector<1x128xi1> to vector<1x128xi1>
    %76 = vector.broadcast %75 : vector<1x128xi1> to vector<4x128xi1>
    %77 = vector.broadcast %cst_23 : f32 to vector<4x128xf32>
    %78 = arith.select %76, %8, %77 : vector<4x128xi1>, vector<4x128xf32>
    %cst_24 = arith.constant dense<0.000000e+00> : vector<4x4xf32>
    %79 = tpu.matmul %78, %11, %cst_24 {dimension_numbers = #tpu.dot_dimension_numbers<[1], [0], [0], [1], [0, 0, 1, 1], [], []>} : vector<4x128xf32>, vector<128x4xf32>, vector<4x4xf32> -> vector<4x4xf32>
    %cst_25 = arith.constant 0.176776692 : f32
    %80 = vector.broadcast %cst_25 : f32 to vector<4x4xf32>
    %81 = arith.mulf %79, %80 : vector<4x4xf32>
    %cst_26 = arith.constant dense<0xFF800000> : vector<4xf32>
    %82 = vector.multi_reduction <maximumf>, %81, %cst_26 [1] : vector<4x4xf32> to vector<4xf32>
    %83 = vector.shape_cast %82 : vector<4xf32> to vector<4x1xf32>
    %84 = vector.broadcast %83 : vector<4x1xf32> to vector<4x4xf32>
    %85 = arith.subf %81, %84 : vector<4x4xf32>
    %86 = math.exp %85 : vector<4x4xf32>
    %cst_27 = arith.constant dense<0.000000e+00> : vector<4xf32>
    %87 = vector.multi_reduction <add>, %86, %cst_27 [1] : vector<4x4xf32> to vector<4xf32>
    %88 = vector.shape_cast %87 : vector<4xf32> to vector<4x1xf32>
    %89 = tpu.reciprocal %88 {approx = true} : vector<4x1xf32> -> vector<4x1xf32>
    %90 = vector.broadcast %89 : vector<4x1xf32> to vector<4x4xf32>
    %91 = arith.mulf %86, %90 : vector<4x4xf32>
    %cst_28 = arith.constant 0.000000e+00 : f32
    %92 = vector.shape_cast %74 : vector<1x128xi1> to vector<1x128xi1>
    %93 = vector.broadcast %92 : vector<1x128xi1> to vector<4x128xi1>
    %94 = vector.broadcast %cst_28 : f32 to vector<4x128xf32>
    %95 = arith.select %93, %10, %94 : vector<4x128xi1>, vector<4x128xf32>
    %cst_29 = arith.constant dense<0.000000e+00> : vector<4x128xf32>
    %96 = tpu.matmul %91, %95, %cst_29 {dimension_numbers = #tpu.dot_dimension_numbers<[1], [0], [0], [1], [0, 0, 1, 1], [], []>} : vector<4x4xf32>, vector<4x128xf32>, vector<4x128xf32> -> vector<4x128xf32>
    %97 = arith.addf %69, %96 : vector<4x128xf32>
    %c96_i32_30 = arith.constant 96 : i32
    %98 = vector.broadcast %c96_i32_30 : i32 to vector<1x128xi32>
    %99 = arith.cmpi sge, %12, %98 : vector<1x128xi32>
    %c128_i32 = arith.constant 128 : i32
    %100 = vector.broadcast %c128_i32 : i32 to vector<1x128xi32>
    %101 = arith.cmpi slt, %12, %100 : vector<1x128xi32>
    %102 = arith.andi %99, %101 : vector<1x128xi1>
    %cst_31 = arith.constant 0.000000e+00 : f32
    %103 = vector.shape_cast %102 : vector<1x128xi1> to vector<1x128xi1>
    %104 = vector.broadcast %103 : vector<1x128xi1> to vector<4x128xi1>
    %105 = vector.broadcast %cst_31 : f32 to vector<4x128xf32>
    %106 = arith.select %104, %8, %105 : vector<4x128xi1>, vector<4x128xf32>
    %cst_32 = arith.constant dense<0.000000e+00> : vector<4x4xf32>
    %107 = tpu.matmul %106, %11, %cst_32 {dimension_numbers = #tpu.dot_dimension_numbers<[1], [0], [0], [1], [0, 0, 1, 1], [], []>} : vector<4x128xf32>, vector<128x4xf32>, vector<4x4xf32> -> vector<4x4xf32>
    %cst_33 = arith.constant 0.176776692 : f32
    %108 = vector.broadcast %cst_33 : f32 to vector<4x4xf32>
    %109 = arith.mulf %107, %108 : vector<4x4xf32>
    %cst_34 = arith.constant dense<0xFF800000> : vector<4xf32>
    %110 = vector.multi_reduction <maximumf>, %109, %cst_34 [1] : vector<4x4xf32> to vector<4xf32>
    %111 = vector.shape_cast %110 : vector<4xf32> to vector<4x1xf32>
    %112 = vector.broadcast %111 : vector<4x1xf32> to vector<4x4xf32>
    %113 = arith.subf %109, %112 : vector<4x4xf32>
    %114 = math.exp %113 : vector<4x4xf32>
    %cst_35 = arith.constant dense<0.000000e+00> : vector<4xf32>
    %115 = vector.multi_reduction <add>, %114, %cst_35 [1] : vector<4x4xf32> to vector<4xf32>
    %116 = vector.shape_cast %115 : vector<4xf32> to vector<4x1xf32>
    %117 = tpu.reciprocal %116 {approx = true} : vector<4x1xf32> -> vector<4x1xf32>
    %118 = vector.broadcast %117 : vector<4x1xf32> to vector<4x4xf32>
    %119 = arith.mulf %114, %118 : vector<4x4xf32>
    %cst_36 = arith.constant 0.000000e+00 : f32
    %120 = vector.shape_cast %102 : vector<1x128xi1> to vector<1x128xi1>
    %121 = vector.broadcast %120 : vector<1x128xi1> to vector<4x128xi1>
    %122 = vector.broadcast %cst_36 : f32 to vector<4x128xf32>
    %123 = arith.select %121, %10, %122 : vector<4x128xi1>, vector<4x128xf32>
    %cst_37 = arith.constant dense<0.000000e+00> : vector<4x128xf32>
    %124 = tpu.matmul %119, %123, %cst_37 {dimension_numbers = #tpu.dot_dimension_numbers<[1], [0], [0], [1], [0, 0, 1, 1], [], []>} : vector<4x4xf32>, vector<4x128xf32>, vector<4x128xf32> -> vector<4x128xf32>
    %125 = arith.addf %97, %124 : vector<4x128xf32>
    %126 = arith.truncf %125 : vector<4x128xf32> to vector<4x128xbf16>
    %c0_38 = arith.constant 0 : index
    %c0_39 = arith.constant 0 : index
    %127 = vector.load %arg4[%c0_38, %c0_39] : memref<128x128xbf16, #tpu.memory_space<vmem>>, vector<128x128xbf16>
    %cst_40 = arith.constant dense<0.000000e+00> : vector<4x128xf32>
    %128 = tpu.matmul %126, %127, %cst_40 {dimension_numbers = #tpu.dot_dimension_numbers<[1], [0], [0], [1], [0, 0, 1, 1], [], []>} : vector<4x128xbf16>, vector<128x128xbf16>, vector<4x128xf32> -> vector<4x128xf32>
    %c0_41 = arith.constant 0 : index
    %c0_42 = arith.constant 0 : index
    %129 = vector.load %arg5[%c0_41, %c0_42] : memref<1x128xf32, #tpu.memory_space<vmem>>, vector<1x128xf32>
    %130 = vector.broadcast %129 : vector<1x128xf32> to vector<4x128xf32>
    %131 = arith.addf %128, %130 : vector<4x128xf32>
    %132 = arith.addf %1, %131 : vector<4x128xf32>
    %c0_43 = arith.constant 0 : index
    %c0_44 = arith.constant 0 : index
    %133 = vector.load %arg6[%c0_43, %c0_44] : memref<1x128xf32, #tpu.memory_space<vmem>>, vector<1x128xf32>
    %c0_45 = arith.constant 0 : index
    %c0_46 = arith.constant 0 : index
    %134 = vector.load %arg7[%c0_45, %c0_46] : memref<1x128xf32, #tpu.memory_space<vmem>>, vector<1x128xf32>
    %cst_47 = arith.constant dense<0.000000e+00> : vector<4xf32>
    %135 = vector.multi_reduction <add>, %132, %cst_47 [1] : vector<4x128xf32> to vector<4xf32>
    %136 = vector.shape_cast %135 : vector<4xf32> to vector<4x1xf32>
    %cst_48 = arith.constant 1.280000e+02 : f32
    %137 = vector.broadcast %cst_48 : f32 to vector<4x1xf32>
    %138 = arith.divf %136, %137 : vector<4x1xf32>
    %139 = vector.broadcast %138 : vector<4x1xf32> to vector<4x128xf32>
    %140 = arith.subf %132, %139 : vector<4x128xf32>
    %141 = arith.mulf %140, %140 : vector<4x128xf32>
    %cst_49 = arith.constant dense<0.000000e+00> : vector<4xf32>
    %142 = vector.multi_reduction <add>, %141, %cst_49 [1] : vector<4x128xf32> to vector<4xf32>
    %143 = vector.shape_cast %142 : vector<4xf32> to vector<4x1xf32>
    %cst_50 = arith.constant 1.280000e+02 : f32
    %144 = vector.broadcast %cst_50 : f32 to vector<4x1xf32>
    %145 = arith.divf %143, %144 : vector<4x1xf32>
    %cst_51 = arith.constant 9.99999974E-6 : f32
    %146 = vector.broadcast %cst_51 : f32 to vector<4x1xf32>
    %147 = arith.addf %145, %146 : vector<4x1xf32>
    %148 = math.rsqrt %147 : vector<4x1xf32>
    %149 = vector.broadcast %148 : vector<4x1xf32> to vector<4x128xf32>
    %150 = arith.mulf %140, %149 : vector<4x128xf32>
    %151 = vector.broadcast %133 : vector<1x128xf32> to vector<4x128xf32>
    %152 = arith.mulf %150, %151 : vector<4x128xf32>
    %153 = vector.broadcast %134 : vector<1x128xf32> to vector<4x128xf32>
    %154 = arith.addf %152, %153 : vector<4x128xf32>
    %155 = arith.truncf %154 : vector<4x128xf32> to vector<4x128xbf16>
    %c0_52 = arith.constant 0 : index
    %c0_53 = arith.constant 0 : index
    %156 = vector.load %arg8[%c0_52, %c0_53] : memref<128x2048xbf16, #tpu.memory_space<vmem>>, vector<128x2048xbf16>
    %cst_54 = arith.constant dense<0.000000e+00> : vector<4x2048xf32>
    %157 = tpu.matmul %155, %156, %cst_54 {dimension_numbers = #tpu.dot_dimension_numbers<[1], [0], [0], [1], [0, 0, 1, 1], [], []>} : vector<4x128xbf16>, vector<128x2048xbf16>, vector<4x2048xf32> -> vector<4x2048xf32>
    %c0_55 = arith.constant 0 : index
    %c0_56 = arith.constant 0 : index
    %158 = vector.load %arg9[%c0_55, %c0_56] : memref<1x2048xf32, #tpu.memory_space<vmem>>, vector<1x2048xf32>
    %159 = vector.broadcast %158 : vector<1x2048xf32> to vector<4x2048xf32>
    %160 = arith.addf %157, %159 : vector<4x2048xf32>
    %cst_57 = arith.constant 0.000000e+00 : f32
    %161 = vector.broadcast %cst_57 : f32 to vector<4x2048xf32>
    %162 = arith.maximumf %160, %161 : vector<4x2048xf32>
    %163 = arith.truncf %162 : vector<4x2048xf32> to vector<4x2048xbf16>
    %c0_58 = arith.constant 0 : index
    %c0_59 = arith.constant 0 : index
    %164 = vector.load %arg10[%c0_58, %c0_59] : memref<2048x128xbf16, #tpu.memory_space<vmem>>, vector<2048x128xbf16>
    %cst_60 = arith.constant dense<0.000000e+00> : vector<4x128xf32>
    %165 = tpu.matmul %163, %164, %cst_60 {dimension_numbers = #tpu.dot_dimension_numbers<[1], [0], [0], [1], [0, 0, 1, 1], [], []>} : vector<4x2048xbf16>, vector<2048x128xbf16>, vector<4x128xf32> -> vector<4x128xf32>
    %c0_61 = arith.constant 0 : index
    %c0_62 = arith.constant 0 : index
    %166 = vector.load %arg11[%c0_61, %c0_62] : memref<1x128xf32, #tpu.memory_space<vmem>>, vector<1x128xf32>
    %167 = vector.broadcast %166 : vector<1x128xf32> to vector<4x128xf32>
    %168 = arith.addf %165, %167 : vector<4x128xf32>
    %169 = arith.addf %154, %168 : vector<4x128xf32>
    %c0_63 = arith.constant 0 : index
    %c0_64 = arith.constant 0 : index
    %170 = vector.load %arg12[%c0_63, %c0_64] : memref<1x128xf32, #tpu.memory_space<vmem>>, vector<1x128xf32>
    %c0_65 = arith.constant 0 : index
    %c0_66 = arith.constant 0 : index
    %171 = vector.load %arg13[%c0_65, %c0_66] : memref<1x128xf32, #tpu.memory_space<vmem>>, vector<1x128xf32>
    %cst_67 = arith.constant dense<0.000000e+00> : vector<4xf32>
    %172 = vector.multi_reduction <add>, %169, %cst_67 [1] : vector<4x128xf32> to vector<4xf32>
    %173 = vector.shape_cast %172 : vector<4xf32> to vector<4x1xf32>
    %cst_68 = arith.constant 1.280000e+02 : f32
    %174 = vector.broadcast %cst_68 : f32 to vector<4x1xf32>
    %175 = arith.divf %173, %174 : vector<4x1xf32>
    %176 = vector.broadcast %175 : vector<4x1xf32> to vector<4x128xf32>
    %177 = arith.subf %169, %176 : vector<4x128xf32>
    %178 = arith.mulf %177, %177 : vector<4x128xf32>
    %cst_69 = arith.constant dense<0.000000e+00> : vector<4xf32>
    %179 = vector.multi_reduction <add>, %178, %cst_69 [1] : vector<4x128xf32> to vector<4xf32>
    %180 = vector.shape_cast %179 : vector<4xf32> to vector<4x1xf32>
    %cst_70 = arith.constant 1.280000e+02 : f32
    %181 = vector.broadcast %cst_70 : f32 to vector<4x1xf32>
    %182 = arith.divf %180, %181 : vector<4x1xf32>
    %cst_71 = arith.constant 9.99999974E-6 : f32
    %183 = vector.broadcast %cst_71 : f32 to vector<4x1xf32>
    %184 = arith.addf %182, %183 : vector<4x1xf32>
    %185 = math.rsqrt %184 : vector<4x1xf32>
    %186 = vector.broadcast %185 : vector<4x1xf32> to vector<4x128xf32>
    %187 = arith.mulf %177, %186 : vector<4x128xf32>
    %188 = vector.broadcast %170 : vector<1x128xf32> to vector<4x128xf32>
    %189 = arith.mulf %187, %188 : vector<4x128xf32>
    %190 = vector.broadcast %171 : vector<1x128xf32> to vector<4x128xf32>
    %191 = arith.addf %189, %190 : vector<4x128xf32>
    %192 = vector.shape_cast %191 : vector<4x128xf32> to vector<1x4x128xf32>
    %c0_72 = arith.constant 0 : index
    %c0_73 = arith.constant 0 : index
    %c0_74 = arith.constant 0 : index
    %193 = vector.load %arg14[%c0_72, %c0_73, %c0_74] : memref<1x4x128xf32, #tpu.memory_space<vmem>>, vector<1x4x128xf32>
    tpu.vector_store %arg14[%c0_72, %c0_73, %c0_74], %192 {strides = array<i32>} : memref<1x4x128xf32, #tpu.memory_space<vmem>>, vector<1x4x128xf32>,
    return
  }
  func.func @transform_0(%arg0: i32) -> (i32, i32, i32) {
    %c0_i32 = arith.constant 0 : i32
    %c0_i32_0 = arith.constant 0 : i32
    %c0_i32_1 = arith.constant 0 : i32
    return %arg0, %c0_i32, %c0_i32_0 : i32, i32, i32
  }
  func.func @transform_1(%arg0: i32) -> (i32, i32) {
    %c0_i32 = arith.constant 0 : i32
    %c0_i32_0 = arith.constant 0 : i32
    %c0_i32_1 = arith.constant 0 : i32
    return %c0_i32, %c0_i32_0 : i32, i32
  }
  func.func @transform_2(%arg0: i32) -> (i32, i32) {
    %c0_i32 = arith.constant 0 : i32
    %c0_i32_0 = arith.constant 0 : i32
    %c0_i32_1 = arith.constant 0 : i32
    return %c0_i32, %c0_i32_0 : i32, i32
  }
  func.func @transform_3(%arg0: i32) -> (i32, i32) {
    %c0_i32 = arith.constant 0 : i32
    %c0_i32_0 = arith.constant 0 : i32
    %c0_i32_1 = arith.constant 0 : i32
    return %c0_i32, %c0_i32_0 : i32, i32
  }
  func.func @transform_4(%arg0: i32) -> (i32, i32) {
    %c0_i32 = arith.constant 0 : i32
    %c0_i32_0 = arith.constant 0 : i32
    %c0_i32_1 = arith.constant 0 : i32
    return %c0_i32, %c0_i32_0 : i32, i32
  }
  func.func @transform_5(%arg0: i32) -> (i32, i32) {
    %c0_i32 = arith.constant 0 : i32
    %c0_i32_0 = arith.constant 0 : i32
    %c0_i32_1 = arith.constant 0 : i32
    return %c0_i32, %c0_i32_0 : i32, i32
  }
  func.func @transform_6(%arg0: i32) -> (i32, i32) {
    %c0_i32 = arith.constant 0 : i32
    %c0_i32_0 = arith.constant 0 : i32
    %c0_i32_1 = arith.constant 0 : i32
    return %c0_i32, %c0_i32_0 : i32, i32
  }
  func.func @transform_7(%arg0: i32) -> (i32, i32) {
    %c0_i32 = arith.constant 0 : i32
    %c0_i32_0 = arith.constant 0 : i32
    %c0_i32_1 = arith.constant 0 : i32
    return %c0_i32, %c0_i32_0 : i32, i32
  }
  func.func @transform_8(%arg0: i32) -> (i32, i32) {
    %c0_i32 = arith.constant 0 : i32
    %c0_i32_0 = arith.constant 0 : i32
    %c0_i32_1 = arith.constant 0 : i32
    return %c0_i32, %c0_i32_0 : i32, i32
  }
  func.func @transform_9(%arg0: i32) -> (i32, i32) {
    %c0_i32 = arith.constant 0 : i32
    %c0_i32_0 = arith.constant 0 : i32
    %c0_i32_1 = arith.constant 0 : i32
    return %c0_i32, %c0_i32_0 : i32, i32
  }
  func.func @transform_10(%arg0: i32) -> (i32, i32) {
    %c0_i32 = arith.constant 0 : i32
    %c0_i32_0 = arith.constant 0 : i32
    %c0_i32_1 = arith.constant 0 : i32
    return %c0_i32, %c0_i32_0 : i32, i32
  }
  func.func @transform_11(%arg0: i32) -> (i32, i32) {
    %c0_i32 = arith.constant 0 : i32
    %c0_i32_0 = arith.constant 0 : i32
    %c0_i32_1 = arith.constant 0 : i32
    return %c0_i32, %c0_i32_0 : i32, i32
  }
  func.func @transform_12(%arg0: i32) -> (i32, i32) {
    %c0_i32 = arith.constant 0 : i32
    %c0_i32_0 = arith.constant 0 : i32
    %c0_i32_1 = arith.constant 0 : i32
    return %c0_i32, %c0_i32_0 : i32, i32
  }
  func.func @transform_13(%arg0: i32) -> (i32, i32, i32) {
    %c0_i32 = arith.constant 0 : i32
    %c0_i32_0 = arith.constant 0 : i32
    %c0_i32_1 = arith.constant 0 : i32
    return %arg0, %c0_i32, %c0_i32_0 : i32, i32, i32
  }
}

module attributes {stable_mosaic.version = 11 : i64} {
  func.func @_conv_stack_kernel(%arg0: i32, %arg1: memref<1x66x128xf32, #tpu.memory_space<vmem>>, %arg2: memref<3x128x64xbf16, #tpu.memory_space<vmem>>, %arg3: memref<1x64xf32, #tpu.memory_space<vmem>>, %arg4: memref<3x64x128xbf16, #tpu.memory_space<vmem>>, %arg5: memref<1x128xf32, #tpu.memory_space<vmem>>, %arg6: memref<1x4x128xf32, #tpu.memory_space<vmem>>) attributes {dimension_semantics = [#tpu.dimension_semantics<parallel>], iteration_bounds = array<i64: 2>, scalar_prefetch = 0 : i64, scratch_operands = 0 : i64, tpu.core_type = #tpu.core_type<tc>, window_params = [{transform_indices = @transform_0, window_bounds = array<i64: 1, 66, 128>}, {pipeline_mode = #tpu.pipeline_mode<synchronous>, transform_indices = @transform_1, window_bounds = array<i64: 3, 128, 64>}, {pipeline_mode = #tpu.pipeline_mode<synchronous>, transform_indices = @transform_2, window_bounds = array<i64: 1, 64>}, {pipeline_mode = #tpu.pipeline_mode<synchronous>, transform_indices = @transform_3, window_bounds = array<i64: 3, 64, 128>}, {pipeline_mode = #tpu.pipeline_mode<synchronous>, transform_indices = @transform_4, window_bounds = array<i64: 1, 128>}, {transform_indices = @transform_5, window_bounds = array<i64: 1, 4, 128>}]} {
    %c0 = arith.constant 0 : index
    %c0_0 = arith.constant 0 : index
    %c0_1 = arith.constant 0 : index
    %0 = vector.load %arg1[%c0, %c0_0, %c0_1] : memref<1x66x128xf32, #tpu.memory_space<vmem>>, vector<1x66x128xf32>
    %1 = vector.shape_cast %0 : vector<1x66x128xf32> to vector<66x128xf32>
    %cst = arith.constant 0.000000e+00 : f32
    %2 = vector.broadcast %cst : f32 to vector<64x64xf32>
    %3 = vector.extract_strided_slice %1 {offsets = [0, 0], sizes = [64, 128], strides = [1, 1]} : vector<66x128xf32> to vector<64x128xf32>
    %4 = arith.truncf %3 : vector<64x128xf32> to vector<64x128xbf16>
    %c0_2 = arith.constant 0 : index
    %c0_3 = arith.constant 0 : index
    %c0_4 = arith.constant 0 : index
    %5 = vector.load %arg2[%c0_2, %c0_3, %c0_4] : memref<3x128x64xbf16, #tpu.memory_space<vmem>>, vector<1x128x64xbf16>
    %6 = vector.shape_cast %5 : vector<1x128x64xbf16> to vector<128x64xbf16>
    %cst_5 = arith.constant dense<0.000000e+00> : vector<64x64xf32>
    %7 = tpu.matmul %4, %6, %cst_5 {dimension_numbers = #tpu.dot_dimension_numbers<[1], [0], [0], [1], [0, 0, 1, 1], [], []>} : vector<64x128xbf16>, vector<128x64xbf16>, vector<64x64xf32> -> vector<64x64xf32>
    %8 = arith.addf %2, %7 : vector<64x64xf32>
    %9 = vector.extract_strided_slice %1 {offsets = [1, 0], sizes = [64, 128], strides = [1, 1]} : vector<66x128xf32> to vector<64x128xf32>
    %10 = arith.truncf %9 : vector<64x128xf32> to vector<64x128xbf16>
    %c1 = arith.constant 1 : index
    %c0_6 = arith.constant 0 : index
    %c0_7 = arith.constant 0 : index
    %11 = vector.load %arg2[%c1, %c0_6, %c0_7] : memref<3x128x64xbf16, #tpu.memory_space<vmem>>, vector<1x128x64xbf16>
    %12 = vector.shape_cast %11 : vector<1x128x64xbf16> to vector<128x64xbf16>
    %cst_8 = arith.constant dense<0.000000e+00> : vector<64x64xf32>
    %13 = tpu.matmul %10, %12, %cst_8 {dimension_numbers = #tpu.dot_dimension_numbers<[1], [0], [0], [1], [0, 0, 1, 1], [], []>} : vector<64x128xbf16>, vector<128x64xbf16>, vector<64x64xf32> -> vector<64x64xf32>
    %14 = arith.addf %8, %13 : vector<64x64xf32>
    %15 = vector.extract_strided_slice %1 {offsets = [2, 0], sizes = [64, 128], strides = [1, 1]} : vector<66x128xf32> to vector<64x128xf32>
    %16 = arith.truncf %15 : vector<64x128xf32> to vector<64x128xbf16>
    %c2 = arith.constant 2 : index
    %c0_9 = arith.constant 0 : index
    %c0_10 = arith.constant 0 : index
    %17 = vector.load %arg2[%c2, %c0_9, %c0_10] : memref<3x128x64xbf16, #tpu.memory_space<vmem>>, vector<1x128x64xbf16>
    %18 = vector.shape_cast %17 : vector<1x128x64xbf16> to vector<128x64xbf16>
    %cst_11 = arith.constant dense<0.000000e+00> : vector<64x64xf32>
    %19 = tpu.matmul %16, %18, %cst_11 {dimension_numbers = #tpu.dot_dimension_numbers<[1], [0], [0], [1], [0, 0, 1, 1], [], []>} : vector<64x128xbf16>, vector<128x64xbf16>, vector<64x64xf32> -> vector<64x64xf32>
    %20 = arith.addf %14, %19 : vector<64x64xf32>
    %21 = tpu.iota {dimensions = array<i32: 1>} : vector<16x64xi32>
    %22 = tpu.iota {dimensions = array<i32: 0>} : vector<16x64xi32>
    %c4_i32 = arith.constant 4 : i32
    %23 = vector.broadcast %c4_i32 : i32 to vector<16x64xi32>
    %24 = arith.muli %23, %22 : vector<16x64xi32>
    %c0_i32 = arith.constant 0 : i32
    %25 = vector.broadcast %c0_i32 : i32 to vector<16x64xi32>
    %26 = arith.addi %24, %25 : vector<16x64xi32>
    %27 = arith.cmpi eq, %21, %26 : vector<16x64xi32>
    %28 = arith.extui %27 : vector<16x64xi1> to vector<16x64xi32>
    %29 = arith.sitofp %28 : vector<16x64xi32> to vector<16x64xf32>
    %cst_12 = arith.constant dense<0.000000e+00> : vector<16x64xf32>
    %30 = tpu.matmul %29, %20, %cst_12 {dimension_numbers = #tpu.dot_dimension_numbers<[1], [0], [0], [1], [0, 0, 1, 1], [], []>} : vector<16x64xf32>, vector<64x64xf32>, vector<16x64xf32> -> vector<16x64xf32>
    %c4_i32_13 = arith.constant 4 : i32
    %31 = vector.broadcast %c4_i32_13 : i32 to vector<16x64xi32>
    %32 = arith.muli %31, %22 : vector<16x64xi32>
    %c2_i32 = arith.constant 2 : i32
    %33 = vector.broadcast %c2_i32 : i32 to vector<16x64xi32>
    %34 = arith.addi %32, %33 : vector<16x64xi32>
    %35 = arith.cmpi eq, %21, %34 : vector<16x64xi32>
    %36 = arith.extui %35 : vector<16x64xi1> to vector<16x64xi32>
    %37 = arith.sitofp %36 : vector<16x64xi32> to vector<16x64xf32>
    %cst_14 = arith.constant dense<0.000000e+00> : vector<16x64xf32>
    %38 = tpu.matmul %37, %20, %cst_14 {dimension_numbers = #tpu.dot_dimension_numbers<[1], [0], [0], [1], [0, 0, 1, 1], [], []>} : vector<16x64xf32>, vector<64x64xf32>, vector<16x64xf32> -> vector<16x64xf32>
    %39 = arith.maximumf %30, %38 : vector<16x64xf32>
    %c0_15 = arith.constant 0 : index
    %c0_16 = arith.constant 0 : index
    %40 = vector.load %arg3[%c0_15, %c0_16] : memref<1x64xf32, #tpu.memory_space<vmem>>, vector<1x64xf32>
    %41 = vector.broadcast %40 : vector<1x64xf32> to vector<16x64xf32>
    %42 = arith.addf %39, %41 : vector<16x64xf32>
    %43 = tpu.iota {dimensions = array<i32: 1>} : vector<16x16xi32>
    %44 = tpu.iota {dimensions = array<i32: 0>} : vector<16x16xi32>
    %cst_17 = arith.constant 0.000000e+00 : f32
    %45 = vector.broadcast %cst_17 : f32 to vector<16x128xf32>
    %c-1_i32 = arith.constant -1 : i32
    %46 = vector.broadcast %c-1_i32 : i32 to vector<16x16xi32>
    %47 = arith.addi %44, %46 : vector<16x16xi32>
    %48 = arith.cmpi eq, %43, %47 : vector<16x16xi32>
    %49 = arith.extui %48 : vector<16x16xi1> to vector<16x16xi32>
    %50 = arith.sitofp %49 : vector<16x16xi32> to vector<16x16xf32>
    %cst_18 = arith.constant dense<0.000000e+00> : vector<16x64xf32>
    %51 = tpu.matmul %50, %42, %cst_18 {dimension_numbers = #tpu.dot_dimension_numbers<[1], [0], [0], [1], [0, 0, 1, 1], [], []>} : vector<16x16xf32>, vector<16x64xf32>, vector<16x64xf32> -> vector<16x64xf32>
    %52 = arith.truncf %51 : vector<16x64xf32> to vector<16x64xbf16>
    %c0_19 = arith.constant 0 : index
    %c0_20 = arith.constant 0 : index
    %c0_21 = arith.constant 0 : index
    %53 = vector.load %arg4[%c0_19, %c0_20, %c0_21] : memref<3x64x128xbf16, #tpu.memory_space<vmem>>, vector<1x64x128xbf16>
    %54 = vector.shape_cast %53 : vector<1x64x128xbf16> to vector<64x128xbf16>
    %cst_22 = arith.constant dense<0.000000e+00> : vector<16x128xf32>
    %55 = tpu.matmul %52, %54, %cst_22 {dimension_numbers = #tpu.dot_dimension_numbers<[1], [0], [0], [1], [0, 0, 1, 1], [], []>} : vector<16x64xbf16>, vector<64x128xbf16>, vector<16x128xf32> -> vector<16x128xf32>
    %56 = arith.addf %45, %55 : vector<16x128xf32>
    %c0_i32_23 = arith.constant 0 : i32
    %57 = vector.broadcast %c0_i32_23 : i32 to vector<16x16xi32>
    %58 = arith.addi %44, %57 : vector<16x16xi32>
    %59 = arith.cmpi eq, %43, %58 : vector<16x16xi32>
    %60 = arith.extui %59 : vector<16x16xi1> to vector<16x16xi32>
    %61 = arith.sitofp %60 : vector<16x16xi32> to vector<16x16xf32>
    %cst_24 = arith.constant dense<0.000000e+00> : vector<16x64xf32>
    %62 = tpu.matmul %61, %42, %cst_24 {dimension_numbers = #tpu.dot_dimension_numbers<[1], [0], [0], [1], [0, 0, 1, 1], [], []>} : vector<16x16xf32>, vector<16x64xf32>, vector<16x64xf32> -> vector<16x64xf32>
    %63 = arith.truncf %62 : vector<16x64xf32> to vector<16x64xbf16>
    %c1_25 = arith.constant 1 : index
    %c0_26 = arith.constant 0 : index
    %c0_27 = arith.constant 0 : index
    %64 = vector.load %arg4[%c1_25, %c0_26, %c0_27] : memref<3x64x128xbf16, #tpu.memory_space<vmem>>, vector<1x64x128xbf16>
    %65 = vector.shape_cast %64 : vector<1x64x128xbf16> to vector<64x128xbf16>
    %cst_28 = arith.constant dense<0.000000e+00> : vector<16x128xf32>
    %66 = tpu.matmul %63, %65, %cst_28 {dimension_numbers = #tpu.dot_dimension_numbers<[1], [0], [0], [1], [0, 0, 1, 1], [], []>} : vector<16x64xbf16>, vector<64x128xbf16>, vector<16x128xf32> -> vector<16x128xf32>
    %67 = arith.addf %56, %66 : vector<16x128xf32>
    %c1_i32 = arith.constant 1 : i32
    %68 = vector.broadcast %c1_i32 : i32 to vector<16x16xi32>
    %69 = arith.addi %44, %68 : vector<16x16xi32>
    %70 = arith.cmpi eq, %43, %69 : vector<16x16xi32>
    %71 = arith.extui %70 : vector<16x16xi1> to vector<16x16xi32>
    %72 = arith.sitofp %71 : vector<16x16xi32> to vector<16x16xf32>
    %cst_29 = arith.constant dense<0.000000e+00> : vector<16x64xf32>
    %73 = tpu.matmul %72, %42, %cst_29 {dimension_numbers = #tpu.dot_dimension_numbers<[1], [0], [0], [1], [0, 0, 1, 1], [], []>} : vector<16x16xf32>, vector<16x64xf32>, vector<16x64xf32> -> vector<16x64xf32>
    %74 = arith.truncf %73 : vector<16x64xf32> to vector<16x64xbf16>
    %c2_30 = arith.constant 2 : index
    %c0_31 = arith.constant 0 : index
    %c0_32 = arith.constant 0 : index
    %75 = vector.load %arg4[%c2_30, %c0_31, %c0_32] : memref<3x64x128xbf16, #tpu.memory_space<vmem>>, vector<1x64x128xbf16>
    %76 = vector.shape_cast %75 : vector<1x64x128xbf16> to vector<64x128xbf16>
    %cst_33 = arith.constant dense<0.000000e+00> : vector<16x128xf32>
    %77 = tpu.matmul %74, %76, %cst_33 {dimension_numbers = #tpu.dot_dimension_numbers<[1], [0], [0], [1], [0, 0, 1, 1], [], []>} : vector<16x64xbf16>, vector<64x128xbf16>, vector<16x128xf32> -> vector<16x128xf32>
    %78 = arith.addf %67, %77 : vector<16x128xf32>
    %79 = tpu.iota {dimensions = array<i32: 1>} : vector<4x16xi32>
    %80 = tpu.iota {dimensions = array<i32: 0>} : vector<4x16xi32>
    %c4_i32_34 = arith.constant 4 : i32
    %81 = vector.broadcast %c4_i32_34 : i32 to vector<4x16xi32>
    %82 = arith.muli %81, %80 : vector<4x16xi32>
    %c0_i32_35 = arith.constant 0 : i32
    %83 = vector.broadcast %c0_i32_35 : i32 to vector<4x16xi32>
    %84 = arith.addi %82, %83 : vector<4x16xi32>
    %85 = arith.cmpi eq, %79, %84 : vector<4x16xi32>
    %86 = arith.extui %85 : vector<4x16xi1> to vector<4x16xi32>
    %87 = arith.sitofp %86 : vector<4x16xi32> to vector<4x16xf32>
    %cst_36 = arith.constant dense<0.000000e+00> : vector<4x128xf32>
    %88 = tpu.matmul %87, %78, %cst_36 {dimension_numbers = #tpu.dot_dimension_numbers<[1], [0], [0], [1], [0, 0, 1, 1], [], []>} : vector<4x16xf32>, vector<16x128xf32>, vector<4x128xf32> -> vector<4x128xf32>
    %c4_i32_37 = arith.constant 4 : i32
    %89 = vector.broadcast %c4_i32_37 : i32 to vector<4x16xi32>
    %90 = arith.muli %89, %80 : vector<4x16xi32>
    %c2_i32_38 = arith.constant 2 : i32
    %91 = vector.broadcast %c2_i32_38 : i32 to vector<4x16xi32>
    %92 = arith.addi %90, %91 : vector<4x16xi32>
    %93 = arith.cmpi eq, %79, %92 : vector<4x16xi32>
    %94 = arith.extui %93 : vector<4x16xi1> to vector<4x16xi32>
    %95 = arith.sitofp %94 : vector<4x16xi32> to vector<4x16xf32>
    %cst_39 = arith.constant dense<0.000000e+00> : vector<4x128xf32>
    %96 = tpu.matmul %95, %78, %cst_39 {dimension_numbers = #tpu.dot_dimension_numbers<[1], [0], [0], [1], [0, 0, 1, 1], [], []>} : vector<4x16xf32>, vector<16x128xf32>, vector<4x128xf32> -> vector<4x128xf32>
    %97 = arith.maximumf %88, %96 : vector<4x128xf32>
    %c0_40 = arith.constant 0 : index
    %c0_41 = arith.constant 0 : index
    %98 = vector.load %arg5[%c0_40, %c0_41] : memref<1x128xf32, #tpu.memory_space<vmem>>, vector<1x128xf32>
    %99 = vector.broadcast %98 : vector<1x128xf32> to vector<4x128xf32>
    %100 = arith.addf %97, %99 : vector<4x128xf32>
    %101 = vector.shape_cast %100 : vector<4x128xf32> to vector<1x4x128xf32>
    %c0_42 = arith.constant 0 : index
    %c0_43 = arith.constant 0 : index
    %c0_44 = arith.constant 0 : index
    %102 = vector.load %arg6[%c0_42, %c0_43, %c0_44] : memref<1x4x128xf32, #tpu.memory_space<vmem>>, vector<1x4x128xf32>
    tpu.vector_store %arg6[%c0_42, %c0_43, %c0_44], %101 {strides = array<i32>} : memref<1x4x128xf32, #tpu.memory_space<vmem>>, vector<1x4x128xf32>,
    return
  }
  func.func @transform_0(%arg0: i32) -> (i32, i32, i32) {
    %c0_i32 = arith.constant 0 : i32
    %c0_i32_0 = arith.constant 0 : i32
    %c0_i32_1 = arith.constant 0 : i32
    return %arg0, %c0_i32, %c0_i32_0 : i32, i32, i32
  }
  func.func @transform_1(%arg0: i32) -> (i32, i32, i32) {
    %c0_i32 = arith.constant 0 : i32
    %c0_i32_0 = arith.constant 0 : i32
    %c0_i32_1 = arith.constant 0 : i32
    %c0_i32_2 = arith.constant 0 : i32
    return %c0_i32, %c0_i32_0, %c0_i32_1 : i32, i32, i32
  }
  func.func @transform_2(%arg0: i32) -> (i32, i32) {
    %c0_i32 = arith.constant 0 : i32
    %c0_i32_0 = arith.constant 0 : i32
    %c0_i32_1 = arith.constant 0 : i32
    return %c0_i32, %c0_i32_0 : i32, i32
  }
  func.func @transform_3(%arg0: i32) -> (i32, i32, i32) {
    %c0_i32 = arith.constant 0 : i32
    %c0_i32_0 = arith.constant 0 : i32
    %c0_i32_1 = arith.constant 0 : i32
    %c0_i32_2 = arith.constant 0 : i32
    return %c0_i32, %c0_i32_0, %c0_i32_1 : i32, i32, i32
  }
  func.func @transform_4(%arg0: i32) -> (i32, i32) {
    %c0_i32 = arith.constant 0 : i32
    %c0_i32_0 = arith.constant 0 : i32
    %c0_i32_1 = arith.constant 0 : i32
    return %c0_i32, %c0_i32_0 : i32, i32
  }
  func.func @transform_5(%arg0: i32) -> (i32, i32, i32) {
    %c0_i32 = arith.constant 0 : i32
    %c0_i32_0 = arith.constant 0 : i32
    %c0_i32_1 = arith.constant 0 : i32
    return %arg0, %c0_i32, %c0_i32_0 : i32, i32, i32
  }
}

module attributes {stable_mosaic.version = 11 : i64} {
  func.func @_tf_layer_kernel(%arg0: i32, %arg1: memref<1x4x128xf32, #tpu.memory_space<vmem>>, %arg2: memref<128x384xbf16, #tpu.memory_space<vmem>>, %arg3: memref<1x384xf32, #tpu.memory_space<vmem>>, %arg4: memref<128x128xbf16, #tpu.memory_space<vmem>>, %arg5: memref<1x128xf32, #tpu.memory_space<vmem>>, %arg6: memref<1x128xf32, #tpu.memory_space<vmem>>, %arg7: memref<1x128xf32, #tpu.memory_space<vmem>>, %arg8: memref<128x2048xbf16, #tpu.memory_space<vmem>>, %arg9: memref<1x2048xf32, #tpu.memory_space<vmem>>, %arg10: memref<2048x128xbf16, #tpu.memory_space<vmem>>, %arg11: memref<1x128xf32, #tpu.memory_space<vmem>>, %arg12: memref<1x128xf32, #tpu.memory_space<vmem>>, %arg13: memref<1x128xf32, #tpu.memory_space<vmem>>, %arg14: memref<1x4x128xf32, #tpu.memory_space<vmem>>) attributes {dimension_semantics = [#tpu.dimension_semantics<parallel>], iteration_bounds = array<i64: 2>, scalar_prefetch = 0 : i64, scratch_operands = 0 : i64, tpu.core_type = #tpu.core_type<tc>, window_params = [{transform_indices = @transform_0, window_bounds = array<i64: 1, 4, 128>}, {pipeline_mode = #tpu.pipeline_mode<synchronous>, transform_indices = @transform_1, window_bounds = array<i64: 128, 384>}, {pipeline_mode = #tpu.pipeline_mode<synchronous>, transform_indices = @transform_2, window_bounds = array<i64: 1, 384>}, {pipeline_mode = #tpu.pipeline_mode<synchronous>, transform_indices = @transform_3, window_bounds = array<i64: 128, 128>}, {pipeline_mode = #tpu.pipeline_mode<synchronous>, transform_indices = @transform_4, window_bounds = array<i64: 1, 128>}, {pipeline_mode = #tpu.pipeline_mode<synchronous>, transform_indices = @transform_5, window_bounds = array<i64: 1, 128>}, {pipeline_mode = #tpu.pipeline_mode<synchronous>, transform_indices = @transform_6, window_bounds = array<i64: 1, 128>}, {pipeline_mode = #tpu.pipeline_mode<synchronous>, transform_indices = @transform_7, window_bounds = array<i64: 128, 2048>}, {pipeline_mode = #tpu.pipeline_mode<synchronous>, transform_indices = @transform_8, window_bounds = array<i64: 1, 2048>}, {pipeline_mode = #tpu.pipeline_mode<synchronous>, transform_indices = @transform_9, window_bounds = array<i64: 2048, 128>}, {pipeline_mode = #tpu.pipeline_mode<synchronous>, transform_indices = @transform_10, window_bounds = array<i64: 1, 128>}, {pipeline_mode = #tpu.pipeline_mode<synchronous>, transform_indices = @transform_11, window_bounds = array<i64: 1, 128>}, {pipeline_mode = #tpu.pipeline_mode<synchronous>, transform_indices = @transform_12, window_bounds = array<i64: 1, 128>}, {transform_indices = @transform_13, window_bounds = array<i64: 1, 4, 128>}]} {
    %c0 = arith.constant 0 : index
    %c0_0 = arith.constant 0 : index
    %c0_1 = arith.constant 0 : index
    %0 = vector.load %arg1[%c0, %c0_0, %c0_1] : memref<1x4x128xf32, #tpu.memory_space<vmem>>, vector<1x4x128xf32>
    %1 = vector.shape_cast %0 : vector<1x4x128xf32> to vector<4x128xf32>
    %2 = arith.truncf %1 : vector<4x128xf32> to vector<4x128xbf16>
    %c0_2 = arith.constant 0 : index
    %c0_3 = arith.constant 0 : index
    %3 = vector.load %arg2[%c0_2, %c0_3] : memref<128x384xbf16, #tpu.memory_space<vmem>>, vector<128x384xbf16>
    %cst = arith.constant dense<0.000000e+00> : vector<4x384xf32>
    %4 = tpu.matmul %2, %3, %cst {dimension_numbers = #tpu.dot_dimension_numbers<[1], [0], [0], [1], [0, 0, 1, 1], [], []>} : vector<4x128xbf16>, vector<128x384xbf16>, vector<4x384xf32> -> vector<4x384xf32>
    %c0_4 = arith.constant 0 : index
    %c0_5 = arith.constant 0 : index
    %5 = vector.load %arg3[%c0_4, %c0_5] : memref<1x384xf32, #tpu.memory_space<vmem>>, vector<1x384xf32>
    %6 = vector.broadcast %5 : vector<1x384xf32> to vector<4x384xf32>
    %7 = arith.addf %4, %6 : vector<4x384xf32>
    %8 = vector.extract_strided_slice %7 {offsets = [0, 0], sizes = [4, 128], strides = [1, 1]} : vector<4x384xf32> to vector<4x128xf32>
    %9 = vector.extract_strided_slice %7 {offsets = [0, 128], sizes = [4, 128], strides = [1, 1]} : vector<4x384xf32> to vector<4x128xf32>
    %10 = vector.extract_strided_slice %7 {offsets = [0, 256], sizes = [4, 128], strides = [1, 1]} : vector<4x384xf32> to vector<4x128xf32>
    %11 = tpu.transpose %9, [1, 0] : vector<4x128xf32> -> vector<128x4xf32>
    %12 = tpu.iota {dimensions = array<i32: 1>} : vector<1x128xi32>
    %cst_6 = arith.constant 0.000000e+00 : f32
    %13 = vector.broadcast %cst_6 : f32 to vector<4x128xf32>
    %c0_i32 = arith.constant 0 : i32
    %14 = vector.broadcast %c0_i32 : i32 to vector<1x128xi32>
    %15 = arith.cmpi sge, %12, %14 : vector<1x128xi32>
    %c32_i32 = arith.constant 32 : i32
    %16 = vector.broadcast %c32_i32 : i32 to vector<1x128xi32>
    %17 = arith.cmpi slt, %12, %16 : vector<1x128xi32>
    %18 = arith.andi %15, %17 : vector<1x128xi1>
    %cst_7 = arith.constant 0.000000e+00 : f32
    %19 = vector.shape_cast %18 : vector<1x128xi1> to vector<1x128xi1>
    %20 = vector.broadcast %19 : vector<1x128xi1> to vector<4x128xi1>
    %21 = vector.broadcast %cst_7 : f32 to vector<4x128xf32>
    %22 = arith.select %20, %8, %21 : vector<4x128xi1>, vector<4x128xf32>
    %cst_8 = arith.constant dense<0.000000e+00> : vector<4x4xf32>
    %23 = tpu.matmul %22, %11, %cst_8 {dimension_numbers = #tpu.dot_dimension_numbers<[1], [0], [0], [1], [0, 0, 1, 1], [], []>} : vector<4x128xf32>, vector<128x4xf32>, vector<4x4xf32> -> vector<4x4xf32>
    %cst_9 = arith.constant 0.176776692 : f32
    %24 = vector.broadcast %cst_9 : f32 to vector<4x4xf32>
    %25 = arith.mulf %23, %24 : vector<4x4xf32>
    %cst_10 = arith.constant dense<0xFF800000> : vector<4xf32>
    %26 = vector.multi_reduction <maximumf>, %25, %cst_10 [1] : vector<4x4xf32> to vector<4xf32>
    %27 = vector.shape_cast %26 : vector<4xf32> to vector<4x1xf32>
    %28 = vector.broadcast %27 : vector<4x1xf32> to vector<4x4xf32>
    %29 = arith.subf %25, %28 : vector<4x4xf32>
    %30 = math.exp %29 : vector<4x4xf32>
    %cst_11 = arith.constant dense<0.000000e+00> : vector<4xf32>
    %31 = vector.multi_reduction <add>, %30, %cst_11 [1] : vector<4x4xf32> to vector<4xf32>
    %32 = vector.shape_cast %31 : vector<4xf32> to vector<4x1xf32>
    %33 = tpu.reciprocal %32 {approx = true} : vector<4x1xf32> -> vector<4x1xf32>
    %34 = vector.broadcast %33 : vector<4x1xf32> to vector<4x4xf32>
    %35 = arith.mulf %30, %34 : vector<4x4xf32>
    %cst_12 = arith.constant 0.000000e+00 : f32
    %36 = vector.shape_cast %18 : vector<1x128xi1> to vector<1x128xi1>
    %37 = vector.broadcast %36 : vector<1x128xi1> to vector<4x128xi1>
    %38 = vector.broadcast %cst_12 : f32 to vector<4x128xf32>
    %39 = arith.select %37, %10, %38 : vector<4x128xi1>, vector<4x128xf32>
    %cst_13 = arith.constant dense<0.000000e+00> : vector<4x128xf32>
    %40 = tpu.matmul %35, %39, %cst_13 {dimension_numbers = #tpu.dot_dimension_numbers<[1], [0], [0], [1], [0, 0, 1, 1], [], []>} : vector<4x4xf32>, vector<4x128xf32>, vector<4x128xf32> -> vector<4x128xf32>
    %41 = arith.addf %13, %40 : vector<4x128xf32>
    %c32_i32_14 = arith.constant 32 : i32
    %42 = vector.broadcast %c32_i32_14 : i32 to vector<1x128xi32>
    %43 = arith.cmpi sge, %12, %42 : vector<1x128xi32>
    %c64_i32 = arith.constant 64 : i32
    %44 = vector.broadcast %c64_i32 : i32 to vector<1x128xi32>
    %45 = arith.cmpi slt, %12, %44 : vector<1x128xi32>
    %46 = arith.andi %43, %45 : vector<1x128xi1>
    %cst_15 = arith.constant 0.000000e+00 : f32
    %47 = vector.shape_cast %46 : vector<1x128xi1> to vector<1x128xi1>
    %48 = vector.broadcast %47 : vector<1x128xi1> to vector<4x128xi1>
    %49 = vector.broadcast %cst_15 : f32 to vector<4x128xf32>
    %50 = arith.select %48, %8, %49 : vector<4x128xi1>, vector<4x128xf32>
    %cst_16 = arith.constant dense<0.000000e+00> : vector<4x4xf32>
    %51 = tpu.matmul %50, %11, %cst_16 {dimension_numbers = #tpu.dot_dimension_numbers<[1], [0], [0], [1], [0, 0, 1, 1], [], []>} : vector<4x128xf32>, vector<128x4xf32>, vector<4x4xf32> -> vector<4x4xf32>
    %cst_17 = arith.constant 0.176776692 : f32
    %52 = vector.broadcast %cst_17 : f32 to vector<4x4xf32>
    %53 = arith.mulf %51, %52 : vector<4x4xf32>
    %cst_18 = arith.constant dense<0xFF800000> : vector<4xf32>
    %54 = vector.multi_reduction <maximumf>, %53, %cst_18 [1] : vector<4x4xf32> to vector<4xf32>
    %55 = vector.shape_cast %54 : vector<4xf32> to vector<4x1xf32>
    %56 = vector.broadcast %55 : vector<4x1xf32> to vector<4x4xf32>
    %57 = arith.subf %53, %56 : vector<4x4xf32>
    %58 = math.exp %57 : vector<4x4xf32>
    %cst_19 = arith.constant dense<0.000000e+00> : vector<4xf32>
    %59 = vector.multi_reduction <add>, %58, %cst_19 [1] : vector<4x4xf32> to vector<4xf32>
    %60 = vector.shape_cast %59 : vector<4xf32> to vector<4x1xf32>
    %61 = tpu.reciprocal %60 {approx = true} : vector<4x1xf32> -> vector<4x1xf32>
    %62 = vector.broadcast %61 : vector<4x1xf32> to vector<4x4xf32>
    %63 = arith.mulf %58, %62 : vector<4x4xf32>
    %cst_20 = arith.constant 0.000000e+00 : f32
    %64 = vector.shape_cast %46 : vector<1x128xi1> to vector<1x128xi1>
    %65 = vector.broadcast %64 : vector<1x128xi1> to vector<4x128xi1>
    %66 = vector.broadcast %cst_20 : f32 to vector<4x128xf32>
    %67 = arith.select %65, %10, %66 : vector<4x128xi1>, vector<4x128xf32>
    %cst_21 = arith.constant dense<0.000000e+00> : vector<4x128xf32>
    %68 = tpu.matmul %63, %67, %cst_21 {dimension_numbers = #tpu.dot_dimension_numbers<[1], [0], [0], [1], [0, 0, 1, 1], [], []>} : vector<4x4xf32>, vector<4x128xf32>, vector<4x128xf32> -> vector<4x128xf32>
    %69 = arith.addf %41, %68 : vector<4x128xf32>
    %c64_i32_22 = arith.constant 64 : i32
    %70 = vector.broadcast %c64_i32_22 : i32 to vector<1x128xi32>
    %71 = arith.cmpi sge, %12, %70 : vector<1x128xi32>
    %c96_i32 = arith.constant 96 : i32
    %72 = vector.broadcast %c96_i32 : i32 to vector<1x128xi32>
    %73 = arith.cmpi slt, %12, %72 : vector<1x128xi32>
    %74 = arith.andi %71, %73 : vector<1x128xi1>
    %cst_23 = arith.constant 0.000000e+00 : f32
    %75 = vector.shape_cast %74 : vector<1x128xi1> to vector<1x128xi1>
    %76 = vector.broadcast %75 : vector<1x128xi1> to vector<4x128xi1>
    %77 = vector.broadcast %cst_23 : f32 to vector<4x128xf32>
    %78 = arith.select %76, %8, %77 : vector<4x128xi1>, vector<4x128xf32>
    %cst_24 = arith.constant dense<0.000000e+00> : vector<4x4xf32>
    %79 = tpu.matmul %78, %11, %cst_24 {dimension_numbers = #tpu.dot_dimension_numbers<[1], [0], [0], [1], [0, 0, 1, 1], [], []>} : vector<4x128xf32>, vector<128x4xf32>, vector<4x4xf32> -> vector<4x4xf32>
    %cst_25 = arith.constant 0.176776692 : f32
    %80 = vector.broadcast %cst_25 : f32 to vector<4x4xf32>
    %81 = arith.mulf %79, %80 : vector<4x4xf32>
    %cst_26 = arith.constant dense<0xFF800000> : vector<4xf32>
    %82 = vector.multi_reduction <maximumf>, %81, %cst_26 [1] : vector<4x4xf32> to vector<4xf32>
    %83 = vector.shape_cast %82 : vector<4xf32> to vector<4x1xf32>
    %84 = vector.broadcast %83 : vector<4x1xf32> to vector<4x4xf32>
    %85 = arith.subf %81, %84 : vector<4x4xf32>
    %86 = math.exp %85 : vector<4x4xf32>
    %cst_27 = arith.constant dense<0.000000e+00> : vector<4xf32>
    %87 = vector.multi_reduction <add>, %86, %cst_27 [1] : vector<4x4xf32> to vector<4xf32>
    %88 = vector.shape_cast %87 : vector<4xf32> to vector<4x1xf32>
    %89 = tpu.reciprocal %88 {approx = true} : vector<4x1xf32> -> vector<4x1xf32>
    %90 = vector.broadcast %89 : vector<4x1xf32> to vector<4x4xf32>
    %91 = arith.mulf %86, %90 : vector<4x4xf32>
    %cst_28 = arith.constant 0.000000e+00 : f32
    %92 = vector.shape_cast %74 : vector<1x128xi1> to vector<1x128xi1>
    %93 = vector.broadcast %92 : vector<1x128xi1> to vector<4x128xi1>
    %94 = vector.broadcast %cst_28 : f32 to vector<4x128xf32>
    %95 = arith.select %93, %10, %94 : vector<4x128xi1>, vector<4x128xf32>
    %cst_29 = arith.constant dense<0.000000e+00> : vector<4x128xf32>
    %96 = tpu.matmul %91, %95, %cst_29 {dimension_numbers = #tpu.dot_dimension_numbers<[1], [0], [0], [1], [0, 0, 1, 1], [], []>} : vector<4x4xf32>, vector<4x128xf32>, vector<4x128xf32> -> vector<4x128xf32>
    %97 = arith.addf %69, %96 : vector<4x128xf32>
    %c96_i32_30 = arith.constant 96 : i32
    %98 = vector.broadcast %c96_i32_30 : i32 to vector<1x128xi32>
    %99 = arith.cmpi sge, %12, %98 : vector<1x128xi32>
    %c128_i32 = arith.constant 128 : i32
    %100 = vector.broadcast %c128_i32 : i32 to vector<1x128xi32>
    %101 = arith.cmpi slt, %12, %100 : vector<1x128xi32>
    %102 = arith.andi %99, %101 : vector<1x128xi1>
    %cst_31 = arith.constant 0.000000e+00 : f32
    %103 = vector.shape_cast %102 : vector<1x128xi1> to vector<1x128xi1>
    %104 = vector.broadcast %103 : vector<1x128xi1> to vector<4x128xi1>
    %105 = vector.broadcast %cst_31 : f32 to vector<4x128xf32>
    %106 = arith.select %104, %8, %105 : vector<4x128xi1>, vector<4x128xf32>
    %cst_32 = arith.constant dense<0.000000e+00> : vector<4x4xf32>
    %107 = tpu.matmul %106, %11, %cst_32 {dimension_numbers = #tpu.dot_dimension_numbers<[1], [0], [0], [1], [0, 0, 1, 1], [], []>} : vector<4x128xf32>, vector<128x4xf32>, vector<4x4xf32> -> vector<4x4xf32>
    %cst_33 = arith.constant 0.176776692 : f32
    %108 = vector.broadcast %cst_33 : f32 to vector<4x4xf32>
    %109 = arith.mulf %107, %108 : vector<4x4xf32>
    %cst_34 = arith.constant dense<0xFF800000> : vector<4xf32>
    %110 = vector.multi_reduction <maximumf>, %109, %cst_34 [1] : vector<4x4xf32> to vector<4xf32>
    %111 = vector.shape_cast %110 : vector<4xf32> to vector<4x1xf32>
    %112 = vector.broadcast %111 : vector<4x1xf32> to vector<4x4xf32>
    %113 = arith.subf %109, %112 : vector<4x4xf32>
    %114 = math.exp %113 : vector<4x4xf32>
    %cst_35 = arith.constant dense<0.000000e+00> : vector<4xf32>
    %115 = vector.multi_reduction <add>, %114, %cst_35 [1] : vector<4x4xf32> to vector<4xf32>
    %116 = vector.shape_cast %115 : vector<4xf32> to vector<4x1xf32>
    %117 = tpu.reciprocal %116 {approx = true} : vector<4x1xf32> -> vector<4x1xf32>
    %118 = vector.broadcast %117 : vector<4x1xf32> to vector<4x4xf32>
    %119 = arith.mulf %114, %118 : vector<4x4xf32>
    %cst_36 = arith.constant 0.000000e+00 : f32
    %120 = vector.shape_cast %102 : vector<1x128xi1> to vector<1x128xi1>
    %121 = vector.broadcast %120 : vector<1x128xi1> to vector<4x128xi1>
    %122 = vector.broadcast %cst_36 : f32 to vector<4x128xf32>
    %123 = arith.select %121, %10, %122 : vector<4x128xi1>, vector<4x128xf32>
    %cst_37 = arith.constant dense<0.000000e+00> : vector<4x128xf32>
    %124 = tpu.matmul %119, %123, %cst_37 {dimension_numbers = #tpu.dot_dimension_numbers<[1], [0], [0], [1], [0, 0, 1, 1], [], []>} : vector<4x4xf32>, vector<4x128xf32>, vector<4x128xf32> -> vector<4x128xf32>
    %125 = arith.addf %97, %124 : vector<4x128xf32>
    %126 = arith.truncf %125 : vector<4x128xf32> to vector<4x128xbf16>
    %c0_38 = arith.constant 0 : index
    %c0_39 = arith.constant 0 : index
    %127 = vector.load %arg4[%c0_38, %c0_39] : memref<128x128xbf16, #tpu.memory_space<vmem>>, vector<128x128xbf16>
    %cst_40 = arith.constant dense<0.000000e+00> : vector<4x128xf32>
    %128 = tpu.matmul %126, %127, %cst_40 {dimension_numbers = #tpu.dot_dimension_numbers<[1], [0], [0], [1], [0, 0, 1, 1], [], []>} : vector<4x128xbf16>, vector<128x128xbf16>, vector<4x128xf32> -> vector<4x128xf32>
    %c0_41 = arith.constant 0 : index
    %c0_42 = arith.constant 0 : index
    %129 = vector.load %arg5[%c0_41, %c0_42] : memref<1x128xf32, #tpu.memory_space<vmem>>, vector<1x128xf32>
    %130 = vector.broadcast %129 : vector<1x128xf32> to vector<4x128xf32>
    %131 = arith.addf %128, %130 : vector<4x128xf32>
    %132 = arith.addf %1, %131 : vector<4x128xf32>
    %c0_43 = arith.constant 0 : index
    %c0_44 = arith.constant 0 : index
    %133 = vector.load %arg6[%c0_43, %c0_44] : memref<1x128xf32, #tpu.memory_space<vmem>>, vector<1x128xf32>
    %c0_45 = arith.constant 0 : index
    %c0_46 = arith.constant 0 : index
    %134 = vector.load %arg7[%c0_45, %c0_46] : memref<1x128xf32, #tpu.memory_space<vmem>>, vector<1x128xf32>
    %cst_47 = arith.constant dense<0.000000e+00> : vector<4xf32>
    %135 = vector.multi_reduction <add>, %132, %cst_47 [1] : vector<4x128xf32> to vector<4xf32>
    %136 = vector.shape_cast %135 : vector<4xf32> to vector<4x1xf32>
    %cst_48 = arith.constant 1.280000e+02 : f32
    %137 = vector.broadcast %cst_48 : f32 to vector<4x1xf32>
    %138 = arith.divf %136, %137 : vector<4x1xf32>
    %139 = vector.broadcast %138 : vector<4x1xf32> to vector<4x128xf32>
    %140 = arith.subf %132, %139 : vector<4x128xf32>
    %141 = arith.mulf %140, %140 : vector<4x128xf32>
    %cst_49 = arith.constant dense<0.000000e+00> : vector<4xf32>
    %142 = vector.multi_reduction <add>, %141, %cst_49 [1] : vector<4x128xf32> to vector<4xf32>
    %143 = vector.shape_cast %142 : vector<4xf32> to vector<4x1xf32>
    %cst_50 = arith.constant 1.280000e+02 : f32
    %144 = vector.broadcast %cst_50 : f32 to vector<4x1xf32>
    %145 = arith.divf %143, %144 : vector<4x1xf32>
    %cst_51 = arith.constant 9.99999974E-6 : f32
    %146 = vector.broadcast %cst_51 : f32 to vector<4x1xf32>
    %147 = arith.addf %145, %146 : vector<4x1xf32>
    %148 = math.rsqrt %147 : vector<4x1xf32>
    %149 = vector.broadcast %148 : vector<4x1xf32> to vector<4x128xf32>
    %150 = arith.mulf %140, %149 : vector<4x128xf32>
    %151 = vector.broadcast %133 : vector<1x128xf32> to vector<4x128xf32>
    %152 = arith.mulf %150, %151 : vector<4x128xf32>
    %153 = vector.broadcast %134 : vector<1x128xf32> to vector<4x128xf32>
    %154 = arith.addf %152, %153 : vector<4x128xf32>
    %155 = arith.truncf %154 : vector<4x128xf32> to vector<4x128xbf16>
    %c0_52 = arith.constant 0 : index
    %c0_53 = arith.constant 0 : index
    %156 = vector.load %arg8[%c0_52, %c0_53] : memref<128x2048xbf16, #tpu.memory_space<vmem>>, vector<128x2048xbf16>
    %cst_54 = arith.constant dense<0.000000e+00> : vector<4x2048xf32>
    %157 = tpu.matmul %155, %156, %cst_54 {dimension_numbers = #tpu.dot_dimension_numbers<[1], [0], [0], [1], [0, 0, 1, 1], [], []>} : vector<4x128xbf16>, vector<128x2048xbf16>, vector<4x2048xf32> -> vector<4x2048xf32>
    %c0_55 = arith.constant 0 : index
    %c0_56 = arith.constant 0 : index
    %158 = vector.load %arg9[%c0_55, %c0_56] : memref<1x2048xf32, #tpu.memory_space<vmem>>, vector<1x2048xf32>
    %159 = vector.broadcast %158 : vector<1x2048xf32> to vector<4x2048xf32>
    %160 = arith.addf %157, %159 : vector<4x2048xf32>
    %cst_57 = arith.constant 0.000000e+00 : f32
    %161 = vector.broadcast %cst_57 : f32 to vector<4x2048xf32>
    %162 = arith.maximumf %160, %161 : vector<4x2048xf32>
    %163 = arith.truncf %162 : vector<4x2048xf32> to vector<4x2048xbf16>
    %c0_58 = arith.constant 0 : index
    %c0_59 = arith.constant 0 : index
    %164 = vector.load %arg10[%c0_58, %c0_59] : memref<2048x128xbf16, #tpu.memory_space<vmem>>, vector<2048x128xbf16>
    %cst_60 = arith.constant dense<0.000000e+00> : vector<4x128xf32>
    %165 = tpu.matmul %163, %164, %cst_60 {dimension_numbers = #tpu.dot_dimension_numbers<[1], [0], [0], [1], [0, 0, 1, 1], [], []>} : vector<4x2048xbf16>, vector<2048x128xbf16>, vector<4x128xf32> -> vector<4x128xf32>
    %c0_61 = arith.constant 0 : index
    %c0_62 = arith.constant 0 : index
    %166 = vector.load %arg11[%c0_61, %c0_62] : memref<1x128xf32, #tpu.memory_space<vmem>>, vector<1x128xf32>
    %167 = vector.broadcast %166 : vector<1x128xf32> to vector<4x128xf32>
    %168 = arith.addf %165, %167 : vector<4x128xf32>
    %169 = arith.addf %154, %168 : vector<4x128xf32>
    %c0_63 = arith.constant 0 : index
    %c0_64 = arith.constant 0 : index
    %170 = vector.load %arg12[%c0_63, %c0_64] : memref<1x128xf32, #tpu.memory_space<vmem>>, vector<1x128xf32>
    %c0_65 = arith.constant 0 : index
    %c0_66 = arith.constant 0 : index
    %171 = vector.load %arg13[%c0_65, %c0_66] : memref<1x128xf32, #tpu.memory_space<vmem>>, vector<1x128xf32>
    %cst_67 = arith.constant dense<0.000000e+00> : vector<4xf32>
    %172 = vector.multi_reduction <add>, %169, %cst_67 [1] : vector<4x128xf32> to vector<4xf32>
    %173 = vector.shape_cast %172 : vector<4xf32> to vector<4x1xf32>
    %cst_68 = arith.constant 1.280000e+02 : f32
    %174 = vector.broadcast %cst_68 : f32 to vector<4x1xf32>
    %175 = arith.divf %173, %174 : vector<4x1xf32>
    %176 = vector.broadcast %175 : vector<4x1xf32> to vector<4x128xf32>
    %177 = arith.subf %169, %176 : vector<4x128xf32>
    %178 = arith.mulf %177, %177 : vector<4x128xf32>
    %cst_69 = arith.constant dense<0.000000e+00> : vector<4xf32>
    %179 = vector.multi_reduction <add>, %178, %cst_69 [1] : vector<4x128xf32> to vector<4xf32>
    %180 = vector.shape_cast %179 : vector<4xf32> to vector<4x1xf32>
    %cst_70 = arith.constant 1.280000e+02 : f32
    %181 = vector.broadcast %cst_70 : f32 to vector<4x1xf32>
    %182 = arith.divf %180, %181 : vector<4x1xf32>
    %cst_71 = arith.constant 9.99999974E-6 : f32
    %183 = vector.broadcast %cst_71 : f32 to vector<4x1xf32>
    %184 = arith.addf %182, %183 : vector<4x1xf32>
    %185 = math.rsqrt %184 : vector<4x1xf32>
    %186 = vector.broadcast %185 : vector<4x1xf32> to vector<4x128xf32>
    %187 = arith.mulf %177, %186 : vector<4x128xf32>
    %188 = vector.broadcast %170 : vector<1x128xf32> to vector<4x128xf32>
    %189 = arith.mulf %187, %188 : vector<4x128xf32>
    %190 = vector.broadcast %171 : vector<1x128xf32> to vector<4x128xf32>
    %191 = arith.addf %189, %190 : vector<4x128xf32>
    %192 = vector.shape_cast %191 : vector<4x128xf32> to vector<1x4x128xf32>
    %c0_72 = arith.constant 0 : index
    %c0_73 = arith.constant 0 : index
    %c0_74 = arith.constant 0 : index
    %193 = vector.load %arg14[%c0_72, %c0_73, %c0_74] : memref<1x4x128xf32, #tpu.memory_space<vmem>>, vector<1x4x128xf32>
    tpu.vector_store %arg14[%c0_72, %c0_73, %c0_74], %192 {strides = array<i32>} : memref<1x4x128xf32, #tpu.memory_space<vmem>>, vector<1x4x128xf32>,
    return
  }
  func.func @transform_0(%arg0: i32) -> (i32, i32, i32) {
    %c0_i32 = arith.constant 0 : i32
    %c0_i32_0 = arith.constant 0 : i32
    %c0_i32_1 = arith.constant 0 : i32
    return %arg0, %c0_i32, %c0_i32_0 : i32, i32, i32
  }
  func.func @transform_1(%arg0: i32) -> (i32, i32) {
    %c0_i32 = arith.constant 0 : i32
    %c0_i32_0 = arith.constant 0 : i32
    %c0_i32_1 = arith.constant 0 : i32
    return %c0_i32, %c0_i32_0 : i32, i32
  }
  func.func @transform_2(%arg0: i32) -> (i32, i32) {
    %c0_i32 = arith.constant 0 : i32
    %c0_i32_0 = arith.constant 0 : i32
    %c0_i32_1 = arith.constant 0 : i32
    return %c0_i32, %c0_i32_0 : i32, i32
  }
  func.func @transform_3(%arg0: i32) -> (i32, i32) {
    %c0_i32 = arith.constant 0 : i32
    %c0_i32_0 = arith.constant 0 : i32
    %c0_i32_1 = arith.constant 0 : i32
    return %c0_i32, %c0_i32_0 : i32, i32
  }
  func.func @transform_4(%arg0: i32) -> (i32, i32) {
    %c0_i32 = arith.constant 0 : i32
    %c0_i32_0 = arith.constant 0 : i32
    %c0_i32_1 = arith.constant 0 : i32
    return %c0_i32, %c0_i32_0 : i32, i32
  }
  func.func @transform_5(%arg0: i32) -> (i32, i32) {
    %c0_i32 = arith.constant 0 : i32
    %c0_i32_0 = arith.constant 0 : i32
    %c0_i32_1 = arith.constant 0 : i32
    return %c0_i32, %c0_i32_0 : i32, i32
  }
  func.func @transform_6(%arg0: i32) -> (i32, i32) {
    %c0_i32 = arith.constant 0 : i32
    %c0_i32_0 = arith.constant 0 : i32
    %c0_i32_1 = arith.constant 0 : i32
    return %c0_i32, %c0_i32_0 : i32, i32
  }
  func.func @transform_7(%arg0: i32) -> (i32, i32) {
    %c0_i32 = arith.constant 0 : i32
    %c0_i32_0 = arith.constant 0 : i32
    %c0_i32_1 = arith.constant 0 : i32
    return %c0_i32, %c0_i32_0 : i32, i32
  }
  func.func @transform_8(%arg0: i32) -> (i32, i32) {
    %c0_i32 = arith.constant 0 : i32
    %c0_i32_0 = arith.constant 0 : i32
    %c0_i32_1 = arith.constant 0 : i32
    return %c0_i32, %c0_i32_0 : i32, i32
  }
  func.func @transform_9(%arg0: i32) -> (i32, i32) {
    %c0_i32 = arith.constant 0 : i32
    %c0_i32_0 = arith.constant 0 : i32
    %c0_i32_1 = arith.constant 0 : i32
    return %c0_i32, %c0_i32_0 : i32, i32
  }
  func.func @transform_10(%arg0: i32) -> (i32, i32) {
    %c0_i32 = arith.constant 0 : i32
    %c0_i32_0 = arith.constant 0 : i32
    %c0_i32_1 = arith.constant 0 : i32
    return %c0_i32, %c0_i32_0 : i32, i32
  }
  func.func @transform_11(%arg0: i32) -> (i32, i32) {
    %c0_i32 = arith.constant 0 : i32
    %c0_i32_0 = arith.constant 0 : i32
    %c0_i32_1 = arith.constant 0 : i32
    return %c0_i32, %c0_i32_0 : i32, i32
  }
  func.func @transform_12(%arg0: i32) -> (i32, i32) {
    %c0_i32 = arith.constant 0 : i32
    %c0_i32_0 = arith.constant 0 : i32
    %c0_i32_1 = arith.constant 0 : i32
    return %c0_i32, %c0_i32_0 : i32, i32
  }
  func.func @transform_13(%arg0: i32) -> (i32, i32, i32) {
    %c0_i32 = arith.constant 0 : i32
    %c0_i32_0 = arith.constant 0 : i32
    %c0_i32_1 = arith.constant 0 : i32
    return %arg0, %c0_i32, %c0_i32_0 : i32, i32, i32
  }
}

module attributes {stable_mosaic.version = 11 : i64} {
  func.func @_tf_layer_kernel(%arg0: i32, %arg1: memref<1x4x128xf32, #tpu.memory_space<vmem>>, %arg2: memref<128x384xbf16, #tpu.memory_space<vmem>>, %arg3: memref<1x384xf32, #tpu.memory_space<vmem>>, %arg4: memref<128x128xbf16, #tpu.memory_space<vmem>>, %arg5: memref<1x128xf32, #tpu.memory_space<vmem>>, %arg6: memref<1x128xf32, #tpu.memory_space<vmem>>, %arg7: memref<1x128xf32, #tpu.memory_space<vmem>>, %arg8: memref<128x2048xbf16, #tpu.memory_space<vmem>>, %arg9: memref<1x2048xf32, #tpu.memory_space<vmem>>, %arg10: memref<2048x128xbf16, #tpu.memory_space<vmem>>, %arg11: memref<1x128xf32, #tpu.memory_space<vmem>>, %arg12: memref<1x128xf32, #tpu.memory_space<vmem>>, %arg13: memref<1x128xf32, #tpu.memory_space<vmem>>, %arg14: memref<1x4x128xf32, #tpu.memory_space<vmem>>) attributes {dimension_semantics = [#tpu.dimension_semantics<parallel>], iteration_bounds = array<i64: 2>, scalar_prefetch = 0 : i64, scratch_operands = 0 : i64, tpu.core_type = #tpu.core_type<tc>, window_params = [{transform_indices = @transform_0, window_bounds = array<i64: 1, 4, 128>}, {pipeline_mode = #tpu.pipeline_mode<synchronous>, transform_indices = @transform_1, window_bounds = array<i64: 128, 384>}, {pipeline_mode = #tpu.pipeline_mode<synchronous>, transform_indices = @transform_2, window_bounds = array<i64: 1, 384>}, {pipeline_mode = #tpu.pipeline_mode<synchronous>, transform_indices = @transform_3, window_bounds = array<i64: 128, 128>}, {pipeline_mode = #tpu.pipeline_mode<synchronous>, transform_indices = @transform_4, window_bounds = array<i64: 1, 128>}, {pipeline_mode = #tpu.pipeline_mode<synchronous>, transform_indices = @transform_5, window_bounds = array<i64: 1, 128>}, {pipeline_mode = #tpu.pipeline_mode<synchronous>, transform_indices = @transform_6, window_bounds = array<i64: 1, 128>}, {pipeline_mode = #tpu.pipeline_mode<synchronous>, transform_indices = @transform_7, window_bounds = array<i64: 128, 2048>}, {pipeline_mode = #tpu.pipeline_mode<synchronous>, transform_indices = @transform_8, window_bounds = array<i64: 1, 2048>}, {pipeline_mode = #tpu.pipeline_mode<synchronous>, transform_indices = @transform_9, window_bounds = array<i64: 2048, 128>}, {pipeline_mode = #tpu.pipeline_mode<synchronous>, transform_indices = @transform_10, window_bounds = array<i64: 1, 128>}, {pipeline_mode = #tpu.pipeline_mode<synchronous>, transform_indices = @transform_11, window_bounds = array<i64: 1, 128>}, {pipeline_mode = #tpu.pipeline_mode<synchronous>, transform_indices = @transform_12, window_bounds = array<i64: 1, 128>}, {transform_indices = @transform_13, window_bounds = array<i64: 1, 4, 128>}]} {
    %c0 = arith.constant 0 : index
    %c0_0 = arith.constant 0 : index
    %c0_1 = arith.constant 0 : index
    %0 = vector.load %arg1[%c0, %c0_0, %c0_1] : memref<1x4x128xf32, #tpu.memory_space<vmem>>, vector<1x4x128xf32>
    %1 = vector.shape_cast %0 : vector<1x4x128xf32> to vector<4x128xf32>
    %2 = arith.truncf %1 : vector<4x128xf32> to vector<4x128xbf16>
    %c0_2 = arith.constant 0 : index
    %c0_3 = arith.constant 0 : index
    %3 = vector.load %arg2[%c0_2, %c0_3] : memref<128x384xbf16, #tpu.memory_space<vmem>>, vector<128x384xbf16>
    %cst = arith.constant dense<0.000000e+00> : vector<4x384xf32>
    %4 = tpu.matmul %2, %3, %cst {dimension_numbers = #tpu.dot_dimension_numbers<[1], [0], [0], [1], [0, 0, 1, 1], [], []>} : vector<4x128xbf16>, vector<128x384xbf16>, vector<4x384xf32> -> vector<4x384xf32>
    %c0_4 = arith.constant 0 : index
    %c0_5 = arith.constant 0 : index
    %5 = vector.load %arg3[%c0_4, %c0_5] : memref<1x384xf32, #tpu.memory_space<vmem>>, vector<1x384xf32>
    %6 = vector.broadcast %5 : vector<1x384xf32> to vector<4x384xf32>
    %7 = arith.addf %4, %6 : vector<4x384xf32>
    %8 = vector.extract_strided_slice %7 {offsets = [0, 0], sizes = [4, 128], strides = [1, 1]} : vector<4x384xf32> to vector<4x128xf32>
    %9 = vector.extract_strided_slice %7 {offsets = [0, 128], sizes = [4, 128], strides = [1, 1]} : vector<4x384xf32> to vector<4x128xf32>
    %10 = vector.extract_strided_slice %7 {offsets = [0, 256], sizes = [4, 128], strides = [1, 1]} : vector<4x384xf32> to vector<4x128xf32>
    %11 = tpu.transpose %9, [1, 0] : vector<4x128xf32> -> vector<128x4xf32>
    %12 = tpu.iota {dimensions = array<i32: 1>} : vector<1x128xi32>
    %cst_6 = arith.constant 0.000000e+00 : f32
    %13 = vector.broadcast %cst_6 : f32 to vector<4x128xf32>
    %c0_i32 = arith.constant 0 : i32
    %14 = vector.broadcast %c0_i32 : i32 to vector<1x128xi32>
    %15 = arith.cmpi sge, %12, %14 : vector<1x128xi32>
    %c32_i32 = arith.constant 32 : i32
    %16 = vector.broadcast %c32_i32 : i32 to vector<1x128xi32>
    %17 = arith.cmpi slt, %12, %16 : vector<1x128xi32>
    %18 = arith.andi %15, %17 : vector<1x128xi1>
    %cst_7 = arith.constant 0.000000e+00 : f32
    %19 = vector.shape_cast %18 : vector<1x128xi1> to vector<1x128xi1>
    %20 = vector.broadcast %19 : vector<1x128xi1> to vector<4x128xi1>
    %21 = vector.broadcast %cst_7 : f32 to vector<4x128xf32>
    %22 = arith.select %20, %8, %21 : vector<4x128xi1>, vector<4x128xf32>
    %cst_8 = arith.constant dense<0.000000e+00> : vector<4x4xf32>
    %23 = tpu.matmul %22, %11, %cst_8 {dimension_numbers = #tpu.dot_dimension_numbers<[1], [0], [0], [1], [0, 0, 1, 1], [], []>} : vector<4x128xf32>, vector<128x4xf32>, vector<4x4xf32> -> vector<4x4xf32>
    %cst_9 = arith.constant 0.176776692 : f32
    %24 = vector.broadcast %cst_9 : f32 to vector<4x4xf32>
    %25 = arith.mulf %23, %24 : vector<4x4xf32>
    %cst_10 = arith.constant dense<0xFF800000> : vector<4xf32>
    %26 = vector.multi_reduction <maximumf>, %25, %cst_10 [1] : vector<4x4xf32> to vector<4xf32>
    %27 = vector.shape_cast %26 : vector<4xf32> to vector<4x1xf32>
    %28 = vector.broadcast %27 : vector<4x1xf32> to vector<4x4xf32>
    %29 = arith.subf %25, %28 : vector<4x4xf32>
    %30 = math.exp %29 : vector<4x4xf32>
    %cst_11 = arith.constant dense<0.000000e+00> : vector<4xf32>
    %31 = vector.multi_reduction <add>, %30, %cst_11 [1] : vector<4x4xf32> to vector<4xf32>
    %32 = vector.shape_cast %31 : vector<4xf32> to vector<4x1xf32>
    %33 = tpu.reciprocal %32 {approx = true} : vector<4x1xf32> -> vector<4x1xf32>
    %34 = vector.broadcast %33 : vector<4x1xf32> to vector<4x4xf32>
    %35 = arith.mulf %30, %34 : vector<4x4xf32>
    %cst_12 = arith.constant 0.000000e+00 : f32
    %36 = vector.shape_cast %18 : vector<1x128xi1> to vector<1x128xi1>
    %37 = vector.broadcast %36 : vector<1x128xi1> to vector<4x128xi1>
    %38 = vector.broadcast %cst_12 : f32 to vector<4x128xf32>
    %39 = arith.select %37, %10, %38 : vector<4x128xi1>, vector<4x128xf32>
    %cst_13 = arith.constant dense<0.000000e+00> : vector<4x128xf32>
    %40 = tpu.matmul %35, %39, %cst_13 {dimension_numbers = #tpu.dot_dimension_numbers<[1], [0], [0], [1], [0, 0, 1, 1], [], []>} : vector<4x4xf32>, vector<4x128xf32>, vector<4x128xf32> -> vector<4x128xf32>
    %41 = arith.addf %13, %40 : vector<4x128xf32>
    %c32_i32_14 = arith.constant 32 : i32
    %42 = vector.broadcast %c32_i32_14 : i32 to vector<1x128xi32>
    %43 = arith.cmpi sge, %12, %42 : vector<1x128xi32>
    %c64_i32 = arith.constant 64 : i32
    %44 = vector.broadcast %c64_i32 : i32 to vector<1x128xi32>
    %45 = arith.cmpi slt, %12, %44 : vector<1x128xi32>
    %46 = arith.andi %43, %45 : vector<1x128xi1>
    %cst_15 = arith.constant 0.000000e+00 : f32
    %47 = vector.shape_cast %46 : vector<1x128xi1> to vector<1x128xi1>
    %48 = vector.broadcast %47 : vector<1x128xi1> to vector<4x128xi1>
    %49 = vector.broadcast %cst_15 : f32 to vector<4x128xf32>
    %50 = arith.select %48, %8, %49 : vector<4x128xi1>, vector<4x128xf32>
    %cst_16 = arith.constant dense<0.000000e+00> : vector<4x4xf32>
    %51 = tpu.matmul %50, %11, %cst_16 {dimension_numbers = #tpu.dot_dimension_numbers<[1], [0], [0], [1], [0, 0, 1, 1], [], []>} : vector<4x128xf32>, vector<128x4xf32>, vector<4x4xf32> -> vector<4x4xf32>
    %cst_17 = arith.constant 0.176776692 : f32
    %52 = vector.broadcast %cst_17 : f32 to vector<4x4xf32>
    %53 = arith.mulf %51, %52 : vector<4x4xf32>
    %cst_18 = arith.constant dense<0xFF800000> : vector<4xf32>
    %54 = vector.multi_reduction <maximumf>, %53, %cst_18 [1] : vector<4x4xf32> to vector<4xf32>
    %55 = vector.shape_cast %54 : vector<4xf32> to vector<4x1xf32>
    %56 = vector.broadcast %55 : vector<4x1xf32> to vector<4x4xf32>
    %57 = arith.subf %53, %56 : vector<4x4xf32>
    %58 = math.exp %57 : vector<4x4xf32>
    %cst_19 = arith.constant dense<0.000000e+00> : vector<4xf32>
    %59 = vector.multi_reduction <add>, %58, %cst_19 [1] : vector<4x4xf32> to vector<4xf32>
    %60 = vector.shape_cast %59 : vector<4xf32> to vector<4x1xf32>
    %61 = tpu.reciprocal %60 {approx = true} : vector<4x1xf32> -> vector<4x1xf32>
    %62 = vector.broadcast %61 : vector<4x1xf32> to vector<4x4xf32>
    %63 = arith.mulf %58, %62 : vector<4x4xf32>
    %cst_20 = arith.constant 0.000000e+00 : f32
    %64 = vector.shape_cast %46 : vector<1x128xi1> to vector<1x128xi1>
    %65 = vector.broadcast %64 : vector<1x128xi1> to vector<4x128xi1>
    %66 = vector.broadcast %cst_20 : f32 to vector<4x128xf32>
    %67 = arith.select %65, %10, %66 : vector<4x128xi1>, vector<4x128xf32>
    %cst_21 = arith.constant dense<0.000000e+00> : vector<4x128xf32>
    %68 = tpu.matmul %63, %67, %cst_21 {dimension_numbers = #tpu.dot_dimension_numbers<[1], [0], [0], [1], [0, 0, 1, 1], [], []>} : vector<4x4xf32>, vector<4x128xf32>, vector<4x128xf32> -> vector<4x128xf32>
    %69 = arith.addf %41, %68 : vector<4x128xf32>
    %c64_i32_22 = arith.constant 64 : i32
    %70 = vector.broadcast %c64_i32_22 : i32 to vector<1x128xi32>
    %71 = arith.cmpi sge, %12, %70 : vector<1x128xi32>
    %c96_i32 = arith.constant 96 : i32
    %72 = vector.broadcast %c96_i32 : i32 to vector<1x128xi32>
    %73 = arith.cmpi slt, %12, %72 : vector<1x128xi32>
    %74 = arith.andi %71, %73 : vector<1x128xi1>
    %cst_23 = arith.constant 0.000000e+00 : f32
    %75 = vector.shape_cast %74 : vector<1x128xi1> to vector<1x128xi1>
    %76 = vector.broadcast %75 : vector<1x128xi1> to vector<4x128xi1>
    %77 = vector.broadcast %cst_23 : f32 to vector<4x128xf32>
    %78 = arith.select %76, %8, %77 : vector<4x128xi1>, vector<4x128xf32>
    %cst_24 = arith.constant dense<0.000000e+00> : vector<4x4xf32>
    %79 = tpu.matmul %78, %11, %cst_24 {dimension_numbers = #tpu.dot_dimension_numbers<[1], [0], [0], [1], [0, 0, 1, 1], [], []>} : vector<4x128xf32>, vector<128x4xf32>, vector<4x4xf32> -> vector<4x4xf32>
    %cst_25 = arith.constant 0.176776692 : f32
    %80 = vector.broadcast %cst_25 : f32 to vector<4x4xf32>
    %81 = arith.mulf %79, %80 : vector<4x4xf32>
    %cst_26 = arith.constant dense<0xFF800000> : vector<4xf32>
    %82 = vector.multi_reduction <maximumf>, %81, %cst_26 [1] : vector<4x4xf32> to vector<4xf32>
    %83 = vector.shape_cast %82 : vector<4xf32> to vector<4x1xf32>
    %84 = vector.broadcast %83 : vector<4x1xf32> to vector<4x4xf32>
    %85 = arith.subf %81, %84 : vector<4x4xf32>
    %86 = math.exp %85 : vector<4x4xf32>
    %cst_27 = arith.constant dense<0.000000e+00> : vector<4xf32>
    %87 = vector.multi_reduction <add>, %86, %cst_27 [1] : vector<4x4xf32> to vector<4xf32>
    %88 = vector.shape_cast %87 : vector<4xf32> to vector<4x1xf32>
    %89 = tpu.reciprocal %88 {approx = true} : vector<4x1xf32> -> vector<4x1xf32>
    %90 = vector.broadcast %89 : vector<4x1xf32> to vector<4x4xf32>
    %91 = arith.mulf %86, %90 : vector<4x4xf32>
    %cst_28 = arith.constant 0.000000e+00 : f32
    %92 = vector.shape_cast %74 : vector<1x128xi1> to vector<1x128xi1>
    %93 = vector.broadcast %92 : vector<1x128xi1> to vector<4x128xi1>
    %94 = vector.broadcast %cst_28 : f32 to vector<4x128xf32>
    %95 = arith.select %93, %10, %94 : vector<4x128xi1>, vector<4x128xf32>
    %cst_29 = arith.constant dense<0.000000e+00> : vector<4x128xf32>
    %96 = tpu.matmul %91, %95, %cst_29 {dimension_numbers = #tpu.dot_dimension_numbers<[1], [0], [0], [1], [0, 0, 1, 1], [], []>} : vector<4x4xf32>, vector<4x128xf32>, vector<4x128xf32> -> vector<4x128xf32>
    %97 = arith.addf %69, %96 : vector<4x128xf32>
    %c96_i32_30 = arith.constant 96 : i32
    %98 = vector.broadcast %c96_i32_30 : i32 to vector<1x128xi32>
    %99 = arith.cmpi sge, %12, %98 : vector<1x128xi32>
    %c128_i32 = arith.constant 128 : i32
    %100 = vector.broadcast %c128_i32 : i32 to vector<1x128xi32>
    %101 = arith.cmpi slt, %12, %100 : vector<1x128xi32>
    %102 = arith.andi %99, %101 : vector<1x128xi1>
    %cst_31 = arith.constant 0.000000e+00 : f32
    %103 = vector.shape_cast %102 : vector<1x128xi1> to vector<1x128xi1>
    %104 = vector.broadcast %103 : vector<1x128xi1> to vector<4x128xi1>
    %105 = vector.broadcast %cst_31 : f32 to vector<4x128xf32>
    %106 = arith.select %104, %8, %105 : vector<4x128xi1>, vector<4x128xf32>
    %cst_32 = arith.constant dense<0.000000e+00> : vector<4x4xf32>
    %107 = tpu.matmul %106, %11, %cst_32 {dimension_numbers = #tpu.dot_dimension_numbers<[1], [0], [0], [1], [0, 0, 1, 1], [], []>} : vector<4x128xf32>, vector<128x4xf32>, vector<4x4xf32> -> vector<4x4xf32>
    %cst_33 = arith.constant 0.176776692 : f32
    %108 = vector.broadcast %cst_33 : f32 to vector<4x4xf32>
    %109 = arith.mulf %107, %108 : vector<4x4xf32>
    %cst_34 = arith.constant dense<0xFF800000> : vector<4xf32>
    %110 = vector.multi_reduction <maximumf>, %109, %cst_34 [1] : vector<4x4xf32> to vector<4xf32>
    %111 = vector.shape_cast %110 : vector<4xf32> to vector<4x1xf32>
    %112 = vector.broadcast %111 : vector<4x1xf32> to vector<4x4xf32>
    %113 = arith.subf %109, %112 : vector<4x4xf32>
    %114 = math.exp %113 : vector<4x4xf32>
    %cst_35 = arith.constant dense<0.000000e+00> : vector<4xf32>
    %115 = vector.multi_reduction <add>, %114, %cst_35 [1] : vector<4x4xf32> to vector<4xf32>
    %116 = vector.shape_cast %115 : vector<4xf32> to vector<4x1xf32>
    %117 = tpu.reciprocal %116 {approx = true} : vector<4x1xf32> -> vector<4x1xf32>
    %118 = vector.broadcast %117 : vector<4x1xf32> to vector<4x4xf32>
    %119 = arith.mulf %114, %118 : vector<4x4xf32>
    %cst_36 = arith.constant 0.000000e+00 : f32
    %120 = vector.shape_cast %102 : vector<1x128xi1> to vector<1x128xi1>
    %121 = vector.broadcast %120 : vector<1x128xi1> to vector<4x128xi1>
    %122 = vector.broadcast %cst_36 : f32 to vector<4x128xf32>
    %123 = arith.select %121, %10, %122 : vector<4x128xi1>, vector<4x128xf32>
    %cst_37 = arith.constant dense<0.000000e+00> : vector<4x128xf32>
    %124 = tpu.matmul %119, %123, %cst_37 {dimension_numbers = #tpu.dot_dimension_numbers<[1], [0], [0], [1], [0, 0, 1, 1], [], []>} : vector<4x4xf32>, vector<4x128xf32>, vector<4x128xf32> -> vector<4x128xf32>
    %125 = arith.addf %97, %124 : vector<4x128xf32>
    %126 = arith.truncf %125 : vector<4x128xf32> to vector<4x128xbf16>
    %c0_38 = arith.constant 0 : index
    %c0_39 = arith.constant 0 : index
    %127 = vector.load %arg4[%c0_38, %c0_39] : memref<128x128xbf16, #tpu.memory_space<vmem>>, vector<128x128xbf16>
    %cst_40 = arith.constant dense<0.000000e+00> : vector<4x128xf32>
    %128 = tpu.matmul %126, %127, %cst_40 {dimension_numbers = #tpu.dot_dimension_numbers<[1], [0], [0], [1], [0, 0, 1, 1], [], []>} : vector<4x128xbf16>, vector<128x128xbf16>, vector<4x128xf32> -> vector<4x128xf32>
    %c0_41 = arith.constant 0 : index
    %c0_42 = arith.constant 0 : index
    %129 = vector.load %arg5[%c0_41, %c0_42] : memref<1x128xf32, #tpu.memory_space<vmem>>, vector<1x128xf32>
    %130 = vector.broadcast %129 : vector<1x128xf32> to vector<4x128xf32>
    %131 = arith.addf %128, %130 : vector<4x128xf32>
    %132 = arith.addf %1, %131 : vector<4x128xf32>
    %c0_43 = arith.constant 0 : index
    %c0_44 = arith.constant 0 : index
    %133 = vector.load %arg6[%c0_43, %c0_44] : memref<1x128xf32, #tpu.memory_space<vmem>>, vector<1x128xf32>
    %c0_45 = arith.constant 0 : index
    %c0_46 = arith.constant 0 : index
    %134 = vector.load %arg7[%c0_45, %c0_46] : memref<1x128xf32, #tpu.memory_space<vmem>>, vector<1x128xf32>
    %cst_47 = arith.constant dense<0.000000e+00> : vector<4xf32>
    %135 = vector.multi_reduction <add>, %132, %cst_47 [1] : vector<4x128xf32> to vector<4xf32>
    %136 = vector.shape_cast %135 : vector<4xf32> to vector<4x1xf32>
    %cst_48 = arith.constant 1.280000e+02 : f32
    %137 = vector.broadcast %cst_48 : f32 to vector<4x1xf32>
    %138 = arith.divf %136, %137 : vector<4x1xf32>
    %139 = vector.broadcast %138 : vector<4x1xf32> to vector<4x128xf32>
    %140 = arith.subf %132, %139 : vector<4x128xf32>
    %141 = arith.mulf %140, %140 : vector<4x128xf32>
    %cst_49 = arith.constant dense<0.000000e+00> : vector<4xf32>
    %142 = vector.multi_reduction <add>, %141, %cst_49 [1] : vector<4x128xf32> to vector<4xf32>
    %143 = vector.shape_cast %142 : vector<4xf32> to vector<4x1xf32>
    %cst_50 = arith.constant 1.280000e+02 : f32
    %144 = vector.broadcast %cst_50 : f32 to vector<4x1xf32>
    %145 = arith.divf %143, %144 : vector<4x1xf32>
    %cst_51 = arith.constant 9.99999974E-6 : f32
    %146 = vector.broadcast %cst_51 : f32 to vector<4x1xf32>
    %147 = arith.addf %145, %146 : vector<4x1xf32>
    %148 = math.rsqrt %147 : vector<4x1xf32>
    %149 = vector.broadcast %148 : vector<4x1xf32> to vector<4x128xf32>
    %150 = arith.mulf %140, %149 : vector<4x128xf32>
    %151 = vector.broadcast %133 : vector<1x128xf32> to vector<4x128xf32>
    %152 = arith.mulf %150, %151 : vector<4x128xf32>
    %153 = vector.broadcast %134 : vector<1x128xf32> to vector<4x128xf32>
    %154 = arith.addf %152, %153 : vector<4x128xf32>
    %155 = arith.truncf %154 : vector<4x128xf32> to vector<4x128xbf16>
    %c0_52 = arith.constant 0 : index
    %c0_53 = arith.constant 0 : index
    %156 = vector.load %arg8[%c0_52, %c0_53] : memref<128x2048xbf16, #tpu.memory_space<vmem>>, vector<128x2048xbf16>
    %cst_54 = arith.constant dense<0.000000e+00> : vector<4x2048xf32>
    %157 = tpu.matmul %155, %156, %cst_54 {dimension_numbers = #tpu.dot_dimension_numbers<[1], [0], [0], [1], [0, 0, 1, 1], [], []>} : vector<4x128xbf16>, vector<128x2048xbf16>, vector<4x2048xf32> -> vector<4x2048xf32>
    %c0_55 = arith.constant 0 : index
    %c0_56 = arith.constant 0 : index
    %158 = vector.load %arg9[%c0_55, %c0_56] : memref<1x2048xf32, #tpu.memory_space<vmem>>, vector<1x2048xf32>
    %159 = vector.broadcast %158 : vector<1x2048xf32> to vector<4x2048xf32>
    %160 = arith.addf %157, %159 : vector<4x2048xf32>
    %cst_57 = arith.constant 0.000000e+00 : f32
    %161 = vector.broadcast %cst_57 : f32 to vector<4x2048xf32>
    %162 = arith.maximumf %160, %161 : vector<4x2048xf32>
    %163 = arith.truncf %162 : vector<4x2048xf32> to vector<4x2048xbf16>
    %c0_58 = arith.constant 0 : index
    %c0_59 = arith.constant 0 : index
    %164 = vector.load %arg10[%c0_58, %c0_59] : memref<2048x128xbf16, #tpu.memory_space<vmem>>, vector<2048x128xbf16>
    %cst_60 = arith.constant dense<0.000000e+00> : vector<4x128xf32>
    %165 = tpu.matmul %163, %164, %cst_60 {dimension_numbers = #tpu.dot_dimension_numbers<[1], [0], [0], [1], [0, 0, 1, 1], [], []>} : vector<4x2048xbf16>, vector<2048x128xbf16>, vector<4x128xf32> -> vector<4x128xf32>
    %c0_61 = arith.constant 0 : index
    %c0_62 = arith.constant 0 : index
    %166 = vector.load %arg11[%c0_61, %c0_62] : memref<1x128xf32, #tpu.memory_space<vmem>>, vector<1x128xf32>
    %167 = vector.broadcast %166 : vector<1x128xf32> to vector<4x128xf32>
    %168 = arith.addf %165, %167 : vector<4x128xf32>
    %169 = arith.addf %154, %168 : vector<4x128xf32>
    %c0_63 = arith.constant 0 : index
    %c0_64 = arith.constant 0 : index
    %170 = vector.load %arg12[%c0_63, %c0_64] : memref<1x128xf32, #tpu.memory_space<vmem>>, vector<1x128xf32>
    %c0_65 = arith.constant 0 : index
    %c0_66 = arith.constant 0 : index
    %171 = vector.load %arg13[%c0_65, %c0_66] : memref<1x128xf32, #tpu.memory_space<vmem>>, vector<1x128xf32>
    %cst_67 = arith.constant dense<0.000000e+00> : vector<4xf32>
    %172 = vector.multi_reduction <add>, %169, %cst_67 [1] : vector<4x128xf32> to vector<4xf32>
    %173 = vector.shape_cast %172 : vector<4xf32> to vector<4x1xf32>
    %cst_68 = arith.constant 1.280000e+02 : f32
    %174 = vector.broadcast %cst_68 : f32 to vector<4x1xf32>
    %175 = arith.divf %173, %174 : vector<4x1xf32>
    %176 = vector.broadcast %175 : vector<4x1xf32> to vector<4x128xf32>
    %177 = arith.subf %169, %176 : vector<4x128xf32>
    %178 = arith.mulf %177, %177 : vector<4x128xf32>
    %cst_69 = arith.constant dense<0.000000e+00> : vector<4xf32>
    %179 = vector.multi_reduction <add>, %178, %cst_69 [1] : vector<4x128xf32> to vector<4xf32>
    %180 = vector.shape_cast %179 : vector<4xf32> to vector<4x1xf32>
    %cst_70 = arith.constant 1.280000e+02 : f32
    %181 = vector.broadcast %cst_70 : f32 to vector<4x1xf32>
    %182 = arith.divf %180, %181 : vector<4x1xf32>
    %cst_71 = arith.constant 9.99999974E-6 : f32
    %183 = vector.broadcast %cst_71 : f32 to vector<4x1xf32>
    %184 = arith.addf %182, %183 : vector<4x1xf32>
    %185 = math.rsqrt %184 : vector<4x1xf32>
    %186 = vector.broadcast %185 : vector<4x1xf32> to vector<4x128xf32>
    %187 = arith.mulf %177, %186 : vector<4x128xf32>
    %188 = vector.broadcast %170 : vector<1x128xf32> to vector<4x128xf32>
    %189 = arith.mulf %187, %188 : vector<4x128xf32>
    %190 = vector.broadcast %171 : vector<1x128xf32> to vector<4x128xf32>
    %191 = arith.addf %189, %190 : vector<4x128xf32>
    %192 = vector.shape_cast %191 : vector<4x128xf32> to vector<1x4x128xf32>
    %c0_72 = arith.constant 0 : index
    %c0_73 = arith.constant 0 : index
    %c0_74 = arith.constant 0 : index
    %193 = vector.load %arg14[%c0_72, %c0_73, %c0_74] : memref<1x4x128xf32, #tpu.memory_space<vmem>>, vector<1x4x128xf32>
    tpu.vector_store %arg14[%c0_72, %c0_73, %c0_74], %192 {strides = array<i32>} : memref<1x4x128xf32, #tpu.memory_space<vmem>>, vector<1x4x128xf32>,
    return
  }
  func.func @transform_0(%arg0: i32) -> (i32, i32, i32) {
    %c0_i32 = arith.constant 0 : i32
    %c0_i32_0 = arith.constant 0 : i32
    %c0_i32_1 = arith.constant 0 : i32
    return %arg0, %c0_i32, %c0_i32_0 : i32, i32, i32
  }
  func.func @transform_1(%arg0: i32) -> (i32, i32) {
    %c0_i32 = arith.constant 0 : i32
    %c0_i32_0 = arith.constant 0 : i32
    %c0_i32_1 = arith.constant 0 : i32
    return %c0_i32, %c0_i32_0 : i32, i32
  }
  func.func @transform_2(%arg0: i32) -> (i32, i32) {
    %c0_i32 = arith.constant 0 : i32
    %c0_i32_0 = arith.constant 0 : i32
    %c0_i32_1 = arith.constant 0 : i32
    return %c0_i32, %c0_i32_0 : i32, i32
  }
  func.func @transform_3(%arg0: i32) -> (i32, i32) {
    %c0_i32 = arith.constant 0 : i32
    %c0_i32_0 = arith.constant 0 : i32
    %c0_i32_1 = arith.constant 0 : i32
    return %c0_i32, %c0_i32_0 : i32, i32
  }
  func.func @transform_4(%arg0: i32) -> (i32, i32) {
    %c0_i32 = arith.constant 0 : i32
    %c0_i32_0 = arith.constant 0 : i32
    %c0_i32_1 = arith.constant 0 : i32
    return %c0_i32, %c0_i32_0 : i32, i32
  }
  func.func @transform_5(%arg0: i32) -> (i32, i32) {
    %c0_i32 = arith.constant 0 : i32
    %c0_i32_0 = arith.constant 0 : i32
    %c0_i32_1 = arith.constant 0 : i32
    return %c0_i32, %c0_i32_0 : i32, i32
  }
  func.func @transform_6(%arg0: i32) -> (i32, i32) {
    %c0_i32 = arith.constant 0 : i32
    %c0_i32_0 = arith.constant 0 : i32
    %c0_i32_1 = arith.constant 0 : i32
    return %c0_i32, %c0_i32_0 : i32, i32
  }
  func.func @transform_7(%arg0: i32) -> (i32, i32) {
    %c0_i32 = arith.constant 0 : i32
    %c0_i32_0 = arith.constant 0 : i32
    %c0_i32_1 = arith.constant 0 : i32
    return %c0_i32, %c0_i32_0 : i32, i32
  }
  func.func @transform_8(%arg0: i32) -> (i32, i32) {
    %c0_i32 = arith.constant 0 : i32
    %c0_i32_0 = arith.constant 0 : i32
    %c0_i32_1 = arith.constant 0 : i32
    return %c0_i32, %c0_i32_0 : i32, i32
  }
  func.func @transform_9(%arg0: i32) -> (i32, i32) {
    %c0_i32 = arith.constant 0 : i32
    %c0_i32_0 = arith.constant 0 : i32
    %c0_i32_1 = arith.constant 0 : i32
    return %c0_i32, %c0_i32_0 : i32, i32
  }
  func.func @transform_10(%arg0: i32) -> (i32, i32) {
    %c0_i32 = arith.constant 0 : i32
    %c0_i32_0 = arith.constant 0 : i32
    %c0_i32_1 = arith.constant 0 : i32
    return %c0_i32, %c0_i32_0 : i32, i32
  }
  func.func @transform_11(%arg0: i32) -> (i32, i32) {
    %c0_i32 = arith.constant 0 : i32
    %c0_i32_0 = arith.constant 0 : i32
    %c0_i32_1 = arith.constant 0 : i32
    return %c0_i32, %c0_i32_0 : i32, i32
  }
  func.func @transform_12(%arg0: i32) -> (i32, i32) {
    %c0_i32 = arith.constant 0 : i32
    %c0_i32_0 = arith.constant 0 : i32
    %c0_i32_1 = arith.constant 0 : i32
    return %c0_i32, %c0_i32_0 : i32, i32
  }
  func.func @transform_13(%arg0: i32) -> (i32, i32, i32) {
    %c0_i32 = arith.constant 0 : i32
    %c0_i32_0 = arith.constant 0 : i32
    %c0_i32_1 = arith.constant 0 : i32
    return %arg0, %c0_i32, %c0_i32_0 : i32, i32, i32
  }
}

</mosaic_0001>

<bundles_post_ra>
// kernel: _lambda_.4
= control target key start
LH: loop header
LB: loop body
LE: loop exit
PB: predicated region body
PF: predicated region fallthrough
CT: control target
= control target key end

     0   :  { %10 = vsyncpa [#allocation3], 0  ;;  %s2678_s0 = inlined_call_operand.vmem [shape: f32[2,66,128], index: 0, kind: input, shape index: {}]   ;;  %s2679_s1 = inlined_call_operand.vmem [shape: bf16[3,128,64], index: 1, kind: input, shape index: {}]   ;;  %s2680_s2 = inlined_call_operand.hbm [shape: f32[1,64], index: 2, kind: input, shape index: {}]   ;;  %s2681_s3 = inlined_call_operand.hbm [shape: bf16[3,64,128], index: 3, kind: input, shape index: {}]   ;;  %s2682_s4 = inlined_call_operand.hbm [shape: f32[1,128], index: 4, kind: input, shape index: {}]   ;;  %s2683_s5 = inlined_call_operand.vmem [shape: f32[2,4,128], index: 5, kind: output, shape index: {}]  }
   0x1   :  { %11 = vsyncpa [#allocation5], 0  ;;  %s2342_s18 = smov 0  }
   0x2 LB: > { %s2304_s19 = smov [#allocation4]   ;;  %s2348_s21 = sadd.s32 4294967295, %s2302_s18   ;;  %s2302_s18 = sphi %s2342_s18, %s17_s18  }
   0x3   : > { %s184_s20 = sshll.u32 %s2304_s19, 4  ;;  %p1671_p0 = scmp.ge.s32.totalorder %s2302_s18, 1  ;;  %s2357_s20 = int_to_ptr.vmem [resolvable:$true] %s184_s20 }
   0x4   : > { %p158_p1 = scmp.lt.s32.totalorder %s2302_s18, 3  ;;  %p2146_p2 = scmp.eq.s32.totalorder %s2348_s21, 0 }
   0x5   : > { %s2305_s23 = smov [#allocation2]   ;;  %s2306_s26 = smov [#allocation6]  }
   0x6   : > { %p2353_p3 = pnand %p1671_p0, %p158_p1  ;;  %s174_s24 = sshll.u32 %s2305_s23, 4  ;;  %s2367_s24 = int_to_ptr.vmem [resolvable:$true] %s174_s24 }
   0x7   : > { %s198_s27 = sshll.u32 %s2306_s26, 4  ;;  %s2204_s30 = scalar_lea.hbm %s2681_s3, 1536  ;;  %s2369_s27 = int_to_ptr.vmem [resolvable:$true] %s198_s27 }
   0x8   : > { %p2136_p4 = pneg %p2353_p3  ;;  %p2205_p6 = scmp.ne.s32.totalorder %s2681_s3, %s2204_s30 }
   0x9   : > { %p2211_p10 = scmp.lt.u32.totalorder %s2204_s30, %s2681_s3 }
   0xa   : > { %p2363_p5 = pnand %p2146_p2, %p2136_p4 }
   0xc   : > { %p2379_p7 = pneg %p2363_p5 }
   0xe   : > { %p2207_p8 = pnand %p2379_p7, %p2205_p6 }
  0x10   : > { %p2208_p9 = pneg %p2207_p8 }
  0x12   : > { %p2213_p11 = pnand %p2211_p10, %p2208_p9 }
  0x14   : > { %2216 = shalt.err (!%p2213_p11)
}
  0x15   : > { %s2217_s11 = scalar_lea.vmem %s2357_s20, 1536  ;;  %p2225_p1 = scmp.lt.s32.totalorder %s2357_s20, %s2357_s20 }
  0x16   : > { %p2218_p12 = scmp.ne.s32.totalorder %s2357_s20, %s2217_s11  ;;  %p2226_p4 = scmp.lt.s32.totalorder %s2217_s11, %s2217_s11 }
  0x18   : > { %p2220_p13 = pnand %p2218_p12, %p2379_p7  ;;  %p2227_p6 = por %p2226_p4, %p2225_p1 }
  0x1a   : > { %p2221_p0 = pneg %p2220_p13 }
  0x1c   : > { %p2228_p8 = pnand %p2227_p6, %p2221_p0 }
  0x1e   : > { %2231 = shalt.err (!%p2228_p8)
}
  0x1f   : > { %s2307_s12 = smov 64   ;;  %s2308_s13 = smov 4  }
  0x20   : > { %2142 = dma.hbm_to_vmem [thread:$0]  (!%p2363_p5), %s2681_s3, 1536, %s2357_s20, [#allocation5], %s2307_s12, %s2307_s12, %s2308_s13  }
  0x21   : > { %s2232_s19 = scalar_lea.hbm %s2680_s2, 16 }
  0x22   : > { %p2233_p9 = scmp.ne.s32.totalorder %s2680_s2, %s2232_s19  ;;  %p2239_p12 = scmp.lt.u32.totalorder %s2232_s19, %s2680_s2 }
  0x24   : > { %p2235_p10 = pnand %p2233_p9, %p2379_p7 }
  0x26   : > { %p2236_p11 = pneg %p2235_p10 }
  0x28   : > { %p2241_p13 = pnand %p2239_p12, %p2236_p11 }
  0x2a   : > { %2244 = shalt.err (!%p2241_p13)
}
  0x2b   : > { %s2245_s20 = scalar_lea.vmem %s2367_s24, 16  ;;  %s2252_s30 = scalar_lea.vmem %s2367_s24, 32 }
  0x2c   : > { %p2246_p0 = scmp.ne.s32.totalorder %s2367_s24, %s2245_s20  ;;  %p2253_p6 = scmp.lt.s32.totalorder %s2367_s24, %s2367_s24 }
  0x2d   : > { %p2254_p8 = scmp.lt.s32.totalorder %s2252_s30, %s2245_s20 }
  0x2e   : > { %p2248_p1 = pnand %p2246_p0, %p2379_p7 }
  0x2f   : > { %p2255_p9 = por %p2254_p8, %p2253_p6 }
  0x30   : > { %p2249_p4 = pneg %p2248_p1 }
  0x32   : > { %p2256_p10 = pnand %p2255_p9, %p2249_p4 }
  0x34   : > { %2259 = shalt.err (!%p2256_p10)
}
  0x35   : > { %2139 = dma.hbm_to_vmem [thread:$0]  (!%p2363_p5), %s2680_s2, 16, %s2367_s24, [#allocation3]  }
  0x36   : > { %s2260_s11 = scalar_lea.hbm %s2682_s4, 16 }
  0x37   : > { %p2261_p11 = scmp.ne.s32.totalorder %s2682_s4, %s2260_s11  ;;  %p2267_p0 = scmp.lt.u32.totalorder %s2260_s11, %s2682_s4 }
  0x39   : > { %p2263_p12 = pnand %p2261_p11, %p2379_p7 }
  0x3b   : > { %p2264_p13 = pneg %p2263_p12 }
  0x3d   : > { %p2269_p1 = pnand %p2267_p0, %p2264_p13 }
  0x3f   : > { %2272 = shalt.err (!%p2269_p1)
}
  0x40   : > { %s2273_s24 = scalar_lea.vmem %s2369_s27, 16  ;;  %s2280_s16 = scalar_lea.vmem %s2369_s27, 32 }
  0x41   : > { %p2274_p4 = scmp.ne.s32.totalorder %s2369_s27, %s2273_s24  ;;  %p2281_p9 = scmp.lt.s32.totalorder %s2369_s27, %s2369_s27 }
  0x42   : > { %p2282_p10 = scmp.lt.s32.totalorder %s2280_s16, %s2273_s24 }
  0x43   : > { %p2276_p6 = pnand %p2274_p4, %p2379_p7 }
  0x44   : > { %p2283_p11 = por %p2282_p10, %p2281_p9 }
  0x45   : > { %p2277_p8 = pneg %p2276_p6 }
  0x47   : > { %p2284_p12 = pnand %p2283_p11, %p2277_p8 }
  0x49   : > { %2287 = shalt.err (!%p2284_p12)
}
  0x4a   : > { %2145 = dma.hbm_to_vmem [thread:$0]  (!%p2363_p5), %s2682_s4, 16, %s2369_s27, [#allocation5]  }
  0x4b   : > { %219 = sbr.rel (%p2353_p3) target bundleno = 1552 (0x610), region = 40 }
  0x52   : > { %2293 = dma.done.wait (%p2146_p2), [#allocation3], 16  }
  0x53   : > { %2295 = vsyncadd (%p2146_p2), [#allocation3], 4294967280 }
  0x54   : > { %2297 = dma.done.wait (%p2146_p2), [#allocation5], 1552  }
  0x55   : > { %2299 = vsyncadd (%p2146_p2), [#allocation5], 4294965744  ;;  %p254_p7 = scmp.lt.s32.totalorder %s2348_s21, 1  ;;  %v2168_v0 = vld [vmem:[%s2679_s1 + $0x40] sm:$0xff]   ;;  %v2169_v1 = vld [vmem:[%s2679_s1 + $0x48] sm:$0xff]   ;;  %vm600_vm1 = vcmask 1046528  }
  0x56   : > { %1868 = vmatprep.subr.bf16.mxu0 %v2168_v0  ;;  %v2170_v2 = vld [vmem:[%s2679_s1 + $0x50] sm:$0xff]   ;;  %v2171_v3 = vld [vmem:[%s2679_s1 + $0x58] sm:$0xff]   ;;  %v2172_v14 = vld [vmem:[%s2679_s1 + $0x60] sm:$0xff]   ;;  %vm311_vm0 = vsmask.f32 7424  ;;  %vm748_vm3 = vcmask 523264  }
  0x57   : > { %s2688_s21 = smov (!%p254_p7, %s2348_s21), 1  ;;  %1869 = vmatpush3.bf16.msra.mxu0 %v2168_v0  ;;  %v2173_v20 = vld [vmem:[%s2679_s1 + $0x68] sm:$0xff]   ;;  %v2174_v26 = vld [vmem:[%s2679_s1 + $0x70] sm:$0xff]   ;;  %v2175_v28 = vld [vmem:[%s2679_s1 + $0x78] sm:$0xff]   ;;  %vm938_vm8 = vcmask 130048   ;;  %vm2310_vm12 = vmmov 0  }
  0x58   : > { %s2123_s23 = smul.u32 72, %s2688_s21  ;;  %1870 = vmatprep.subr.bf16.mxu0 %v2169_v1  ;;  %v2176_v36 = vld [vmem:[%s2679_s1] sm:$0xff]   ;;  %v2177_v45 = vld [vmem:[%s2679_s1 + $0x8] sm:$0xff]   ;;  %v2178_v50 = vld [vmem:[%s2679_s1 + $0x10] sm:$0xff]   ;;  %s1681_s28 = sshll.u32 %s2688_s21, 2 }
  0x59   : > { %v2179_v52 = vld [vmem:[%s2679_s1 + $0x18] sm:$0xff]   ;;  %v2180_v53 = vld [vmem:[%s2679_s1 + $0x20] sm:$0xff]   ;;  %v2181_v54 = vld [vmem:[%s2679_s1 + $0x28] sm:$0xff]  }
  0x5a   : > { %s2475_s30 = scalar_lea.vmem %s2678_s0, %s2123_s23  ;;  %v2182_v55 = vld [vmem:[%s2679_s1 + $0x30] sm:$0xff]   ;;  %v2183_v56 = vld [vmem:[%s2679_s1 + $0x38] sm:$0xff]   ;;  %v2184_v57 = vld [vmem:[%s2679_s1 + $0x80] sm:$0xff]  }
  0x5b   : > { %1871 = vmatpush3.bf16.msra.mxu0 %v2169_v1  ;;  %v264_v4 = vld [vmem:[%s2475_s30] sm:$0xff]  ;;  %v265_v5 = vld [vmem:[%s2475_s30 + $0x8] sm:$0xff]  ;;  %v266_v6 = vld [vmem:[%s2475_s30 + $0x10] sm:$0xff] }
  0x5c   : > { %1872 = vmatprep.subr.bf16.mxu0 %v2170_v2  ;;  %v267_v7 = vld [vmem:[%s2475_s30 + $0x18] sm:$0xff]  ;;  %v2484_v8 = vpack.c.bf16 %v265_v5, %v264_v4  ;;  %v268_v10 = vld [vmem:[%s2475_s30 + $0x20] sm:$0xff]  ;;  %v269_v11 = vld [vmem:[%s2475_s30 + $0x28] sm:$0xff]  ;;  %v735_v5 = vlaneseq }
  0x5d   : > { %v2486_v9 = vpack.c.bf16 %v267_v7, %v266_v6  ;;  %v2496_v18 = vpack.c.bf16 %v269_v11, %v268_v10  ;;  %v270_v21 = vld [vmem:[%s2475_s30 + $0x30] sm:$0xff]  ;;  %v271_v23 = vld [vmem:[%s2475_s30 + $0x38] sm:$0xff]  ;;  %v272_v27 = vld [vmem:[%s2475_s30 + $0x40] sm:$0x3]  ;;  %s262_s30 = scalar_lea.vmem %s2683_s5, %s1681_s28 }
  0x5e   : > { %v313_v12 = vshrl.u32 %v2484_v8, 16  ;;  %v315_v13 = vshll.u32 %v2484_v8, 16  ;;  %v2505_v25 = vpack.c.bf16 %v271_v23, %v270_v21  ;;  %v293_v33 = vpack.c.bf16 %v272_v27, %v272_v27  ;;  %v2185_v58 = vld [vmem:[%s2679_s1 + $0x88] sm:$0xff]   ;;  %v2186_v59 = vld [vmem:[%s2679_s1 + $0x90] sm:$0xff]   ;;  %v2187_v62 = vld [vmem:[%s2679_s1 + $0x98] sm:$0xff]  }
  0x5f   : > { %1873 = vmatpush3.bf16.msra.mxu0 %v2170_v2  ;;  %v320_v15 = vshll.u32 %v2486_v9, 16  ;;  %v328_v24 = vshll.u32 %v2496_v18, 16  ;;  %v324_v29 = vshrl.u32 %v2486_v9, 16  ;;  %v332_v31 = vshrl.u32 %v2496_v18, 16  ;;  %v2188_v0 = vld [vmem:[%s2679_s1 + $0xa0] sm:$0xff]   ;;  %v2189_v1 = vld [vmem:[%s2679_s1 + $0xa8] sm:$0xff]  }
  0x60   : > { %1874 = vmatprep.subr.bf16.mxu0 %v2171_v3  ;;  %v317_v16 = vrot.slane %v315_v13, 1  ;;  %v336_v32 = vshll.u32 %v2505_v25, 16  ;;  %v604_v34 = vrot.slane %v2496_v18, 1  ;;  %v606_v35 = vrot.slane %v2505_v25, 1  ;;  %v2190_v2 = vld [vmem:[%s2679_s1 + $0xb0] sm:$0xff]  }
  0x61   : > { %v322_v17 = vrot.slane %v320_v15, 1  ;;  %v330_v30 = vrot.slane %v328_v24, 1  ;;  %v340_v37 = vshrl.u32 %v2505_v25, 16  ;;  %v608_v38 = vrot.slane %v293_v33, 1 }
  0x62   : > { %v318_v19 = vor.u32 %v317_v16, %v313_v12  ;;  %v338_v40 = vrot.slane %v336_v32, 1  ;;  %v344_v41 = vshll.u32 %v293_v33, 16  ;;  %v2526_v42 = vsel %vm600_vm1, %v604_v34, %v606_v35 }
  0x63   : > { %1875 = vmatpush3.bf16.msra.mxu0 %v2171_v3  ;;  %v326_v39 = vor.u32 %v324_v29, %v322_v17  ;;  %v334_v43 = vor.u32 %v332_v31, %v330_v30  ;;  %v2529_v44 = vsel %vm600_vm1, %v606_v35, %v608_v38  ;;  %v601_v60 = vrot.slane %v2484_v8, 1  ;;  %v2191_v3 = vld [vmem:[%s2679_s1 + $0xb8] sm:$0xff]   ;;  %v1746_v35 = vld [vmem:[#allocation2] ss:$0 sm:$0xff] }
  0x64   : > { %1876 = vmatprep.subr.bf16.mxu0 %v2172_v14  ;;  %v323_v22 = vsel %vm311_vm0, %v318_v19, %v322_v17  ;;  %v342_v48 = vor.u32 %v340_v37, %v338_v40  ;;  %v346_v49 = vrot.slane %v344_v41, 1  ;;  %v602_v61 = vrot.slane %v2486_v9, 1 }
  0x65   : > { %1884 = vmatprep.mubr.bf16.mxu0 %v323_v22  ;;  %v331_v46 = vsel %vm311_vm0, %v326_v39, %v330_v30  ;;  %v339_v47 = vsel %vm311_vm0, %v334_v43, %v338_v40  ;;  %v2591_v6 = vshrl.u32 %v735_v5, 7  ;;  %v2593_v7 = vand.u32 127, %v735_v5 }
  0x66   : > { %v347_v51 = vsel %vm311_vm0, %v342_v48, %v346_v49  ;;  %v603_v63 = vsel %vm600_vm1, %v601_v60, %v602_v61  ;;  %v605_v4 = vsel %vm600_vm1, %v602_v61, %v604_v34  ;;  %v2194_v48 = vld [vmem:[#allocation4 + $0x30] sm:$0xff]   ;;  %v2195_v49 = vld [vmem:[#allocation4 + $0x38] sm:$0xff]  }
  0x67   : > { %1877 = vmatpush3.bf16.msra.mxu0 %v2172_v14  ;;  %v930_v30 = vadd.s32 4294967295, %v2591_v6  ;;  %vm1029_vm10 = vcmp.eq.s32.totalorder %v2593_v7, %v2591_v6  ;;  %v2199_v60 = vld [vmem:[#allocation4 + $0x18] sm:$0xff]  }
  0x68   : > { %1878 = vmatprep.subr.bf16.mxu0 %v2173_v20 }
  0x69   : > { %vm932_vm7 = vcmp.eq.s32.totalorder %v2593_v7, %v930_v30 }
  0x6b   : > { %1879 = vmatpush3.bf16.msra.mxu0 %v2173_v20 }
  0x6c   : > { %1880 = vmatprep.subr.bf16.mxu0 %v2174_v26 }
  0x6f   : > { %1881 = vmatpush3.bf16.msra.mxu0 %v2174_v26 }
  0x70   : > { %1882 = vmatprep.subr.bf16.mxu0 %v2175_v28 }
  0x73   : > { %1883 = vmatpush3.bf16.msra.mxu0 %v2175_v28 }
  0x74   : > { %1892 = vmatprep.subr.bf16.mxu0 %v2176_v36 }
  0x76   : > { %1885 = vmatmul.mubr.bf16.vlgmr.msra.gmra.mrb[0].mxu0 %v331_v46  ;;  %v2192_v46 = vld [vmem:[#allocation4 + $0x20] sm:$0xff]  }
  0x77   : > { %1893 = vmatpush3.bf16.msra.mxu0 %v2176_v36  ;;  %1888 = vmatprep.mubr.bf16.mxu0 %v339_v47  ;;  %v2193_v47 = vld [vmem:[#allocation4 + $0x28] sm:$0xff]  }
  0x78   : > { %1894 = vmatprep.subr.bf16.mxu0 %v2177_v45 }
  0x7b   : > { %1895 = vmatpush3.bf16.msra.mxu0 %v2177_v45 }
  0x7c   : > { %1896 = vmatprep.subr.bf16.mxu0 %v2178_v50 }
  0x7e   : > { %1889 = vmatmul.mubr.bf16.gmra.mrb[4].mxu0 %v347_v51 }
  0x7f   : > { %1897 = vmatpush3.bf16.msra.mxu0 %v2178_v50  ;;  %1908 = vmatprep.mubr.bf16.mxu0 %v2484_v8  ;;  %v740_v8 = vmul.u32 4, %v2591_v6 }
  0x80   : > { %1898 = vmatprep.subr.bf16.mxu0 %v2179_v52 }
  0x81   : > { %vm742_vm2 = vcmp.eq.s32.totalorder %v2593_v7, %v740_v8 }
  0x83   : > { %1899 = vmatpush3.bf16.msra.mxu0 %v2179_v52 }
  0x84   : > { %1900 = vmatprep.subr.bf16.mxu0 %v2180_v53 }
  0x87   : > { %1901 = vmatpush3.bf16.msra.mxu0 %v2180_v53 }
  0x88   : > { %1902 = vmatprep.subr.bf16.mxu0 %v2181_v54 }
  0x8b   : > { %1903 = vmatpush3.bf16.msra.mxu0 %v2181_v54 }
  0x8c   : > { %1904 = vmatprep.subr.bf16.mxu0 %v2182_v55 }
  0x8f   : > { %1905 = vmatpush3.bf16.msra.mxu0 %v2182_v55  ;;  %v2196_v55 = vld [vmem:[#allocation4] sm:$0xff]  }
  0x90   : > { %1906 = vmatprep.subr.bf16.mxu0 %v2183_v56 }
  0x93   : > { %1907 = vmatpush3.bf16.msra.mxu0 %v2183_v56 }
  0x94   : > { %1916 = vmatprep.subr.bf16.mxu0 %v2184_v57 }
  0x96   : > { %1909 = vmatmul.mubr.bf16.vlgmr.msra.gmra.mrb[0].mxu0 %v2486_v9  ;;  %v2309_v9 = vmov 0.0  }
  0x97   : > { %1917 = vmatpush3.bf16.msra.mxu0 %v2184_v57  ;;  %1912 = vmatprep.mubr.bf16.mxu0 %v2496_v18  ;;  %v2598_v10 = vsel %vm742_vm2, 1.0, %v2309_v9  ;;  %v2603_v18 = vadd.s32 8, %v2591_v6  ;;  %v1747_v31 = vsel %vm932_vm7, 1.0, %v2309_v9  ;;  %v2197_v57 = vld [vmem:[#allocation4 + $0x8] sm:$0xff]  }
  0x98   : > { %1918 = vmatprep.subr.bf16.mxu0 %v2185_v58  ;;  %1956 = vmatprep.mubr.msk.f32.mxu1 %vm748_vm3, %v2598_v10 }
  0x99   : > { %v741_v24 = vmul.u32 4, %v2603_v18  ;;  %v931_v39 = vadd.s32 4294967295, %v2603_v18  ;;  %vm1030_vm11 = vcmp.eq.s32.totalorder %v2593_v7, %v2603_v18 }
  0x9a   : > { %v1752_v45 = vsel %vm1030_vm11, 1.0, %v2309_v9 }
  0x9b   : > { %1919 = vmatpush3.bf16.msra.mxu0 %v2185_v58  ;;  %vm743_vm4 = vcmp.eq.s32.totalorder %v2593_v7, %v741_v24  ;;  %v831_v28 = vadd.s32 2, %v741_v24  ;;  %vm933_vm9 = vcmp.eq.s32.totalorder %v2593_v7, %v931_v39  ;;  %v2198_v58 = vld [vmem:[#allocation4 + $0x10] sm:$0xff]  }
  0x9c   : > { %1920 = vmatprep.subr.bf16.mxu0 %v2186_v59  ;;  %v1739_v26 = vsel %vm743_vm4, 1.0, %v2309_v9  ;;  %v1748_v43 = vsel %vm933_vm9, 1.0, %v2309_v9 }
  0x9d   : > { %vm833_vm6 = vcmp.eq.s32.totalorder %v2593_v7, %v831_v28 }
  0x9e   : > { %1913 = vmatmul.mubr.bf16.gmra.mrb[4].mxu0 %v2505_v25  ;;  %v830_v25 = vadd.s32 2, %v740_v8  ;;  %v1743_v29 = vsel %vm833_vm6, 1.0, %v2309_v9 }
  0x9f   : > { %1921 = vmatpush3.bf16.msra.mxu0 %v2186_v59  ;;  %1932 = vmatprep.mubr.bf16.mxu0 %v603_v63  ;;  %v1262_v59 = vadd.s32 1, %v2591_v6 }
  0xa0   : > { %1922 = vmatprep.subr.bf16.mxu0 %v2187_v62  ;;  %vm832_vm5 = vcmp.eq.s32.totalorder %v2593_v7, %v830_v25 }
  0xa1   : > { %v2610_v27 = vsel %vm832_vm5, 1.0, %v2309_v9  ;;  %vm1264_vm13 = vcmp.eq.s32.totalorder %v2593_v7, %v1262_v59 }
  0xa2   : > { %v1765_v61 = vsel %vm1264_vm13, 1.0, %v2309_v9 }
  0xa3   : > { %1923 = vmatpush3.bf16.msra.mxu0 %v2187_v62  ;;  %v1263_v62 = vadd.s32 1, %v2603_v18  ;;  %v1776_v18 = vld [vmem:[#allocation6] ss:$0 sm:$0xff] }
  0xa4   : > { %1924 = vmatprep.subr.bf16.mxu0 %v2188_v0 }
  0xa5   : > { %vm1265_vm14 = vcmp.eq.s32.totalorder %v2593_v7, %v1263_v62  ;;  %v2311_v7 = vmov 0.0|0.0  }
  0xa6   : > { %v1766_v63 = vsel %vm1265_vm14, 1.0, %v2309_v9 }
  0xa7   : > { %1925 = vmatpush3.bf16.msra.mxu0 %v2188_v0  ;;  %v2200_v0 = vld [vmem:[#allocation4 + $0x40] sm:$0xff]  }
  0xa8   : > { %1926 = vmatprep.subr.bf16.mxu0 %v2189_v1 }
  0xab   : > { %1927 = vmatpush3.bf16.msra.mxu0 %v2189_v1  ;;  %v2201_v1 = vld [vmem:[#allocation4 + $0x48] sm:$0xff]  }
  0xac   : > { %1928 = vmatprep.subr.bf16.mxu0 %v2190_v2 }
  0xaf   : > { %1929 = vmatpush3.bf16.msra.mxu0 %v2190_v2  ;;  %v2202_v2 = vld [vmem:[#allocation4 + $0x50] sm:$0xff]  }
  0xb0   : > { %1930 = vmatprep.subr.bf16.mxu0 %v2191_v3 }
  0xb3   : > { %1931 = vmatpush3.bf16.msra.mxu0 %v2191_v3  ;;  %v2203_v3 = vld [vmem:[#allocation4 + $0x58] sm:$0xff]  }
  0xb6   : > { %1933 = vmatmul.mubr.bf16.vlgmr.msra.gmra.mrb[0].mxu0 %v605_v4 }
  0xb7   : > { %1936 = vmatprep.mubr.bf16.mxu0 %v2526_v42 }
  0xbe   : > { %1937 = vmatmul.mubr.bf16.gmra.mrb[4].mxu0 %v2529_v44  ;;  %v1751_v44 = vsel %vm1029_vm10, 1.0, %v2309_v9 }
 0x189   : > { %v1934_v11 = vpop.f32.mrb[0].mxu0 }
 0x18a   : > { %v696_v12 = vpop.f32.mrb[1].mxu0 }
 0x18b   : > { %v1935_v13 = vpop.f32.mrb[2].mxu0 }
 0x18c   : > { %v2053_v14 = vpack.c.bf16 %v1935_v13, %v1934_v11  ;;  %v699_v15 = vpop.f32.mrb[3].mxu0 }
 0x18d   : > { %v2049_v16 = vpack.c.bf16 %v699_v15, %v696_v12 }
 0x18f   : > { %2050 = vmatprep.subr.bf16.mxu1 %v2049_v16 }
 0x190   : > { %2052 = vmatpush3.bf16.msra.mxu1 %v2049_v16 }
 0x191   : > { %v1938_v17 = vpop.f32.mrb[4].mxu0  ;;  %2054 = vmatprep.subr.bf16.mxu1 %v2053_v14 }
 0x192   : > { %v712_v19 = vpop.f32.mrb[5].mxu0 }
 0x193   : > { %v1939_v20 = vpop.f32.mrb[6].mxu0 }
 0x194   : > { %v2061_v21 = vpack.c.bf16 %v1939_v20, %v1938_v17  ;;  %v715_v22 = vpop.f32.mrb[7].mxu0  ;;  %2056 = vmatpush3.bf16.msra.mxu1 %v2053_v14 }
 0x195   : > { %v2057_v23 = vpack.c.bf16 %v715_v22, %v712_v19 }
 0x197   : > { %2058 = vmatprep.subr.bf16.mxu1 %v2057_v23 }
 0x198   : > { %2060 = vmatpush3.bf16.msra.mxu1 %v2057_v23 }
 0x199   : > { %2062 = vmatprep.subr.bf16.mxu1 %v2061_v21 }
 0x19c   : > { %2064 = vmatpush3.bf16.msra.mxu1 %v2061_v21 }
 0x19d   : > { %2066 = vmatprep.subr.bf16.mxu1 %v2049_v16 }
 0x19f   : > { %1957 = vmatmul.mubr.msk.f32.vlgmr.msra.gmra.mrb[0].mxu1 %vm748_vm3, %v1739_v26 }
 0x1a0   : > { %2068 = vmatpush3.bf16.msra.mxu1 %v2049_v16  ;;  %1975 = vmatprep.mubr.msk.f32.mxu1 %vm748_vm3, %v2610_v27 }
 0x1a1   : > { %2070 = vmatprep.subr.bf16.mxu1 %v2053_v14 }
 0x1a4   : > { %2072 = vmatpush3.bf16.msra.mxu1 %v2053_v14 }
 0x1a5   : > { %2074 = vmatprep.subr.bf16.mxu1 %v2057_v23 }
 0x1a8   : > { %2076 = vmatpush3.bf16.msra.mxu1 %v2057_v23 }
 0x1a9   : > { %2078 = vmatprep.subr.bf16.mxu1 %v2061_v21 }
 0x1ac   : > { %2080 = vmatpush3.bf16.msra.mxu1 %v2061_v21 }
 0x1af   : > { %1976 = vmatmul.mubr.msk.f32.vlgmr.msra.gmra.mrb[2].mxu1 %vm748_vm3, %v1743_v29 }
 0x1b0   : > { %1982 = vmatprep.mubr.msk.f32.mxu1 %vm938_vm8, %v1747_v31 }
 0x272   : > { %v1958_v32 = vpop.f32.mrb[0].mxu1 }
 0x273   : > { %v821_v33 = vpop.f32.mrb[1].mxu1 }
 0x282   : > { %v1977_v34 = vpop.f32.mrb[2].mxu1 }
 0x283   : > { %v920_v36 = vmax.f32 %v1958_v32, %v1977_v34  ;;  %v910_v37 = vpop.f32.mrb[3].mxu1 }
 0x284   : > { %v919_v38 = vmax.f32 %v821_v33, %v910_v37 }
 0x285   : > { %v929_v40 = vadd.f32 %v1746_v35, %v920_v36 }
 0x286   : > { %v928_v41 = vadd.f32 %v1746_v35, %v919_v38 }
 0x288   : > { %v2081_v42 = vpack.c.bf16 %v929_v40, %v928_v41 }
 0x28a   : > { %2082 = vmatprep.subr.bf16.mxu1 %v2081_v42 }
 0x28b   : > { %2084 = vmatpush3.bf16.msra.mxu1 %v2081_v42 }
 0x28c   : > { %2086 = vmatprep.subr.bf16.mxu1 %v2081_v42 }
 0x28e   : > { %1983 = vmatmul.mubr.msk.f32.vlgmr.msra.gmra.mrb[4].mxu1 %vm938_vm8, %v1748_v43 }
 0x28f   : > { %2088 = vmatpush3.bf16.msra.mxu1 %v2081_v42  ;;  %1989 = vmatprep.mubr.msk.f32.mxu1 %vm938_vm8, %v1751_v44 }
 0x290   : > { %1992 = vmatprep.subr.bf16.mxu1 %v2309_v9 }
 0x292   : > { %1990 = vmatmul.mubr.msk.f32.vlgmr.msra.gmra.mrb[6].mxu1 %vm938_vm8, %v1752_v45 }
 0x293   : > { %1993 = vmatpush3.bf16.msra.mxu1 %v2192_v46  ;;  %2000 = vmatprep.mubr.msk.bf16.mxu1 %vm2310_vm12, %v2309_v9 }
 0x294   : > { %1994 = vmatprep.subr.bf16.mxu1 %v2309_v9 }
 0x297   : > { %1995 = vmatpush3.bf16.msra.mxu1 %v2193_v47 }
 0x298   : > { %1996 = vmatprep.subr.bf16.mxu1 %v2309_v9 }
 0x29b   : > { %1997 = vmatpush3.bf16.msra.mxu1 %v2194_v48 }
 0x29c   : > { %1998 = vmatprep.subr.bf16.mxu1 %v2309_v9 }
 0x29f   : > { %1999 = vmatpush3.bf16.msra.mxu1 %v2195_v49 }
 0x2a0   : > { %2004 = vmatprep.subr.bf16.mxu1 %v2309_v9 }
 0x361   : > { %v1984_v50 = vpop.f32.mrb[4].mxu1 }
 0x362   : > { %v1011_v51 = vpop.f32.mrb[5].mxu1 }
 0x363   : > { %v1020_v52 = vpack.c.bf16 %v1984_v50, %v1011_v51 }
 0x365   : > { %v1991_v53 = vpop.f32.mrb[6].mxu1 }
 0x366   : > { %v1107_v54 = vpop.f32.mrb[7].mxu1 }
 0x367   : > { %v1116_v56 = vpack.c.bf16 %v1991_v53, %v1107_v54 }
 0x369   : > { %2001 = vmatmul.mubr.msk.bf16.vlgmr.msra.gmra.mrb[8].mxu1 %vm748_vm3, %v1116_v56 }
 0x36a   : > { %2005 = vmatpush3.bf16.msra.mxu1 %v2196_v55  ;;  %2012 = vmatprep.mubr.msk.bf16.mxu1 %vm2310_vm12, %v2309_v9 }
 0x36b   : > { %2006 = vmatprep.subr.bf16.mxu1 %v2309_v9 }
 0x36e   : > { %2007 = vmatpush3.bf16.msra.mxu1 %v2197_v57 }
 0x36f   : > { %2008 = vmatprep.subr.bf16.mxu1 %v2309_v9 }
 0x372   : > { %2009 = vmatpush3.bf16.msra.mxu1 %v2198_v58 }
 0x373   : > { %2010 = vmatprep.subr.bf16.mxu1 %v2309_v9 }
 0x376   : > { %2011 = vmatpush3.bf16.msra.mxu1 %v2199_v60 }
 0x377   : > { %2090 = vmatprep.subr.bf16.mxu1 %v2081_v42 }
 0x379   : > { %2013 = vmatmul.mubr.msk.bf16.vlgmr.msra.gmra.mrb[8].mxu1 %vm748_vm3, %v1020_v52 }
 0x37a   : > { %2092 = vmatpush3.bf16.msra.mxu1 %v2081_v42  ;;  %2020 = vmatprep.mubr.msk.f32.mxu1 %vm938_vm8, %v1765_v61 }
 0x37b   : > { %2023 = vmatprep.subr.bf16.mxu1 %v2309_v9 }
 0x381   : > { %2021 = vmatmul.mubr.msk.f32.vlgmr.msra.gmra.mrb[12].mxu1 %vm938_vm8, %v1766_v63 }
 0x382   : > { %2024 = vmatpush3.bf16.msra.mxu1 %v2200_v0  ;;  %2031 = vmatprep.mubr.msk.bf16.mxu1 %vm2310_vm12, %v2309_v9 }
 0x383   : > { %2025 = vmatprep.subr.bf16.mxu1 %v2309_v9 }
 0x386   : > { %2026 = vmatpush3.bf16.msra.mxu1 %v2201_v1 }
 0x387   : > { %2027 = vmatprep.subr.bf16.mxu1 %v2309_v9 }
 0x38a   : > { %2028 = vmatpush3.bf16.msra.mxu1 %v2202_v2 }
 0x38b   : > { %2029 = vmatprep.subr.bf16.mxu1 %v2309_v9 }
 0x38e   : > { %2030 = vmatpush3.bf16.msra.mxu1 %v2203_v3 }
 0x38f   : > { %2093 = vmatprep.subr.bf16.mxu1 %v2311_v7 }
 0x454   : > { %v2022_v4 = vpop.f32.mrb[12].mxu1 }
 0x455   : > { %v1342_v5 = vpop.f32.mrb[13].mxu1 }
 0x456   : > { %v1351_v6 = vpack.c.bf16 %v2022_v4, %v1342_v5 }
 0x458   : > { %2032 = vmatmul.mubr.msk.bf16.vlgmr.msra.gmra.mrb[8].mxu1 %vm748_vm3, %v1351_v6 }
 0x459   : > { %2039 = vmatprep.mubr.msk.f32.mxu1 %vm2310_vm12, %v2309_v9 }
 0x52b   : > { %v1422_v8 = vpop.f32.mrb[8].mxu1 }
 0x52c   : > { %v2033_v11 = vpop.f32.mrb[9].mxu1 }
 0x52d   : > { %v1425_v12 = vpop.f32.mrb[10].mxu1 }
 0x52e   : > { %v2094_v13 = vpack.c.bf16 %v1425_v12, %v1422_v8  ;;  %v2034_v14 = vpop.f32.mrb[11].mxu1 }
 0x530   : > { %2095 = vmatpush3.bf16.msra.mxu1 %v2094_v13 }
 0x531   : > { %2096 = vmatprep.subr.bf16.mxu1 %v2311_v7 }
 0x533   : > { %2040 = vmatmul.mubr.msk.f32.vlgmr.msra.gmra.mrb[14].mxu1 %vm938_vm8, %v2598_v10 }
 0x534   : > { %2098 = vmatpush3.bf16.msra.mxu1 %v2094_v13  ;;  %2046 = vmatprep.mubr.msk.f32.mxu1 %vm2310_vm12, %v2309_v9 }
 0x537   : > { %2047 = vmatmul.mubr.msk.f32.vlgmr.msra.gmra.mrb[16].mxu1 %vm938_vm8, %v2610_v27 }
 0x606   : > { %v1499_v15 = vpop.f32.mrb[14].mxu1 }
 0x607   : > { %v2041_v16 = vpop.f32.mrb[15].mxu1 }
 0x60a   : > { %v1571_v17 = vpop.f32.mrb[16].mxu1 }
 0x60b   : > { %v1575_v19 = vmax.f32 %v1499_v15, %v1571_v17  ;;  %v2048_v20 = vpop.f32.mrb[17].mxu1 }
 0x60d   : > { %v1583_v21 = vadd.f32 %v1776_v18, %v1575_v19 }
 0x60f   : > { %1584 = vst [vmem:[%s262_s30] sm:$0xf] %v1583_v21 }
 0x610 PF: > { %s17_s18 = sadd.s32 1, %s2302_s18  }
 0x611   : > { %p14_p2 = scmp.ge.s32.totalorder %s17_s18, 4  }
 0x613   :  { %16 = sbr.rel (!%p14_p2) target bundleno = 2 (0x2), region = 87 }
 0x61a   :  { %1604 = vsyncpa [#allocation3], 1 }
 0x61b   :  { %1606 = vsyncpa [#allocation3 + $0x1], 1 }
 0x61c   :  { %1607 = vsyncpa [#allocation5], 1 }

// kernel: _lambda_.5
= control target key start
LH: loop header
LB: loop body
LE: loop exit
PB: predicated region body
PF: predicated region fallthrough
CT: control target
= control target key end

     0   :  { %s6090_s0 = inlined_call_operand.vmem [shape: f32[2,4,128], index: 0, kind: input, shape index: {}]   ;;  %s6091_s1 = inlined_call_operand.hbm [shape: bf16[128,384], index: 1, kind: input, shape index: {}]   ;;  %s6092_s2 = inlined_call_operand.vmem [shape: f32[1,384], index: 2, kind: input, shape index: {}]   ;;  %s6093_s3 = inlined_call_operand.hbm [shape: bf16[128,128], index: 3, kind: input, shape index: {}]   ;;  %s6094_s4 = inlined_call_operand.vmem [shape: f32[1,128], index: 4, kind: input, shape index: {}]   ;;  %s6095_s5 = inlined_call_operand.vmem [shape: f32[1,128], index: 5, kind: input, shape index: {}]   ;;  %s6096_s6 = inlined_call_operand.vmem [shape: f32[1,128], index: 6, kind: input, shape index: {}]   ;;  %s6097_s7 = inlined_call_operand.vmem [shape: bf16[128,2048], index: 7, kind: input, shape index: {}]   ;;  %s6098_s8 = inlined_call_operand.hbm [shape: f32[1,2048], index: 8, kind: input, shape index: {}]   ;;  %s6099_s9 = inlined_call_operand.hbm [shape: bf16[2048,128], index: 9, kind: input, shape index: {}]   ;;  %s6100_s10 = inlined_call_operand.vmem [shape: f32[1,128], index: 10, kind: input, shape index: {}]   ;;  %s6101_s11 = inlined_call_operand.vmem [shape: f32[1,128], index: 11, kind: input, shape index: {}]   ;;  %s6102_s12 = inlined_call_operand.vmem [shape: f32[1,128], index: 12, kind: input, shape index: {}]   ;;  %s6103_s13 = inlined_call_operand.vmem [shape: f32[2,4,128], index: 13, kind: output, shape index: {}]  }
   0x1   :  { %6109 = sst [smem:[#allocation13_spill]] %s6093_s3 }
   0x2   :  { %6110 = sst [smem:[#allocation14_spill]] %s6103_s13 }
   0x3   :  { %18 = vsyncpa [#allocation3], 0 }
   0x4   :  { %19 = vsyncpa [#allocation5], 0 }
   0x5   :  { %20 = vsyncpa [#allocation8], 0  ;;  %s5329_s25 = smov 0  }
   0x6 LB: > { %6111 = sst [smem:[#allocation12_spill]] %s5246_s25  ;;  %s5248_s26 = smov [#allocation4]   ;;  %s5246_s25 = sphi %s5329_s25, %s26_s25  }
   0x7   : > { %s363_s27 = sshll.u32 %s5248_s26, 4  ;;  %s5335_s28 = sadd.s32 4294967295, %s5246_s25   ;;  %s5340_s27 = int_to_ptr.vmem [resolvable:$true] %s363_s27 }
   0x8   : > { %p4255_p0 = scmp.ge.s32.totalorder %s5246_s25, 1  ;;  %p335_p1 = scmp.lt.s32.totalorder %s5246_s25, 3 }
   0x9   : > { %p6107_p2 = scmp.eq.s32.totalorder %s5335_s28, 0  ;;  %s5249_s30 = smov [#allocation2]  }
   0xa   : > { %p5342_p3 = pnand %p4255_p0, %p335_p1  ;;  %s347_s14 = sshll.u32 %s5249_s30, 4  ;;  %s5348_s14 = int_to_ptr.vmem [resolvable:$true] %s347_s14 }
   0xb   : > { %s5250_s16 = smov [#allocation6]   ;;  %s6114_s3 = sld [smem:[#allocation13_spill]] }
   0xc   : > { %s6112_s29 = scalar_select %p5342_p3, 1, 0 }
   0xd   : > { %p4888_p4 = pneg %p5342_p3  ;;  %s5356_s17 = sshll.u32 %s5250_s16, 4  ;;  %s390_s17 = int_to_ptr.vmem [resolvable:$true] %s5356_s17 }
   0xf   : > { %p5352_p5 = pnand %p6107_p2, %p4888_p4 }
  0x11   : > { %s5116_s20 = scalar_lea.hbm %s6114_s3, 1024  ;;  %p5366_p7 = pneg %p5352_p5 }
  0x12   : > { %p5117_p6 = scmp.ne.s32.totalorder %s6114_s3, %s5116_s20  ;;  %p5123_p10 = scmp.lt.u32.totalorder %s5116_s20, %s6114_s3 }
  0x14   : > { %p5119_p8 = pnand %p5366_p7, %p5117_p6 }
  0x16   : > { %p5120_p9 = pneg %p5119_p8 }
  0x18   : > { %p5125_p11 = pnand %p5123_p10, %p5120_p9 }
  0x1a   : > { %5128 = shalt.err (!%p5125_p11)
}
  0x1b   : > { %s5129_s30 = scalar_lea.vmem %s5340_s27, 1024  ;;  %p5137_p1 = scmp.lt.s32.totalorder %s5340_s27, %s5340_s27 }
  0x1c   : > { %p5130_p12 = scmp.ne.s32.totalorder %s5340_s27, %s5129_s30  ;;  %p5138_p4 = scmp.lt.s32.totalorder %s5129_s30, %s5129_s30 }
  0x1e   : > { %p5132_p13 = pnand %p5130_p12, %p5366_p7  ;;  %p5139_p6 = por %p5138_p4, %p5137_p1 }
  0x20   : > { %p5133_p0 = pneg %p5132_p13 }
  0x22   : > { %p5140_p8 = pnand %p5139_p6, %p5133_p0 }
  0x24   : > { %5143 = shalt.err (!%p5140_p8)
}
  0x25   : > { %s6105_s16 = smov 64   ;;  %s6106_s18 = smov 4  }
  0x26   : > { %4894 = dma.hbm_to_vmem [thread:$0]  (!%p5352_p5), %s6114_s3, 1024, %s5340_s27, [#allocation5], %s6105_s16, %s6105_s16, %s6106_s18  }
  0x27   : > { %s5144_s24 = scalar_lea.hbm %s6091_s1, 3072 }
  0x28   : > { %p5145_p9 = scmp.ne.s32.totalorder %s6091_s1, %s5144_s24  ;;  %p5151_p12 = scmp.lt.u32.totalorder %s5144_s24, %s6091_s1 }
  0x2a   : > { %p5147_p10 = pnand %p5145_p9, %p5366_p7 }
  0x2c   : > { %p5148_p11 = pneg %p5147_p10 }
  0x2e   : > { %p5153_p13 = pnand %p5151_p12, %p5148_p11 }
  0x30   : > { %5156 = shalt.err (!%p5153_p13)
}
  0x31   : > { %s5157_s27 = scalar_lea.vmem %s5348_s14, 3072  ;;  %p5165_p6 = scmp.lt.s32.totalorder %s5348_s14, %s5348_s14 }
  0x32   : > { %p5158_p0 = scmp.ne.s32.totalorder %s5348_s14, %s5157_s27  ;;  %p5166_p8 = scmp.lt.s32.totalorder %s5157_s27, %s5157_s27 }
  0x34   : > { %p5160_p1 = pnand %p5158_p0, %p5366_p7  ;;  %p5167_p9 = por %p5166_p8, %p5165_p6 }
  0x36   : > { %p5161_p4 = pneg %p5160_p1 }
  0x38   : > { %p5168_p10 = pnand %p5167_p9, %p5161_p4 }
  0x3a   : > { %5171 = shalt.err (!%p5168_p10)
}
  0x3b   : > { %s5253_s19 = smov 192   ;;  %s5254_s13 = smov 12  }
  0x3c   : > { %4891 = dma.hbm_to_vmem [thread:$0]  (!%p5352_p5), %s6091_s1, 3072, %s5348_s14, [#allocation3], %s5253_s19, %s5253_s19, %s5254_s13  }
  0x3d   : > { %s5255_s21 = smov [#allocation7]   ;;  %s5172_s30 = scalar_lea.hbm %s6098_s8, 256 }
  0x3e   : > { %s399_s22 = sshll.u32 %s5255_s21, 4  ;;  %p5173_p11 = scmp.ne.s32.totalorder %s6098_s8, %s5172_s30  ;;  %s400_s22 = int_to_ptr.vmem [resolvable:$true] %s399_s22 }
  0x3f   : > { %p5179_p0 = scmp.lt.u32.totalorder %s5172_s30, %s6098_s8 }
  0x40   : > { %p5175_p12 = pnand %p5173_p11, %p5366_p7 }
  0x42   : > { %p5176_p13 = pneg %p5175_p12 }
  0x44   : > { %p5181_p1 = pnand %p5179_p0, %p5176_p13 }
  0x46   : > { %5184 = shalt.err (!%p5181_p1)
}
  0x47   : > { %s5185_s14 = scalar_lea.vmem %s390_s17, 256  ;;  %p5193_p9 = scmp.lt.s32.totalorder %s390_s17, %s390_s17 }
  0x48   : > { %p5186_p4 = scmp.ne.s32.totalorder %s390_s17, %s5185_s14  ;;  %p5194_p10 = scmp.lt.s32.totalorder %s5185_s14, %s5185_s14 }
  0x4a   : > { %p5188_p6 = pnand %p5186_p4, %p5366_p7  ;;  %p5195_p2 = por %p5194_p10, %p5193_p9 }
  0x4c   : > { %p5189_p8 = pneg %p5188_p6 }
  0x4e   : > { %p5196_p3 = pnand %p5195_p2, %p5189_p8 }
  0x50   : > { %5199 = shalt.err (!%p5196_p3)
}
  0x51   : > { %4897 = dma.hbm_to_vmem [thread:$0]  (!%p5352_p5), %s6098_s8, 256, %s390_s17, [#allocation5]  }
  0x52   : > { %s5200_s13 = scalar_lea.hbm %s6099_s9, 16384 }
  0x53   : > { %p5201_p11 = scmp.ne.s32.totalorder %s6099_s9, %s5200_s13  ;;  %p5207_p3 = scmp.lt.u32.totalorder %s5200_s13, %s6099_s9 }
  0x55   : > { %p5203_p12 = pnand %p5201_p11, %p5366_p7 }
  0x57   : > { %p5204_p2 = pneg %p5203_p12 }
  0x59   : > { %p5209_p13 = pnand %p5207_p3, %p5204_p2 }
  0x5b   : > { %5212 = shalt.err (!%p5209_p13)
}
  0x5c   : > { %s5213_s26 = scalar_lea.vmem %s400_s22, 16384  ;;  %p5221_p6 = scmp.lt.s32.totalorder %s400_s22, %s400_s22 }
  0x5d   : > { %p5214_p0 = scmp.ne.s32.totalorder %s400_s22, %s5213_s26  ;;  %p5222_p8 = scmp.lt.s32.totalorder %s5213_s26, %s5213_s26 }
  0x5f   : > { %p5216_p1 = pnand %p5214_p0, %p5366_p7  ;;  %p5223_p9 = por %p5222_p8, %p5221_p6 }
  0x61   : > { %p5217_p4 = pneg %p5216_p1 }
  0x63   : > { %p5224_p10 = pnand %p5223_p9, %p5217_p4 }
  0x65   : > { %5227 = shalt.err (!%p5224_p10)
}
  0x66   : > { %s6116_s17 = smov 4   ;;  %s6117_s30 = smov 64  }
  0x67   : > { %4900 = dma.hbm_to_vmem [thread:$0]  (!%p5352_p5), %s6099_s9, 16384, %s400_s22, [#allocation8], %s6117_s30, %s6117_s30, %s6116_s17  }
  0x68   : > { %p6118_p11 = scmp.ne.s32.totalorder %s6112_s29, 0 }
  0x69   : > { %p6119_p7 = scmp.eq.s32.totalorder (!%p6118_p11), %s5335_s28, 0 }
  0x6a   : > { %431 = sbr.rel (%p6118_p11) target bundleno = 3571 (0xdf3), region = 72 }
  0x71   : > { %5233 = dma.done.wait (%p6119_p7), [#allocation3], 3072   ;;  %p6120_p12 = pmov %p6119_p7 }
  0x72   : > { %p6121_p2 = pmov %p6119_p7 }
  0x73   : > { %5235 = vsyncadd (%p6120_p12), [#allocation3], 4294964224 }
  0x74   : > { %5237 = dma.done.wait (%p6121_p2), [#allocation5], 1280   ;;  %p6122_p3 = pmov %p6121_p2 }
  0x75   : > { %p6123_p13 = pmov %p6121_p2 }
  0x76   : > { %5239 = vsyncadd (%p6122_p3), [#allocation5], 4294966016 }
  0x77   : > { %5241 = dma.done.wait (%p6123_p13), [#allocation8], 16384   ;;  %p6124_p5 = pmov %p6121_p2 }
  0x78   : > { %v5256_v0 = vmov 0   ;;  %v4928_v1 = vld [vmem:[#allocation2 + $0x4] ss:$12 sps:$4 sm:$0xff]   ;;  %v4930_v2 = vld [vmem:[#allocation2] ss:$12 sps:$4 sm:$0xff]   ;;  %p485_p0 = scmp.lt.s32.totalorder %s5335_s28, 1  ;;  %v530_v20 = vlaneseq }
  0x79   : > { %5243 = vsyncadd (%p6124_p5), [#allocation8], 4294950912  ;;  %705 = vmatprep.mubr.bf16.mxu0 %v5256_v0  ;;  %673 = vmatprep.subr.bf16.mxu0 %v4928_v1  ;;  %v4931_v3 = vld [vmem:[#allocation2 + $0x1c] ss:$12 sps:$4 sm:$0xff]   ;;  %v4933_v4 = vld [vmem:[#allocation2 + $0x18] ss:$12 sps:$4 sm:$0xff]  }
  0x7a   : > { %674 = vmatpush1.bf16.msra.mxu0 %v4930_v2  ;;  %v4934_v5 = vld [vmem:[#allocation2 + $0x34] ss:$12 sps:$4 sm:$0xff]   ;;  %s6130_s28 = smov (!%p485_p0, %s5335_s28), 1  ;;  %v4936_v6 = vld [vmem:[#allocation2 + $0x30] ss:$12 sps:$4 sm:$0xff]   ;;  %v5257_v19 = vmov 0.0  }
  0x7b   : > { %675 = vmatprep.subr.bf16.mxu0 %v4931_v3  ;;  %v4937_v7 = vld [vmem:[#allocation2 + $0x4c] ss:$12 sps:$4 sm:$0xff]   ;;  %v4939_v8 = vld [vmem:[#allocation2 + $0x48] ss:$12 sps:$4 sm:$0xff]   ;;  %s4266_s29 = sshll.u32 %s6130_s28, 2  ;;  %4786 = vmatprep.subr.bf16.mxu1 %v5257_v19  ;;  %vm5258_vm0 = vmmov 0  }
  0x7c   : > { %v4940_v9 = vld [vmem:[#allocation2 + $0x64] ss:$12 sps:$4 sm:$0xff]   ;;  %v4942_v10 = vld [vmem:[#allocation2 + $0x60] ss:$12 sps:$4 sm:$0xff]   ;;  %v4943_v11 = vld [vmem:[#allocation2 + $0x7c] ss:$12 sps:$4 sm:$0xff]   ;;  %s488_s22 = scalar_lea.vmem %s6090_s0, %s4266_s29  ;;  %4802 = vmatprep.mubr.msk.bf16.mxu1 %vm5258_vm0, %v5257_v19 }
  0x7d   : > { %v4945_v12 = vld [vmem:[#allocation2 + $0x78] ss:$12 sps:$4 sm:$0xff]   ;;  %v4946_v13 = vld [vmem:[#allocation2 + $0x94] ss:$12 sps:$4 sm:$0xff]   ;;  %v4948_v14 = vld [vmem:[#allocation2 + $0x90] ss:$12 sps:$4 sm:$0xff]  }
  0x7e   : > { %676 = vmatpush1.bf16.msra.mxu0 %v4933_v4  ;;  %v4949_v15 = vld [vmem:[#allocation2 + $0xac] ss:$12 sps:$4 sm:$0xff]   ;;  %v4951_v16 = vld [vmem:[#allocation2 + $0xa8] ss:$12 sps:$4 sm:$0xff]   ;;  %v5478_v17 = vld [vmem:[%s488_s22] sm:$0xf] }
  0x7f   : > { %677 = vmatprep.subr.bf16.mxu0 %v4934_v5  ;;  %v495_v18 = vpack.c.bf16 %v5478_v17, %v5478_v17  ;;  %v5488_v21 = vshrl.u32 %v530_v20, 7  ;;  %v5496_v23 = vld [vmem:[%s6092_s2] sm:$0x7]  ;;  %v5503_v27 = vand.u32 127, %v530_v20  ;;  %v4952_v35 = vld [vmem:[#allocation2 + $0x8] ss:$12 sps:$4 sm:$0xff]  }
  0x80   : > { %4787 = vmatpush3.bf16.msra.mxu1 %v4952_v35  ;;  %v4953_v36 = vld [vmem:[#allocation2 + $0x20] ss:$12 sps:$4 sm:$0xff]   ;;  %v4954_v37 = vld [vmem:[#allocation2 + $0x38] ss:$12 sps:$4 sm:$0xff]   ;;  %v4955_v38 = vld [vmem:[#allocation2 + $0x50] ss:$12 sps:$4 sm:$0xff]  }
  0x81   : > { %v5491_v22 = vsub.s32 1, %v5488_v21  ;;  %v5499_v24 = vsub.s32 0, %v5488_v21  ;;  %vm757_vm1 = vcmp.lt.s32.totalorder %v5503_v27, 32  ;;  %vm846_vm2 = vcmp.ge.s32.totalorder %v5503_v27, 32  ;;  %4788 = vmatprep.subr.bf16.mxu1 %v5257_v19  ;;  %v4956_v39 = vld [vmem:[#allocation2 + $0x68] ss:$12 sps:$4 sm:$0xff]  }
  0x82   : > { %678 = vmatpush1.bf16.msra.mxu0 %v4936_v6  ;;  %vm847_vm3 = vcmp.lt.s32.totalorder %v5503_v27, 64  ;;  %v4957_v40 = vld [vmem:[#allocation2 + $0x80] ss:$12 sps:$4 sm:$0xff]   ;;  %v4958_v41 = vld [vmem:[#allocation2 + $0x98] ss:$12 sps:$4 sm:$0xff]   ;;  %vm833_vm5 = vcmask 27648  }
  0x83   : > { %679 = vmatprep.subr.bf16.mxu0 %v4937_v7  ;;  %v537_v25 = vrot.slane %v5496_v23, %v5491_v22  ;;  %v533_v28 = vrot.slane %v5496_v23, %v5499_v24  ;;  %vm5522_vm4 = vmand %vm846_vm2, %vm847_vm3  ;;  %v4959_v42 = vld [vmem:[#allocation2 + $0xb0] ss:$12 sps:$4 sm:$0xff]   ;;  %v5547_v61 = vsub.s32 2, %v5488_v21  ;;  %vm939_vm6 = vcmask 1043456   ;;  %s6127_s16 = sld [smem:[#allocation14_spill]] }
  0x84   : > { %4789 = vmatpush3.bf16.msra.mxu1 %v4953_v36  ;;  %vm935_vm7 = vcmask 31744   ;;  %vm1089_vm8 = vcmp.ge.s32.totalorder %v5503_v27, 64  ;;  %vm1090_vm9 = vcmp.lt.s32.totalorder %v5503_v27, 96  ;;  %vm1255_vm11 = vcmp.ge.s32.totalorder %v5503_v27, 96 }
  0x85   : > { %4790 = vmatprep.subr.bf16.mxu1 %v5257_v19  ;;  %v541_v63 = vrot.slane %v5496_v23, %v5547_v61  ;;  %vm1091_vm10 = vmand %vm1089_vm8, %vm1090_vm9 }
  0x86   : > { %680 = vmatpush1.bf16.msra.mxu0 %v4939_v8 }
  0x87   : > { %681 = vmatprep.subr.bf16.mxu0 %v4940_v9 }
  0x88   : > { %4791 = vmatpush3.bf16.msra.mxu1 %v4954_v37 }
  0x89   : > { %4792 = vmatprep.subr.bf16.mxu1 %v5257_v19  ;;  %s492_s19 = scalar_lea.vmem %s6127_s16, %s4266_s29 }
  0x8a   : > { %682 = vmatpush1.bf16.msra.mxu0 %v4942_v10 }
  0x8b   : > { %683 = vmatprep.subr.bf16.mxu0 %v4943_v11 }
  0x8c   : > { %4793 = vmatpush3.bf16.msra.mxu1 %v4955_v38 }
  0x8d   : > { %4794 = vmatprep.subr.bf16.mxu1 %v5257_v19 }
  0x8e   : > { %684 = vmatpush1.bf16.msra.mxu0 %v4945_v12 }
  0x8f   : > { %685 = vmatprep.subr.bf16.mxu0 %v4946_v13 }
  0x90   : > { %4795 = vmatpush3.bf16.msra.mxu1 %v4956_v39 }
  0x91   : > { %4796 = vmatprep.subr.bf16.mxu1 %v5257_v19 }
  0x92   : > { %686 = vmatpush1.bf16.msra.mxu0 %v4948_v14 }
  0x93   : > { %687 = vmatprep.subr.bf16.mxu0 %v4949_v15 }
  0x94   : > { %4797 = vmatpush3.bf16.msra.mxu1 %v4957_v40 }
  0x95   : > { %4798 = vmatprep.subr.bf16.mxu1 %v5257_v19 }
  0x96   : > { %688 = vmatpush1.bf16.msra.mxu0 %v4951_v16 }
  0x97   : > { %4806 = vmatprep.subr.mxu0 %v5257_v19 }
  0x98   : > { %4799 = vmatpush3.bf16.msra.mxu1 %v4958_v41 }
  0x99   : > { %706 = vmatmul.mubr.bf16.vlgmr.msra.gmra.mrb[0].mxu0 %v495_v18  ;;  %4800 = vmatprep.subr.bf16.mxu1 %v5257_v19 }
  0x9a   : > { %4808 = vmatprep.mubr.msk.f32.mxu0 %vm5258_vm0, %v5257_v19 }
  0x9c   : > { %4801 = vmatpush3.bf16.msra.mxu1 %v4959_v42  ;;  %v4961_v42 = vld [vmem:[#allocation4 + $0x8] sm:$0xff]  }
  0x9d   : > { %4846 = vmatprep.subr.bf16.mxu1 %v5257_v19 }
  0x9f   : > { %4803 = vmatmul.mubr.bf16.vlgmr.msra.gmra.mrb[0].mxu1 %v495_v18 }
  0xa0   : > { %4862 = vmatprep.mubr.msk.bf16.mxu1 %vm5258_vm0, %v5257_v19 }
 0x16c   : > { %v707_v26 = vpop.f32.mrb[0].mxu0 }
 0x16d   : > { %v709_v29 = vpop.f32.mrb[1].mxu0  ;;  %v5511_v33 = vadd.f32 %v707_v26, %v533_v28 }
 0x16e   : > { %v5507_v30 = vadd.f32 %v709_v29, %v537_v25  ;;  %v711_v31 = vpop.f32.mrb[2].mxu0 }
 0x16f   : > { %v712_v32 = vpop.f32.mrb[3].mxu0 }
 0x170   : > { %4807 = vmatpush3.xpose.msra.mxu0 %v5507_v30 }
 0x171   : > { %4811 = vmatprep.subr.mxu0 %v5257_v19 }
 0x172   : > { %v748_v62 = vpop.f32.mrb[0].mxu1 }
 0x173   : > { %4809 = vmatmul.mubr.msk.f32.vlgmr.msra.gmra.mrb[4].mxu0 %vm757_vm1, %v5511_v33  ;;  %v4804_v1 = vpop.f32.mrb[1].mxu1  ;;  %v749_v3 = vadd.f32 %v748_v62, %v541_v63  ;;  %v1565_v63 = vld [vmem:[%s6097_s7] sm:$0xff] }
 0x174   : > { %4812 = vmatpush3.xpose.msra.mxu0 %v5507_v30  ;;  %4813 = vmatprep.mubr.msk.f32.mxu0 %vm5258_vm0, %v5257_v19  ;;  %v751_v2 = vpop.f32.mrb[2].mxu1  ;;  %v1573_v1 = vld [vmem:[%s6097_s7 + $0x40] sm:$0xff] }
 0x175   : > { %4816 = vmatprep.subr.mxu0 %v5257_v19  ;;  %v4805_v4 = vpop.f32.mrb[3].mxu1  ;;  %v934_v5 = vsel %vm5522_vm4, %v749_v3, 0.0  ;;  %v845_v10 = vsel %vm757_vm1, %v749_v3, 0.0  ;;  %v1177_v13 = vsel %vm1091_vm10, %v749_v3, 0.0  ;;  %v1343_v34 = vsel %vm1255_vm11, %v749_v3, 0.0  ;;  %v1566_v2 = vld [vmem:[%s6097_s7 + $0x8] sm:$0xff] }
 0x176   : > { %v4315_v3 = vcombine.low %v1565_v63, %v1573_v1  ;;  %v4316_v4 = vcombine.high %v1565_v63, %v1573_v1 }
 0x177   : > { %4814 = vmatmul.mubr.msk.f32.vlgmr.msra.gmra.mrb[6].mxu0 %vm5522_vm4, %v5511_v33 }
 0x178   : > { %4818 = vmatprep.mubr.msk.f32.mxu0 %vm5258_vm0, %v5257_v19  ;;  %4817 = vmatpush3.msk.msra.mxu0 %vm939_vm6, %v934_v5  ;;  %v1581_v5 = vld [vmem:[%s6097_s7 + $0x80] sm:$0xff] }
 0x179   : > { %4821 = vmatprep.subr.mxu0 %v5257_v19 }
 0x246   : > { %v828_v43 = vpop.f32.mrb[4].mxu0 }
 0x247   : > { %v4810_v44 = vpop.f32.mrb[5].mxu0  ;;  %v832_v48 = vmul.f32 0.17677669, %v828_v43  ;;  %v4962_v43 = vld [vmem:[#allocation4 + $0x10] sm:$0xff]  }
 0x248   : > { %v4963_v44 = vld [vmem:[#allocation4 + $0x18] sm:$0xff]  }
 0x249   : > { %v834_v50 = vsel %vm833_vm5, %v832_v48, -inf }
 0x24a   : > { %v918_v45 = vpop.f32.mrb[6].mxu0 }
 0x24b   : > { %v922_v46 = vmul.f32 0.17677669, %v918_v45  ;;  %v4815_v47 = vpop.f32.mrb[7].mxu0  ;;  %v4964_v45 = vld [vmem:[#allocation4 + $0x20] sm:$0xff]  }
 0x24c   : > { %v4966_v47 = vld [vmem:[#allocation4 + $0x30] sm:$0xff]  }
 0x24d   : > { %v923_v49 = vsel %vm833_vm5, %v922_v46, -inf }
 0x24e   : > { %924 = vmax.xlane.f32.xlu0 %v923_v49 }
 0x252   : > { %835 = vmax.xlane.f32.xlu0 %v834_v50 }
 0x2db   : > { %v925_v51 = vpop.xlane.xlu0 %924 }
 0x2dc   : > { %v926_v52 = vsub.f32 %v922_v46, %v925_v51  ;;  %v4965_v46 = vld [vmem:[#allocation4 + $0x28] sm:$0xff]   ;;  %v4967_v51 = vld [vmem:[#allocation4 + $0x38] sm:$0xff]  }
 0x2de   : > { %v927_v53 = vmul.f32 1.442695, %v926_v52 }
 0x2df   : > { %v836_v54 = vpop.xlane.xlu0 %835 }
 0x2e0   : > { %5096 = vpow2.f32 %v927_v53  ;;  %v837_v55 = vsub.f32 %v832_v48, %v836_v54 }
 0x2e2   : > { %v838_v56 = vmul.f32 1.442695, %v837_v55 }
 0x2e4   : > { %5098 = vpow2.f32 %v838_v56 }
 0x2ea   : > { %v5097_v57 = vpop.eup %5096 }
 0x2eb   : > { %v929_v58 = vsel %vm833_vm5, %v5097_v57, 0.0 }
 0x2ec   : > { %930 = vadd.xlane.f32.xlu1 %v929_v58 }
 0x2ee   : > { %v5099_v59 = vpop.eup %5098 }
 0x2ef   : > { %v840_v60 = vsel %vm833_vm5, %v5099_v59, 0.0 }
 0x2f0   : > { %841 = vadd.xlane.f32.xlu1 %v840_v60 }
 0x379   : > { %v931_v6 = vpop.xlane.xlu1 %930 }
 0x37a   : > { %5100 = vrcp.f32 %v931_v6  ;;  %v1589_v6 = vld [vmem:[%s6097_s7 + $0xc0] sm:$0xff] }
 0x37d   : > { %v842_v7 = vpop.xlane.xlu1 %841 }
 0x37e   : > { %5102 = vrcp.f32 %v842_v7 }
 0x384   : > { %v5101_v8 = vpop.eup %5100 }
 0x385   : > { %v933_v9 = vmul.f32 %v5101_v8, %v5097_v57 }
 0x387   : > { %4819 = vmatmul.mubr.msk.f32.vlgmr.msra.gmra.mrb[8].mxu0 %vm935_vm7, %v933_v9  ;;  %v4332_v9 = vcombine.high %v1581_v5, %v1589_v6 }
 0x388   : > { %4822 = vmatpush3.msk.msra.mxu0 %vm939_vm6, %v845_v10  ;;  %4823 = vmatprep.mubr.msk.f32.mxu0 %vm5258_vm0, %v5257_v19  ;;  %v5103_v11 = vpop.eup %5102  ;;  %v1582_v10 = vld [vmem:[%s6097_s7 + $0x88] sm:$0xff] }
 0x389   : > { %4826 = vmatprep.subr.mxu0 %v5257_v19  ;;  %v844_v12 = vmul.f32 %v5103_v11, %v5099_v59  ;;  %v1590_v11 = vld [vmem:[%s6097_s7 + $0xc8] sm:$0xff] }
 0x38f   : > { %4824 = vmatmul.mubr.msk.f32.vlgmr.msra.gmra.mrb[8].mxu0 %vm935_vm7, %v844_v12  ;;  %v1597_v12 = vld [vmem:[%s6097_s7 + $0x100] sm:$0xff] }
 0x390   : > { %4827 = vmatpush3.xpose.msra.mxu0 %v5507_v30  ;;  %4828 = vmatprep.mubr.msk.f32.mxu0 %vm5258_vm0, %v5257_v19 }
 0x391   : > { %4831 = vmatprep.subr.mxu0 %v5257_v19 }
 0x393   : > { %4829 = vmatmul.mubr.msk.f32.vlgmr.msra.gmra.mrb[10].mxu0 %vm1091_vm10, %v5511_v33 }
 0x394   : > { %4832 = vmatpush3.msk.msra.mxu0 %vm939_vm6, %v1177_v13  ;;  %4833 = vmatprep.mubr.msk.f32.mxu0 %vm5258_vm0, %v5257_v19  ;;  %v4334_v13 = vcombine.high %v1582_v10, %v1590_v11 }
 0x395   : > { %4836 = vmatprep.subr.mxu0 %v5257_v19 }
 0x466   : > { %v1161_v14 = vpop.f32.mrb[10].mxu0 }
 0x467   : > { %v1165_v15 = vmul.f32 0.17677669, %v1161_v14  ;;  %v4830_v16 = vpop.f32.mrb[11].mxu0  ;;  %v1605_v14 = vld [vmem:[%s6097_s7 + $0x140] sm:$0xff] }
 0x468   : > { %v1606_v16 = vld [vmem:[%s6097_s7 + $0x148] sm:$0xff] }
 0x469   : > { %v1166_v18 = vsel %vm833_vm5, %v1165_v15, -inf }
 0x46a   : > { %1167 = vmax.xlane.f32.xlu0 %v1166_v18  ;;  %v4331_v18 = vcombine.low %v1581_v5, %v1589_v6  ;;  %v1686_v5 = vld [vmem:[%s6097_s7 + $0x3c8] sm:$0xff] }
 0x4f7   : > { %v1168_v20 = vpop.xlane.xlu0 %1167 }
 0x4f8   : > { %v1169_v23 = vsub.f32 %v1165_v15, %v1168_v20  ;;  %v1598_v15 = vld [vmem:[%s6097_s7 + $0x108] sm:$0xff]  ;;  %v4333_v20 = vcombine.low %v1582_v10, %v1590_v11  ;;  %v1575_v10 = vld [vmem:[%s6097_s7 + $0x50] sm:$0xff]  ;;  %v1568_v11 = vld [vmem:[%s6097_s7 + $0x18] sm:$0xff] }
 0x4fa   : > { %v1170_v25 = vmul.f32 1.442695, %v1169_v23  ;;  %v4348_v23 = vcombine.high %v1597_v12, %v1605_v14 }
 0x4fc   : > { %5104 = vpow2.f32 %v1170_v25  ;;  %v4350_v25 = vcombine.high %v1598_v15, %v1606_v16 }
 0x506   : > { %v5105_v26 = vpop.eup %5104 }
 0x507   : > { %v1172_v28 = vsel %vm833_vm5, %v5105_v26, 0.0 }
 0x508   : > { %1173 = vadd.xlane.f32.xlu1 %v1172_v28  ;;  %v4349_v28 = vcombine.low %v1598_v15, %v1606_v16 }
 0x595   : > { %v1174_v29 = vpop.xlane.xlu1 %1173 }
 0x596   : > { %5106 = vrcp.f32 %v1174_v29 }
 0x5a0   : > { %v5107_v31 = vpop.eup %5106 }
 0x5a1   : > { %v1176_v32 = vmul.f32 %v5107_v31, %v5105_v26  ;;  %v4347_v26 = vcombine.low %v1597_v12, %v1605_v14  ;;  %v1576_v14 = vld [vmem:[%s6097_s7 + $0x58] sm:$0xff] }
 0x5a2   : > { %v4321_v15 = vcombine.low %v1568_v11, %v1576_v14  ;;  %v4322_v16 = vcombine.high %v1568_v11, %v1576_v14  ;;  %v1679_v14 = vld [vmem:[%s6097_s7 + $0x390] sm:$0xff] }
 0x5a3   : > { %4834 = vmatmul.mubr.msk.f32.vlgmr.msra.gmra.mrb[8].mxu0 %vm935_vm7, %v1176_v32 }
 0x5a4   : > { %4837 = vmatpush3.xpose.msra.mxu0 %v5507_v30  ;;  %4838 = vmatprep.mubr.msk.f32.mxu0 %vm5258_vm0, %v5257_v19 }
 0x5a5   : > { %4841 = vmatprep.subr.mxu0 %v5257_v19 }
 0x5a7   : > { %4839 = vmatmul.mubr.msk.f32.vlgmr.msra.gmra.mrb[12].mxu0 %vm1255_vm11, %v5511_v33  ;;  %v4960_v33 = vld [vmem:[#allocation4] sm:$0xff]  }
 0x5a8   : > { %4842 = vmatpush3.msk.msra.mxu0 %vm939_vm6, %v1343_v34  ;;  %4843 = vmatprep.mubr.msk.f32.mxu0 %vm5258_vm0, %v5257_v19 }
 0x5a9   : > { %4847 = vmatpush3.bf16.msra.mxu1 %v4960_v33  ;;  %2417 = vmatprep.subr.bf16.mxu0 %v4316_v4  ;;  %v1629_v33 = vld [vmem:[%s6097_s7 + $0x200] sm:$0xff]  ;;  %v1678_v4 = vld [vmem:[%s6097_s7 + $0x388] sm:$0xff] }
 0x5aa   : > { %4848 = vmatprep.subr.bf16.mxu1 %v5257_v19 }
 0x5ad   : > { %4849 = vmatpush3.bf16.msra.mxu1 %v4961_v42  ;;  %v1637_v42 = vld [vmem:[%s6097_s7 + $0x240] sm:$0xff] }
 0x5ae   : > { %4850 = vmatprep.subr.bf16.mxu1 %v5257_v19 }
 0x5b1   : > { %4851 = vmatpush3.bf16.msra.mxu1 %v4962_v43  ;;  %v1630_v43 = vld [vmem:[%s6097_s7 + $0x208] sm:$0xff] }
 0x5b2   : > { %4852 = vmatprep.subr.bf16.mxu1 %v5257_v19 }
 0x5b5   : > { %4853 = vmatpush3.bf16.msra.mxu1 %v4963_v44  ;;  %v4380_v44 = vcombine.high %v1629_v33, %v1637_v42 }
 0x5b6   : > { %4854 = vmatprep.subr.bf16.mxu1 %v5257_v19 }
 0x5b9   : > { %4855 = vmatpush3.bf16.msra.mxu1 %v4964_v45  ;;  %v1638_v45 = vld [vmem:[%s6097_s7 + $0x248] sm:$0xff] }
 0x5ba   : > { %4856 = vmatprep.subr.bf16.mxu1 %v5257_v19 }
 0x5bd   : > { %4857 = vmatpush3.bf16.msra.mxu1 %v4965_v46  ;;  %v4379_v46 = vcombine.low %v1629_v33, %v1637_v42  ;;  %v1608_v33 = vld [vmem:[%s6097_s7 + $0x158] sm:$0xff] }
 0x5be   : > { %4858 = vmatprep.subr.bf16.mxu1 %v5257_v19 }
 0x5c1   : > { %4859 = vmatpush3.bf16.msra.mxu1 %v4966_v47  ;;  %v4381_v47 = vcombine.low %v1630_v43, %v1638_v45 }
 0x5c2   : > { %4860 = vmatprep.subr.bf16.mxu1 %v5257_v19  ;;  %v4304_v19 = vld [vmem:[%s6094_s4] ss:$0 sm:$0xff] }
 0x5c5   : > { %4861 = vmatpush3.bf16.msra.mxu1 %v4967_v51  ;;  %v1646_v51 = vld [vmem:[%s6097_s7 + $0x288] sm:$0xff] }
 0x67a   : > { %v1327_v35 = vpop.f32.mrb[12].mxu0 }
 0x67b   : > { %v1331_v36 = vmul.f32 0.17677669, %v1327_v35  ;;  %v4840_v37 = vpop.f32.mrb[13].mxu0 }
 0x67c   : > { %v1621_v37 = vld [vmem:[%s6097_s7 + $0x1c0] sm:$0xff] }
 0x67d   : > { %v1332_v30 = vsel %vm833_vm5, %v1331_v36, -inf }
 0x67e   : > { %1333 = vmax.xlane.f32.xlu0 %v1332_v30  ;;  %v1614_v30 = vld [vmem:[%s6097_s7 + $0x188] sm:$0xff] }
 0x70b   : > { %v1334_v38 = vpop.xlane.xlu0 %1333 }
 0x70c   : > { %v1335_v39 = vsub.f32 %v1331_v36, %v1334_v38  ;;  %v1613_v36 = vld [vmem:[%s6097_s7 + $0x180] sm:$0xff] }
 0x70d   : > { %v4364_v38 = vcombine.high %v1613_v36, %v1621_v37 }
 0x70e   : > { %v1336_v40 = vmul.f32 1.442695, %v1335_v39  ;;  %v1622_v39 = vld [vmem:[%s6097_s7 + $0x1c8] sm:$0xff] }
 0x710   : > { %5108 = vpow2.f32 %v1336_v40  ;;  %v4363_v40 = vcombine.low %v1613_v36, %v1621_v37  ;;  %v1584_v36 = vld [vmem:[%s6097_s7 + $0x98] sm:$0xff] }
 0x71a   : > { %v5109_v27 = vpop.eup %5108 }
 0x71b   : > { %v1338_v41 = vsel %vm833_vm5, %v5109_v27, 0.0 }
 0x71c   : > { %1339 = vadd.xlane.f32.xlu1 %v1338_v41  ;;  %v4366_v41 = vcombine.high %v1614_v30, %v1622_v39 }
 0x7a9   : > { %v1340_v48 = vpop.xlane.xlu1 %1339 }
 0x7aa   : > { %5110 = vrcp.f32 %v1340_v48  ;;  %v4382_v48 = vcombine.high %v1630_v43, %v1638_v45 }
 0x7b4   : > { %v5111_v49 = vpop.eup %5110 }
 0x7b5   : > { %v1342_v50 = vmul.f32 %v5111_v49, %v5109_v27  ;;  %v4365_v27 = vcombine.low %v1614_v30, %v1622_v39  ;;  %v1645_v49 = vld [vmem:[%s6097_s7 + $0x280] sm:$0xff] }
 0x7b7   : > { %4844 = vmatmul.mubr.msk.f32.vlgmr.msra.gmra.mrb[8].mxu0 %vm935_vm7, %v1342_v50  ;;  %v1653_v50 = vld [vmem:[%s6097_s7 + $0x2c0] sm:$0xff] }
 0x7b8   : > { %2449 = vmatprep.mubr.bf16.mxu0 %v5256_v0  ;;  %2418 = vmatpush1.bf16.msra.mxu0 %v4315_v3  ;;  %v1685_v3 = vld [vmem:[%s6097_s7 + $0x3c0] sm:$0xff] }
 0x7b9   : > { %2419 = vmatprep.subr.bf16.mxu0 %v4332_v9  ;;  %v1567_v9 = vld [vmem:[%s6097_s7 + $0x10] sm:$0xff] }
 0x7ba   : > { %v4319_v12 = vcombine.low %v1567_v9, %v1575_v10 }
 0x7bc   : > { %2420 = vmatpush1.bf16.msra.mxu0 %v4331_v18 }
 0x7bd   : > { %2421 = vmatprep.subr.bf16.mxu0 %v4348_v23 }
 0x7c0   : > { %2422 = vmatpush1.bf16.msra.mxu0 %v4347_v26  ;;  %v4313_v26 = vld [vmem:[%s6095_s5] ss:$0 sm:$0xff] }
 0x7c1   : > { %2423 = vmatprep.subr.bf16.mxu0 %v4364_v38 }
 0x7c4   : > { %2424 = vmatpush1.bf16.msra.mxu0 %v4363_v40  ;;  %v1599_v40 = vld [vmem:[%s6097_s7 + $0x110] sm:$0xff] }
 0x7c5   : > { %2425 = vmatprep.subr.bf16.mxu0 %v4380_v44 }
 0x7c8   : > { %2426 = vmatpush1.bf16.msra.mxu0 %v4379_v46  ;;  %v1615_v46 = vld [vmem:[%s6097_s7 + $0x190] sm:$0xff] }
 0x88a   : > { %v1416_v52 = vpop.f32.mrb[8].mxu0 }
 0x88b   : > { %v1421_v53 = vpack.c.bf16 %v1416_v52, %v1416_v52  ;;  %v4845_v54 = vpop.f32.mrb[9].mxu0  ;;  %v4396_v52 = vcombine.high %v1645_v49, %v1653_v50 }
 0x88c   : > { %v4395_v54 = vcombine.low %v1645_v49, %v1653_v50  ;;  %v1624_v49 = vld [vmem:[%s6097_s7 + $0x1d8] sm:$0xff] }
 0x88d   : > { %4863 = vmatmul.mubr.bf16.vlgmr.msra.gmra.mrb[4].mxu1 %v1421_v53  ;;  %v1654_v53 = vld [vmem:[%s6097_s7 + $0x2c8] sm:$0xff]  ;;  %2427 = vmatprep.subr.bf16.mxu0 %v4396_v52 }
 0x88e   : > { %2490 = vmatprep.mubr.bf16.mxu1 %v5256_v0  ;;  %2428 = vmatpush1.bf16.msra.mxu0 %v4395_v54  ;;  %v1631_v54 = vld [vmem:[%s6097_s7 + $0x210] sm:$0xff] }
 0x960   : > { %v1527_v55 = vpop.f32.mrb[4].mxu1 }
 0x961   : > { %v1528_v56 = vadd.f32 %v4304_v19, %v1527_v55  ;;  %v4864_v57 = vpop.f32.mrb[5].mxu1  ;;  %v4397_v19 = vcombine.low %v1646_v51, %v1654_v53  ;;  %v4398_v55 = vcombine.high %v1646_v51, %v1654_v53 }
 0x962   : > { %v1530_v58 = vpop.f32.mrb[6].mxu1  ;;  %v1669_v57 = vld [vmem:[%s6097_s7 + $0x340] sm:$0xff] }
 0x963   : > { %v4865_v59 = vpop.f32.mrb[7].mxu1  ;;  %v1533_v60 = vadd.f32 %v1528_v56, %v5478_v17  ;;  %v1574_v17 = vld [vmem:[%s6097_s7 + $0x48] sm:$0xff]  ;;  %v1661_v56 = vld [vmem:[%s6097_s7 + $0x300] sm:$0xff] }
 0x964   : > { %v4317_v7 = vcombine.low %v1566_v2, %v1574_v17  ;;  %v4318_v8 = vcombine.high %v1566_v2, %v1574_v17  ;;  %v1662_v58 = vld [vmem:[%s6097_s7 + $0x308] sm:$0xff]  ;;  %v4412_v59 = vcombine.high %v1661_v56, %v1669_v57  ;;  %v1677_v2 = vld [vmem:[%s6097_s7 + $0x380] sm:$0xff] }
 0x965   : > { %v1536_v62 = vsel %vm939_vm6, %v1533_v60, 0.0  ;;  %v4428_v17 = vcombine.high %v1677_v2, %v1685_v3  ;;  %v4427_v6 = vcombine.low %v1677_v2, %v1685_v3  ;;  %v1656_v2 = vld [vmem:[%s6097_s7 + $0x2d8] sm:$0xff] }
 0x966   : > { %1537 = vadd.xlane.f32.xlu0 %v1536_v62  ;;  %2458 = vmatprep.subr.bf16.mxu1 %v4318_v8  ;;  %v4411_v62 = vcombine.low %v1661_v56, %v1669_v57  ;;  %v4430_v8 = vcombine.high %v1678_v4, %v1686_v5  ;;  %v1640_v56 = vld [vmem:[%s6097_s7 + $0x258] sm:$0xff] }
 0x967   : > { %2459 = vmatpush1.bf16.msra.mxu1 %v4317_v7  ;;  %2429 = vmatprep.subr.bf16.mxu0 %v4412_v59  ;;  %v4429_v7 = vcombine.low %v1678_v4, %v1686_v5 }
 0x968   : > { %2460 = vmatprep.subr.bf16.mxu1 %v4334_v13  ;;  %2430 = vmatpush1.bf16.msra.mxu0 %v4411_v62  ;;  %v4320_v13 = vcombine.high %v1567_v9, %v1575_v10  ;;  %v1647_v62 = vld [vmem:[%s6097_s7 + $0x290] sm:$0xff]  ;;  %v1672_v9 = vld [vmem:[%s6097_s7 + $0x358] sm:$0xff] }
 0x969   : > { %2431 = vmatprep.subr.bf16.mxu0 %v4428_v17 }
 0x96b   : > { %2461 = vmatpush1.bf16.msra.mxu1 %v4333_v20 }
 0x96c   : > { %2462 = vmatprep.subr.bf16.mxu1 %v4350_v25  ;;  %2432 = vmatpush1.bf16.msra.mxu0 %v4427_v6  ;;  %v1663_v6 = vld [vmem:[%s6097_s7 + $0x310] sm:$0xff] }
 0x96d   : > { %2499 = vmatprep.subr.bf16.mxu0 %v4320_v13 }
 0x96f   : > { %2463 = vmatpush1.bf16.msra.mxu1 %v4349_v28 }
 0x970   : > { %2464 = vmatprep.subr.bf16.mxu1 %v4366_v41  ;;  %v1600_v41 = vld [vmem:[%s6097_s7 + $0x118] sm:$0xff] }
 0x971   : > { %v4354_v45 = vcombine.high %v1600_v41, %v1608_v33  ;;  %v4353_v51 = vcombine.low %v1600_v41, %v1608_v33  ;;  %v1594_v41 = vld [vmem:[%s6097_s7 + $0xe8] sm:$0xff] }
 0x973   : > { %2465 = vmatpush1.bf16.msra.mxu1 %v4365_v27  ;;  %v1607_v27 = vld [vmem:[%s6097_s7 + $0x150] sm:$0xff] }
 0x974   : > { %2466 = vmatprep.subr.bf16.mxu1 %v4382_v48  ;;  %v4352_v44 = vcombine.high %v1599_v40, %v1607_v27  ;;  %v1616_v48 = vld [vmem:[%s6097_s7 + $0x198] sm:$0xff]  ;;  %v4351_v50 = vcombine.low %v1599_v40, %v1607_v27  ;;  %v1593_v40 = vld [vmem:[%s6097_s7 + $0xe0] sm:$0xff]  ;;  %v1586_v27 = vld [vmem:[%s6097_s7 + $0xa8] sm:$0xff] }
 0x975   : > { %v4370_v53 = vcombine.high %v1616_v48, %v1624_v49 }
 0x977   : > { %2467 = vmatpush1.bf16.msra.mxu1 %v4381_v47  ;;  %v1623_v47 = vld [vmem:[%s6097_s7 + $0x1d0] sm:$0xff] }
 0x978   : > { %2468 = vmatprep.subr.bf16.mxu1 %v4398_v55  ;;  %v4368_v52 = vcombine.high %v1615_v46, %v1623_v47  ;;  %v1632_v55 = vld [vmem:[%s6097_s7 + $0x218] sm:$0xff]  ;;  %v4367_v57 = vcombine.low %v1615_v46, %v1623_v47  ;;  %v1609_v46 = vld [vmem:[%s6097_s7 + $0x160] sm:$0xff]  ;;  %v1602_v47 = vld [vmem:[%s6097_s7 + $0x128] sm:$0xff] }
 0x979   : > { %v4385_v4 = vcombine.low %v1632_v55, %v1640_v56 }
 0x97b   : > { %2469 = vmatpush1.bf16.msra.mxu1 %v4397_v19  ;;  %v1639_v19 = vld [vmem:[%s6097_s7 + $0x250] sm:$0xff] }
 0x97c   : > { %v4384_v59 = vcombine.high %v1631_v54, %v1639_v19  ;;  %v4383_v3 = vcombine.low %v1631_v54, %v1639_v19  ;;  %v1625_v54 = vld [vmem:[%s6097_s7 + $0x1e0] sm:$0xff]  ;;  %v1618_v19 = vld [vmem:[%s6097_s7 + $0x1a8] sm:$0xff] }
 0x9f3   : > { %v1538_v29 = vpop.xlane.xlu0 %1537 }
 0x9f4   : > { %v1540_v31 = vmul.f32 0.0078125, %v1538_v29  ;;  %v4314_v29 = vld [vmem:[%s6096_s6] ss:$0 sm:$0xff] }
 0x9f6   : > { %v5639_v32 = vsub.f32 %v1533_v60, %v1540_v31  ;;  %v1670_v60 = vld [vmem:[%s6097_s7 + $0x348] sm:$0xff] }
 0x9f7   : > { %v4413_v63 = vcombine.low %v1662_v58, %v1670_v60  ;;  %v4414_v1 = vcombine.high %v1662_v58, %v1670_v60  ;;  %v4369_v58 = vcombine.low %v1616_v48, %v1624_v49  ;;  %v4386_v60 = vcombine.high %v1632_v55, %v1640_v56  ;;  %v1610_v48 = vld [vmem:[%s6097_s7 + $0x168] sm:$0xff] }
 0x9f8   : > { %v1542_v34 = vmul.f32 %v5639_v32, %v5639_v32  ;;  %v1626_v55 = vld [vmem:[%s6097_s7 + $0x1e8] sm:$0xff] }
 0x9f9   : > { %2470 = vmatprep.subr.bf16.mxu1 %v4414_v1  ;;  %v1648_v1 = vld [vmem:[%s6097_s7 + $0x298] sm:$0xff] }
 0x9fa   : > { %v1543_v35 = vsel %vm939_vm6, %v1542_v34, 0.0  ;;  %2471 = vmatpush1.bf16.msra.mxu1 %v4413_v63  ;;  %v1583_v34 = vld [vmem:[%s6097_s7 + $0x90] sm:$0xff]  ;;  %v4402_v5 = vcombine.high %v1648_v1, %v1656_v2  ;;  %v4401_v11 = vcombine.low %v1648_v1, %v1656_v2  ;;  %v1642_v1 = vld [vmem:[%s6097_s7 + $0x268] sm:$0xff] }
 0x9fb   : > { %1544 = vadd.xlane.f32.xlu1 %v1543_v35  ;;  %2472 = vmatprep.subr.bf16.mxu1 %v4430_v8  ;;  %v1591_v35 = vld [vmem:[%s6097_s7 + $0xd0] sm:$0xff]  ;;  %v1664_v8 = vld [vmem:[%s6097_s7 + $0x318] sm:$0xff] }
 0x9fc   : > { %v4336_v38 = vcombine.high %v1583_v34, %v1591_v35  ;;  %v4335_v42 = vcombine.low %v1583_v34, %v1591_v35  ;;  %v1655_v63 = vld [vmem:[%s6097_s7 + $0x2d0] sm:$0xff]  ;;  %v4418_v13 = vcombine.high %v1664_v8, %v1672_v9  ;;  %v1578_v34 = vld [vmem:[%s6097_s7 + $0x68] sm:$0xff] }
 0x9fd   : > { %v4400_v17 = vcombine.high %v1647_v62, %v1655_v63  ;;  %v4399_v10 = vcombine.low %v1647_v62, %v1655_v63  ;;  %v1641_v62 = vld [vmem:[%s6097_s7 + $0x260] sm:$0xff]  ;;  %v1634_v63 = vld [vmem:[%s6097_s7 + $0x228] sm:$0xff] }
 0x9fe   : > { %2473 = vmatpush1.bf16.msra.mxu1 %v4429_v7  ;;  %v1671_v7 = vld [vmem:[%s6097_s7 + $0x350] sm:$0xff] }
 0x9ff   : > { %2540 = vmatprep.subr.bf16.mxu1 %v4322_v16  ;;  %v1680_v16 = vld [vmem:[%s6097_s7 + $0x398] sm:$0xff] }
 0xa88   : > { %v1545_v18 = vpop.xlane.xlu1 %1544 }
 0xa89   : > { %v1546_v20 = vmul.f32 0.0078125, %v1545_v18  ;;  %v1688_v18 = vld [vmem:[%s6097_s7 + $0x3d8] sm:$0xff] }
 0xa8b   : > { %v1547_v23 = vadd.f32 1e-05, %v1546_v20  ;;  %v4415_v20 = vcombine.low %v1663_v6, %v1671_v7 }
 0xa8d   : > { %5112 = vrsqrt.f32 %v1547_v23  ;;  %v4417_v23 = vcombine.low %v1664_v8, %v1672_v9  ;;  %v1658_v8 = vld [vmem:[%s6097_s7 + $0x2e8] sm:$0xff] }
 0xa97   : > { %v5113_v25 = vpop.eup %5112 }
 0xa98   : > { %v1549_v28 = vmul.f32 %v5113_v25, %v5639_v32  ;;  %v1592_v32 = vld [vmem:[%s6097_s7 + $0xd8] sm:$0xff] }
 0xa99   : > { %v4338_v39 = vcombine.high %v1584_v36, %v1592_v32  ;;  %v4337_v43 = vcombine.low %v1584_v36, %v1592_v32  ;;  %v4433_v36 = vcombine.low %v1680_v16, %v1688_v18 }
 0xa9a   : > { %v1556_v31 = vmul.f32 %v4313_v26, %v1549_v28  ;;  %v4434_v26 = vcombine.high %v1680_v16, %v1688_v18  ;;  %v1569_v28 = vld [vmem:[%s6097_s7 + $0x20] sm:$0xff]  ;;  %v1674_v16 = vld [vmem:[%s6097_s7 + $0x368] sm:$0xff] }
 0xa9c   : > { %v5735_v37 = vadd.f32 %v4314_v29, %v1556_v31  ;;  %v1577_v29 = vld [vmem:[%s6097_s7 + $0x60] sm:$0xff]  ;;  %v1570_v31 = vld [vmem:[%s6097_s7 + $0x28] sm:$0xff] }
 0xa9d   : > { %v4324_v32 = vcombine.high %v1569_v28, %v1577_v29  ;;  %v4323_v33 = vcombine.low %v1569_v28, %v1577_v29  ;;  %v1689_v28 = vld [vmem:[%s6097_s7 + $0x3e0] sm:$0xff]  ;;  %v1682_v29 = vld [vmem:[%s6097_s7 + $0x3a8] sm:$0xff] }
 0xa9e   : > { %v5739_v30 = vpack.c.bf16 %v5735_v37, %v5735_v37 }
 0xaa0   : > { %2450 = vmatmul.mubr.bf16.vlgmr.msra.gmra.mrb[16].mxu0 %v5739_v30  ;;  %2491 = vmatmul.mubr.bf16.vlgmr.msra.gmra.mrb[8].mxu1 %v5739_v30 }
 0xaa1   : > { %2500 = vmatpush1.bf16.msra.mxu0 %v4319_v12  ;;  %2541 = vmatpush1.bf16.msra.mxu1 %v4321_v15  ;;  %v4416_v12 = vcombine.high %v1663_v6, %v1671_v7  ;;  %v1687_v15 = vld [vmem:[%s6097_s7 + $0x3d0] sm:$0xff]  ;;  %v1657_v6 = vld [vmem:[%s6097_s7 + $0x2e0] sm:$0xff]  ;;  %v1650_v7 = vld [vmem:[%s6097_s7 + $0x2a8] sm:$0xff] }
 0xaa2   : > { %2501 = vmatprep.subr.bf16.mxu0 %v4336_v38  ;;  %2542 = vmatprep.subr.bf16.mxu1 %v4338_v39  ;;  %v4432_v25 = vcombine.high %v1679_v14, %v1687_v15  ;;  %v4431_v35 = vcombine.low %v1679_v14, %v1687_v15  ;;  %v4326_v38 = vcombine.high %v1570_v31, %v1578_v34  ;;  %v1585_v39 = vld [vmem:[%s6097_s7 + $0xa0] sm:$0xff]  ;;  %v1666_v15 = vld [vmem:[%s6097_s7 + $0x328] sm:$0xff] }
 0xaa3   : > { %2531 = vmatprep.mubr.bf16.mxu0 %v5256_v0  ;;  %2572 = vmatprep.mubr.bf16.mxu1 %v5256_v0  ;;  %v4339_v49 = vcombine.low %v1585_v39, %v1593_v40  ;;  %v1673_v14 = vld [vmem:[%s6097_s7 + $0x360] sm:$0xff] }
 0xaa5   : > { %2502 = vmatpush1.bf16.msra.mxu0 %v4335_v42  ;;  %2543 = vmatpush1.bf16.msra.mxu1 %v4337_v43  ;;  %v4325_v42 = vcombine.low %v1570_v31, %v1578_v34  ;;  %v4340_v43 = vcombine.high %v1585_v39, %v1593_v40  ;;  %v1690_v31 = vld [vmem:[%s6097_s7 + $0x3e8] sm:$0xff]  ;;  %v1579_v39 = vld [vmem:[%s6097_s7 + $0x70] sm:$0xff]  ;;  %v1572_v40 = vld [vmem:[%s6097_s7 + $0x38] sm:$0xff] }
 0xaa6   : > { %2503 = vmatprep.subr.bf16.mxu0 %v4352_v44  ;;  %2544 = vmatprep.subr.bf16.mxu1 %v4354_v45  ;;  %v4342_v44 = vcombine.high %v1586_v27, %v1594_v41  ;;  %v1601_v45 = vld [vmem:[%s6097_s7 + $0x120] sm:$0xff] }
 0xaa7   : > { %v4355_v56 = vcombine.low %v1601_v45, %v1609_v46 }
 0xaa9   : > { %2504 = vmatpush1.bf16.msra.mxu0 %v4351_v50  ;;  %2545 = vmatpush1.bf16.msra.mxu1 %v4353_v51  ;;  %v4341_v50 = vcombine.low %v1586_v27, %v1594_v41  ;;  %v4356_v51 = vcombine.high %v1601_v45, %v1609_v46  ;;  %v1580_v27 = vld [vmem:[%s6097_s7 + $0x78] sm:$0xff]  ;;  %v1595_v45 = vld [vmem:[%s6097_s7 + $0xf0] sm:$0xff] }
 0xaaa   : > { %2505 = vmatprep.subr.bf16.mxu0 %v4368_v52  ;;  %2546 = vmatprep.subr.bf16.mxu1 %v4370_v53  ;;  %v4358_v52 = vcombine.high %v1602_v47, %v1610_v48  ;;  %v1617_v53 = vld [vmem:[%s6097_s7 + $0x1a0] sm:$0xff]  ;;  %v1588_v46 = vld [vmem:[%s6097_s7 + $0xb8] sm:$0xff] }
 0xaab   : > { %v4371_v2 = vcombine.low %v1617_v53, %v1625_v54 }
 0xaad   : > { %2506 = vmatpush1.bf16.msra.mxu0 %v4367_v57  ;;  %2547 = vmatpush1.bf16.msra.mxu1 %v4369_v58  ;;  %v4357_v57 = vcombine.low %v1602_v47, %v1610_v48  ;;  %v4372_v58 = vcombine.high %v1617_v53, %v1625_v54  ;;  %v1596_v47 = vld [vmem:[%s6097_s7 + $0xf8] sm:$0xff]  ;;  %v1611_v53 = vld [vmem:[%s6097_s7 + $0x170] sm:$0xff] }
 0xaae   : > { %2507 = vmatprep.subr.bf16.mxu0 %v4384_v59  ;;  %2548 = vmatprep.subr.bf16.mxu1 %v4386_v60  ;;  %v4374_v59 = vcombine.high %v1618_v19, %v1626_v55  ;;  %v1633_v60 = vld [vmem:[%s6097_s7 + $0x220] sm:$0xff]  ;;  %v1604_v54 = vld [vmem:[%s6097_s7 + $0x138] sm:$0xff] }
 0xaaf   : > { %v4387_v9 = vcombine.low %v1633_v60, %v1641_v62 }
 0xab1   : > { %2508 = vmatpush1.bf16.msra.mxu0 %v4383_v3  ;;  %2549 = vmatpush1.bf16.msra.mxu1 %v4385_v4  ;;  %v4373_v3 = vcombine.low %v1618_v19, %v1626_v55  ;;  %v4388_v4 = vcombine.high %v1633_v60, %v1641_v62  ;;  %v1612_v19 = vld [vmem:[%s6097_s7 + $0x178] sm:$0xff]  ;;  %v1627_v60 = vld [vmem:[%s6097_s7 + $0x1f0] sm:$0xff] }
 0xab2   : > { %2509 = vmatprep.subr.bf16.mxu0 %v4400_v17  ;;  %2550 = vmatprep.subr.bf16.mxu1 %v4402_v5  ;;  %v4390_v17 = vcombine.high %v1634_v63, %v1642_v1  ;;  %v1649_v5 = vld [vmem:[%s6097_s7 + $0x2a0] sm:$0xff]  ;;  %v1620_v62 = vld [vmem:[%s6097_s7 + $0x1b8] sm:$0xff] }
 0xab3   : > { %v4403_v18 = vcombine.low %v1649_v5, %v1657_v6 }
 0xab5   : > { %2510 = vmatpush1.bf16.msra.mxu0 %v4399_v10  ;;  %2551 = vmatpush1.bf16.msra.mxu1 %v4401_v11  ;;  %v4389_v10 = vcombine.low %v1634_v63, %v1642_v1  ;;  %v4404_v11 = vcombine.high %v1649_v5, %v1657_v6  ;;  %v1628_v63 = vld [vmem:[%s6097_s7 + $0x1f8] sm:$0xff]  ;;  %v1643_v5 = vld [vmem:[%s6097_s7 + $0x270] sm:$0xff] }
 0xab6   : > { %2511 = vmatprep.subr.bf16.mxu0 %v4416_v12  ;;  %2552 = vmatprep.subr.bf16.mxu1 %v4418_v13  ;;  %v4406_v12 = vcombine.high %v1650_v7, %v1658_v8  ;;  %v1665_v13 = vld [vmem:[%s6097_s7 + $0x320] sm:$0xff]  ;;  %v1644_v6 = vld [vmem:[%s6097_s7 + $0x278] sm:$0xff] }
 0xab7   : > { %v4419_v34 = vcombine.low %v1665_v13, %v1673_v14 }
 0xab9   : > { %2512 = vmatpush1.bf16.msra.mxu0 %v4415_v20  ;;  %2553 = vmatpush1.bf16.msra.mxu1 %v4417_v23  ;;  %v4405_v20 = vcombine.low %v1650_v7, %v1658_v8  ;;  %v4420_v23 = vcombine.high %v1665_v13, %v1673_v14  ;;  %v4377_v8 = vcombine.low %v1620_v62, %v1628_v63  ;;  %v1652_v13 = vld [vmem:[%s6097_s7 + $0x2b8] sm:$0xff] }
 0xaba   : > { %2513 = vmatprep.subr.bf16.mxu0 %v4432_v25  ;;  %2554 = vmatprep.subr.bf16.mxu1 %v4434_v26  ;;  %v4422_v25 = vcombine.high %v1666_v15, %v1674_v16  ;;  %v1681_v26 = vld [vmem:[%s6097_s7 + $0x3a0] sm:$0xff]  ;;  %v1660_v14 = vld [vmem:[%s6097_s7 + $0x2f8] sm:$0xff] }
 0xabb   : > { %v4435_v41 = vcombine.low %v1681_v26, %v1689_v28 }
 0xabd   : > { %2514 = vmatpush1.bf16.msra.mxu0 %v4431_v35  ;;  %2555 = vmatpush1.bf16.msra.mxu1 %v4433_v36  ;;  %v4421_v35 = vcombine.low %v1666_v15, %v1674_v16  ;;  %v4436_v36 = vcombine.high %v1681_v26, %v1689_v28  ;;  %v1668_v26 = vld [vmem:[%s6097_s7 + $0x338] sm:$0xff] }
 0xabe   : > { %2581 = vmatprep.subr.bf16.mxu0 %v4324_v32  ;;  %2622 = vmatprep.subr.bf16.mxu1 %v4326_v38  ;;  %v4438_v32 = vcombine.high %v1682_v29, %v1690_v31  ;;  %v1571_v38 = vld [vmem:[%s6097_s7 + $0x30] sm:$0xff]  ;;  %v1676_v28 = vld [vmem:[%s6097_s7 + $0x378] sm:$0xff] }
 0xabf   : > { %v4327_v48 = vcombine.low %v1571_v38, %v1579_v39 }
 0xac0   : > { %2532 = vmatmul.mubr.bf16.vlgmr.msra.gmra.mrb[20].mxu0 %v5739_v30  ;;  %2573 = vmatmul.mubr.bf16.vlgmr.msra.gmra.mrb[12].mxu1 %v5739_v30 }
 0xac1   : > { %2582 = vmatpush1.bf16.msra.mxu0 %v4323_v33  ;;  %2623 = vmatpush1.bf16.msra.mxu1 %v4325_v42  ;;  %v4437_v33 = vcombine.low %v1682_v29, %v1690_v31  ;;  %v4328_v42 = vcombine.high %v1571_v38, %v1579_v39  ;;  %v4409_v31 = vcombine.low %v1652_v13, %v1660_v14  ;;  %v1684_v38 = vld [vmem:[%s6097_s7 + $0x3b8] sm:$0xff] }
 0xac2   : > { %2583 = vmatprep.subr.bf16.mxu0 %v4340_v43  ;;  %2624 = vmatprep.subr.bf16.mxu1 %v4342_v44  ;;  %v4330_v43 = vcombine.high %v1572_v40, %v1580_v27  ;;  %v1587_v44 = vld [vmem:[%s6097_s7 + $0xb0] sm:$0xff]  ;;  %v1692_v39 = vld [vmem:[%s6097_s7 + $0x3f8] sm:$0xff] }
 0xac3   : > { %2613 = vmatprep.mubr.bf16.mxu0 %v5256_v0  ;;  %2654 = vmatprep.mubr.bf16.mxu1 %v5256_v0  ;;  %v4343_v55 = vcombine.low %v1587_v44, %v1595_v45 }
 0xac5   : > { %2584 = vmatpush1.bf16.msra.mxu0 %v4339_v49  ;;  %2625 = vmatpush1.bf16.msra.mxu1 %v4341_v50  ;;  %v4329_v49 = vcombine.low %v1572_v40, %v1580_v27  ;;  %v4344_v50 = vcombine.high %v1587_v44, %v1595_v45  ;;  %v4425_v27 = vcombine.low %v1668_v26, %v1676_v28  ;;  %v4968_v44 = vld [vmem:[#allocation7 + $0x40] sm:$0xff]  }
 0xac6   : > { %2585 = vmatprep.subr.bf16.mxu0 %v4356_v51  ;;  %2626 = vmatprep.subr.bf16.mxu1 %v4358_v52  ;;  %v4346_v51 = vcombine.high %v1588_v46, %v1596_v47  ;;  %v1603_v52 = vld [vmem:[%s6097_s7 + $0x130] sm:$0xff] }
 0xac7   : > { %v4359_v1 = vcombine.low %v1603_v52, %v1611_v53  ;;  %v4969_v45 = vld [vmem:[#allocation7 + $0xc0] sm:$0xff]  }
 0xac9   : > { %2586 = vmatpush1.bf16.msra.mxu0 %v4355_v56  ;;  %2627 = vmatpush1.bf16.msra.mxu1 %v4357_v57  ;;  %v4345_v56 = vcombine.low %v1588_v46, %v1596_v47  ;;  %v4360_v57 = vcombine.high %v1603_v52, %v1611_v53  ;;  %v4970_v46 = vld [vmem:[#allocation7] sm:$0xff]   ;;  %v4976_v52 = vld [vmem:[#allocation7 + $0x50] sm:$0xff]  }
 0xaca   : > { %2587 = vmatprep.subr.bf16.mxu0 %v4372_v58  ;;  %2628 = vmatprep.subr.bf16.mxu1 %v4374_v59  ;;  %v4362_v58 = vcombine.high %v1604_v54, %v1612_v19  ;;  %v1619_v59 = vld [vmem:[%s6097_s7 + $0x1b0] sm:$0xff]  ;;  %v4977_v53 = vld [vmem:[#allocation7 + $0xd0] sm:$0xff]  }
 0xacb   : > { %v4375_v7 = vcombine.low %v1619_v59, %v1627_v60  ;;  %v4971_v47 = vld [vmem:[#allocation7 + $0x80] sm:$0xff]  }
 0xacd   : > { %2588 = vmatpush1.bf16.msra.mxu0 %v4371_v2  ;;  %2629 = vmatpush1.bf16.msra.mxu1 %v4373_v3  ;;  %v4361_v2 = vcombine.low %v1604_v54, %v1612_v19  ;;  %v4376_v3 = vcombine.high %v1619_v59, %v1627_v60  ;;  %v4978_v54 = vld [vmem:[#allocation7 + $0x10] sm:$0xff]   ;;  %v4985_v59 = vld [vmem:[#allocation7 + $0xe0] sm:$0xff]  }
 0xace   : > { %2589 = vmatprep.subr.bf16.mxu0 %v4388_v4  ;;  %2630 = vmatprep.subr.bf16.mxu1 %v4390_v17  ;;  %v4378_v4 = vcombine.high %v1620_v62, %v1628_v63  ;;  %v1635_v17 = vld [vmem:[%s6097_s7 + $0x230] sm:$0xff]  ;;  %v4979_v19 = vld [vmem:[#allocation7 + $0x90] sm:$0xff]   ;;  %v4988_v63 = vld [vmem:[#allocation7 + $0x68] sm:$0xff]  }
 0xacf   : > { %v4391_v15 = vcombine.low %v1635_v17, %v1643_v5  ;;  %v4986_v60 = vld [vmem:[#allocation7 + $0x20] sm:$0xff]  }
 0xad0   : > { %v4987_v62 = vld [vmem:[#allocation7 + $0xa0] sm:$0xff]  }
 0xad1   : > { %2590 = vmatpush1.bf16.msra.mxu0 %v4387_v9  ;;  %2631 = vmatpush1.bf16.msra.mxu1 %v4389_v10  ;;  %v4392_v9 = vcombine.high %v1635_v17, %v1643_v5  ;;  %v4993_v17 = vld [vmem:[#allocation7 + $0xf0] sm:$0xff]  }
 0xad2   : > { %2591 = vmatprep.subr.bf16.mxu0 %v4404_v11  ;;  %2632 = vmatprep.subr.bf16.mxu1 %v4406_v12  ;;  %v1651_v11 = vld [vmem:[%s6097_s7 + $0x2b0] sm:$0xff]  ;;  %v4994_v5 = vld [vmem:[#allocation7 + $0x30] sm:$0xff]  }
 0xad3   : > { %v1659_v12 = vld [vmem:[%s6097_s7 + $0x2f0] sm:$0xff] }
 0xad4   : > { %v4407_v29 = vcombine.low %v1651_v11, %v1659_v12 }
 0xad5   : > { %2592 = vmatpush1.bf16.msra.mxu0 %v4403_v18  ;;  %2633 = vmatpush1.bf16.msra.mxu1 %v4405_v20  ;;  %v4408_v18 = vcombine.high %v1651_v11, %v1659_v12  ;;  %v4410_v20 = vcombine.high %v1652_v13, %v1660_v14  ;;  %v5001_v11 = vld [vmem:[#allocation7 + $0x1c0] sm:$0xff]   ;;  %v6019_v12 = vld [vmem:[#allocation6] sm:$0xff]  ;;  %v1711_v13 = vsub.s32 3, %v5488_v21 }
 0xad6   : > { %2593 = vmatprep.subr.bf16.mxu0 %v4420_v23  ;;  %2634 = vmatprep.subr.bf16.mxu1 %v4422_v25  ;;  %v1667_v23 = vld [vmem:[%s6097_s7 + $0x330] sm:$0xff]  ;;  %v1700_v14 = vrot.slane %v6019_v12, %v5499_v24 }
 0xad7   : > { %v1675_v25 = vld [vmem:[%s6097_s7 + $0x370] sm:$0xff] }
 0xad8   : > { %v4423_v40 = vcombine.low %v1667_v23, %v1675_v25 }
 0xad9   : > { %2594 = vmatpush1.bf16.msra.mxu0 %v4419_v34  ;;  %2635 = vmatpush1.bf16.msra.mxu1 %v4421_v35  ;;  %v4424_v34 = vcombine.high %v1667_v23, %v1675_v25  ;;  %v4426_v35 = vcombine.high %v1668_v26, %v1676_v28 }
 0xada   : > { %2595 = vmatprep.subr.bf16.mxu0 %v4436_v36  ;;  %2636 = vmatprep.subr.bf16.mxu1 %v4438_v32  ;;  %v1683_v36 = vld [vmem:[%s6097_s7 + $0x3b0] sm:$0xff] }
 0xadb   : > { %v1691_v32 = vld [vmem:[%s6097_s7 + $0x3f0] sm:$0xff] }
 0xadd   : > { %2596 = vmatpush1.bf16.msra.mxu0 %v4435_v41  ;;  %2637 = vmatpush1.bf16.msra.mxu1 %v4437_v33  ;;  %v4440_v41 = vcombine.high %v1683_v36, %v1691_v32  ;;  %v4442_v33 = vcombine.high %v1684_v38, %v1692_v39 }
 0xade   : > { %2663 = vmatprep.subr.bf16.mxu0 %v4328_v42  ;;  %2704 = vmatprep.subr.bf16.mxu1 %v4330_v43  ;;  %v4439_v42 = vcombine.low %v1683_v36, %v1691_v32  ;;  %v4441_v43 = vcombine.low %v1684_v38, %v1692_v39 }
 0xae0   : > { %2614 = vmatmul.mubr.bf16.vlgmr.msra.gmra.mrb[24].mxu0 %v5739_v30  ;;  %2655 = vmatmul.mubr.bf16.vlgmr.msra.gmra.mrb[16].mxu1 %v5739_v30 }
 0xae1   : > { %2664 = vmatpush1.bf16.msra.mxu0 %v4327_v48  ;;  %2705 = vmatpush1.bf16.msra.mxu1 %v4329_v49  ;;  %v4972_v48 = vld [vmem:[#allocation7 + $0x48] sm:$0xff]  }
 0xae2   : > { %2665 = vmatprep.subr.bf16.mxu0 %v4344_v50  ;;  %2706 = vmatprep.subr.bf16.mxu1 %v4346_v51  ;;  %v4973_v49 = vld [vmem:[#allocation7 + $0xc8] sm:$0xff]  }
 0xae3   : > { %2695 = vmatprep.mubr.bf16.mxu0 %v5256_v0  ;;  %2736 = vmatprep.mubr.bf16.mxu1 %v5256_v0  ;;  %v1636_v0 = vld [vmem:[%s6097_s7 + $0x238] sm:$0xff] }
 0xae4   : > { %v4394_v10 = vcombine.high %v1636_v0, %v1644_v6  ;;  %v4393_v16 = vcombine.low %v1636_v0, %v1644_v6  ;;  %v4974_v50 = vld [vmem:[#allocation7 + $0x8] sm:$0xff]   ;;  %v4995_v0 = vld [vmem:[#allocation7 + $0xb0] sm:$0xff]   ;;  %v4996_v6 = vld [vmem:[#allocation7 + $0x78] sm:$0xff]  }
 0xae5   : > { %2666 = vmatpush1.bf16.msra.mxu0 %v4343_v55  ;;  %2707 = vmatpush1.bf16.msra.mxu1 %v4345_v56  ;;  %v4975_v51 = vld [vmem:[#allocation7 + $0x88] sm:$0xff]   ;;  %v4980_v55 = vld [vmem:[#allocation7 + $0x58] sm:$0xff]  }
 0xae6   : > { %2667 = vmatprep.subr.bf16.mxu0 %v4360_v57  ;;  %2708 = vmatprep.subr.bf16.mxu1 %v4362_v58  ;;  %v4981_v56 = vld [vmem:[#allocation7 + $0xd8] sm:$0xff]   ;;  %v4984_v58 = vld [vmem:[#allocation7 + $0x60] sm:$0xff]  }
 0xae7   : > { %v4982_v57 = vld [vmem:[#allocation7 + $0x18] sm:$0xff]  }
 0xae9   : > { %2668 = vmatpush1.bf16.msra.mxu0 %v4359_v1  ;;  %2709 = vmatpush1.bf16.msra.mxu1 %v4361_v2  ;;  %v4989_v1 = vld [vmem:[#allocation7 + $0xe8] sm:$0xff]  }
 0xaea   : > { %2669 = vmatprep.subr.bf16.mxu0 %v4376_v3  ;;  %2710 = vmatprep.subr.bf16.mxu1 %v4378_v4  ;;  %v4990_v2 = vld [vmem:[#allocation7 + $0x28] sm:$0xff]   ;;  %v4992_v4 = vld [vmem:[#allocation7 + $0x70] sm:$0xff]  }
 0xaeb   : > { %v4991_v3 = vld [vmem:[#allocation7 + $0xa8] sm:$0xff]  }
 0xaed   : > { %2670 = vmatpush1.bf16.msra.mxu0 %v4375_v7  ;;  %2711 = vmatpush1.bf16.msra.mxu1 %v4377_v8  ;;  %v4997_v7 = vld [vmem:[#allocation7 + $0xf8] sm:$0xff]  }
 0xaee   : > { %2671 = vmatprep.subr.bf16.mxu0 %v4392_v9  ;;  %2712 = vmatprep.subr.bf16.mxu1 %v4394_v10  ;;  %v4998_v8 = vld [vmem:[#allocation7 + $0x38] sm:$0xff]   ;;  %v5000_v10 = vld [vmem:[#allocation7 + $0x140] sm:$0xff]  }
 0xaef   : > { %v4999_v9 = vld [vmem:[#allocation7 + $0xb8] sm:$0xff]  }
 0xaf1   : > { %2672 = vmatpush1.bf16.msra.mxu0 %v4391_v15  ;;  %2713 = vmatpush1.bf16.msra.mxu1 %v4393_v16  ;;  %v1708_v15 = vrot.slane %v6019_v12, %v5547_v61  ;;  %v1704_v16 = vrot.slane %v6019_v12, %v5491_v22 }
 0xaf2   : > { %2673 = vmatprep.subr.bf16.mxu0 %v4408_v18  ;;  %2714 = vmatprep.subr.bf16.mxu1 %v4410_v20  ;;  %v1712_v18 = vrot.slane %v6019_v12, %v1711_v13 }
 0xaf5   : > { %2674 = vmatpush1.bf16.msra.mxu0 %v4407_v29  ;;  %2715 = vmatpush1.bf16.msra.mxu1 %v4409_v31 }
 0xaf6   : > { %2675 = vmatprep.subr.bf16.mxu0 %v4424_v34  ;;  %2716 = vmatprep.subr.bf16.mxu1 %v4426_v35 }
 0xaf9   : > { %2676 = vmatpush1.bf16.msra.mxu0 %v4423_v40  ;;  %2717 = vmatpush1.bf16.msra.mxu1 %v4425_v27 }
 0xafa   : > { %2677 = vmatprep.subr.bf16.mxu0 %v4440_v41  ;;  %2718 = vmatprep.subr.bf16.mxu1 %v4442_v33 }
 0xafd   : > { %2678 = vmatpush1.bf16.msra.mxu0 %v4439_v42  ;;  %2719 = vmatpush1.bf16.msra.mxu1 %v4441_v43  ;;  %v5002_v43 = vld [vmem:[#allocation7 + $0x100] sm:$0xff]  }
 0xafe   : > { %4610 = vmatprep.subr.bf16.mxu0 %v4968_v44  ;;  %4632 = vmatprep.subr.bf16.mxu1 %v4969_v45  ;;  %v5003_v44 = vld [vmem:[#allocation7 + $0x180] sm:$0xff]  }
 0xb00   : > { %2696 = vmatmul.mubr.bf16.vlgmr.msra.gmra.mrb[28].mxu0 %v5739_v30  ;;  %2737 = vmatmul.mubr.bf16.vlgmr.msra.gmra.mrb[20].mxu1 %v5739_v30  ;;  %v4983_v30 = vld [vmem:[#allocation7 + $0x98] sm:$0xff]  }
 0xb01   : > { %4611 = vmatpush3.bf16.msra.mxu0 %v4970_v46  ;;  %4633 = vmatpush3.bf16.msra.mxu1 %v4971_v47  ;;  %v5004_v47 = vld [vmem:[#allocation7 + $0x148] sm:$0xff]  }
 0xb02   : > { %4612 = vmatprep.subr.bf16.mxu0 %v4972_v48  ;;  %4634 = vmatprep.subr.bf16.mxu1 %v4973_v49  ;;  %v5005_v48 = vld [vmem:[#allocation7 + $0x1c8] sm:$0xff]  }
 0xb03   : > { %v5006_v49 = vld [vmem:[#allocation7 + $0x108] sm:$0xff]  }
 0xb05   : > { %4613 = vmatpush3.bf16.msra.mxu0 %v4974_v50  ;;  %4635 = vmatpush3.bf16.msra.mxu1 %v4975_v51  ;;  %v5007_v50 = vld [vmem:[#allocation7 + $0x188] sm:$0xff]   ;;  %v5008_v51 = vld [vmem:[#allocation7 + $0x150] sm:$0xff]  }
 0xb06   : > { %4614 = vmatprep.subr.bf16.mxu0 %v4976_v52  ;;  %4636 = vmatprep.subr.bf16.mxu1 %v4977_v53  ;;  %v5009_v52 = vld [vmem:[#allocation7 + $0x1d0] sm:$0xff]  }
 0xb07   : > { %v5010_v53 = vld [vmem:[#allocation7 + $0x110] sm:$0xff]  }
 0xb09   : > { %4615 = vmatpush3.bf16.msra.mxu0 %v4978_v54  ;;  %4637 = vmatpush3.bf16.msra.mxu1 %v4979_v19  ;;  %v5011_v54 = vld [vmem:[#allocation7 + $0x190] sm:$0xff]   ;;  %v5012_v19 = vld [vmem:[#allocation7 + $0x158] sm:$0xff]  }
 0xb0a   : > { %4616 = vmatprep.subr.bf16.mxu0 %v4980_v55  ;;  %4638 = vmatprep.subr.bf16.mxu1 %v4981_v56  ;;  %v5013_v55 = vld [vmem:[#allocation7 + $0x1d8] sm:$0xff]  }
 0xb0b   : > { %v5014_v56 = vld [vmem:[#allocation7 + $0x118] sm:$0xff]  }
 0xb0d   : > { %4617 = vmatpush3.bf16.msra.mxu0 %v4982_v57  ;;  %4639 = vmatpush3.bf16.msra.mxu1 %v4983_v30  ;;  %v5015_v57 = vld [vmem:[#allocation7 + $0x198] sm:$0xff]   ;;  %v5016_v30 = vld [vmem:[#allocation7 + $0x160] sm:$0xff]  }
 0xb0e   : > { %4618 = vmatprep.subr.bf16.mxu0 %v4984_v58  ;;  %4640 = vmatprep.subr.bf16.mxu1 %v4985_v59  ;;  %v5017_v58 = vld [vmem:[#allocation7 + $0x1e0] sm:$0xff]  }
 0xb0f   : > { %v5018_v59 = vld [vmem:[#allocation7 + $0x120] sm:$0xff]  }
 0xb11   : > { %4619 = vmatpush3.bf16.msra.mxu0 %v4986_v60  ;;  %4641 = vmatpush3.bf16.msra.mxu1 %v4987_v62  ;;  %v5019_v60 = vld [vmem:[#allocation7 + $0x1a0] sm:$0xff]   ;;  %v5020_v62 = vld [vmem:[#allocation7 + $0x168] sm:$0xff]  }
 0xb12   : > { %4620 = vmatprep.subr.bf16.mxu0 %v4988_v63  ;;  %4642 = vmatprep.subr.bf16.mxu1 %v4989_v1  ;;  %v5021_v63 = vld [vmem:[#allocation7 + $0x1e8] sm:$0xff]   ;;  %v1715_v1 = vsub.s32 4, %v5488_v21 }
 0xb15   : > { %4621 = vmatpush3.bf16.msra.mxu0 %v4990_v2  ;;  %4643 = vmatpush3.bf16.msra.mxu1 %v4991_v3  ;;  %v1723_v2 = vsub.s32 6, %v5488_v21  ;;  %v5022_v3 = vld [vmem:[#allocation7 + $0x128] sm:$0xff]  }
 0xb16   : > { %4622 = vmatprep.subr.bf16.mxu0 %v4992_v4  ;;  %4644 = vmatprep.subr.bf16.mxu1 %v4993_v17  ;;  %v5023_v4 = vld [vmem:[#allocation7 + $0x1a8] sm:$0xff]   ;;  %v1719_v17 = vsub.s32 5, %v5488_v21 }
 0xb19   : > { %4623 = vmatpush3.bf16.msra.mxu0 %v4994_v5  ;;  %4645 = vmatpush3.bf16.msra.mxu1 %v4995_v0  ;;  %v1727_v5 = vsub.s32 7, %v5488_v21  ;;  %v5024_v0 = vld [vmem:[#allocation7 + $0x170] sm:$0xff]   ;;  %v5094_v21 = vld [vmem:[#allocation7 + $0x338] sm:$0xff]  }
 0xb1a   : > { %4624 = vmatprep.subr.bf16.mxu0 %v4996_v6  ;;  %4646 = vmatprep.subr.bf16.mxu1 %v4997_v7  ;;  %v5025_v6 = vld [vmem:[#allocation7 + $0x1f0] sm:$0xff]   ;;  %v1716_v7 = vrot.slane %v6019_v12, %v1715_v1 }
 0xb1d   : > { %4625 = vmatpush3.bf16.msra.mxu0 %v4998_v8  ;;  %4647 = vmatpush3.bf16.msra.mxu1 %v4999_v9  ;;  %v1724_v8 = vrot.slane %v6019_v12, %v1723_v2  ;;  %v1720_v9 = vrot.slane %v6019_v12, %v1719_v17 }
 0xb1e   : > { %4654 = vmatprep.subr.bf16.mxu0 %v5000_v10  ;;  %4676 = vmatprep.subr.bf16.mxu1 %v5001_v11  ;;  %v1728_v10 = vrot.slane %v6019_v12, %v1727_v5  ;;  %v5026_v11 = vld [vmem:[#allocation7 + $0x130] sm:$0xff]   ;;  %v5031_v12 = vld [vmem:[#allocation7 + $0x1b8] sm:$0xff]  }
 0xb73   : > { %v2451_v20 = vpop.f32.mrb[16].mxu0  ;;  %v2492_v23 = vpop.f32.mrb[8].mxu1 }
 0xb74   : > { %v2452_v25 = vadd.f32 %v2451_v20, %v1700_v14  ;;  %v2493_v26 = vadd.f32 %v2492_v23, %v1708_v15  ;;  %v2453_v28 = vpop.f32.mrb[17].mxu0  ;;  %v2494_v29 = vpop.f32.mrb[9].mxu1  ;;  %v5027_v14 = vld [vmem:[#allocation7 + $0x1b0] sm:$0xff]   ;;  %v5028_v15 = vld [vmem:[#allocation7 + $0x178] sm:$0xff]  }
 0xb75   : > { %v2454_v31 = vadd.f32 %v2453_v28, %v1704_v16  ;;  %v2495_v34 = vadd.f32 %v2494_v29, %v1712_v18  ;;  %v2455_v35 = vpop.f32.mrb[18].mxu0  ;;  %v2496_v36 = vpop.f32.mrb[10].mxu1  ;;  %v5029_v16 = vld [vmem:[#allocation7 + $0x1f8] sm:$0xff]  }
 0xb76   : > { %v2745_v32 = vmax.f32 %v2452_v25, 0.0  ;;  %v2747_v38 = vmax.f32 %v2493_v26, 0.0  ;;  %v2456_v39 = vpop.f32.mrb[19].mxu0  ;;  %v2497_v40 = vpop.f32.mrb[11].mxu1  ;;  %v5030_v36 = vld [vmem:[#allocation7 + $0x138] sm:$0xff]  }
 0xb77   : > { %v2746_v27 = vmax.f32 %v2454_v31, 0.0  ;;  %v2748_v41 = vmax.f32 %v2495_v34, 0.0 }
 0xb78   : > { %v2761_v45 = vpack.c.bf16 %v2745_v32, %v2745_v32  ;;  %v2763_v46 = vpack.c.bf16 %v2747_v38, %v2747_v38 }
 0xb79   : > { %v2762_v33 = vpack.c.bf16 %v2746_v27, %v2746_v27  ;;  %v2764_v42 = vpack.c.bf16 %v2748_v41, %v2748_v41  ;;  %v5032_v27 = vld [vmem:[#allocation7 + $0x240] sm:$0xff]  }
 0xb7a   : > { %v5033_v41 = vld [vmem:[#allocation7 + $0x2c0] sm:$0xff]  }
 0xb7b   : > { %3840 = vmatprep.mubr.bf16.mxu0 %v2762_v33  ;;  %3880 = vmatprep.mubr.bf16.mxu1 %v2764_v42 }
 0xb7c   : > { %3841 = vmatmul.mubr.bf16.vlgmr.msra.gmra.mrb[32].mxu0 %v2761_v45  ;;  %3881 = vmatmul.mubr.bf16.vlgmr.msra.gmra.mrb[24].mxu1 %v2763_v46  ;;  %v5034_v45 = vld [vmem:[#allocation7 + $0x200] sm:$0xff]  }
 0xb7d   : > { %4655 = vmatpush3.bf16.msra.mxu0 %v5002_v43  ;;  %4677 = vmatpush3.bf16.msra.mxu1 %v5003_v44  ;;  %v5035_v46 = vld [vmem:[#allocation7 + $0x280] sm:$0xff]  }
 0xb7e   : > { %4656 = vmatprep.subr.bf16.mxu0 %v5004_v47  ;;  %4678 = vmatprep.subr.bf16.mxu1 %v5005_v48 }
 0xb81   : > { %4657 = vmatpush3.bf16.msra.mxu0 %v5006_v49  ;;  %4679 = vmatpush3.bf16.msra.mxu1 %v5007_v50  ;;  %v5036_v49 = vld [vmem:[#allocation7 + $0x248] sm:$0xff]  }
 0xb82   : > { %4658 = vmatprep.subr.bf16.mxu0 %v5008_v51  ;;  %4680 = vmatprep.subr.bf16.mxu1 %v5009_v52  ;;  %v5037_v50 = vld [vmem:[#allocation7 + $0x2c8] sm:$0xff]  }
 0xb83   : > { %v5038_v51 = vld [vmem:[#allocation7 + $0x208] sm:$0xff]  }
 0xb84   : > { %v5039_v52 = vld [vmem:[#allocation7 + $0x288] sm:$0xff]  }
 0xb85   : > { %4659 = vmatpush3.bf16.msra.mxu0 %v5010_v53  ;;  %4681 = vmatpush3.bf16.msra.mxu1 %v5011_v54  ;;  %v5040_v53 = vld [vmem:[#allocation7 + $0x250] sm:$0xff]  }
 0xb86   : > { %4660 = vmatprep.subr.bf16.mxu0 %v5012_v19  ;;  %4682 = vmatprep.subr.bf16.mxu1 %v5013_v55  ;;  %v5041_v54 = vld [vmem:[#allocation7 + $0x2d0] sm:$0xff]  }
 0xb87   : > { %v5042_v19 = vld [vmem:[#allocation7 + $0x210] sm:$0xff]  }
 0xb88   : > { %v5043_v55 = vld [vmem:[#allocation7 + $0x290] sm:$0xff]  }
 0xb89   : > { %4661 = vmatpush3.bf16.msra.mxu0 %v5014_v56  ;;  %4683 = vmatpush3.bf16.msra.mxu1 %v5015_v57  ;;  %v5044_v56 = vld [vmem:[#allocation7 + $0x258] sm:$0xff]  }
 0xb8a   : > { %4662 = vmatprep.subr.bf16.mxu0 %v5016_v30  ;;  %4684 = vmatprep.subr.bf16.mxu1 %v5017_v58  ;;  %v5045_v57 = vld [vmem:[#allocation7 + $0x2d8] sm:$0xff]  }
 0xb8b   : > { %v5046_v30 = vld [vmem:[#allocation7 + $0x218] sm:$0xff]  }
 0xb8c   : > { %v5047_v58 = vld [vmem:[#allocation7 + $0x298] sm:$0xff]  }
 0xb8d   : > { %4663 = vmatpush3.bf16.msra.mxu0 %v5018_v59  ;;  %4685 = vmatpush3.bf16.msra.mxu1 %v5019_v60  ;;  %v5048_v59 = vld [vmem:[#allocation7 + $0x260] sm:$0xff]  }
 0xb8e   : > { %4664 = vmatprep.subr.bf16.mxu0 %v5020_v62  ;;  %4686 = vmatprep.subr.bf16.mxu1 %v5021_v63  ;;  %v5049_v60 = vld [vmem:[#allocation7 + $0x2e0] sm:$0xff]  }
 0xb8f   : > { %v5050_v62 = vld [vmem:[#allocation7 + $0x220] sm:$0xff]  }
 0xb90   : > { %v5051_v63 = vld [vmem:[#allocation7 + $0x2a0] sm:$0xff]  }
 0xb91   : > { %4665 = vmatpush3.bf16.msra.mxu0 %v5022_v3  ;;  %4687 = vmatpush3.bf16.msra.mxu1 %v5023_v4  ;;  %v5052_v3 = vld [vmem:[#allocation7 + $0x268] sm:$0xff]  }
 0xb92   : > { %4666 = vmatprep.subr.bf16.mxu0 %v5024_v0  ;;  %4688 = vmatprep.subr.bf16.mxu1 %v5025_v6  ;;  %v5053_v4 = vld [vmem:[#allocation7 + $0x2e8] sm:$0xff]  }
 0xb93   : > { %v2533_v18 = vpop.f32.mrb[20].mxu0  ;;  %v2574_v20 = vpop.f32.mrb[12].mxu1  ;;  %v5054_v0 = vld [vmem:[#allocation7 + $0x228] sm:$0xff]  }
 0xb94   : > { %v2534_v23 = vadd.f32 %v2533_v18, %v1716_v7  ;;  %v2575_v25 = vadd.f32 %v2574_v20, %v1724_v8  ;;  %v2535_v26 = vpop.f32.mrb[21].mxu0  ;;  %v2576_v28 = vpop.f32.mrb[13].mxu1  ;;  %v5055_v6 = vld [vmem:[#allocation7 + $0x2a8] sm:$0xff]   ;;  %v6047_v7 = vld [vmem:[#allocation6 + $0x8] sm:$0xff]  ;;  %v5056_v8 = vld [vmem:[#allocation7 + $0x270] sm:$0xff]  }
 0xb95   : > { %v2536_v29 = vadd.f32 %v2535_v26, %v1720_v9  ;;  %v2577_v31 = vadd.f32 %v2576_v28, %v1728_v10  ;;  %v2537_v34 = vpop.f32.mrb[22].mxu0  ;;  %v2578_v35 = vpop.f32.mrb[14].mxu1  ;;  %4667 = vmatpush3.bf16.msra.mxu0 %v5026_v11  ;;  %4689 = vmatpush3.bf16.msra.mxu1 %v5027_v14  ;;  %v5057_v9 = vld [vmem:[#allocation7 + $0x2f0] sm:$0xff]   ;;  %v1732_v10 = vrot.slane %v6047_v7, %v5499_v24  ;;  %v5060_v20 = vld [vmem:[#allocation7 + $0x278] sm:$0xff]  }
 0xb96   : > { %v2749_v32 = vmax.f32 %v2534_v23, 0.0  ;;  %v2751_v38 = vmax.f32 %v2575_v25, 0.0  ;;  %v2538_v39 = vpop.f32.mrb[23].mxu0  ;;  %v2579_v40 = vpop.f32.mrb[15].mxu1  ;;  %4668 = vmatprep.subr.bf16.mxu0 %v5028_v15  ;;  %4690 = vmatprep.subr.bf16.mxu1 %v5029_v16  ;;  %v1740_v11 = vrot.slane %v6047_v7, %v5547_v61  ;;  %v1736_v14 = vrot.slane %v6047_v7, %v5491_v22  ;;  %v5058_v16 = vld [vmem:[#allocation7 + $0x230] sm:$0xff]   ;;  %v5061_v23 = vld [vmem:[#allocation7 + $0x2f8] sm:$0xff]  }
 0xb97   : > { %v2750_v33 = vmax.f32 %v2536_v29, 0.0  ;;  %v2752_v42 = vmax.f32 %v2577_v31, 0.0  ;;  %v1744_v15 = vrot.slane %v6047_v7, %v1711_v13  ;;  %v5059_v18 = vld [vmem:[#allocation7 + $0x2b0] sm:$0xff]   ;;  %v5063_v13 = vld [vmem:[#allocation7 + $0x2b8] sm:$0xff]   ;;  %v5064_v40 = vld [vmem:[#allocation7 + $0x340] sm:$0xff]  }
 0xb98   : > { %v2765_v47 = vpack.c.bf16 %v2749_v32, %v2749_v32  ;;  %v2767_v48 = vpack.c.bf16 %v2751_v38, %v2751_v38 }
 0xb99   : > { %v2766_v43 = vpack.c.bf16 %v2750_v33, %v2750_v33  ;;  %v2768_v44 = vpack.c.bf16 %v2752_v42, %v2752_v42  ;;  %4669 = vmatpush3.bf16.msra.mxu0 %v5030_v36  ;;  %4691 = vmatpush3.bf16.msra.mxu1 %v5031_v12  ;;  %v5062_v36 = vld [vmem:[#allocation7 + $0x238] sm:$0xff]  }
 0xb9a   : > { %4698 = vmatprep.subr.bf16.mxu0 %v5032_v27  ;;  %4720 = vmatprep.subr.bf16.mxu1 %v5033_v41  ;;  %v5065_v27 = vld [vmem:[#allocation7 + $0x3c0] sm:$0xff]  }
 0xb9b   : > { %3920 = vmatprep.mubr.bf16.mxu0 %v2766_v43  ;;  %3960 = vmatprep.mubr.bf16.mxu1 %v2768_v44  ;;  %v5066_v44 = vld [vmem:[#allocation7 + $0x300] sm:$0xff]  }
 0xb9c   : > { %3921 = vmatmul.mubr.bf16.vlgmr.msra.gmra.mrb[36].mxu0 %v2765_v47  ;;  %3961 = vmatmul.mubr.bf16.vlgmr.msra.gmra.mrb[28].mxu1 %v2767_v48  ;;  %v5068_v48 = vld [vmem:[#allocation7 + $0x348] sm:$0xff]  }
 0xb9d   : > { %4699 = vmatpush3.bf16.msra.mxu0 %v5034_v45  ;;  %4721 = vmatpush3.bf16.msra.mxu1 %v5035_v46  ;;  %v5067_v45 = vld [vmem:[#allocation7 + $0x380] sm:$0xff]  }
 0xb9e   : > { %4700 = vmatprep.subr.bf16.mxu0 %v5036_v49  ;;  %4722 = vmatprep.subr.bf16.mxu1 %v5037_v50  ;;  %v5069_v49 = vld [vmem:[#allocation7 + $0x3c8] sm:$0xff]  }
 0xb9f   : > { %v5070_v50 = vld [vmem:[#allocation7 + $0x308] sm:$0xff]  }
 0xba1   : > { %4701 = vmatpush3.bf16.msra.mxu0 %v5038_v51  ;;  %4723 = vmatpush3.bf16.msra.mxu1 %v5039_v52  ;;  %v5071_v51 = vld [vmem:[#allocation7 + $0x388] sm:$0xff]   ;;  %v5072_v52 = vld [vmem:[#allocation7 + $0x350] sm:$0xff]  }
 0xba2   : > { %4702 = vmatprep.subr.bf16.mxu0 %v5040_v53  ;;  %4724 = vmatprep.subr.bf16.mxu1 %v5041_v54  ;;  %v5073_v53 = vld [vmem:[#allocation7 + $0x3d0] sm:$0xff]  }
 0xba3   : > { %v5074_v54 = vld [vmem:[#allocation7 + $0x310] sm:$0xff]  }
 0xba5   : > { %4703 = vmatpush3.bf16.msra.mxu0 %v5042_v19  ;;  %4725 = vmatpush3.bf16.msra.mxu1 %v5043_v55  ;;  %v5075_v19 = vld [vmem:[#allocation7 + $0x390] sm:$0xff]   ;;  %v5076_v55 = vld [vmem:[#allocation7 + $0x358] sm:$0xff]  }
 0xba6   : > { %4704 = vmatprep.subr.bf16.mxu0 %v5044_v56  ;;  %4726 = vmatprep.subr.bf16.mxu1 %v5045_v57  ;;  %v5077_v56 = vld [vmem:[#allocation7 + $0x3d8] sm:$0xff]  }
 0xba7   : > { %v5078_v57 = vld [vmem:[#allocation7 + $0x318] sm:$0xff]  }
 0xba9   : > { %4705 = vmatpush3.bf16.msra.mxu0 %v5046_v30  ;;  %4727 = vmatpush3.bf16.msra.mxu1 %v5047_v58  ;;  %v5079_v30 = vld [vmem:[#allocation7 + $0x398] sm:$0xff]   ;;  %v5080_v58 = vld [vmem:[#allocation7 + $0x360] sm:$0xff]  }
 0xbaa   : > { %4706 = vmatprep.subr.bf16.mxu0 %v5048_v59  ;;  %4728 = vmatprep.subr.bf16.mxu1 %v5049_v60  ;;  %v5081_v59 = vld [vmem:[#allocation7 + $0x3e0] sm:$0xff]  }
 0xbab   : > { %v5082_v60 = vld [vmem:[#allocation7 + $0x320] sm:$0xff]  }
 0xbad   : > { %4707 = vmatpush3.bf16.msra.mxu0 %v5050_v62  ;;  %4729 = vmatpush3.bf16.msra.mxu1 %v5051_v63  ;;  %v5083_v62 = vld [vmem:[#allocation7 + $0x3a0] sm:$0xff]   ;;  %v5084_v63 = vld [vmem:[#allocation7 + $0x368] sm:$0xff]  }
 0xbae   : > { %4708 = vmatprep.subr.bf16.mxu0 %v5052_v3  ;;  %4730 = vmatprep.subr.bf16.mxu1 %v5053_v4  ;;  %v5085_v3 = vld [vmem:[#allocation7 + $0x3e8] sm:$0xff]  }
 0xbaf   : > { %v5086_v4 = vld [vmem:[#allocation7 + $0x328] sm:$0xff]  }
 0xbb1   : > { %4709 = vmatpush3.bf16.msra.mxu0 %v5054_v0  ;;  %4731 = vmatpush3.bf16.msra.mxu1 %v5055_v6  ;;  %v5087_v0 = vld [vmem:[#allocation7 + $0x3a8] sm:$0xff]   ;;  %v5088_v6 = vld [vmem:[#allocation7 + $0x370] sm:$0xff]  }
 0xbb2   : > { %4710 = vmatprep.subr.bf16.mxu0 %v5056_v8  ;;  %4732 = vmatprep.subr.bf16.mxu1 %v5057_v9  ;;  %v5089_v8 = vld [vmem:[#allocation7 + $0x3f0] sm:$0xff]   ;;  %v1748_v9 = vrot.slane %v6047_v7, %v1715_v1  ;;  %v5093_v1 = vld [vmem:[#allocation7 + $0x3f8] sm:$0xff]  }
 0xbb3   : > { %v2615_v25 = vpop.f32.mrb[24].mxu0  ;;  %v2656_v24 = vpop.f32.mrb[16].mxu1 }
 0xbb4   : > { %v2616_v26 = vadd.f32 %v2615_v25, %v1732_v10  ;;  %v2657_v28 = vadd.f32 %v2656_v24, %v1740_v11  ;;  %v2617_v61 = vpop.f32.mrb[25].mxu0  ;;  %v2658_v29 = vpop.f32.mrb[17].mxu1  ;;  %v1756_v10 = vrot.slane %v6047_v7, %v1723_v2  ;;  %v1752_v11 = vrot.slane %v6047_v7, %v1719_v17 }
 0xbb5   : > { %v2618_v31 = vadd.f32 %v2617_v61, %v1736_v14  ;;  %v2659_v34 = vadd.f32 %v2658_v29, %v1744_v15  ;;  %v2619_v35 = vpop.f32.mrb[26].mxu0  ;;  %v2660_v22 = vpop.f32.mrb[18].mxu1  ;;  %4711 = vmatpush3.bf16.msra.mxu0 %v5058_v16  ;;  %4733 = vmatpush3.bf16.msra.mxu1 %v5059_v18  ;;  %v1760_v14 = vrot.slane %v6047_v7, %v1727_v5  ;;  %v5090_v15 = vld [vmem:[#allocation7 + $0x330] sm:$0xff]   ;;  %v5092_v18 = vld [vmem:[#allocation7 + $0x378] sm:$0xff]  }
 0xbb6   : > { %v2753_v12 = vmax.f32 %v2616_v26, 0.0  ;;  %v2755_v32 = vmax.f32 %v2657_v28, 0.0  ;;  %v2620_v38 = vpop.f32.mrb[27].mxu0  ;;  %v2661_v39 = vpop.f32.mrb[19].mxu1  ;;  %4712 = vmatprep.subr.bf16.mxu0 %v5060_v20  ;;  %4734 = vmatprep.subr.bf16.mxu1 %v5061_v23  ;;  %v5091_v16 = vld [vmem:[#allocation7 + $0x3b0] sm:$0xff]   ;;  %v5095_v5 = vld [vmem:[#allocation7 + $0x3b8] sm:$0xff]  }
 0xbb7   : > { %v2754_v41 = vmax.f32 %v2618_v31, 0.0  ;;  %v2756_v33 = vmax.f32 %v2659_v34, 0.0 }
 0xbb8   : > { %v2769_v46 = vpack.c.bf16 %v2753_v12, %v2753_v12  ;;  %v2771_v47 = vpack.c.bf16 %v2755_v32, %v2755_v32 }
 0xbb9   : > { %v2770_v42 = vpack.c.bf16 %v2754_v41, %v2754_v41  ;;  %v2772_v43 = vpack.c.bf16 %v2756_v33, %v2756_v33  ;;  %4713 = vmatpush3.bf16.msra.mxu0 %v5062_v36  ;;  %4735 = vmatpush3.bf16.msra.mxu1 %v5063_v13 }
 0xbba   : > { %4742 = vmatprep.subr.bf16.mxu0 %v5064_v40  ;;  %4764 = vmatprep.subr.bf16.mxu1 %v5065_v27  ;;  %v4443_v27 = vld [vmem:[%s6100_s10] ss:$0 sm:$0xff] }
 0xbbb   : > { %4000 = vmatprep.mubr.bf16.mxu0 %v2770_v42  ;;  %4040 = vmatprep.mubr.bf16.mxu1 %v2772_v43 }
 0xbbc   : > { %4001 = vmatmul.mubr.bf16.vlgmr.msra.gmra.mrb[40].mxu0 %v2769_v46  ;;  %4041 = vmatmul.mubr.bf16.vlgmr.msra.gmra.mrb[32].mxu1 %v2771_v47 }
 0xbbd   : > { %4743 = vmatpush3.bf16.msra.mxu0 %v5066_v44  ;;  %4765 = vmatpush3.bf16.msra.mxu1 %v5067_v45 }
 0xbbe   : > { %4744 = vmatprep.subr.bf16.mxu0 %v5068_v48  ;;  %4766 = vmatprep.subr.bf16.mxu1 %v5069_v49 }
 0xbc1   : > { %4745 = vmatpush3.bf16.msra.mxu0 %v5070_v50  ;;  %4767 = vmatpush3.bf16.msra.mxu1 %v5071_v51 }
 0xbc2   : > { %4746 = vmatprep.subr.bf16.mxu0 %v5072_v52  ;;  %4768 = vmatprep.subr.bf16.mxu1 %v5073_v53 }
 0xbc5   : > { %4747 = vmatpush3.bf16.msra.mxu0 %v5074_v54  ;;  %4769 = vmatpush3.bf16.msra.mxu1 %v5075_v19 }
 0xbc6   : > { %4748 = vmatprep.subr.bf16.mxu0 %v5076_v55  ;;  %4770 = vmatprep.subr.bf16.mxu1 %v5077_v56 }
 0xbc9   : > { %4749 = vmatpush3.bf16.msra.mxu0 %v5078_v57  ;;  %4771 = vmatpush3.bf16.msra.mxu1 %v5079_v30 }
 0xbca   : > { %4750 = vmatprep.subr.bf16.mxu0 %v5080_v58  ;;  %4772 = vmatprep.subr.bf16.mxu1 %v5081_v59 }
 0xbcd   : > { %4751 = vmatpush3.bf16.msra.mxu0 %v5082_v60  ;;  %4773 = vmatpush3.bf16.msra.mxu1 %v5083_v62 }
 0xbce   : > { %4752 = vmatprep.subr.bf16.mxu0 %v5084_v63  ;;  %4774 = vmatprep.subr.bf16.mxu1 %v5085_v3 }
 0xbd1   : > { %4753 = vmatpush3.bf16.msra.mxu0 %v5086_v4  ;;  %4775 = vmatpush3.bf16.msra.mxu1 %v5087_v0 }
 0xbd2   : > { %4754 = vmatprep.subr.bf16.mxu0 %v5088_v6  ;;  %4776 = vmatprep.subr.bf16.mxu1 %v5089_v8 }
 0xbd3   : > { %v2697_v20 = vpop.f32.mrb[28].mxu0  ;;  %v2738_v23 = vpop.f32.mrb[20].mxu1 }
 0xbd4   : > { %v2698_v25 = vadd.f32 %v2697_v20, %v1748_v9  ;;  %v2739_v2 = vadd.f32 %v2738_v23, %v1756_v10  ;;  %v2699_v24 = vpop.f32.mrb[29].mxu0  ;;  %v2740_v26 = vpop.f32.mrb[21].mxu1 }
 0xbd5   : > { %v2700_v28 = vadd.f32 %v2699_v24, %v1752_v11  ;;  %v2741_v61 = vadd.f32 %v2740_v26, %v1760_v14  ;;  %v2701_v29 = vpop.f32.mrb[30].mxu0  ;;  %v2742_v17 = vpop.f32.mrb[22].mxu1  ;;  %4755 = vmatpush3.bf16.msra.mxu0 %v5090_v15  ;;  %4777 = vmatpush3.bf16.msra.mxu1 %v5091_v16 }
 0xbd6   : > { %v2757_v7 = vmax.f32 %v2698_v25, 0.0  ;;  %v2759_v31 = vmax.f32 %v2739_v2, 0.0  ;;  %v2702_v34 = vpop.f32.mrb[31].mxu0  ;;  %v2743_v35 = vpop.f32.mrb[23].mxu1  ;;  %4756 = vmatprep.subr.bf16.mxu0 %v5092_v18  ;;  %4778 = vmatprep.subr.bf16.mxu1 %v5093_v1 }
 0xbd7   : > { %v2758_v22 = vmax.f32 %v2700_v28, 0.0  ;;  %v2760_v36 = vmax.f32 %v2741_v61, 0.0 }
 0xbd8   : > { %v2773_v32 = vpack.c.bf16 %v2757_v7, %v2757_v7  ;;  %v2775_v38 = vpack.c.bf16 %v2759_v31, %v2759_v31 }
 0xbd9   : > { %v2774_v13 = vpack.c.bf16 %v2758_v22, %v2758_v22  ;;  %v2776_v12 = vpack.c.bf16 %v2760_v36, %v2760_v36  ;;  %4757 = vmatpush3.bf16.msra.mxu0 %v5094_v21  ;;  %4779 = vmatpush3.bf16.msra.mxu1 %v5095_v5 }
 0xbdb   : > { %4080 = vmatprep.mubr.bf16.mxu0 %v2774_v13  ;;  %4120 = vmatprep.mubr.bf16.mxu1 %v2776_v12 }
 0xbdc   : > { %4081 = vmatmul.mubr.bf16.vlgmr.msra.gmra.mrb[44].mxu0 %v2773_v32  ;;  %4121 = vmatmul.mubr.bf16.vlgmr.msra.gmra.mrb[36].mxu1 %v2775_v38  ;;  %v4573_v32 = vld [vmem:[%s6102_s12] ss:$0 sm:$0xff] }
 0xc4f   : > { %v4626_v39 = vpop.f32.mrb[32].mxu0  ;;  %v4648_v40 = vpop.f32.mrb[24].mxu1 }
 0xc50   : > { %v4627_v41 = vpop.f32.mrb[33].mxu0  ;;  %v4649_v33 = vpop.f32.mrb[25].mxu1 }
 0xc51   : > { %v4628_v42 = vadd.f32 %v4627_v41, %v4626_v39  ;;  %v4650_v43 = vadd.f32 %v4649_v33, %v4648_v40  ;;  %v4629_v44 = vpop.f32.mrb[34].mxu0  ;;  %v4651_v45 = vpop.f32.mrb[26].mxu1 }
 0xc52   : > { %v4630_v46 = vpop.f32.mrb[35].mxu0  ;;  %v4652_v47 = vpop.f32.mrb[27].mxu1 }
 0xc53   : > { %v3843_v48 = vadd.f32 %v4628_v42, %v4443_v27 }
 0xc55   : > { %v3883_v49 = vadd.f32 %v4650_v43, %v3843_v48 }
 0xc6f   : > { %v4670_v50 = vpop.f32.mrb[36].mxu0  ;;  %v4692_v51 = vpop.f32.mrb[28].mxu1 }
 0xc70   : > { %v4671_v52 = vpop.f32.mrb[37].mxu0  ;;  %v4693_v53 = vpop.f32.mrb[29].mxu1 }
 0xc71   : > { %v4672_v54 = vadd.f32 %v4671_v52, %v4670_v50  ;;  %v4694_v19 = vadd.f32 %v4693_v53, %v4692_v51  ;;  %v4673_v55 = vpop.f32.mrb[38].mxu0  ;;  %v4695_v56 = vpop.f32.mrb[30].mxu1 }
 0xc72   : > { %v4674_v57 = vpop.f32.mrb[39].mxu0  ;;  %v4696_v30 = vpop.f32.mrb[31].mxu1 }
 0xc73   : > { %v3923_v58 = vadd.f32 %v4672_v54, %v3883_v49 }
 0xc75   : > { %v3963_v59 = vadd.f32 %v4694_v19, %v3923_v58 }
 0xc8f   : > { %v4714_v60 = vpop.f32.mrb[40].mxu0  ;;  %v4736_v62 = vpop.f32.mrb[32].mxu1 }
 0xc90   : > { %v4715_v63 = vpop.f32.mrb[41].mxu0  ;;  %v4737_v3 = vpop.f32.mrb[33].mxu1 }
 0xc91   : > { %v4716_v4 = vadd.f32 %v4715_v63, %v4714_v60  ;;  %v4738_v0 = vadd.f32 %v4737_v3, %v4736_v62  ;;  %v4717_v6 = vpop.f32.mrb[42].mxu0  ;;  %v4739_v8 = vpop.f32.mrb[34].mxu1 }
 0xc92   : > { %v4718_v9 = vpop.f32.mrb[43].mxu0  ;;  %v4740_v10 = vpop.f32.mrb[35].mxu1 }
 0xc93   : > { %v4003_v11 = vadd.f32 %v4716_v4, %v3963_v59 }
 0xc95   : > { %v4043_v14 = vadd.f32 %v4738_v0, %v4003_v11 }
 0xcaf   : > { %v4758_v15 = vpop.f32.mrb[44].mxu0  ;;  %v4780_v16 = vpop.f32.mrb[36].mxu1 }
 0xcb0   : > { %v4759_v18 = vpop.f32.mrb[45].mxu0  ;;  %v4781_v1 = vpop.f32.mrb[37].mxu1 }
 0xcb1   : > { %v4760_v20 = vadd.f32 %v4759_v18, %v4758_v15  ;;  %v4782_v23 = vadd.f32 %v4781_v1, %v4780_v16  ;;  %v4761_v25 = vpop.f32.mrb[46].mxu0  ;;  %v4783_v2 = vpop.f32.mrb[38].mxu1 }
 0xcb2   : > { %v4762_v24 = vpop.f32.mrb[47].mxu0  ;;  %v4784_v26 = vpop.f32.mrb[39].mxu1 }
 0xcb3   : > { %v4083_v28 = vadd.f32 %v4760_v20, %v4043_v14 }
 0xcb5   : > { %v4123_v61 = vadd.f32 %v4782_v23, %v4083_v28 }
 0xcb7   : > { %v4128_v29 = vadd.f32 %v4123_v61, %v5735_v37  ;;  %v4572_v37 = vld [vmem:[%s6101_s11] ss:$0 sm:$0xff] }
 0xcb9   : > { %v4131_v17 = vsel %vm939_vm6, %v4128_v29, 0.0 }
 0xcba   : > { %4132 = vadd.xlane.f32.xlu0 %v4131_v17 }
 0xd47   : > { %v4133_v21 = vpop.xlane.xlu0 %4132 }
 0xd48   : > { %v4134_v5 = vmul.f32 0.0078125, %v4133_v21 }
 0xd4a   : > { %v4135_v7 = vsub.f32 %v4128_v29, %v4134_v5 }
 0xd4c   : > { %v4136_v31 = vmul.f32 %v4135_v7, %v4135_v7 }
 0xd4e   : > { %v4137_v34 = vsel %vm939_vm6, %v4136_v31, 0.0 }
 0xd4f   : > { %4138 = vadd.xlane.f32.xlu1 %v4137_v34 }
 0xddc   : > { %v4139_v35 = vpop.xlane.xlu1 %4138 }
 0xddd   : > { %v4140_v22 = vmul.f32 0.0078125, %v4139_v35 }
 0xddf   : > { %v4141_v36 = vadd.f32 1e-05, %v4140_v22 }
 0xde1   : > { %5114 = vrsqrt.f32 %v4141_v36 }
 0xdeb   : > { %v5115_v13 = vpop.eup %5114 }
 0xdec   : > { %v4143_v12 = vmul.f32 %v5115_v13, %v4135_v7 }
 0xdee   : > { %v4150_v38 = vmul.f32 %v4572_v37, %v4143_v12 }
 0xdf0   : > { %v4157_v39 = vadd.f32 %v4573_v32, %v4150_v38 }
 0xdf2   : > { %4158 = vst [vmem:[%s492_s19] sm:$0xf] %v4157_v39 }
 0xdf3 PF: > { %s6128_s3 = sld [smem:[#allocation12_spill]] }
 0xdf9   : > { %s26_s25 = sadd.s32 1, %s6128_s3  }
 0xdfa   : > { %p23_p1 = scmp.ge.s32.totalorder %s26_s25, 4  }
 0xdfc   :  { %25 = sbr.rel (!%p23_p1) target bundleno = 6 (0x6), region = 119 }
 0xe03   :  { %4178 = vsyncpa [#allocation3], 1 }
 0xe04   :  { %4180 = vsyncpa [#allocation3 + $0x1], 1 }
 0xe05   :  { %4181 = vsyncpa [#allocation5], 1 }
 0xe06   :  { %4182 = vsyncpa [#allocation8], 1 }

// kernel: _lambda_.6
= control target key start
LH: loop header
LB: loop body
LE: loop exit
PB: predicated region body
PF: predicated region fallthrough
CT: control target
= control target key end

     0   :  { %s5046_s25 = smov 0   ;;  %s6161_s0 = inlined_call_operand.vmem [shape: f32[2,4,128], index: 0, kind: input, shape index: {}]   ;;  %s6162_s1 = inlined_call_operand.vmem [shape: bf16[128,384], index: 1, kind: input, shape index: {}]   ;;  %s6163_s2 = inlined_call_operand.vmem [shape: f32[1,384], index: 2, kind: input, shape index: {}]   ;;  %s6164_s3 = inlined_call_operand.vmem [shape: bf16[128,128], index: 3, kind: input, shape index: {}]   ;;  %s6165_s4 = inlined_call_operand.vmem [shape: f32[1,128], index: 4, kind: input, shape index: {}]   ;;  %s6166_s5 = inlined_call_operand.vmem [shape: f32[1,128], index: 5, kind: input, shape index: {}]   ;;  %s6167_s6 = inlined_call_operand.vmem [shape: f32[1,128], index: 6, kind: input, shape index: {}]   ;;  %s6168_s7 = inlined_call_operand.vmem [shape: bf16[128,2048], index: 7, kind: input, shape index: {}]   ;;  %s6169_s8 = inlined_call_operand.vmem [shape: f32[1,2048], index: 8, kind: input, shape index: {}]   ;;  %s6170_s9 = inlined_call_operand.vmem [shape: bf16[2048,128], index: 9, kind: input, shape index: {}]   ;;  %s6171_s10 = inlined_call_operand.vmem [shape: f32[1,128], index: 10, kind: input, shape index: {}]   ;;  %s6172_s11 = inlined_call_operand.vmem [shape: f32[1,128], index: 11, kind: input, shape index: {}]   ;;  %s6173_s12 = inlined_call_operand.vmem [shape: f32[1,128], index: 12, kind: input, shape index: {}]   ;;  %s6174_s13 = inlined_call_operand.vmem [shape: f32[2,4,128], index: 13, kind: output, shape index: {}]  }
   0x1 LB: > { %s4155_s26 = sadd.s32 4294967295, %s4971_s25   ;;  %p4159_p0 = scmp.ge.s32.totalorder %s4971_s25, 1  ;;  %s4971_s25 = sphi %s5046_s25, %s23_s25  }
   0x2   : > { %p386_p1 = scmp.lt.s32.totalorder %s4971_s25, 3 }
   0x4   : > { %p387_p2 = pnand %p4159_p0, %p386_p1 }
   0x5   : > { %v4777_v0 = vld [vmem:[%s6162_s1 + $0x4] ss:$12 sps:$4 sm:$0xff] (!%p387_p2)   ;;  %v4779_v1 = vld [vmem:[%s6162_s1] ss:$12 sps:$4 sm:$0xff] (!%p387_p2)   ;;  %v4973_v2 = vmov (!%p387_p2), 0   ;;  %p428_p3 = scmp.lt.s32.totalorder (!%p387_p2), %s4155_s26, 1  ;;  %v473_v20 = vlaneseq (!%p387_p2) }
   0x6   : > { %390 = sbr.rel (%p387_p2) target bundleno = 3456 (0xd80), region = 72  ;;  %648 = vmatprep.mubr.bf16.mxu0 (!%p387_p2), %v4973_v2  ;;  %616 = vmatprep.subr.bf16.mxu0 (!%p387_p2), %v4777_v0  ;;  %v4780_v3 = vld [vmem:[%s6162_s1 + $0x1c] ss:$12 sps:$4 sm:$0xff] (!%p387_p2)   ;;  %v4782_v4 = vld [vmem:[%s6162_s1 + $0x18] ss:$12 sps:$4 sm:$0xff] (!%p387_p2)   ;;  %v4974_v19 = vmov (!%p387_p2), 0.0  }
   0x7   : > { %617 = vmatpush1.bf16.msra.mxu0 (!%p387_p2), %v4779_v1  ;;  %v4783_v5 = vld [vmem:[%s6162_s1 + $0x34] ss:$12 sps:$4 sm:$0xff] (!%p387_p2)   ;;  %v4785_v6 = vld [vmem:[%s6162_s1 + $0x30] ss:$12 sps:$4 sm:$0xff] (!%p387_p2)   ;;  %v4786_v7 = vld [vmem:[%s6162_s1 + $0x4c] ss:$12 sps:$4 sm:$0xff] (!%p387_p2)   ;;  %4680 = vmatprep.subr.bf16.mxu1 (!%p387_p2), %v4974_v19 }
   0x8   : > { %618 = vmatprep.subr.bf16.mxu0 (!%p387_p2), %v4780_v3  ;;  %v4788_v8 = vld [vmem:[%s6162_s1 + $0x48] ss:$12 sps:$4 sm:$0xff] (!%p387_p2)   ;;  %v4789_v9 = vld [vmem:[%s6162_s1 + $0x64] ss:$12 sps:$4 sm:$0xff] (!%p387_p2)   ;;  %v4791_v10 = vld [vmem:[%s6162_s1 + $0x60] ss:$12 sps:$4 sm:$0xff] (!%p387_p2)  }
   0x9   : > { %v4792_v11 = vld [vmem:[%s6162_s1 + $0x7c] ss:$12 sps:$4 sm:$0xff] (!%p387_p2)   ;;  %v4794_v12 = vld [vmem:[%s6162_s1 + $0x78] ss:$12 sps:$4 sm:$0xff] (!%p387_p2)   ;;  %v4795_v13 = vld [vmem:[%s6162_s1 + $0x94] ss:$12 sps:$4 sm:$0xff] (!%p387_p2)  }
   0xa   : > { %v4797_v14 = vld [vmem:[%s6162_s1 + $0x90] ss:$12 sps:$4 sm:$0xff] (!%p387_p2)   ;;  %v4798_v15 = vld [vmem:[%s6162_s1 + $0xac] ss:$12 sps:$4 sm:$0xff] (!%p387_p2)   ;;  %v4800_v16 = vld [vmem:[%s6162_s1 + $0xa8] ss:$12 sps:$4 sm:$0xff] (!%p387_p2)  }
   0xb   : > { %619 = vmatpush1.bf16.msra.mxu0 (!%p387_p2), %v4782_v4  ;;  %vm4975_vm0 = vmmov (!%p387_p2), 0   ;;  %v5121_v21 = vshrl.u32 (!%p387_p2), %v473_v20, 7  ;;  %v5129_v23 = vld [vmem:[%s6163_s2] sm:$0x7] (!%p387_p2)  ;;  %v5136_v27 = vand.u32 (!%p387_p2), 127, %v473_v20  ;;  %vm776_vm5 = vcmask (!%p387_p2), 27648  }
   0xc   : > { %620 = vmatprep.subr.bf16.mxu0 (!%p387_p2), %v4783_v5  ;;  %4696 = vmatprep.mubr.msk.bf16.mxu1 (!%p387_p2), %vm4975_vm0, %v4974_v19  ;;  %v4801_v35 = vld [vmem:[%s6162_s1 + $0x8] ss:$12 sps:$4 sm:$0xff] (!%p387_p2)   ;;  %v4802_v36 = vld [vmem:[%s6162_s1 + $0x20] ss:$12 sps:$4 sm:$0xff] (!%p387_p2)   ;;  %v4803_v37 = vld [vmem:[%s6162_s1 + $0x38] ss:$12 sps:$4 sm:$0xff] (!%p387_p2)  }
   0xd   : > { %s6178_s26 = smov (!%p428_p3, %s4155_s26), 1  ;;  %v5124_v22 = vsub.s32 1, %v5121_v21  ;;  %v5132_v24 = vsub.s32 0, %v5121_v21  ;;  %vm700_vm1 = vcmp.lt.s32.totalorder %v5136_v27, 32  ;;  %vm789_vm2 = vcmp.ge.s32.totalorder %v5136_v27, 32  ;;  %4681 = vmatpush3.bf16.msra.mxu1 %v4801_v35 }
   0xe   : > { %s4160_s28 = sshll.u32 %s6178_s26, 2  ;;  %vm790_vm3 = vcmp.lt.s32.totalorder %v5136_v27, 64  ;;  %4682 = vmatprep.subr.bf16.mxu1 %v4974_v19  ;;  %v4804_v38 = vld [vmem:[%s6162_s1 + $0x50] ss:$12 sps:$4 sm:$0xff]   ;;  %v4805_v39 = vld [vmem:[%s6162_s1 + $0x68] ss:$12 sps:$4 sm:$0xff]  }
   0xf   : > { %621 = vmatpush1.bf16.msra.mxu0 %v4785_v6  ;;  %s431_s14 = scalar_lea.vmem %s6161_s0, %s4160_s28  ;;  %v480_v25 = vrot.slane %v5129_v23, %v5124_v22  ;;  %v476_v28 = vrot.slane %v5129_v23, %v5132_v24  ;;  %vm5155_vm4 = vmand %vm789_vm2, %vm790_vm3  ;;  %v4806_v40 = vld [vmem:[%s6162_s1 + $0x80] ss:$12 sps:$4 sm:$0xff]   ;;  %v4807_v41 = vld [vmem:[%s6162_s1 + $0x98] ss:$12 sps:$4 sm:$0xff]   ;;  %v5204_v61 = vsub.s32 2, %v5121_v21  ;;  %vm882_vm6 = vcmask 1043456   ;;  %s435_s21 = scalar_lea.vmem %s6174_s13, %s4160_s28 }
  0x10   : > { %622 = vmatprep.subr.bf16.mxu0 %v4786_v7  ;;  %v5111_v17 = vld [vmem:[%s431_s14] sm:$0xf]  ;;  %v4808_v42 = vld [vmem:[%s6162_s1 + $0xb0] ss:$12 sps:$4 sm:$0xff]   ;;  %vm878_vm7 = vcmask 31744   ;;  %vm1032_vm8 = vcmp.ge.s32.totalorder %v5136_v27, 64 }
  0x11   : > { %v438_v18 = vpack.c.bf16 %v5111_v17, %v5111_v17  ;;  %4683 = vmatpush3.bf16.msra.mxu1 %v4802_v36  ;;  %v484_v63 = vrot.slane %v5129_v23, %v5204_v61  ;;  %vm1033_vm9 = vcmp.lt.s32.totalorder %v5136_v27, 96  ;;  %vm1198_vm11 = vcmp.ge.s32.totalorder %v5136_v27, 96 }
  0x12   : > { %4684 = vmatprep.subr.bf16.mxu1 %v4974_v19  ;;  %vm1034_vm10 = vmand %vm1032_vm8, %vm1033_vm9 }
  0x13   : > { %623 = vmatpush1.bf16.msra.mxu0 %v4788_v8 }
  0x14   : > { %624 = vmatprep.subr.bf16.mxu0 %v4789_v9 }
  0x15   : > { %4685 = vmatpush3.bf16.msra.mxu1 %v4803_v37 }
  0x16   : > { %4686 = vmatprep.subr.bf16.mxu1 %v4974_v19 }
  0x17   : > { %625 = vmatpush1.bf16.msra.mxu0 %v4791_v10 }
  0x18   : > { %626 = vmatprep.subr.bf16.mxu0 %v4792_v11 }
  0x19   : > { %4687 = vmatpush3.bf16.msra.mxu1 %v4804_v38 }
  0x1a   : > { %4688 = vmatprep.subr.bf16.mxu1 %v4974_v19 }
  0x1b   : > { %627 = vmatpush1.bf16.msra.mxu0 %v4794_v12 }
  0x1c   : > { %628 = vmatprep.subr.bf16.mxu0 %v4795_v13 }
  0x1d   : > { %4689 = vmatpush3.bf16.msra.mxu1 %v4805_v39 }
  0x1e   : > { %4690 = vmatprep.subr.bf16.mxu1 %v4974_v19 }
  0x1f   : > { %629 = vmatpush1.bf16.msra.mxu0 %v4797_v14 }
  0x20   : > { %630 = vmatprep.subr.bf16.mxu0 %v4798_v15 }
  0x21   : > { %4691 = vmatpush3.bf16.msra.mxu1 %v4806_v40 }
  0x22   : > { %4692 = vmatprep.subr.bf16.mxu1 %v4974_v19 }
  0x23   : > { %631 = vmatpush1.bf16.msra.mxu0 %v4800_v16 }
  0x24   : > { %4700 = vmatprep.subr.mxu0 %v4974_v19 }
  0x25   : > { %4693 = vmatpush3.bf16.msra.mxu1 %v4807_v41 }
  0x26   : > { %649 = vmatmul.mubr.bf16.vlgmr.msra.gmra.mrb[0].mxu0 %v438_v18  ;;  %4694 = vmatprep.subr.bf16.mxu1 %v4974_v19 }
  0x27   : > { %4702 = vmatprep.mubr.msk.f32.mxu0 %vm4975_vm0, %v4974_v19 }
  0x29   : > { %4695 = vmatpush3.bf16.msra.mxu1 %v4808_v42  ;;  %v4810_v42 = vld [vmem:[%s6164_s3 + $0x8] sm:$0xff]  }
  0x2a   : > { %4740 = vmatprep.subr.bf16.mxu1 %v4974_v19 }
  0x2c   : > { %4697 = vmatmul.mubr.bf16.vlgmr.msra.gmra.mrb[0].mxu1 %v438_v18 }
  0x2d   : > { %4756 = vmatprep.mubr.msk.bf16.mxu1 %vm4975_vm0, %v4974_v19 }
  0xf9   : > { %v650_v26 = vpop.f32.mrb[0].mxu0 }
  0xfa   : > { %v652_v29 = vpop.f32.mrb[1].mxu0  ;;  %v5144_v33 = vadd.f32 %v650_v26, %v476_v28 }
  0xfb   : > { %v5140_v30 = vadd.f32 %v652_v29, %v480_v25  ;;  %v654_v31 = vpop.f32.mrb[2].mxu0 }
  0xfc   : > { %v655_v32 = vpop.f32.mrb[3].mxu0 }
  0xfd   : > { %4701 = vmatpush3.xpose.msra.mxu0 %v5140_v30 }
  0xfe   : > { %4705 = vmatprep.subr.mxu0 %v4974_v19 }
  0xff   : > { %v691_v62 = vpop.f32.mrb[0].mxu1 }
 0x100   : > { %4703 = vmatmul.mubr.msk.f32.vlgmr.msra.gmra.mrb[4].mxu0 %vm700_vm1, %v5144_v33  ;;  %v4698_v0 = vpop.f32.mrb[1].mxu1  ;;  %v692_v3 = vadd.f32 %v691_v62, %v484_v63  ;;  %v1508_v63 = vld [vmem:[%s6168_s7] sm:$0xff] }
 0x101   : > { %4706 = vmatpush3.xpose.msra.mxu0 %v5140_v30  ;;  %4707 = vmatprep.mubr.msk.f32.mxu0 %vm4975_vm0, %v4974_v19  ;;  %v694_v1 = vpop.f32.mrb[2].mxu1  ;;  %v1516_v0 = vld [vmem:[%s6168_s7 + $0x40] sm:$0xff] }
 0x102   : > { %4710 = vmatprep.subr.mxu0 %v4974_v19  ;;  %v4699_v4 = vpop.f32.mrb[3].mxu1  ;;  %v877_v5 = vsel %vm5155_vm4, %v692_v3, 0.0  ;;  %v788_v10 = vsel %vm700_vm1, %v692_v3, 0.0  ;;  %v1120_v13 = vsel %vm1034_vm10, %v692_v3, 0.0  ;;  %v1286_v34 = vsel %vm1198_vm11, %v692_v3, 0.0  ;;  %v1509_v1 = vld [vmem:[%s6168_s7 + $0x8] sm:$0xff] }
 0x103   : > { %v4209_v3 = vcombine.low %v1508_v63, %v1516_v0  ;;  %v4210_v4 = vcombine.high %v1508_v63, %v1516_v0 }
 0x104   : > { %4708 = vmatmul.mubr.msk.f32.vlgmr.msra.gmra.mrb[6].mxu0 %vm5155_vm4, %v5144_v33 }
 0x105   : > { %4712 = vmatprep.mubr.msk.f32.mxu0 %vm4975_vm0, %v4974_v19  ;;  %4711 = vmatpush3.msk.msra.mxu0 %vm882_vm6, %v877_v5  ;;  %v1524_v5 = vld [vmem:[%s6168_s7 + $0x80] sm:$0xff] }
 0x106   : > { %4715 = vmatprep.subr.mxu0 %v4974_v19 }
 0x1d3   : > { %v771_v43 = vpop.f32.mrb[4].mxu0 }
 0x1d4   : > { %v4704_v44 = vpop.f32.mrb[5].mxu0  ;;  %v775_v48 = vmul.f32 0.17677669, %v771_v43  ;;  %v4811_v43 = vld [vmem:[%s6164_s3 + $0x10] sm:$0xff]  }
 0x1d5   : > { %v4812_v44 = vld [vmem:[%s6164_s3 + $0x18] sm:$0xff]  }
 0x1d6   : > { %v777_v50 = vsel %vm776_vm5, %v775_v48, -inf }
 0x1d7   : > { %v861_v45 = vpop.f32.mrb[6].mxu0 }
 0x1d8   : > { %v865_v46 = vmul.f32 0.17677669, %v861_v45  ;;  %v4709_v47 = vpop.f32.mrb[7].mxu0  ;;  %v4813_v45 = vld [vmem:[%s6164_s3 + $0x20] sm:$0xff]  }
 0x1d9   : > { %v4815_v47 = vld [vmem:[%s6164_s3 + $0x30] sm:$0xff]  }
 0x1da   : > { %v866_v49 = vsel %vm776_vm5, %v865_v46, -inf }
 0x1db   : > { %867 = vmax.xlane.f32.xlu0 %v866_v49 }
 0x1df   : > { %778 = vmax.xlane.f32.xlu0 %v777_v50 }
 0x268   : > { %v868_v51 = vpop.xlane.xlu0 %867 }
 0x269   : > { %v869_v52 = vsub.f32 %v865_v46, %v868_v51  ;;  %v4814_v46 = vld [vmem:[%s6164_s3 + $0x28] sm:$0xff]   ;;  %v4816_v51 = vld [vmem:[%s6164_s3 + $0x38] sm:$0xff]  }
 0x26b   : > { %v870_v53 = vmul.f32 1.442695, %v869_v52 }
 0x26c   : > { %v779_v54 = vpop.xlane.xlu0 %778 }
 0x26d   : > { %4945 = vpow2.f32 %v870_v53  ;;  %v780_v55 = vsub.f32 %v775_v48, %v779_v54 }
 0x26f   : > { %v781_v56 = vmul.f32 1.442695, %v780_v55 }
 0x271   : > { %4947 = vpow2.f32 %v781_v56 }
 0x277   : > { %v4946_v57 = vpop.eup %4945 }
 0x278   : > { %v872_v58 = vsel %vm776_vm5, %v4946_v57, 0.0 }
 0x279   : > { %873 = vadd.xlane.f32.xlu1 %v872_v58 }
 0x27b   : > { %v4948_v59 = vpop.eup %4947 }
 0x27c   : > { %v783_v60 = vsel %vm776_vm5, %v4948_v59, 0.0 }
 0x27d   : > { %784 = vadd.xlane.f32.xlu1 %v783_v60 }
 0x306   : > { %v874_v6 = vpop.xlane.xlu1 %873 }
 0x307   : > { %4949 = vrcp.f32 %v874_v6  ;;  %v1532_v6 = vld [vmem:[%s6168_s7 + $0xc0] sm:$0xff] }
 0x30a   : > { %v785_v7 = vpop.xlane.xlu1 %784 }
 0x30b   : > { %4951 = vrcp.f32 %v785_v7 }
 0x311   : > { %v4950_v8 = vpop.eup %4949 }
 0x312   : > { %v876_v9 = vmul.f32 %v4950_v8, %v4946_v57 }
 0x314   : > { %4713 = vmatmul.mubr.msk.f32.vlgmr.msra.gmra.mrb[8].mxu0 %vm878_vm7, %v876_v9  ;;  %v4226_v9 = vcombine.high %v1524_v5, %v1532_v6 }
 0x315   : > { %4716 = vmatpush3.msk.msra.mxu0 %vm882_vm6, %v788_v10  ;;  %4717 = vmatprep.mubr.msk.f32.mxu0 %vm4975_vm0, %v4974_v19  ;;  %v4952_v11 = vpop.eup %4951  ;;  %v1525_v10 = vld [vmem:[%s6168_s7 + $0x88] sm:$0xff] }
 0x316   : > { %4720 = vmatprep.subr.mxu0 %v4974_v19  ;;  %v787_v12 = vmul.f32 %v4952_v11, %v4948_v59  ;;  %v1533_v11 = vld [vmem:[%s6168_s7 + $0xc8] sm:$0xff] }
 0x31c   : > { %4718 = vmatmul.mubr.msk.f32.vlgmr.msra.gmra.mrb[8].mxu0 %vm878_vm7, %v787_v12  ;;  %v1540_v12 = vld [vmem:[%s6168_s7 + $0x100] sm:$0xff] }
 0x31d   : > { %4721 = vmatpush3.xpose.msra.mxu0 %v5140_v30  ;;  %4722 = vmatprep.mubr.msk.f32.mxu0 %vm4975_vm0, %v4974_v19 }
 0x31e   : > { %4725 = vmatprep.subr.mxu0 %v4974_v19 }
 0x320   : > { %4723 = vmatmul.mubr.msk.f32.vlgmr.msra.gmra.mrb[10].mxu0 %vm1034_vm10, %v5144_v33 }
 0x321   : > { %4726 = vmatpush3.msk.msra.mxu0 %vm882_vm6, %v1120_v13  ;;  %4727 = vmatprep.mubr.msk.f32.mxu0 %vm4975_vm0, %v4974_v19  ;;  %v4228_v13 = vcombine.high %v1525_v10, %v1533_v11 }
 0x322   : > { %4730 = vmatprep.subr.mxu0 %v4974_v19 }
 0x3f3   : > { %v1104_v14 = vpop.f32.mrb[10].mxu0 }
 0x3f4   : > { %v1108_v15 = vmul.f32 0.17677669, %v1104_v14  ;;  %v4724_v16 = vpop.f32.mrb[11].mxu0  ;;  %v1548_v14 = vld [vmem:[%s6168_s7 + $0x140] sm:$0xff] }
 0x3f5   : > { %v1549_v16 = vld [vmem:[%s6168_s7 + $0x148] sm:$0xff] }
 0x3f6   : > { %v1109_v18 = vsel %vm776_vm5, %v1108_v15, -inf }
 0x3f7   : > { %1110 = vmax.xlane.f32.xlu0 %v1109_v18  ;;  %v4225_v18 = vcombine.low %v1524_v5, %v1532_v6  ;;  %v1629_v5 = vld [vmem:[%s6168_s7 + $0x3c8] sm:$0xff] }
 0x484   : > { %v1111_v20 = vpop.xlane.xlu0 %1110 }
 0x485   : > { %v1112_v23 = vsub.f32 %v1108_v15, %v1111_v20  ;;  %v1541_v15 = vld [vmem:[%s6168_s7 + $0x108] sm:$0xff]  ;;  %v4227_v20 = vcombine.low %v1525_v10, %v1533_v11  ;;  %v1518_v10 = vld [vmem:[%s6168_s7 + $0x50] sm:$0xff]  ;;  %v1511_v11 = vld [vmem:[%s6168_s7 + $0x18] sm:$0xff] }
 0x487   : > { %v1113_v25 = vmul.f32 1.442695, %v1112_v23  ;;  %v4242_v23 = vcombine.high %v1540_v12, %v1548_v14 }
 0x489   : > { %4953 = vpow2.f32 %v1113_v25  ;;  %v4244_v25 = vcombine.high %v1541_v15, %v1549_v16 }
 0x493   : > { %v4954_v26 = vpop.eup %4953 }
 0x494   : > { %v1115_v28 = vsel %vm776_vm5, %v4954_v26, 0.0 }
 0x495   : > { %1116 = vadd.xlane.f32.xlu1 %v1115_v28  ;;  %v4243_v28 = vcombine.low %v1541_v15, %v1549_v16 }
 0x522   : > { %v1117_v29 = vpop.xlane.xlu1 %1116 }
 0x523   : > { %4955 = vrcp.f32 %v1117_v29 }
 0x52d   : > { %v4956_v31 = vpop.eup %4955 }
 0x52e   : > { %v1119_v32 = vmul.f32 %v4956_v31, %v4954_v26  ;;  %v4241_v26 = vcombine.low %v1540_v12, %v1548_v14  ;;  %v1519_v14 = vld [vmem:[%s6168_s7 + $0x58] sm:$0xff] }
 0x52f   : > { %v4215_v15 = vcombine.low %v1511_v11, %v1519_v14  ;;  %v4216_v16 = vcombine.high %v1511_v11, %v1519_v14  ;;  %v1622_v14 = vld [vmem:[%s6168_s7 + $0x390] sm:$0xff] }
 0x530   : > { %4728 = vmatmul.mubr.msk.f32.vlgmr.msra.gmra.mrb[8].mxu0 %vm878_vm7, %v1119_v32 }
 0x531   : > { %4731 = vmatpush3.xpose.msra.mxu0 %v5140_v30  ;;  %4732 = vmatprep.mubr.msk.f32.mxu0 %vm4975_vm0, %v4974_v19 }
 0x532   : > { %4735 = vmatprep.subr.mxu0 %v4974_v19 }
 0x534   : > { %4733 = vmatmul.mubr.msk.f32.vlgmr.msra.gmra.mrb[12].mxu0 %vm1198_vm11, %v5144_v33  ;;  %v4809_v33 = vld [vmem:[%s6164_s3] sm:$0xff]  }
 0x535   : > { %4736 = vmatpush3.msk.msra.mxu0 %vm882_vm6, %v1286_v34  ;;  %4737 = vmatprep.mubr.msk.f32.mxu0 %vm4975_vm0, %v4974_v19 }
 0x536   : > { %4741 = vmatpush3.bf16.msra.mxu1 %v4809_v33  ;;  %2360 = vmatprep.subr.bf16.mxu0 %v4210_v4  ;;  %v1572_v33 = vld [vmem:[%s6168_s7 + $0x200] sm:$0xff]  ;;  %v1621_v4 = vld [vmem:[%s6168_s7 + $0x388] sm:$0xff] }
 0x537   : > { %4742 = vmatprep.subr.bf16.mxu1 %v4974_v19 }
 0x53a   : > { %4743 = vmatpush3.bf16.msra.mxu1 %v4810_v42  ;;  %v1580_v42 = vld [vmem:[%s6168_s7 + $0x240] sm:$0xff] }
 0x53b   : > { %4744 = vmatprep.subr.bf16.mxu1 %v4974_v19 }
 0x53e   : > { %4745 = vmatpush3.bf16.msra.mxu1 %v4811_v43  ;;  %v1573_v43 = vld [vmem:[%s6168_s7 + $0x208] sm:$0xff] }
 0x53f   : > { %4746 = vmatprep.subr.bf16.mxu1 %v4974_v19 }
 0x542   : > { %4747 = vmatpush3.bf16.msra.mxu1 %v4812_v44  ;;  %v4274_v44 = vcombine.high %v1572_v33, %v1580_v42 }
 0x543   : > { %4748 = vmatprep.subr.bf16.mxu1 %v4974_v19 }
 0x546   : > { %4749 = vmatpush3.bf16.msra.mxu1 %v4813_v45  ;;  %v1581_v45 = vld [vmem:[%s6168_s7 + $0x248] sm:$0xff] }
 0x547   : > { %4750 = vmatprep.subr.bf16.mxu1 %v4974_v19 }
 0x54a   : > { %4751 = vmatpush3.bf16.msra.mxu1 %v4814_v46  ;;  %v4273_v46 = vcombine.low %v1572_v33, %v1580_v42  ;;  %v1551_v33 = vld [vmem:[%s6168_s7 + $0x158] sm:$0xff] }
 0x54b   : > { %4752 = vmatprep.subr.bf16.mxu1 %v4974_v19 }
 0x54e   : > { %4753 = vmatpush3.bf16.msra.mxu1 %v4815_v47  ;;  %v4275_v47 = vcombine.low %v1573_v43, %v1581_v45 }
 0x54f   : > { %4754 = vmatprep.subr.bf16.mxu1 %v4974_v19  ;;  %v4198_v19 = vld [vmem:[%s6165_s4] ss:$0 sm:$0xff] }
 0x552   : > { %4755 = vmatpush3.bf16.msra.mxu1 %v4816_v51  ;;  %v1589_v51 = vld [vmem:[%s6168_s7 + $0x288] sm:$0xff] }
 0x607   : > { %v1270_v35 = vpop.f32.mrb[12].mxu0 }
 0x608   : > { %v1274_v36 = vmul.f32 0.17677669, %v1270_v35  ;;  %v4734_v37 = vpop.f32.mrb[13].mxu0 }
 0x609   : > { %v1564_v37 = vld [vmem:[%s6168_s7 + $0x1c0] sm:$0xff] }
 0x60a   : > { %v1275_v30 = vsel %vm776_vm5, %v1274_v36, -inf }
 0x60b   : > { %1276 = vmax.xlane.f32.xlu0 %v1275_v30  ;;  %v1557_v30 = vld [vmem:[%s6168_s7 + $0x188] sm:$0xff] }
 0x698   : > { %v1277_v38 = vpop.xlane.xlu0 %1276 }
 0x699   : > { %v1278_v39 = vsub.f32 %v1274_v36, %v1277_v38  ;;  %v1556_v36 = vld [vmem:[%s6168_s7 + $0x180] sm:$0xff] }
 0x69a   : > { %v4258_v38 = vcombine.high %v1556_v36, %v1564_v37 }
 0x69b   : > { %v1279_v40 = vmul.f32 1.442695, %v1278_v39  ;;  %v1565_v39 = vld [vmem:[%s6168_s7 + $0x1c8] sm:$0xff] }
 0x69d   : > { %4957 = vpow2.f32 %v1279_v40  ;;  %v4257_v40 = vcombine.low %v1556_v36, %v1564_v37  ;;  %v1527_v36 = vld [vmem:[%s6168_s7 + $0x98] sm:$0xff] }
 0x6a7   : > { %v4958_v27 = vpop.eup %4957 }
 0x6a8   : > { %v1281_v41 = vsel %vm776_vm5, %v4958_v27, 0.0 }
 0x6a9   : > { %1282 = vadd.xlane.f32.xlu1 %v1281_v41  ;;  %v4260_v41 = vcombine.high %v1557_v30, %v1565_v39 }
 0x736   : > { %v1283_v48 = vpop.xlane.xlu1 %1282 }
 0x737   : > { %4959 = vrcp.f32 %v1283_v48  ;;  %v4276_v48 = vcombine.high %v1573_v43, %v1581_v45 }
 0x741   : > { %v4960_v49 = vpop.eup %4959 }
 0x742   : > { %v1285_v50 = vmul.f32 %v4960_v49, %v4958_v27  ;;  %v4259_v27 = vcombine.low %v1557_v30, %v1565_v39  ;;  %v1588_v49 = vld [vmem:[%s6168_s7 + $0x280] sm:$0xff] }
 0x744   : > { %4738 = vmatmul.mubr.msk.f32.vlgmr.msra.gmra.mrb[8].mxu0 %vm878_vm7, %v1285_v50  ;;  %v1596_v50 = vld [vmem:[%s6168_s7 + $0x2c0] sm:$0xff] }
 0x745   : > { %2392 = vmatprep.mubr.bf16.mxu0 %v4973_v2  ;;  %2361 = vmatpush1.bf16.msra.mxu0 %v4209_v3  ;;  %v1628_v3 = vld [vmem:[%s6168_s7 + $0x3c0] sm:$0xff] }
 0x746   : > { %2362 = vmatprep.subr.bf16.mxu0 %v4226_v9  ;;  %v1510_v9 = vld [vmem:[%s6168_s7 + $0x10] sm:$0xff] }
 0x747   : > { %v4213_v12 = vcombine.low %v1510_v9, %v1518_v10 }
 0x749   : > { %2363 = vmatpush1.bf16.msra.mxu0 %v4225_v18 }
 0x74a   : > { %2364 = vmatprep.subr.bf16.mxu0 %v4242_v23 }
 0x74d   : > { %2365 = vmatpush1.bf16.msra.mxu0 %v4241_v26  ;;  %v4207_v26 = vld [vmem:[%s6166_s5] ss:$0 sm:$0xff] }
 0x74e   : > { %2366 = vmatprep.subr.bf16.mxu0 %v4258_v38 }
 0x751   : > { %2367 = vmatpush1.bf16.msra.mxu0 %v4257_v40  ;;  %v1542_v40 = vld [vmem:[%s6168_s7 + $0x110] sm:$0xff] }
 0x752   : > { %2368 = vmatprep.subr.bf16.mxu0 %v4274_v44 }
 0x755   : > { %2369 = vmatpush1.bf16.msra.mxu0 %v4273_v46  ;;  %v1558_v46 = vld [vmem:[%s6168_s7 + $0x190] sm:$0xff] }
 0x817   : > { %v1359_v52 = vpop.f32.mrb[8].mxu0 }
 0x818   : > { %v1364_v53 = vpack.c.bf16 %v1359_v52, %v1359_v52  ;;  %v4739_v54 = vpop.f32.mrb[9].mxu0  ;;  %v4290_v52 = vcombine.high %v1588_v49, %v1596_v50 }
 0x819   : > { %v4289_v54 = vcombine.low %v1588_v49, %v1596_v50  ;;  %v1567_v49 = vld [vmem:[%s6168_s7 + $0x1d8] sm:$0xff] }
 0x81a   : > { %4757 = vmatmul.mubr.bf16.vlgmr.msra.gmra.mrb[4].mxu1 %v1364_v53  ;;  %v1597_v53 = vld [vmem:[%s6168_s7 + $0x2c8] sm:$0xff]  ;;  %2370 = vmatprep.subr.bf16.mxu0 %v4290_v52 }
 0x81b   : > { %2433 = vmatprep.mubr.bf16.mxu1 %v4973_v2  ;;  %2371 = vmatpush1.bf16.msra.mxu0 %v4289_v54  ;;  %v1574_v54 = vld [vmem:[%s6168_s7 + $0x210] sm:$0xff] }
 0x8ed   : > { %v1470_v55 = vpop.f32.mrb[4].mxu1 }
 0x8ee   : > { %v1471_v56 = vadd.f32 %v4198_v19, %v1470_v55  ;;  %v4758_v57 = vpop.f32.mrb[5].mxu1  ;;  %v4291_v19 = vcombine.low %v1589_v51, %v1597_v53  ;;  %v4292_v55 = vcombine.high %v1589_v51, %v1597_v53 }
 0x8ef   : > { %v1473_v58 = vpop.f32.mrb[6].mxu1  ;;  %v1612_v57 = vld [vmem:[%s6168_s7 + $0x340] sm:$0xff] }
 0x8f0   : > { %v4759_v59 = vpop.f32.mrb[7].mxu1  ;;  %v1476_v60 = vadd.f32 %v1471_v56, %v5111_v17  ;;  %v1517_v17 = vld [vmem:[%s6168_s7 + $0x48] sm:$0xff]  ;;  %v1604_v56 = vld [vmem:[%s6168_s7 + $0x300] sm:$0xff] }
 0x8f1   : > { %v4211_v7 = vcombine.low %v1509_v1, %v1517_v17  ;;  %v4212_v8 = vcombine.high %v1509_v1, %v1517_v17  ;;  %v1605_v58 = vld [vmem:[%s6168_s7 + $0x308] sm:$0xff]  ;;  %v4306_v59 = vcombine.high %v1604_v56, %v1612_v57  ;;  %v1620_v1 = vld [vmem:[%s6168_s7 + $0x380] sm:$0xff] }
 0x8f2   : > { %v1479_v62 = vsel %vm882_vm6, %v1476_v60, 0.0  ;;  %v4322_v17 = vcombine.high %v1620_v1, %v1628_v3  ;;  %v4321_v6 = vcombine.low %v1620_v1, %v1628_v3  ;;  %v1599_v1 = vld [vmem:[%s6168_s7 + $0x2d8] sm:$0xff] }
 0x8f3   : > { %1480 = vadd.xlane.f32.xlu0 %v1479_v62  ;;  %2401 = vmatprep.subr.bf16.mxu1 %v4212_v8  ;;  %v4305_v62 = vcombine.low %v1604_v56, %v1612_v57  ;;  %v4324_v8 = vcombine.high %v1621_v4, %v1629_v5  ;;  %v1583_v56 = vld [vmem:[%s6168_s7 + $0x258] sm:$0xff] }
 0x8f4   : > { %2402 = vmatpush1.bf16.msra.mxu1 %v4211_v7  ;;  %2372 = vmatprep.subr.bf16.mxu0 %v4306_v59  ;;  %v4323_v7 = vcombine.low %v1621_v4, %v1629_v5 }
 0x8f5   : > { %2403 = vmatprep.subr.bf16.mxu1 %v4228_v13  ;;  %2373 = vmatpush1.bf16.msra.mxu0 %v4305_v62  ;;  %v4214_v13 = vcombine.high %v1510_v9, %v1518_v10  ;;  %v1590_v62 = vld [vmem:[%s6168_s7 + $0x290] sm:$0xff]  ;;  %v1615_v9 = vld [vmem:[%s6168_s7 + $0x358] sm:$0xff] }
 0x8f6   : > { %2374 = vmatprep.subr.bf16.mxu0 %v4322_v17 }
 0x8f8   : > { %2404 = vmatpush1.bf16.msra.mxu1 %v4227_v20 }
 0x8f9   : > { %2405 = vmatprep.subr.bf16.mxu1 %v4244_v25  ;;  %2375 = vmatpush1.bf16.msra.mxu0 %v4321_v6  ;;  %v1606_v6 = vld [vmem:[%s6168_s7 + $0x310] sm:$0xff] }
 0x8fa   : > { %2442 = vmatprep.subr.bf16.mxu0 %v4214_v13 }
 0x8fc   : > { %2406 = vmatpush1.bf16.msra.mxu1 %v4243_v28 }
 0x8fd   : > { %2407 = vmatprep.subr.bf16.mxu1 %v4260_v41  ;;  %v1543_v41 = vld [vmem:[%s6168_s7 + $0x118] sm:$0xff] }
 0x8fe   : > { %v4248_v45 = vcombine.high %v1543_v41, %v1551_v33  ;;  %v4247_v51 = vcombine.low %v1543_v41, %v1551_v33  ;;  %v1537_v41 = vld [vmem:[%s6168_s7 + $0xe8] sm:$0xff] }
 0x900   : > { %2408 = vmatpush1.bf16.msra.mxu1 %v4259_v27  ;;  %v1550_v27 = vld [vmem:[%s6168_s7 + $0x150] sm:$0xff] }
 0x901   : > { %2409 = vmatprep.subr.bf16.mxu1 %v4276_v48  ;;  %v4246_v44 = vcombine.high %v1542_v40, %v1550_v27  ;;  %v1559_v48 = vld [vmem:[%s6168_s7 + $0x198] sm:$0xff]  ;;  %v4245_v50 = vcombine.low %v1542_v40, %v1550_v27  ;;  %v1536_v40 = vld [vmem:[%s6168_s7 + $0xe0] sm:$0xff]  ;;  %v1529_v27 = vld [vmem:[%s6168_s7 + $0xa8] sm:$0xff] }
 0x902   : > { %v4264_v53 = vcombine.high %v1559_v48, %v1567_v49 }
 0x904   : > { %2410 = vmatpush1.bf16.msra.mxu1 %v4275_v47  ;;  %v1566_v47 = vld [vmem:[%s6168_s7 + $0x1d0] sm:$0xff] }
 0x905   : > { %2411 = vmatprep.subr.bf16.mxu1 %v4292_v55  ;;  %v4262_v52 = vcombine.high %v1558_v46, %v1566_v47  ;;  %v1575_v55 = vld [vmem:[%s6168_s7 + $0x218] sm:$0xff]  ;;  %v4261_v57 = vcombine.low %v1558_v46, %v1566_v47  ;;  %v1552_v46 = vld [vmem:[%s6168_s7 + $0x160] sm:$0xff]  ;;  %v1545_v47 = vld [vmem:[%s6168_s7 + $0x128] sm:$0xff] }
 0x906   : > { %v4279_v4 = vcombine.low %v1575_v55, %v1583_v56 }
 0x908   : > { %2412 = vmatpush1.bf16.msra.mxu1 %v4291_v19  ;;  %v1582_v19 = vld [vmem:[%s6168_s7 + $0x250] sm:$0xff] }
 0x909   : > { %v4278_v59 = vcombine.high %v1574_v54, %v1582_v19  ;;  %v4277_v3 = vcombine.low %v1574_v54, %v1582_v19  ;;  %v1568_v54 = vld [vmem:[%s6168_s7 + $0x1e0] sm:$0xff]  ;;  %v1561_v19 = vld [vmem:[%s6168_s7 + $0x1a8] sm:$0xff] }
 0x980   : > { %v1481_v29 = vpop.xlane.xlu0 %1480 }
 0x981   : > { %v1483_v31 = vmul.f32 0.0078125, %v1481_v29  ;;  %v4208_v29 = vld [vmem:[%s6167_s6] ss:$0 sm:$0xff] }
 0x983   : > { %v5320_v32 = vsub.f32 %v1476_v60, %v1483_v31  ;;  %v1613_v60 = vld [vmem:[%s6168_s7 + $0x348] sm:$0xff] }
 0x984   : > { %v4307_v63 = vcombine.low %v1605_v58, %v1613_v60  ;;  %v4308_v0 = vcombine.high %v1605_v58, %v1613_v60  ;;  %v4263_v58 = vcombine.low %v1559_v48, %v1567_v49  ;;  %v4280_v60 = vcombine.high %v1575_v55, %v1583_v56  ;;  %v1553_v48 = vld [vmem:[%s6168_s7 + $0x168] sm:$0xff] }
 0x985   : > { %v1485_v34 = vmul.f32 %v5320_v32, %v5320_v32  ;;  %v1569_v55 = vld [vmem:[%s6168_s7 + $0x1e8] sm:$0xff] }
 0x986   : > { %2413 = vmatprep.subr.bf16.mxu1 %v4308_v0  ;;  %v1591_v0 = vld [vmem:[%s6168_s7 + $0x298] sm:$0xff] }
 0x987   : > { %v1486_v35 = vsel %vm882_vm6, %v1485_v34, 0.0  ;;  %2414 = vmatpush1.bf16.msra.mxu1 %v4307_v63  ;;  %v1526_v34 = vld [vmem:[%s6168_s7 + $0x90] sm:$0xff]  ;;  %v4296_v5 = vcombine.high %v1591_v0, %v1599_v1  ;;  %v4295_v11 = vcombine.low %v1591_v0, %v1599_v1  ;;  %v1585_v0 = vld [vmem:[%s6168_s7 + $0x268] sm:$0xff] }
 0x988   : > { %1487 = vadd.xlane.f32.xlu1 %v1486_v35  ;;  %2415 = vmatprep.subr.bf16.mxu1 %v4324_v8  ;;  %v1534_v35 = vld [vmem:[%s6168_s7 + $0xd0] sm:$0xff]  ;;  %v1607_v8 = vld [vmem:[%s6168_s7 + $0x318] sm:$0xff] }
 0x989   : > { %v4230_v38 = vcombine.high %v1526_v34, %v1534_v35  ;;  %v4229_v42 = vcombine.low %v1526_v34, %v1534_v35  ;;  %v1598_v63 = vld [vmem:[%s6168_s7 + $0x2d0] sm:$0xff]  ;;  %v4312_v13 = vcombine.high %v1607_v8, %v1615_v9  ;;  %v1521_v34 = vld [vmem:[%s6168_s7 + $0x68] sm:$0xff] }
 0x98a   : > { %v4294_v17 = vcombine.high %v1590_v62, %v1598_v63  ;;  %v4293_v10 = vcombine.low %v1590_v62, %v1598_v63  ;;  %v1584_v62 = vld [vmem:[%s6168_s7 + $0x260] sm:$0xff]  ;;  %v1577_v63 = vld [vmem:[%s6168_s7 + $0x228] sm:$0xff] }
 0x98b   : > { %2416 = vmatpush1.bf16.msra.mxu1 %v4323_v7  ;;  %v1614_v7 = vld [vmem:[%s6168_s7 + $0x350] sm:$0xff] }
 0x98c   : > { %2483 = vmatprep.subr.bf16.mxu1 %v4216_v16  ;;  %v1623_v16 = vld [vmem:[%s6168_s7 + $0x398] sm:$0xff] }
 0xa15   : > { %v1488_v18 = vpop.xlane.xlu1 %1487 }
 0xa16   : > { %v1489_v20 = vmul.f32 0.0078125, %v1488_v18  ;;  %v1631_v18 = vld [vmem:[%s6168_s7 + $0x3d8] sm:$0xff] }
 0xa18   : > { %v1490_v23 = vadd.f32 1e-05, %v1489_v20  ;;  %v4309_v20 = vcombine.low %v1606_v6, %v1614_v7 }
 0xa1a   : > { %4961 = vrsqrt.f32 %v1490_v23  ;;  %v4311_v23 = vcombine.low %v1607_v8, %v1615_v9  ;;  %v1601_v8 = vld [vmem:[%s6168_s7 + $0x2e8] sm:$0xff] }
 0xa24   : > { %v4962_v25 = vpop.eup %4961 }
 0xa25   : > { %v1492_v28 = vmul.f32 %v4962_v25, %v5320_v32  ;;  %v1535_v32 = vld [vmem:[%s6168_s7 + $0xd8] sm:$0xff] }
 0xa26   : > { %v4232_v39 = vcombine.high %v1527_v36, %v1535_v32  ;;  %v4231_v43 = vcombine.low %v1527_v36, %v1535_v32  ;;  %v4327_v36 = vcombine.low %v1623_v16, %v1631_v18 }
 0xa27   : > { %v1499_v31 = vmul.f32 %v4207_v26, %v1492_v28  ;;  %v4328_v26 = vcombine.high %v1623_v16, %v1631_v18  ;;  %v1512_v28 = vld [vmem:[%s6168_s7 + $0x20] sm:$0xff]  ;;  %v1617_v16 = vld [vmem:[%s6168_s7 + $0x368] sm:$0xff] }
 0xa29   : > { %v5416_v37 = vadd.f32 %v4208_v29, %v1499_v31  ;;  %v1520_v29 = vld [vmem:[%s6168_s7 + $0x60] sm:$0xff]  ;;  %v1513_v31 = vld [vmem:[%s6168_s7 + $0x28] sm:$0xff] }
 0xa2a   : > { %v4218_v32 = vcombine.high %v1512_v28, %v1520_v29  ;;  %v4217_v33 = vcombine.low %v1512_v28, %v1520_v29  ;;  %v1632_v28 = vld [vmem:[%s6168_s7 + $0x3e0] sm:$0xff]  ;;  %v1625_v29 = vld [vmem:[%s6168_s7 + $0x3a8] sm:$0xff] }
 0xa2b   : > { %v5420_v30 = vpack.c.bf16 %v5416_v37, %v5416_v37 }
 0xa2d   : > { %2393 = vmatmul.mubr.bf16.vlgmr.msra.gmra.mrb[16].mxu0 %v5420_v30  ;;  %2434 = vmatmul.mubr.bf16.vlgmr.msra.gmra.mrb[8].mxu1 %v5420_v30 }
 0xa2e   : > { %2443 = vmatpush1.bf16.msra.mxu0 %v4213_v12  ;;  %2484 = vmatpush1.bf16.msra.mxu1 %v4215_v15  ;;  %v4310_v12 = vcombine.high %v1606_v6, %v1614_v7  ;;  %v1630_v15 = vld [vmem:[%s6168_s7 + $0x3d0] sm:$0xff]  ;;  %v1600_v6 = vld [vmem:[%s6168_s7 + $0x2e0] sm:$0xff]  ;;  %v1593_v7 = vld [vmem:[%s6168_s7 + $0x2a8] sm:$0xff] }
 0xa2f   : > { %2444 = vmatprep.subr.bf16.mxu0 %v4230_v38  ;;  %2485 = vmatprep.subr.bf16.mxu1 %v4232_v39  ;;  %v4326_v25 = vcombine.high %v1622_v14, %v1630_v15  ;;  %v4325_v35 = vcombine.low %v1622_v14, %v1630_v15  ;;  %v4220_v38 = vcombine.high %v1513_v31, %v1521_v34  ;;  %v1528_v39 = vld [vmem:[%s6168_s7 + $0xa0] sm:$0xff]  ;;  %v1609_v15 = vld [vmem:[%s6168_s7 + $0x328] sm:$0xff] }
 0xa30   : > { %2474 = vmatprep.mubr.bf16.mxu0 %v4973_v2  ;;  %2515 = vmatprep.mubr.bf16.mxu1 %v4973_v2  ;;  %v4233_v49 = vcombine.low %v1528_v39, %v1536_v40  ;;  %v1616_v14 = vld [vmem:[%s6168_s7 + $0x360] sm:$0xff] }
 0xa32   : > { %2445 = vmatpush1.bf16.msra.mxu0 %v4229_v42  ;;  %2486 = vmatpush1.bf16.msra.mxu1 %v4231_v43  ;;  %v4219_v42 = vcombine.low %v1513_v31, %v1521_v34  ;;  %v4234_v43 = vcombine.high %v1528_v39, %v1536_v40  ;;  %v1633_v31 = vld [vmem:[%s6168_s7 + $0x3e8] sm:$0xff]  ;;  %v1522_v39 = vld [vmem:[%s6168_s7 + $0x70] sm:$0xff]  ;;  %v1515_v40 = vld [vmem:[%s6168_s7 + $0x38] sm:$0xff] }
 0xa33   : > { %2446 = vmatprep.subr.bf16.mxu0 %v4246_v44  ;;  %2487 = vmatprep.subr.bf16.mxu1 %v4248_v45  ;;  %v4236_v44 = vcombine.high %v1529_v27, %v1537_v41  ;;  %v1544_v45 = vld [vmem:[%s6168_s7 + $0x120] sm:$0xff] }
 0xa34   : > { %v4249_v56 = vcombine.low %v1544_v45, %v1552_v46 }
 0xa36   : > { %2447 = vmatpush1.bf16.msra.mxu0 %v4245_v50  ;;  %2488 = vmatpush1.bf16.msra.mxu1 %v4247_v51  ;;  %v4235_v50 = vcombine.low %v1529_v27, %v1537_v41  ;;  %v4250_v51 = vcombine.high %v1544_v45, %v1552_v46  ;;  %v1523_v27 = vld [vmem:[%s6168_s7 + $0x78] sm:$0xff]  ;;  %v1538_v45 = vld [vmem:[%s6168_s7 + $0xf0] sm:$0xff] }
 0xa37   : > { %2448 = vmatprep.subr.bf16.mxu0 %v4262_v52  ;;  %2489 = vmatprep.subr.bf16.mxu1 %v4264_v53  ;;  %v4252_v52 = vcombine.high %v1545_v47, %v1553_v48  ;;  %v1560_v53 = vld [vmem:[%s6168_s7 + $0x1a0] sm:$0xff]  ;;  %v1531_v46 = vld [vmem:[%s6168_s7 + $0xb8] sm:$0xff] }
 0xa38   : > { %v4265_v1 = vcombine.low %v1560_v53, %v1568_v54 }
 0xa3a   : > { %2449 = vmatpush1.bf16.msra.mxu0 %v4261_v57  ;;  %2490 = vmatpush1.bf16.msra.mxu1 %v4263_v58  ;;  %v4251_v57 = vcombine.low %v1545_v47, %v1553_v48  ;;  %v4266_v58 = vcombine.high %v1560_v53, %v1568_v54  ;;  %v1539_v47 = vld [vmem:[%s6168_s7 + $0xf8] sm:$0xff]  ;;  %v1554_v53 = vld [vmem:[%s6168_s7 + $0x170] sm:$0xff] }
 0xa3b   : > { %2450 = vmatprep.subr.bf16.mxu0 %v4278_v59  ;;  %2491 = vmatprep.subr.bf16.mxu1 %v4280_v60  ;;  %v4268_v59 = vcombine.high %v1561_v19, %v1569_v55  ;;  %v1576_v60 = vld [vmem:[%s6168_s7 + $0x220] sm:$0xff]  ;;  %v1547_v54 = vld [vmem:[%s6168_s7 + $0x138] sm:$0xff] }
 0xa3c   : > { %v4281_v9 = vcombine.low %v1576_v60, %v1584_v62 }
 0xa3e   : > { %2451 = vmatpush1.bf16.msra.mxu0 %v4277_v3  ;;  %2492 = vmatpush1.bf16.msra.mxu1 %v4279_v4  ;;  %v4267_v3 = vcombine.low %v1561_v19, %v1569_v55  ;;  %v4282_v4 = vcombine.high %v1576_v60, %v1584_v62  ;;  %v1555_v19 = vld [vmem:[%s6168_s7 + $0x178] sm:$0xff]  ;;  %v1570_v60 = vld [vmem:[%s6168_s7 + $0x1f0] sm:$0xff] }
 0xa3f   : > { %2452 = vmatprep.subr.bf16.mxu0 %v4294_v17  ;;  %2493 = vmatprep.subr.bf16.mxu1 %v4296_v5  ;;  %v4284_v17 = vcombine.high %v1577_v63, %v1585_v0  ;;  %v1592_v5 = vld [vmem:[%s6168_s7 + $0x2a0] sm:$0xff]  ;;  %v1563_v62 = vld [vmem:[%s6168_s7 + $0x1b8] sm:$0xff] }
 0xa40   : > { %v4297_v18 = vcombine.low %v1592_v5, %v1600_v6 }
 0xa42   : > { %2453 = vmatpush1.bf16.msra.mxu0 %v4293_v10  ;;  %2494 = vmatpush1.bf16.msra.mxu1 %v4295_v11  ;;  %v4283_v10 = vcombine.low %v1577_v63, %v1585_v0  ;;  %v4298_v11 = vcombine.high %v1592_v5, %v1600_v6  ;;  %v1571_v63 = vld [vmem:[%s6168_s7 + $0x1f8] sm:$0xff]  ;;  %v1586_v5 = vld [vmem:[%s6168_s7 + $0x270] sm:$0xff] }
 0xa43   : > { %2454 = vmatprep.subr.bf16.mxu0 %v4310_v12  ;;  %2495 = vmatprep.subr.bf16.mxu1 %v4312_v13  ;;  %v4300_v12 = vcombine.high %v1593_v7, %v1601_v8  ;;  %v1608_v13 = vld [vmem:[%s6168_s7 + $0x320] sm:$0xff]  ;;  %v1587_v6 = vld [vmem:[%s6168_s7 + $0x278] sm:$0xff] }
 0xa44   : > { %v4313_v34 = vcombine.low %v1608_v13, %v1616_v14 }
 0xa46   : > { %2455 = vmatpush1.bf16.msra.mxu0 %v4309_v20  ;;  %2496 = vmatpush1.bf16.msra.mxu1 %v4311_v23  ;;  %v4299_v20 = vcombine.low %v1593_v7, %v1601_v8  ;;  %v4314_v23 = vcombine.high %v1608_v13, %v1616_v14  ;;  %v4271_v8 = vcombine.low %v1563_v62, %v1571_v63  ;;  %v1595_v13 = vld [vmem:[%s6168_s7 + $0x2b8] sm:$0xff] }
 0xa47   : > { %2456 = vmatprep.subr.bf16.mxu0 %v4326_v25  ;;  %2497 = vmatprep.subr.bf16.mxu1 %v4328_v26  ;;  %v4316_v25 = vcombine.high %v1609_v15, %v1617_v16  ;;  %v1624_v26 = vld [vmem:[%s6168_s7 + $0x3a0] sm:$0xff]  ;;  %v1603_v14 = vld [vmem:[%s6168_s7 + $0x2f8] sm:$0xff] }
 0xa48   : > { %v4329_v41 = vcombine.low %v1624_v26, %v1632_v28 }
 0xa4a   : > { %2457 = vmatpush1.bf16.msra.mxu0 %v4325_v35  ;;  %2498 = vmatpush1.bf16.msra.mxu1 %v4327_v36  ;;  %v4315_v35 = vcombine.low %v1609_v15, %v1617_v16  ;;  %v4330_v36 = vcombine.high %v1624_v26, %v1632_v28  ;;  %v1611_v26 = vld [vmem:[%s6168_s7 + $0x338] sm:$0xff] }
 0xa4b   : > { %2524 = vmatprep.subr.bf16.mxu0 %v4218_v32  ;;  %2565 = vmatprep.subr.bf16.mxu1 %v4220_v38  ;;  %v4332_v32 = vcombine.high %v1625_v29, %v1633_v31  ;;  %v1514_v38 = vld [vmem:[%s6168_s7 + $0x30] sm:$0xff]  ;;  %v1619_v28 = vld [vmem:[%s6168_s7 + $0x378] sm:$0xff] }
 0xa4c   : > { %v4221_v48 = vcombine.low %v1514_v38, %v1522_v39 }
 0xa4d   : > { %2475 = vmatmul.mubr.bf16.vlgmr.msra.gmra.mrb[20].mxu0 %v5420_v30  ;;  %2516 = vmatmul.mubr.bf16.vlgmr.msra.gmra.mrb[12].mxu1 %v5420_v30 }
 0xa4e   : > { %2525 = vmatpush1.bf16.msra.mxu0 %v4217_v33  ;;  %2566 = vmatpush1.bf16.msra.mxu1 %v4219_v42  ;;  %v4331_v33 = vcombine.low %v1625_v29, %v1633_v31  ;;  %v4222_v42 = vcombine.high %v1514_v38, %v1522_v39  ;;  %v4303_v31 = vcombine.low %v1595_v13, %v1603_v14  ;;  %v1627_v38 = vld [vmem:[%s6168_s7 + $0x3b8] sm:$0xff] }
 0xa4f   : > { %2526 = vmatprep.subr.bf16.mxu0 %v4234_v43  ;;  %2567 = vmatprep.subr.bf16.mxu1 %v4236_v44  ;;  %v4224_v43 = vcombine.high %v1515_v40, %v1523_v27  ;;  %v1530_v44 = vld [vmem:[%s6168_s7 + $0xb0] sm:$0xff]  ;;  %v1635_v39 = vld [vmem:[%s6168_s7 + $0x3f8] sm:$0xff] }
 0xa50   : > { %2556 = vmatprep.mubr.bf16.mxu0 %v4973_v2  ;;  %2597 = vmatprep.mubr.bf16.mxu1 %v4973_v2  ;;  %v4237_v55 = vcombine.low %v1530_v44, %v1538_v45 }
 0xa52   : > { %2527 = vmatpush1.bf16.msra.mxu0 %v4233_v49  ;;  %2568 = vmatpush1.bf16.msra.mxu1 %v4235_v50  ;;  %v4223_v49 = vcombine.low %v1515_v40, %v1523_v27  ;;  %v4238_v50 = vcombine.high %v1530_v44, %v1538_v45  ;;  %v4319_v27 = vcombine.low %v1611_v26, %v1619_v28  ;;  %v4817_v44 = vld [vmem:[%s6170_s9 + $0x40] sm:$0xff]  }
 0xa53   : > { %2528 = vmatprep.subr.bf16.mxu0 %v4250_v51  ;;  %2569 = vmatprep.subr.bf16.mxu1 %v4252_v52  ;;  %v4240_v51 = vcombine.high %v1531_v46, %v1539_v47  ;;  %v1546_v52 = vld [vmem:[%s6168_s7 + $0x130] sm:$0xff]  ;;  %v4818_v45 = vld [vmem:[%s6170_s9 + $0xc0] sm:$0xff]  }
 0xa54   : > { %v4253_v0 = vcombine.low %v1546_v52, %v1554_v53 }
 0xa56   : > { %2529 = vmatpush1.bf16.msra.mxu0 %v4249_v56  ;;  %2570 = vmatpush1.bf16.msra.mxu1 %v4251_v57  ;;  %v4239_v56 = vcombine.low %v1531_v46, %v1539_v47  ;;  %v4254_v57 = vcombine.high %v1546_v52, %v1554_v53  ;;  %v4819_v46 = vld [vmem:[%s6170_s9] sm:$0xff]   ;;  %v4825_v52 = vld [vmem:[%s6170_s9 + $0x50] sm:$0xff]  }
 0xa57   : > { %2530 = vmatprep.subr.bf16.mxu0 %v4266_v58  ;;  %2571 = vmatprep.subr.bf16.mxu1 %v4268_v59  ;;  %v4256_v58 = vcombine.high %v1547_v54, %v1555_v19  ;;  %v1562_v59 = vld [vmem:[%s6168_s7 + $0x1b0] sm:$0xff]  ;;  %v4820_v47 = vld [vmem:[%s6170_s9 + $0x80] sm:$0xff]  }
 0xa58   : > { %v4269_v7 = vcombine.low %v1562_v59, %v1570_v60  ;;  %v4827_v53 = vld [vmem:[%s6170_s9 + $0x10] sm:$0xff]  }
 0xa5a   : > { %2531 = vmatpush1.bf16.msra.mxu0 %v4265_v1  ;;  %2572 = vmatpush1.bf16.msra.mxu1 %v4267_v3  ;;  %v4255_v1 = vcombine.low %v1547_v54, %v1555_v19  ;;  %v4270_v3 = vcombine.high %v1562_v59, %v1570_v60  ;;  %v4828_v54 = vld [vmem:[%s6170_s9 + $0x90] sm:$0xff]   ;;  %v4829_v19 = vld [vmem:[%s6170_s9 + $0x58] sm:$0xff]   ;;  %v4834_v59 = vld [vmem:[%s6170_s9 + $0xe0] sm:$0xff]  }
 0xa5b   : > { %2532 = vmatprep.subr.bf16.mxu0 %v4282_v4  ;;  %2573 = vmatprep.subr.bf16.mxu1 %v4284_v17  ;;  %v4272_v4 = vcombine.high %v1563_v62, %v1571_v63  ;;  %v1578_v17 = vld [vmem:[%s6168_s7 + $0x230] sm:$0xff]  ;;  %v4835_v60 = vld [vmem:[%s6170_s9 + $0x20] sm:$0xff]   ;;  %v4837_v63 = vld [vmem:[%s6170_s9 + $0x68] sm:$0xff]  }
 0xa5c   : > { %v4285_v15 = vcombine.low %v1578_v17, %v1586_v5  ;;  %v4836_v62 = vld [vmem:[%s6170_s9 + $0xa0] sm:$0xff]  }
 0xa5e   : > { %2533 = vmatpush1.bf16.msra.mxu0 %v4281_v9  ;;  %2574 = vmatpush1.bf16.msra.mxu1 %v4283_v10  ;;  %v4286_v9 = vcombine.high %v1578_v17, %v1586_v5  ;;  %v4842_v17 = vld [vmem:[%s6170_s9 + $0xf0] sm:$0xff]  }
 0xa5f   : > { %2534 = vmatprep.subr.bf16.mxu0 %v4298_v11  ;;  %2575 = vmatprep.subr.bf16.mxu1 %v4300_v12  ;;  %v1594_v11 = vld [vmem:[%s6168_s7 + $0x2b0] sm:$0xff] }
 0xa60   : > { %v1602_v12 = vld [vmem:[%s6168_s7 + $0x2f0] sm:$0xff] }
 0xa61   : > { %v4301_v29 = vcombine.low %v1594_v11, %v1602_v12  ;;  %v4843_v5 = vld [vmem:[%s6170_s9 + $0x30] sm:$0xff]  }
 0xa62   : > { %2535 = vmatpush1.bf16.msra.mxu0 %v4297_v18  ;;  %2576 = vmatpush1.bf16.msra.mxu1 %v4299_v20  ;;  %v4302_v18 = vcombine.high %v1594_v11, %v1602_v12  ;;  %v4304_v20 = vcombine.high %v1595_v13, %v1603_v14  ;;  %v4850_v11 = vld [vmem:[%s6170_s9 + $0x1c0] sm:$0xff]   ;;  %v1654_v13 = vsub.s32 3, %v5121_v21 }
 0xa63   : > { %2536 = vmatprep.subr.bf16.mxu0 %v4314_v23  ;;  %2577 = vmatprep.subr.bf16.mxu1 %v4316_v25  ;;  %v1610_v23 = vld [vmem:[%s6168_s7 + $0x330] sm:$0xff]  ;;  %v5805_v12 = vld [vmem:[%s6169_s8] sm:$0xff] }
 0xa64   : > { %v1618_v25 = vld [vmem:[%s6168_s7 + $0x370] sm:$0xff]  ;;  %v1643_v14 = vrot.slane %v5805_v12, %v5132_v24 }
 0xa65   : > { %v4317_v40 = vcombine.low %v1610_v23, %v1618_v25 }
 0xa66   : > { %2537 = vmatpush1.bf16.msra.mxu0 %v4313_v34  ;;  %2578 = vmatpush1.bf16.msra.mxu1 %v4315_v35  ;;  %v4318_v34 = vcombine.high %v1610_v23, %v1618_v25  ;;  %v4320_v35 = vcombine.high %v1611_v26, %v1619_v28 }
 0xa67   : > { %2538 = vmatprep.subr.bf16.mxu0 %v4330_v36  ;;  %2579 = vmatprep.subr.bf16.mxu1 %v4332_v32  ;;  %v1626_v36 = vld [vmem:[%s6168_s7 + $0x3b0] sm:$0xff] }
 0xa68   : > { %v1634_v32 = vld [vmem:[%s6168_s7 + $0x3f0] sm:$0xff] }
 0xa6a   : > { %2539 = vmatpush1.bf16.msra.mxu0 %v4329_v41  ;;  %2580 = vmatpush1.bf16.msra.mxu1 %v4331_v33  ;;  %v4334_v41 = vcombine.high %v1626_v36, %v1634_v32  ;;  %v4336_v33 = vcombine.high %v1627_v38, %v1635_v39 }
 0xa6b   : > { %2606 = vmatprep.subr.bf16.mxu0 %v4222_v42  ;;  %2647 = vmatprep.subr.bf16.mxu1 %v4224_v43  ;;  %v4333_v42 = vcombine.low %v1626_v36, %v1634_v32  ;;  %v4335_v43 = vcombine.low %v1627_v38, %v1635_v39 }
 0xa6d   : > { %2557 = vmatmul.mubr.bf16.vlgmr.msra.gmra.mrb[24].mxu0 %v5420_v30  ;;  %2598 = vmatmul.mubr.bf16.vlgmr.msra.gmra.mrb[16].mxu1 %v5420_v30 }
 0xa6e   : > { %2607 = vmatpush1.bf16.msra.mxu0 %v4221_v48  ;;  %2648 = vmatpush1.bf16.msra.mxu1 %v4223_v49  ;;  %v4821_v48 = vld [vmem:[%s6170_s9 + $0x48] sm:$0xff]  }
 0xa6f   : > { %2608 = vmatprep.subr.bf16.mxu0 %v4238_v50  ;;  %2649 = vmatprep.subr.bf16.mxu1 %v4240_v51  ;;  %v4822_v49 = vld [vmem:[%s6170_s9 + $0xc8] sm:$0xff]  }
 0xa70   : > { %2638 = vmatprep.mubr.bf16.mxu0 %v4973_v2  ;;  %2679 = vmatprep.mubr.bf16.mxu1 %v4973_v2  ;;  %v1579_v2 = vld [vmem:[%s6168_s7 + $0x238] sm:$0xff]  ;;  %v4823_v50 = vld [vmem:[%s6170_s9 + $0x8] sm:$0xff]  }
 0xa71   : > { %v4288_v10 = vcombine.high %v1579_v2, %v1587_v6  ;;  %v4287_v16 = vcombine.low %v1579_v2, %v1587_v6  ;;  %v4824_v51 = vld [vmem:[%s6170_s9 + $0x88] sm:$0xff]   ;;  %v4844_v2 = vld [vmem:[%s6170_s9 + $0xb0] sm:$0xff]   ;;  %v4845_v6 = vld [vmem:[%s6170_s9 + $0x78] sm:$0xff]  }
 0xa72   : > { %2609 = vmatpush1.bf16.msra.mxu0 %v4237_v55  ;;  %2650 = vmatpush1.bf16.msra.mxu1 %v4239_v56  ;;  %v4830_v55 = vld [vmem:[%s6170_s9 + $0xd8] sm:$0xff]  }
 0xa73   : > { %2610 = vmatprep.subr.bf16.mxu0 %v4254_v57  ;;  %2651 = vmatprep.subr.bf16.mxu1 %v4256_v58  ;;  %v4831_v56 = vld [vmem:[%s6170_s9 + $0x18] sm:$0xff]   ;;  %v4833_v58 = vld [vmem:[%s6170_s9 + $0x60] sm:$0xff]  }
 0xa74   : > { %v4832_v57 = vld [vmem:[%s6170_s9 + $0x98] sm:$0xff]  }
 0xa76   : > { %2611 = vmatpush1.bf16.msra.mxu0 %v4253_v0  ;;  %2652 = vmatpush1.bf16.msra.mxu1 %v4255_v1  ;;  %v4838_v0 = vld [vmem:[%s6170_s9 + $0xe8] sm:$0xff]  }
 0xa77   : > { %2612 = vmatprep.subr.bf16.mxu0 %v4270_v3  ;;  %2653 = vmatprep.subr.bf16.mxu1 %v4272_v4  ;;  %v4839_v1 = vld [vmem:[%s6170_s9 + $0x28] sm:$0xff]   ;;  %v4841_v4 = vld [vmem:[%s6170_s9 + $0x70] sm:$0xff]  }
 0xa78   : > { %v4840_v3 = vld [vmem:[%s6170_s9 + $0xa8] sm:$0xff]  }
 0xa7a   : > { %2613 = vmatpush1.bf16.msra.mxu0 %v4269_v7  ;;  %2654 = vmatpush1.bf16.msra.mxu1 %v4271_v8  ;;  %v4846_v7 = vld [vmem:[%s6170_s9 + $0xf8] sm:$0xff]  }
 0xa7b   : > { %2614 = vmatprep.subr.bf16.mxu0 %v4286_v9  ;;  %2655 = vmatprep.subr.bf16.mxu1 %v4288_v10  ;;  %v4847_v8 = vld [vmem:[%s6170_s9 + $0x38] sm:$0xff]   ;;  %v4849_v10 = vld [vmem:[%s6170_s9 + $0x140] sm:$0xff]  }
 0xa7c   : > { %v4848_v9 = vld [vmem:[%s6170_s9 + $0xb8] sm:$0xff]  }
 0xa7e   : > { %2615 = vmatpush1.bf16.msra.mxu0 %v4285_v15  ;;  %2656 = vmatpush1.bf16.msra.mxu1 %v4287_v16  ;;  %v1651_v15 = vrot.slane %v5805_v12, %v5204_v61  ;;  %v1647_v16 = vrot.slane %v5805_v12, %v5124_v22 }
 0xa7f   : > { %2616 = vmatprep.subr.bf16.mxu0 %v4302_v18  ;;  %2657 = vmatprep.subr.bf16.mxu1 %v4304_v20  ;;  %v1655_v18 = vrot.slane %v5805_v12, %v1654_v13 }
 0xa82   : > { %2617 = vmatpush1.bf16.msra.mxu0 %v4301_v29  ;;  %2658 = vmatpush1.bf16.msra.mxu1 %v4303_v31 }
 0xa83   : > { %2618 = vmatprep.subr.bf16.mxu0 %v4318_v34  ;;  %2659 = vmatprep.subr.bf16.mxu1 %v4320_v35 }
 0xa86   : > { %2619 = vmatpush1.bf16.msra.mxu0 %v4317_v40  ;;  %2660 = vmatpush1.bf16.msra.mxu1 %v4319_v27 }
 0xa87   : > { %2620 = vmatprep.subr.bf16.mxu0 %v4334_v41  ;;  %2661 = vmatprep.subr.bf16.mxu1 %v4336_v33 }
 0xa8a   : > { %2621 = vmatpush1.bf16.msra.mxu0 %v4333_v42  ;;  %2662 = vmatpush1.bf16.msra.mxu1 %v4335_v43  ;;  %v4851_v43 = vld [vmem:[%s6170_s9 + $0x100] sm:$0xff]  }
 0xa8b   : > { %4504 = vmatprep.subr.bf16.mxu0 %v4817_v44  ;;  %4526 = vmatprep.subr.bf16.mxu1 %v4818_v45  ;;  %v4852_v44 = vld [vmem:[%s6170_s9 + $0x180] sm:$0xff]  }
 0xa8d   : > { %2639 = vmatmul.mubr.bf16.vlgmr.msra.gmra.mrb[28].mxu0 %v5420_v30  ;;  %2680 = vmatmul.mubr.bf16.vlgmr.msra.gmra.mrb[20].mxu1 %v5420_v30  ;;  %v4826_v30 = vld [vmem:[%s6170_s9 + $0xd0] sm:$0xff]  }
 0xa8e   : > { %4505 = vmatpush3.bf16.msra.mxu0 %v4819_v46  ;;  %4527 = vmatpush3.bf16.msra.mxu1 %v4820_v47  ;;  %v4853_v47 = vld [vmem:[%s6170_s9 + $0x148] sm:$0xff]  }
 0xa8f   : > { %4506 = vmatprep.subr.bf16.mxu0 %v4821_v48  ;;  %4528 = vmatprep.subr.bf16.mxu1 %v4822_v49  ;;  %v4854_v48 = vld [vmem:[%s6170_s9 + $0x1c8] sm:$0xff]  }
 0xa90   : > { %v4855_v49 = vld [vmem:[%s6170_s9 + $0x108] sm:$0xff]  }
 0xa92   : > { %4507 = vmatpush3.bf16.msra.mxu0 %v4823_v50  ;;  %4529 = vmatpush3.bf16.msra.mxu1 %v4824_v51  ;;  %v4856_v50 = vld [vmem:[%s6170_s9 + $0x188] sm:$0xff]   ;;  %v4857_v51 = vld [vmem:[%s6170_s9 + $0x150] sm:$0xff]  }
 0xa93   : > { %4508 = vmatprep.subr.bf16.mxu0 %v4825_v52  ;;  %4530 = vmatprep.subr.bf16.mxu1 %v4826_v30  ;;  %v4858_v52 = vld [vmem:[%s6170_s9 + $0x1d0] sm:$0xff]  }
 0xa94   : > { %v4859_v30 = vld [vmem:[%s6170_s9 + $0x110] sm:$0xff]  }
 0xa96   : > { %4509 = vmatpush3.bf16.msra.mxu0 %v4827_v53  ;;  %4531 = vmatpush3.bf16.msra.mxu1 %v4828_v54  ;;  %v4860_v53 = vld [vmem:[%s6170_s9 + $0x190] sm:$0xff]   ;;  %v4861_v54 = vld [vmem:[%s6170_s9 + $0x158] sm:$0xff]  }
 0xa97   : > { %4510 = vmatprep.subr.bf16.mxu0 %v4829_v19  ;;  %4532 = vmatprep.subr.bf16.mxu1 %v4830_v55  ;;  %v4862_v19 = vld [vmem:[%s6170_s9 + $0x1d8] sm:$0xff]  }
 0xa98   : > { %v4863_v55 = vld [vmem:[%s6170_s9 + $0x118] sm:$0xff]  }
 0xa9a   : > { %4511 = vmatpush3.bf16.msra.mxu0 %v4831_v56  ;;  %4533 = vmatpush3.bf16.msra.mxu1 %v4832_v57  ;;  %v4864_v56 = vld [vmem:[%s6170_s9 + $0x198] sm:$0xff]   ;;  %v4865_v57 = vld [vmem:[%s6170_s9 + $0x160] sm:$0xff]  }
 0xa9b   : > { %4512 = vmatprep.subr.bf16.mxu0 %v4833_v58  ;;  %4534 = vmatprep.subr.bf16.mxu1 %v4834_v59  ;;  %v4866_v58 = vld [vmem:[%s6170_s9 + $0x1e0] sm:$0xff]  }
 0xa9c   : > { %v4867_v59 = vld [vmem:[%s6170_s9 + $0x120] sm:$0xff]  }
 0xa9e   : > { %4513 = vmatpush3.bf16.msra.mxu0 %v4835_v60  ;;  %4535 = vmatpush3.bf16.msra.mxu1 %v4836_v62  ;;  %v4868_v60 = vld [vmem:[%s6170_s9 + $0x1a0] sm:$0xff]   ;;  %v4869_v62 = vld [vmem:[%s6170_s9 + $0x168] sm:$0xff]  }
 0xa9f   : > { %4514 = vmatprep.subr.bf16.mxu0 %v4837_v63  ;;  %4536 = vmatprep.subr.bf16.mxu1 %v4838_v0  ;;  %v4870_v63 = vld [vmem:[%s6170_s9 + $0x1e8] sm:$0xff]   ;;  %v1658_v0 = vsub.s32 4, %v5121_v21 }
 0xaa2   : > { %4515 = vmatpush3.bf16.msra.mxu0 %v4839_v1  ;;  %4537 = vmatpush3.bf16.msra.mxu1 %v4840_v3  ;;  %v1666_v1 = vsub.s32 6, %v5121_v21  ;;  %v4871_v3 = vld [vmem:[%s6170_s9 + $0x128] sm:$0xff]  }
 0xaa3   : > { %4516 = vmatprep.subr.bf16.mxu0 %v4841_v4  ;;  %4538 = vmatprep.subr.bf16.mxu1 %v4842_v17  ;;  %v4872_v4 = vld [vmem:[%s6170_s9 + $0x1a8] sm:$0xff]   ;;  %v1662_v17 = vsub.s32 5, %v5121_v21 }
 0xaa6   : > { %4517 = vmatpush3.bf16.msra.mxu0 %v4843_v5  ;;  %4539 = vmatpush3.bf16.msra.mxu1 %v4844_v2  ;;  %v1670_v5 = vsub.s32 7, %v5121_v21  ;;  %v4873_v2 = vld [vmem:[%s6170_s9 + $0x170] sm:$0xff]   ;;  %v4942_v21 = vld [vmem:[%s6170_s9 + $0x3f8] sm:$0xff]  }
 0xaa7   : > { %4518 = vmatprep.subr.bf16.mxu0 %v4845_v6  ;;  %4540 = vmatprep.subr.bf16.mxu1 %v4846_v7  ;;  %v4874_v6 = vld [vmem:[%s6170_s9 + $0x1f0] sm:$0xff]   ;;  %v1659_v7 = vrot.slane %v5805_v12, %v1658_v0 }
 0xaaa   : > { %4519 = vmatpush3.bf16.msra.mxu0 %v4847_v8  ;;  %4541 = vmatpush3.bf16.msra.mxu1 %v4848_v9  ;;  %v1667_v8 = vrot.slane %v5805_v12, %v1666_v1  ;;  %v1663_v9 = vrot.slane %v5805_v12, %v1662_v17 }
 0xaab   : > { %4548 = vmatprep.subr.bf16.mxu0 %v4849_v10  ;;  %4570 = vmatprep.subr.bf16.mxu1 %v4850_v11  ;;  %v1671_v10 = vrot.slane %v5805_v12, %v1670_v5  ;;  %v4875_v11 = vld [vmem:[%s6170_s9 + $0x130] sm:$0xff]  }
 0xb00   : > { %v2394_v20 = vpop.f32.mrb[16].mxu0  ;;  %v2435_v23 = vpop.f32.mrb[8].mxu1 }
 0xb01   : > { %v2395_v25 = vadd.f32 %v2394_v20, %v1643_v14  ;;  %v2436_v26 = vadd.f32 %v2435_v23, %v1651_v15  ;;  %v2396_v28 = vpop.f32.mrb[17].mxu0  ;;  %v2437_v29 = vpop.f32.mrb[9].mxu1  ;;  %v4876_v14 = vld [vmem:[%s6170_s9 + $0x1b0] sm:$0xff]   ;;  %v4877_v15 = vld [vmem:[%s6170_s9 + $0x178] sm:$0xff]  }
 0xb02   : > { %v2397_v31 = vadd.f32 %v2396_v28, %v1647_v16  ;;  %v2438_v34 = vadd.f32 %v2437_v29, %v1655_v18  ;;  %v2398_v35 = vpop.f32.mrb[18].mxu0  ;;  %v2439_v36 = vpop.f32.mrb[10].mxu1  ;;  %v4878_v16 = vld [vmem:[%s6170_s9 + $0x1f8] sm:$0xff]  }
 0xb03   : > { %v2688_v32 = vmax.f32 %v2395_v25, 0.0  ;;  %v2690_v38 = vmax.f32 %v2436_v26, 0.0  ;;  %v2399_v39 = vpop.f32.mrb[19].mxu0  ;;  %v2440_v40 = vpop.f32.mrb[11].mxu1  ;;  %v4879_v35 = vld [vmem:[%s6170_s9 + $0x138] sm:$0xff]  }
 0xb04   : > { %v2689_v27 = vmax.f32 %v2397_v31, 0.0  ;;  %v2691_v41 = vmax.f32 %v2438_v34, 0.0  ;;  %v4880_v36 = vld [vmem:[%s6170_s9 + $0x1b8] sm:$0xff]  }
 0xb05   : > { %v2704_v45 = vpack.c.bf16 %v2688_v32, %v2688_v32  ;;  %v2706_v46 = vpack.c.bf16 %v2690_v38, %v2690_v38 }
 0xb06   : > { %v2705_v33 = vpack.c.bf16 %v2689_v27, %v2689_v27  ;;  %v2707_v42 = vpack.c.bf16 %v2691_v41, %v2691_v41  ;;  %v4881_v27 = vld [vmem:[%s6170_s9 + $0x240] sm:$0xff]  }
 0xb07   : > { %v4882_v41 = vld [vmem:[%s6170_s9 + $0x2c0] sm:$0xff]  }
 0xb08   : > { %3783 = vmatprep.mubr.bf16.mxu0 %v2705_v33  ;;  %3823 = vmatprep.mubr.bf16.mxu1 %v2707_v42 }
 0xb09   : > { %3784 = vmatmul.mubr.bf16.vlgmr.msra.gmra.mrb[32].mxu0 %v2704_v45  ;;  %3824 = vmatmul.mubr.bf16.vlgmr.msra.gmra.mrb[24].mxu1 %v2706_v46  ;;  %v4883_v45 = vld [vmem:[%s6170_s9 + $0x200] sm:$0xff]  }
 0xb0a   : > { %4549 = vmatpush3.bf16.msra.mxu0 %v4851_v43  ;;  %4571 = vmatpush3.bf16.msra.mxu1 %v4852_v44  ;;  %v4884_v46 = vld [vmem:[%s6170_s9 + $0x280] sm:$0xff]  }
 0xb0b   : > { %4550 = vmatprep.subr.bf16.mxu0 %v4853_v47  ;;  %4572 = vmatprep.subr.bf16.mxu1 %v4854_v48 }
 0xb0e   : > { %4551 = vmatpush3.bf16.msra.mxu0 %v4855_v49  ;;  %4573 = vmatpush3.bf16.msra.mxu1 %v4856_v50  ;;  %v4885_v49 = vld [vmem:[%s6170_s9 + $0x248] sm:$0xff]  }
 0xb0f   : > { %4552 = vmatprep.subr.bf16.mxu0 %v4857_v51  ;;  %4574 = vmatprep.subr.bf16.mxu1 %v4858_v52  ;;  %v4886_v50 = vld [vmem:[%s6170_s9 + $0x2c8] sm:$0xff]  }
 0xb10   : > { %v4887_v51 = vld [vmem:[%s6170_s9 + $0x208] sm:$0xff]  }
 0xb11   : > { %v4888_v52 = vld [vmem:[%s6170_s9 + $0x288] sm:$0xff]  }
 0xb12   : > { %4553 = vmatpush3.bf16.msra.mxu0 %v4859_v30  ;;  %4575 = vmatpush3.bf16.msra.mxu1 %v4860_v53  ;;  %v4889_v30 = vld [vmem:[%s6170_s9 + $0x250] sm:$0xff]  }
 0xb13   : > { %4554 = vmatprep.subr.bf16.mxu0 %v4861_v54  ;;  %4576 = vmatprep.subr.bf16.mxu1 %v4862_v19  ;;  %v4890_v53 = vld [vmem:[%s6170_s9 + $0x2d0] sm:$0xff]  }
 0xb14   : > { %v4891_v54 = vld [vmem:[%s6170_s9 + $0x210] sm:$0xff]  }
 0xb15   : > { %v4892_v19 = vld [vmem:[%s6170_s9 + $0x290] sm:$0xff]  }
 0xb16   : > { %4555 = vmatpush3.bf16.msra.mxu0 %v4863_v55  ;;  %4577 = vmatpush3.bf16.msra.mxu1 %v4864_v56  ;;  %v4893_v55 = vld [vmem:[%s6170_s9 + $0x258] sm:$0xff]  }
 0xb17   : > { %4556 = vmatprep.subr.bf16.mxu0 %v4865_v57  ;;  %4578 = vmatprep.subr.bf16.mxu1 %v4866_v58  ;;  %v4894_v56 = vld [vmem:[%s6170_s9 + $0x2d8] sm:$0xff]  }
 0xb18   : > { %v4895_v57 = vld [vmem:[%s6170_s9 + $0x218] sm:$0xff]  }
 0xb19   : > { %v4896_v58 = vld [vmem:[%s6170_s9 + $0x298] sm:$0xff]  }
 0xb1a   : > { %4557 = vmatpush3.bf16.msra.mxu0 %v4867_v59  ;;  %4579 = vmatpush3.bf16.msra.mxu1 %v4868_v60  ;;  %v4897_v59 = vld [vmem:[%s6170_s9 + $0x260] sm:$0xff]  }
 0xb1b   : > { %4558 = vmatprep.subr.bf16.mxu0 %v4869_v62  ;;  %4580 = vmatprep.subr.bf16.mxu1 %v4870_v63  ;;  %v4898_v60 = vld [vmem:[%s6170_s9 + $0x2e0] sm:$0xff]  }
 0xb1c   : > { %v4899_v62 = vld [vmem:[%s6170_s9 + $0x220] sm:$0xff]  }
 0xb1d   : > { %v4900_v63 = vld [vmem:[%s6170_s9 + $0x2a0] sm:$0xff]  }
 0xb1e   : > { %4559 = vmatpush3.bf16.msra.mxu0 %v4871_v3  ;;  %4581 = vmatpush3.bf16.msra.mxu1 %v4872_v4  ;;  %v4901_v3 = vld [vmem:[%s6170_s9 + $0x268] sm:$0xff]  }
 0xb1f   : > { %4560 = vmatprep.subr.bf16.mxu0 %v4873_v2  ;;  %4582 = vmatprep.subr.bf16.mxu1 %v4874_v6  ;;  %v4902_v4 = vld [vmem:[%s6170_s9 + $0x2e8] sm:$0xff]  }
 0xb20   : > { %v2476_v18 = vpop.f32.mrb[20].mxu0  ;;  %v2517_v12 = vpop.f32.mrb[12].mxu1  ;;  %v4903_v2 = vld [vmem:[%s6170_s9 + $0x228] sm:$0xff]  }
 0xb21   : > { %v2477_v20 = vadd.f32 %v2476_v18, %v1659_v7  ;;  %v2518_v23 = vadd.f32 %v2517_v12, %v1667_v8  ;;  %v2478_v25 = vpop.f32.mrb[21].mxu0  ;;  %v2519_v26 = vpop.f32.mrb[13].mxu1  ;;  %v4904_v6 = vld [vmem:[%s6170_s9 + $0x2a8] sm:$0xff]   ;;  %v4905_v8 = vld [vmem:[%s6170_s9 + $0x270] sm:$0xff]  }
 0xb22   : > { %v2479_v28 = vadd.f32 %v2478_v25, %v1663_v9  ;;  %v2520_v29 = vadd.f32 %v2519_v26, %v1671_v10  ;;  %v2480_v31 = vpop.f32.mrb[22].mxu0  ;;  %v2521_v34 = vpop.f32.mrb[14].mxu1  ;;  %4561 = vmatpush3.bf16.msra.mxu0 %v4875_v11  ;;  %4583 = vmatpush3.bf16.msra.mxu1 %v4876_v14  ;;  %v5998_v7 = vld [vmem:[%s6169_s8 + $0x8] sm:$0xff]  ;;  %v4906_v9 = vld [vmem:[%s6170_s9 + $0x2f0] sm:$0xff]  }
 0xb23   : > { %v2692_v32 = vmax.f32 %v2477_v20, 0.0  ;;  %v2694_v38 = vmax.f32 %v2518_v23, 0.0  ;;  %v2481_v39 = vpop.f32.mrb[23].mxu0  ;;  %v2522_v40 = vpop.f32.mrb[15].mxu1  ;;  %4562 = vmatprep.subr.bf16.mxu0 %v4877_v15  ;;  %4584 = vmatprep.subr.bf16.mxu1 %v4878_v16  ;;  %v1675_v10 = vrot.slane %v5998_v7, %v5132_v24  ;;  %v1683_v11 = vrot.slane %v5998_v7, %v5204_v61  ;;  %v4907_v16 = vld [vmem:[%s6170_s9 + $0x230] sm:$0xff]   ;;  %v4909_v61 = vld [vmem:[%s6170_s9 + $0x278] sm:$0xff]  }
 0xb24   : > { %v2693_v33 = vmax.f32 %v2479_v28, 0.0  ;;  %v2695_v42 = vmax.f32 %v2520_v29, 0.0  ;;  %v1679_v14 = vrot.slane %v5998_v7, %v5124_v22  ;;  %v1687_v15 = vrot.slane %v5998_v7, %v1654_v13  ;;  %v4908_v24 = vld [vmem:[%s6170_s9 + $0x2b0] sm:$0xff]   ;;  %v4910_v22 = vld [vmem:[%s6170_s9 + $0x2f8] sm:$0xff]   ;;  %v4913_v40 = vld [vmem:[%s6170_s9 + $0x340] sm:$0xff]  }
 0xb25   : > { %v2708_v47 = vpack.c.bf16 %v2692_v32, %v2692_v32  ;;  %v2710_v48 = vpack.c.bf16 %v2694_v38, %v2694_v38  ;;  %v4911_v34 = vld [vmem:[%s6170_s9 + $0x238] sm:$0xff]  }
 0xb26   : > { %v2709_v43 = vpack.c.bf16 %v2693_v33, %v2693_v33  ;;  %v2711_v44 = vpack.c.bf16 %v2695_v42, %v2695_v42  ;;  %4563 = vmatpush3.bf16.msra.mxu0 %v4879_v35  ;;  %4585 = vmatpush3.bf16.msra.mxu1 %v4880_v36  ;;  %v4912_v35 = vld [vmem:[%s6170_s9 + $0x2b8] sm:$0xff]  }
 0xb27   : > { %4592 = vmatprep.subr.bf16.mxu0 %v4881_v27  ;;  %4614 = vmatprep.subr.bf16.mxu1 %v4882_v41  ;;  %v4914_v27 = vld [vmem:[%s6170_s9 + $0x3c0] sm:$0xff]  }
 0xb28   : > { %3863 = vmatprep.mubr.bf16.mxu0 %v2709_v43  ;;  %3903 = vmatprep.mubr.bf16.mxu1 %v2711_v44  ;;  %v4915_v44 = vld [vmem:[%s6170_s9 + $0x300] sm:$0xff]  }
 0xb29   : > { %3864 = vmatmul.mubr.bf16.vlgmr.msra.gmra.mrb[36].mxu0 %v2708_v47  ;;  %3904 = vmatmul.mubr.bf16.vlgmr.msra.gmra.mrb[28].mxu1 %v2710_v48  ;;  %v4917_v48 = vld [vmem:[%s6170_s9 + $0x348] sm:$0xff]  }
 0xb2a   : > { %4593 = vmatpush3.bf16.msra.mxu0 %v4883_v45  ;;  %4615 = vmatpush3.bf16.msra.mxu1 %v4884_v46  ;;  %v4916_v45 = vld [vmem:[%s6170_s9 + $0x380] sm:$0xff]  }
 0xb2b   : > { %4594 = vmatprep.subr.bf16.mxu0 %v4885_v49  ;;  %4616 = vmatprep.subr.bf16.mxu1 %v4886_v50  ;;  %v4918_v49 = vld [vmem:[%s6170_s9 + $0x3c8] sm:$0xff]  }
 0xb2c   : > { %v4919_v50 = vld [vmem:[%s6170_s9 + $0x308] sm:$0xff]  }
 0xb2e   : > { %4595 = vmatpush3.bf16.msra.mxu0 %v4887_v51  ;;  %4617 = vmatpush3.bf16.msra.mxu1 %v4888_v52  ;;  %v4920_v51 = vld [vmem:[%s6170_s9 + $0x388] sm:$0xff]   ;;  %v4921_v52 = vld [vmem:[%s6170_s9 + $0x350] sm:$0xff]  }
 0xb2f   : > { %4596 = vmatprep.subr.bf16.mxu0 %v4889_v30  ;;  %4618 = vmatprep.subr.bf16.mxu1 %v4890_v53  ;;  %v4922_v30 = vld [vmem:[%s6170_s9 + $0x3d0] sm:$0xff]  }
 0xb30   : > { %v4923_v53 = vld [vmem:[%s6170_s9 + $0x310] sm:$0xff]  }
 0xb32   : > { %4597 = vmatpush3.bf16.msra.mxu0 %v4891_v54  ;;  %4619 = vmatpush3.bf16.msra.mxu1 %v4892_v19  ;;  %v4924_v54 = vld [vmem:[%s6170_s9 + $0x390] sm:$0xff]   ;;  %v4925_v19 = vld [vmem:[%s6170_s9 + $0x358] sm:$0xff]  }
 0xb33   : > { %4598 = vmatprep.subr.bf16.mxu0 %v4893_v55  ;;  %4620 = vmatprep.subr.bf16.mxu1 %v4894_v56  ;;  %v4926_v55 = vld [vmem:[%s6170_s9 + $0x3d8] sm:$0xff]  }
 0xb34   : > { %v4927_v56 = vld [vmem:[%s6170_s9 + $0x318] sm:$0xff]  }
 0xb36   : > { %4599 = vmatpush3.bf16.msra.mxu0 %v4895_v57  ;;  %4621 = vmatpush3.bf16.msra.mxu1 %v4896_v58  ;;  %v4928_v57 = vld [vmem:[%s6170_s9 + $0x398] sm:$0xff]   ;;  %v4929_v58 = vld [vmem:[%s6170_s9 + $0x360] sm:$0xff]  }
 0xb37   : > { %4600 = vmatprep.subr.bf16.mxu0 %v4897_v59  ;;  %4622 = vmatprep.subr.bf16.mxu1 %v4898_v60  ;;  %v4930_v59 = vld [vmem:[%s6170_s9 + $0x3e0] sm:$0xff]  }
 0xb38   : > { %v4931_v60 = vld [vmem:[%s6170_s9 + $0x320] sm:$0xff]  }
 0xb3a   : > { %4601 = vmatpush3.bf16.msra.mxu0 %v4899_v62  ;;  %4623 = vmatpush3.bf16.msra.mxu1 %v4900_v63  ;;  %v4932_v62 = vld [vmem:[%s6170_s9 + $0x3a0] sm:$0xff]   ;;  %v4933_v63 = vld [vmem:[%s6170_s9 + $0x368] sm:$0xff]  }
 0xb3b   : > { %4602 = vmatprep.subr.bf16.mxu0 %v4901_v3  ;;  %4624 = vmatprep.subr.bf16.mxu1 %v4902_v4  ;;  %v4934_v3 = vld [vmem:[%s6170_s9 + $0x3e8] sm:$0xff]  }
 0xb3c   : > { %v4935_v4 = vld [vmem:[%s6170_s9 + $0x328] sm:$0xff]  }
 0xb3e   : > { %4603 = vmatpush3.bf16.msra.mxu0 %v4903_v2  ;;  %4625 = vmatpush3.bf16.msra.mxu1 %v4904_v6  ;;  %v4936_v2 = vld [vmem:[%s6170_s9 + $0x3a8] sm:$0xff]   ;;  %v4937_v6 = vld [vmem:[%s6170_s9 + $0x370] sm:$0xff]  }
 0xb3f   : > { %4604 = vmatprep.subr.bf16.mxu0 %v4905_v8  ;;  %4626 = vmatprep.subr.bf16.mxu1 %v4906_v9  ;;  %v4938_v8 = vld [vmem:[%s6170_s9 + $0x3f0] sm:$0xff]   ;;  %v1691_v9 = vrot.slane %v5998_v7, %v1658_v0 }
 0xb40   : > { %v2558_v18 = vpop.f32.mrb[24].mxu0  ;;  %v2599_v13 = vpop.f32.mrb[16].mxu1  ;;  %v4940_v0 = vld [vmem:[%s6170_s9 + $0x3b0] sm:$0xff]  }
 0xb41   : > { %v2559_v12 = vadd.f32 %v2558_v18, %v1675_v10  ;;  %v2600_v20 = vadd.f32 %v2599_v13, %v1683_v11  ;;  %v2560_v23 = vpop.f32.mrb[25].mxu0  ;;  %v2601_v25 = vpop.f32.mrb[17].mxu1  ;;  %v1699_v10 = vrot.slane %v5998_v7, %v1666_v1  ;;  %v1695_v11 = vrot.slane %v5998_v7, %v1662_v17  ;;  %v4941_v1 = vld [vmem:[%s6170_s9 + $0x378] sm:$0xff]  }
 0xb42   : > { %v2561_v26 = vadd.f32 %v2560_v23, %v1679_v14  ;;  %v2602_v28 = vadd.f32 %v2601_v25, %v1687_v15  ;;  %v2562_v29 = vpop.f32.mrb[26].mxu0  ;;  %v2603_v31 = vpop.f32.mrb[18].mxu1  ;;  %4605 = vmatpush3.bf16.msra.mxu0 %v4907_v16  ;;  %4627 = vmatpush3.bf16.msra.mxu1 %v4908_v24  ;;  %v1703_v14 = vrot.slane %v5998_v7, %v1670_v5  ;;  %v4939_v15 = vld [vmem:[%s6170_s9 + $0x330] sm:$0xff]   ;;  %v4944_v23 = vld [vmem:[%s6170_s9 + $0x3b8] sm:$0xff]  }
 0xb43   : > { %v2696_v36 = vmax.f32 %v2559_v12, 0.0  ;;  %v2698_v32 = vmax.f32 %v2600_v20, 0.0  ;;  %v2563_v38 = vpop.f32.mrb[27].mxu0  ;;  %v2604_v39 = vpop.f32.mrb[19].mxu1  ;;  %4606 = vmatprep.subr.bf16.mxu0 %v4909_v61  ;;  %4628 = vmatprep.subr.bf16.mxu1 %v4910_v22  ;;  %v4943_v20 = vld [vmem:[%s6170_s9 + $0x338] sm:$0xff]  }
 0xb44   : > { %v2697_v41 = vmax.f32 %v2561_v26, 0.0  ;;  %v2699_v33 = vmax.f32 %v2602_v28, 0.0 }
 0xb45   : > { %v2712_v46 = vpack.c.bf16 %v2696_v36, %v2696_v36  ;;  %v2714_v47 = vpack.c.bf16 %v2698_v32, %v2698_v32 }
 0xb46   : > { %v2713_v42 = vpack.c.bf16 %v2697_v41, %v2697_v41  ;;  %v2715_v43 = vpack.c.bf16 %v2699_v33, %v2699_v33  ;;  %4607 = vmatpush3.bf16.msra.mxu0 %v4911_v34  ;;  %4629 = vmatpush3.bf16.msra.mxu1 %v4912_v35 }
 0xb47   : > { %4636 = vmatprep.subr.bf16.mxu0 %v4913_v40  ;;  %4658 = vmatprep.subr.bf16.mxu1 %v4914_v27  ;;  %v4337_v27 = vld [vmem:[%s6171_s10] ss:$0 sm:$0xff] }
 0xb48   : > { %3943 = vmatprep.mubr.bf16.mxu0 %v2713_v42  ;;  %3983 = vmatprep.mubr.bf16.mxu1 %v2715_v43 }
 0xb49   : > { %3944 = vmatmul.mubr.bf16.vlgmr.msra.gmra.mrb[40].mxu0 %v2712_v46  ;;  %3984 = vmatmul.mubr.bf16.vlgmr.msra.gmra.mrb[32].mxu1 %v2714_v47 }
 0xb4a   : > { %4637 = vmatpush3.bf16.msra.mxu0 %v4915_v44  ;;  %4659 = vmatpush3.bf16.msra.mxu1 %v4916_v45 }
 0xb4b   : > { %4638 = vmatprep.subr.bf16.mxu0 %v4917_v48  ;;  %4660 = vmatprep.subr.bf16.mxu1 %v4918_v49 }
 0xb4e   : > { %4639 = vmatpush3.bf16.msra.mxu0 %v4919_v50  ;;  %4661 = vmatpush3.bf16.msra.mxu1 %v4920_v51 }
 0xb4f   : > { %4640 = vmatprep.subr.bf16.mxu0 %v4921_v52  ;;  %4662 = vmatprep.subr.bf16.mxu1 %v4922_v30 }
 0xb52   : > { %4641 = vmatpush3.bf16.msra.mxu0 %v4923_v53  ;;  %4663 = vmatpush3.bf16.msra.mxu1 %v4924_v54 }
 0xb53   : > { %4642 = vmatprep.subr.bf16.mxu0 %v4925_v19  ;;  %4664 = vmatprep.subr.bf16.mxu1 %v4926_v55 }
 0xb56   : > { %4643 = vmatpush3.bf16.msra.mxu0 %v4927_v56  ;;  %4665 = vmatpush3.bf16.msra.mxu1 %v4928_v57 }
 0xb57   : > { %4644 = vmatprep.subr.bf16.mxu0 %v4929_v58  ;;  %4666 = vmatprep.subr.bf16.mxu1 %v4930_v59 }
 0xb5a   : > { %4645 = vmatpush3.bf16.msra.mxu0 %v4931_v60  ;;  %4667 = vmatpush3.bf16.msra.mxu1 %v4932_v62 }
 0xb5b   : > { %4646 = vmatprep.subr.bf16.mxu0 %v4933_v63  ;;  %4668 = vmatprep.subr.bf16.mxu1 %v4934_v3 }
 0xb5e   : > { %4647 = vmatpush3.bf16.msra.mxu0 %v4935_v4  ;;  %4669 = vmatpush3.bf16.msra.mxu1 %v4936_v2 }
 0xb5f   : > { %4648 = vmatprep.subr.bf16.mxu0 %v4937_v6  ;;  %4670 = vmatprep.subr.bf16.mxu1 %v4938_v8 }
 0xb60   : > { %v2640_v17 = vpop.f32.mrb[28].mxu0  ;;  %v2681_v5 = vpop.f32.mrb[20].mxu1 }
 0xb61   : > { %v2641_v7 = vadd.f32 %v2640_v17, %v1691_v9  ;;  %v2682_v16 = vadd.f32 %v2681_v5, %v1699_v10  ;;  %v2642_v24 = vpop.f32.mrb[29].mxu0  ;;  %v2683_v61 = vpop.f32.mrb[21].mxu1 }
 0xb62   : > { %v2643_v22 = vadd.f32 %v2642_v24, %v1695_v11  ;;  %v2684_v18 = vadd.f32 %v2683_v61, %v1703_v14  ;;  %v2644_v13 = vpop.f32.mrb[30].mxu0  ;;  %v2685_v12 = vpop.f32.mrb[22].mxu1  ;;  %4649 = vmatpush3.bf16.msra.mxu0 %v4939_v15  ;;  %4671 = vmatpush3.bf16.msra.mxu1 %v4940_v0 }
 0xb63   : > { %v2700_v25 = vmax.f32 %v2641_v7, 0.0  ;;  %v2702_v26 = vmax.f32 %v2682_v16, 0.0  ;;  %v2645_v28 = vpop.f32.mrb[31].mxu0  ;;  %v2686_v29 = vpop.f32.mrb[23].mxu1  ;;  %4650 = vmatprep.subr.bf16.mxu0 %v4941_v1  ;;  %4672 = vmatprep.subr.bf16.mxu1 %v4942_v21 }
 0xb64   : > { %v2701_v31 = vmax.f32 %v2643_v22, 0.0  ;;  %v2703_v34 = vmax.f32 %v2684_v18, 0.0 }
 0xb65   : > { %v2716_v32 = vpack.c.bf16 %v2700_v25, %v2700_v25  ;;  %v2718_v38 = vpack.c.bf16 %v2702_v26, %v2702_v26 }
 0xb66   : > { %v2717_v35 = vpack.c.bf16 %v2701_v31, %v2701_v31  ;;  %v2719_v36 = vpack.c.bf16 %v2703_v34, %v2703_v34  ;;  %4651 = vmatpush3.bf16.msra.mxu0 %v4943_v20  ;;  %4673 = vmatpush3.bf16.msra.mxu1 %v4944_v23 }
 0xb68   : > { %4023 = vmatprep.mubr.bf16.mxu0 %v2717_v35  ;;  %4063 = vmatprep.mubr.bf16.mxu1 %v2719_v36 }
 0xb69   : > { %4024 = vmatmul.mubr.bf16.vlgmr.msra.gmra.mrb[44].mxu0 %v2716_v32  ;;  %4064 = vmatmul.mubr.bf16.vlgmr.msra.gmra.mrb[36].mxu1 %v2718_v38  ;;  %v4467_v32 = vld [vmem:[%s6173_s12] ss:$0 sm:$0xff] }
 0xbdc   : > { %v4520_v39 = vpop.f32.mrb[32].mxu0  ;;  %v4542_v40 = vpop.f32.mrb[24].mxu1 }
 0xbdd   : > { %v4521_v41 = vpop.f32.mrb[33].mxu0  ;;  %v4543_v33 = vpop.f32.mrb[25].mxu1 }
 0xbde   : > { %v4522_v42 = vadd.f32 %v4521_v41, %v4520_v39  ;;  %v4544_v43 = vadd.f32 %v4543_v33, %v4542_v40  ;;  %v4523_v44 = vpop.f32.mrb[34].mxu0  ;;  %v4545_v45 = vpop.f32.mrb[26].mxu1 }
 0xbdf   : > { %v4524_v46 = vpop.f32.mrb[35].mxu0  ;;  %v4546_v47 = vpop.f32.mrb[27].mxu1 }
 0xbe0   : > { %v3786_v48 = vadd.f32 %v4522_v42, %v4337_v27 }
 0xbe2   : > { %v3826_v49 = vadd.f32 %v4544_v43, %v3786_v48 }
 0xbfc   : > { %v4564_v50 = vpop.f32.mrb[36].mxu0  ;;  %v4586_v51 = vpop.f32.mrb[28].mxu1 }
 0xbfd   : > { %v4565_v52 = vpop.f32.mrb[37].mxu0  ;;  %v4587_v30 = vpop.f32.mrb[29].mxu1 }
 0xbfe   : > { %v4566_v53 = vadd.f32 %v4565_v52, %v4564_v50  ;;  %v4588_v54 = vadd.f32 %v4587_v30, %v4586_v51  ;;  %v4567_v19 = vpop.f32.mrb[38].mxu0  ;;  %v4589_v55 = vpop.f32.mrb[30].mxu1 }
 0xbff   : > { %v4568_v56 = vpop.f32.mrb[39].mxu0  ;;  %v4590_v57 = vpop.f32.mrb[31].mxu1 }
 0xc00   : > { %v3866_v58 = vadd.f32 %v4566_v53, %v3826_v49 }
 0xc02   : > { %v3906_v59 = vadd.f32 %v4588_v54, %v3866_v58 }
 0xc1c   : > { %v4608_v60 = vpop.f32.mrb[40].mxu0  ;;  %v4630_v62 = vpop.f32.mrb[32].mxu1 }
 0xc1d   : > { %v4609_v63 = vpop.f32.mrb[41].mxu0  ;;  %v4631_v3 = vpop.f32.mrb[33].mxu1 }
 0xc1e   : > { %v4610_v4 = vadd.f32 %v4609_v63, %v4608_v60  ;;  %v4632_v2 = vadd.f32 %v4631_v3, %v4630_v62  ;;  %v4611_v6 = vpop.f32.mrb[42].mxu0  ;;  %v4633_v8 = vpop.f32.mrb[34].mxu1 }
 0xc1f   : > { %v4612_v9 = vpop.f32.mrb[43].mxu0  ;;  %v4634_v10 = vpop.f32.mrb[35].mxu1 }
 0xc20   : > { %v3946_v11 = vadd.f32 %v4610_v4, %v3906_v59 }
 0xc22   : > { %v3986_v14 = vadd.f32 %v4632_v2, %v3946_v11 }
 0xc3c   : > { %v4652_v15 = vpop.f32.mrb[44].mxu0  ;;  %v4674_v0 = vpop.f32.mrb[36].mxu1 }
 0xc3d   : > { %v4653_v1 = vpop.f32.mrb[45].mxu0  ;;  %v4675_v21 = vpop.f32.mrb[37].mxu1 }
 0xc3e   : > { %v4654_v17 = vadd.f32 %v4653_v1, %v4652_v15  ;;  %v4676_v5 = vadd.f32 %v4675_v21, %v4674_v0  ;;  %v4655_v7 = vpop.f32.mrb[46].mxu0  ;;  %v4677_v16 = vpop.f32.mrb[38].mxu1 }
 0xc3f   : > { %v4656_v24 = vpop.f32.mrb[47].mxu0  ;;  %v4678_v61 = vpop.f32.mrb[39].mxu1 }
 0xc40   : > { %v4026_v22 = vadd.f32 %v4654_v17, %v3986_v14 }
 0xc42   : > { %v4066_v18 = vadd.f32 %v4676_v5, %v4026_v22 }
 0xc44   : > { %v4071_v13 = vadd.f32 %v4066_v18, %v5416_v37  ;;  %v4466_v37 = vld [vmem:[%s6172_s11] ss:$0 sm:$0xff] }
 0xc46   : > { %v4074_v12 = vsel %vm882_vm6, %v4071_v13, 0.0 }
 0xc47   : > { %4075 = vadd.xlane.f32.xlu0 %v4074_v12 }
 0xcd4   : > { %v4076_v20 = vpop.xlane.xlu0 %4075 }
 0xcd5   : > { %v4077_v23 = vmul.f32 0.0078125, %v4076_v20 }
 0xcd7   : > { %v4078_v25 = vsub.f32 %v4071_v13, %v4077_v23 }
 0xcd9   : > { %v4079_v26 = vmul.f32 %v4078_v25, %v4078_v25 }
 0xcdb   : > { %v4080_v28 = vsel %vm882_vm6, %v4079_v26, 0.0 }
 0xcdc   : > { %4081 = vadd.xlane.f32.xlu1 %v4080_v28 }
 0xd69   : > { %v4082_v29 = vpop.xlane.xlu1 %4081 }
 0xd6a   : > { %v4083_v31 = vmul.f32 0.0078125, %v4082_v29 }
 0xd6c   : > { %v4084_v34 = vadd.f32 1e-05, %v4083_v31 }
 0xd6e   : > { %4963 = vrsqrt.f32 %v4084_v34 }
 0xd78   : > { %v4964_v35 = vpop.eup %4963 }
 0xd79   : > { %v4086_v36 = vmul.f32 %v4964_v35, %v4078_v25 }
 0xd7b   : > { %v4093_v38 = vmul.f32 %v4466_v37, %v4086_v36 }
 0xd7d   : > { %v4100_v39 = vadd.f32 %v4467_v32, %v4093_v38 }
 0xd7f   : > { %4101 = vst [vmem:[%s435_s21] sm:$0xf] %v4100_v39 }
 0xd80 PF: > { %s23_s25 = sadd.s32 1, %s4971_s25  }
 0xd81   : > { %p20_p4 = scmp.ge.s32.totalorder %s23_s25, 4  }
 0xd83   :  { %22 = sbr.rel (!%p20_p4) target bundleno = 1 (0x1), region = 102 }

// kernel: _lambda_.7
= control target key start
LH: loop header
LB: loop body
LE: loop exit
PB: predicated region body
PF: predicated region fallthrough
CT: control target
= control target key end

     0   :  { %18 = vsyncpa [#allocation3], 0  ;;  %s6346_s0 = inlined_call_operand.vmem [shape: f32[2,4,128], index: 0, kind: input, shape index: {}]   ;;  %s6347_s1 = inlined_call_operand.vmem [shape: bf16[128,384], index: 1, kind: input, shape index: {}]   ;;  %s6348_s2 = inlined_call_operand.vmem [shape: f32[1,384], index: 2, kind: input, shape index: {}]   ;;  %s6349_s3 = inlined_call_operand.vmem [shape: bf16[128,128], index: 3, kind: input, shape index: {}]   ;;  %s6350_s4 = inlined_call_operand.vmem [shape: f32[1,128], index: 4, kind: input, shape index: {}]   ;;  %s6351_s5 = inlined_call_operand.vmem [shape: f32[1,128], index: 5, kind: input, shape index: {}]   ;;  %s6352_s6 = inlined_call_operand.vmem [shape: f32[1,128], index: 6, kind: input, shape index: {}]   ;;  %s6353_s7 = inlined_call_operand.vmem [shape: bf16[128,2048], index: 7, kind: input, shape index: {}]   ;;  %s6354_s8 = inlined_call_operand.vmem [shape: f32[1,2048], index: 8, kind: input, shape index: {}]   ;;  %s6355_s9 = inlined_call_operand.vmem [shape: bf16[2048,128], index: 9, kind: input, shape index: {}]   ;;  %s6356_s10 = inlined_call_operand.vmem [shape: f32[1,128], index: 10, kind: input, shape index: {}]   ;;  %s6357_s11 = inlined_call_operand.vmem [shape: f32[1,128], index: 11, kind: input, shape index: {}]   ;;  %s6358_s12 = inlined_call_operand.vmem [shape: f32[1,128], index: 12, kind: input, shape index: {}]   ;;  %s6359_s13 = inlined_call_operand.hbm [shape: f32[2,4,128], index: 13, kind: output, shape index: {}]  }
   0x1   :  { %20 = vsyncpa [#allocation3 + $0x1], 0  ;;  %s5155_s25 = smov 0   ;;  %s5157_s26 = smov 0  }
   0x2   :  { %s5159_s27 = smov 0   ;;  %s5161_s28 = smov 0  }
   0x3 LB: > { %6364 = sst [smem:[#allocation5_spill]] %s5075_s27  ;;  %s5176_s29 = sadd.s32 4294967295, %s5079_s28   ;;  %s5079_s28 = sphi %s5161_s28, %s6373_s28   ;;  %s5075_s27 = sphi %s5159_s27, %s6375_s27   ;;  %s5071_s26 = sphi %s5157_s26, %s6377_s26   ;;  %s5067_s25 = sphi %s5155_s25, %s6376_s25  }
   0x4   : > { %s4175_s30 = sadd.s32 4294967294, %s5079_s28   ;;  %s5180_s14 = sadd.s32 1, %s5079_s28  }
   0x5   : > { %6365 = sst [smem:[#allocation6_spill]] %s5180_s14  ;;  %s311_s15 = sadd.s32 1, %s5075_s27 }
   0x6   : > { %s308_s16 = ssub.s32 %s5079_s28, %s5180_s14  ;;  %p321_p0 = scmp.ne.s32.totalorder %s5075_s27, %s5071_s26 }
   0x7   : > { %p309_p1 = scmp.eq.s32.totalorder %s308_s16, 0  ;;  %p322_p2 = scmp.eq.s32.totalorder %s5176_s29, 1 }
   0x8   : > { %p327_p3 = scmp.ne.s32.totalorder %s5071_s26, %s5067_s25  ;;  %p328_p4 = scmp.eq.s32.totalorder %s4175_s30, 1 }
   0x9   : > { %s5191_s17 = scalar_select %p309_p1, %s5075_s27, %s311_s15  }
   0xa   : > { %p5193_p5 = por %p322_p2, %p321_p0  ;;  %p5197_p6 = por %p328_p4, %p327_p3 }
   0xb   : > { %6366 = sst [smem:[#allocation7_spill]] %s5191_s17  ;;  %p4178_p7 = scmp.ge.s32.totalorder %s5079_s28, 1 }
   0xc   : > { %s6368_s19 = scalar_select %p5197_p6, 1, 0 }
   0xd   : > { %p389_p8 = scmp.lt.s32.totalorder %s5079_s28, 3 }
   0xe   : > { %6369 = sst [smem:[#allocation8_spill]] %s6368_s19 }
   0xf   : > { %p390_p9 = pnand %p4178_p7, %p389_p8 }
  0x10   : > { %v4829_v0 = vld [vmem:[%s6347_s1 + $0x4] ss:$12 sps:$4 sm:$0xff] (!%p390_p9)   ;;  %v4831_v1 = vld [vmem:[%s6347_s1] ss:$12 sps:$4 sm:$0xff] (!%p390_p9)   ;;  %v5081_v2 = vmov (!%p390_p9), 0   ;;  %p432_p10 = scmp.lt.s32.totalorder (!%p390_p9), %s5176_s29, 1  ;;  %v473_v20 = vlaneseq (!%p390_p9) }
  0x11   : > { %393 = sbr.rel (%p390_p9) target bundleno = 3480 (0xd98), region = 72  ;;  %648 = vmatprep.mubr.bf16.mxu0 (!%p390_p9), %v5081_v2  ;;  %616 = vmatprep.subr.bf16.mxu0 (!%p390_p9), %v4829_v0  ;;  %v4832_v3 = vld [vmem:[%s6347_s1 + $0x1c] ss:$12 sps:$4 sm:$0xff] (!%p390_p9)   ;;  %v4834_v4 = vld [vmem:[%s6347_s1 + $0x18] ss:$12 sps:$4 sm:$0xff] (!%p390_p9)   ;;  %v5082_v19 = vmov (!%p390_p9), 0.0  }
  0x12   : > { %617 = vmatpush1.bf16.msra.mxu0 (!%p390_p9), %v4831_v1  ;;  %v4835_v5 = vld [vmem:[%s6347_s1 + $0x34] ss:$12 sps:$4 sm:$0xff] (!%p390_p9)   ;;  %v4837_v6 = vld [vmem:[%s6347_s1 + $0x30] ss:$12 sps:$4 sm:$0xff] (!%p390_p9)   ;;  %v4838_v7 = vld [vmem:[%s6347_s1 + $0x4c] ss:$12 sps:$4 sm:$0xff] (!%p390_p9)   ;;  %4701 = vmatprep.subr.bf16.mxu1 (!%p390_p9), %v5082_v19 }
  0x13   : > { %618 = vmatprep.subr.bf16.mxu0 (!%p390_p9), %v4832_v3  ;;  %v4840_v8 = vld [vmem:[%s6347_s1 + $0x48] ss:$12 sps:$4 sm:$0xff] (!%p390_p9)   ;;  %v4841_v9 = vld [vmem:[%s6347_s1 + $0x64] ss:$12 sps:$4 sm:$0xff] (!%p390_p9)   ;;  %v4843_v10 = vld [vmem:[%s6347_s1 + $0x60] ss:$12 sps:$4 sm:$0xff] (!%p390_p9)  }
  0x14   : > { %v4844_v11 = vld [vmem:[%s6347_s1 + $0x7c] ss:$12 sps:$4 sm:$0xff] (!%p390_p9)   ;;  %v4846_v12 = vld [vmem:[%s6347_s1 + $0x78] ss:$12 sps:$4 sm:$0xff] (!%p390_p9)   ;;  %v4847_v13 = vld [vmem:[%s6347_s1 + $0x94] ss:$12 sps:$4 sm:$0xff] (!%p390_p9)  }
  0x15   : > { %v4849_v14 = vld [vmem:[%s6347_s1 + $0x90] ss:$12 sps:$4 sm:$0xff] (!%p390_p9)   ;;  %v4850_v15 = vld [vmem:[%s6347_s1 + $0xac] ss:$12 sps:$4 sm:$0xff] (!%p390_p9)   ;;  %v4852_v16 = vld [vmem:[%s6347_s1 + $0xa8] ss:$12 sps:$4 sm:$0xff] (!%p390_p9)  }
  0x16   : > { %619 = vmatpush1.bf16.msra.mxu0 (!%p390_p9), %v4834_v4  ;;  %vm5083_vm0 = vmmov (!%p390_p9), 0   ;;  %v5267_v21 = vshrl.u32 (!%p390_p9), %v473_v20, 7  ;;  %v5275_v23 = vld [vmem:[%s6348_s2] sm:$0x7] (!%p390_p9)  ;;  %v5282_v27 = vand.u32 (!%p390_p9), 127, %v473_v20  ;;  %vm776_vm5 = vcmask (!%p390_p9), 27648  }
  0x17   : > { %620 = vmatprep.subr.bf16.mxu0 (!%p390_p9), %v4835_v5  ;;  %4717 = vmatprep.mubr.msk.bf16.mxu1 (!%p390_p9), %vm5083_vm0, %v5082_v19  ;;  %v4853_v35 = vld [vmem:[%s6347_s1 + $0x8] ss:$12 sps:$4 sm:$0xff] (!%p390_p9)   ;;  %v4854_v36 = vld [vmem:[%s6347_s1 + $0x20] ss:$12 sps:$4 sm:$0xff] (!%p390_p9)   ;;  %v4855_v37 = vld [vmem:[%s6347_s1 + $0x38] ss:$12 sps:$4 sm:$0xff] (!%p390_p9)  }
  0x18   : > { %s433_s22 = scalar_select %p432_p10, %s5176_s29, 1  ;;  %v5270_v22 = vsub.s32 1, %v5267_v21  ;;  %v5278_v24 = vsub.s32 0, %v5267_v21  ;;  %vm700_vm1 = vcmp.lt.s32.totalorder %v5282_v27, 32  ;;  %vm789_vm2 = vcmp.ge.s32.totalorder %v5282_v27, 32  ;;  %4702 = vmatpush3.bf16.msra.mxu1 %v4853_v35 }
  0x19   : > { %vm790_vm3 = vcmp.lt.s32.totalorder %v5282_v27, 64  ;;  %4703 = vmatprep.subr.bf16.mxu1 %v5082_v19  ;;  %v4856_v38 = vld [vmem:[%s6347_s1 + $0x50] ss:$12 sps:$4 sm:$0xff]   ;;  %v4857_v39 = vld [vmem:[%s6347_s1 + $0x68] ss:$12 sps:$4 sm:$0xff]   ;;  %v5350_v61 = vsub.s32 2, %v5267_v21 }
  0x1a   : > { %s4180_s15 = sshll.u32 %s433_s22, 2  ;;  %621 = vmatpush1.bf16.msra.mxu0 %v4837_v6  ;;  %v480_v25 = vrot.slane %v5275_v23, %v5270_v22  ;;  %v476_v28 = vrot.slane %v5275_v23, %v5278_v24  ;;  %vm5301_vm4 = vmand %vm789_vm2, %vm790_vm3  ;;  %v4858_v40 = vld [vmem:[%s6347_s1 + $0x80] ss:$12 sps:$4 sm:$0xff]   ;;  %v4859_v41 = vld [vmem:[%s6347_s1 + $0x98] ss:$12 sps:$4 sm:$0xff]   ;;  %vm882_vm6 = vcmask 1043456  }
  0x1b   : > { %622 = vmatprep.subr.bf16.mxu0 %v4838_v7  ;;  %s435_s23 = scalar_lea.vmem %s6346_s0, %s4180_s15  ;;  %v4860_v42 = vld [vmem:[%s6347_s1 + $0xb0] ss:$12 sps:$4 sm:$0xff]   ;;  %v484_v63 = vrot.slane %v5275_v23, %v5350_v61  ;;  %vm878_vm7 = vcmask 31744   ;;  %vm1032_vm8 = vcmp.ge.s32.totalorder %v5282_v27, 64  ;;  %vm1033_vm9 = vcmp.lt.s32.totalorder %v5282_v27, 96  ;;  %s429_s20 = sand.u32 1, %s5071_s26  }
  0x1c   : > { %v5257_v17 = vld [vmem:[%s435_s23] sm:$0xf]  ;;  %4704 = vmatpush3.bf16.msra.mxu1 %v4854_v36  ;;  %vm1034_vm10 = vmand %vm1032_vm8, %vm1033_vm9  ;;  %vm1198_vm11 = vcmp.ge.s32.totalorder %v5282_v27, 96  ;;  %s4179_s21 = sshll.u32 %s429_s20, 2  ;;  %s4488_s15 = sshll.u32 %s5176_s29, 6 }
  0x1d   : > { %v438_v18 = vpack.c.bf16 %v5257_v17, %v5257_v17  ;;  %4705 = vmatprep.subr.bf16.mxu1 %v5082_v19  ;;  %s431_s14 = scalar_lea.vmem [#allocation2], %s4179_s21  ;;  %s6304_s19 = scalar_lea.hbm %s6359_s13, %s4488_s15 }
  0x1e   : > { %623 = vmatpush1.bf16.msra.mxu0 %v4840_v8  ;;  %s4116_s22 = sshll.u32 %s431_s14, 4  ;;  %s4103_s17 = scalar_lea.sflag [#allocation3], %s429_s20  ;;  %s6306_s22 = int_to_ptr.vmem [resolvable:$true] %s4116_s22 }
  0x1f   : > { %624 = vmatprep.subr.bf16.mxu0 %v4841_v9  ;;  %s5017_s23 = scalar_lea.vmem %s6306_s22, 64  ;;  %s5084_s29 = smov [#allocation2]  }
  0x20   : > { %4706 = vmatpush3.bf16.msra.mxu1 %v4855_v37  ;;  %p5018_p11 = scmp.ne.s32.totalorder %s6306_s22, %s5017_s23  ;;  %s5021_s21 = sshll.u32 %s5084_s29, 4  ;;  %s5022_s21 = int_to_ptr.vmem [resolvable:$false] %s5021_s21 }
  0x21   : > { %4707 = vmatprep.subr.bf16.mxu1 %v5082_v19  ;;  %s5023_s24 = scalar_lea.vmem %s5022_s21, 128  ;;  %p5024_p0 = scmp.lt.s32.totalorder %s6306_s22, %s5022_s21 }
  0x22   : > { %625 = vmatpush1.bf16.msra.mxu0 %v4843_v10  ;;  %p5019_p12 = pnand %p5018_p11, %p5193_p5  ;;  %p5025_p1 = scmp.lt.s32.totalorder %s5023_s24, %s5017_s23 }
  0x23   : > { %626 = vmatprep.subr.bf16.mxu0 %v4844_v11 }
  0x24   : > { %4708 = vmatpush3.bf16.msra.mxu1 %v4856_v38  ;;  %p5020_p13 = pneg %p5019_p12  ;;  %p5026_p2 = por %p5025_p1, %p5024_p0 }
  0x25   : > { %4709 = vmatprep.subr.bf16.mxu1 %v5082_v19 }
  0x26   : > { %627 = vmatpush1.bf16.msra.mxu0 %v4846_v12  ;;  %p5027_p3 = pnand %p5026_p2, %p5020_p13 }
  0x27   : > { %628 = vmatprep.subr.bf16.mxu0 %v4847_v13 }
  0x28   : > { %4710 = vmatpush3.bf16.msra.mxu1 %v4857_v39 }
  0x29   : > { %4711 = vmatprep.subr.bf16.mxu1 %v5082_v19 }
  0x2a   : > { %629 = vmatpush1.bf16.msra.mxu0 %v4849_v14 }
  0x2b   : > { %630 = vmatprep.subr.bf16.mxu0 %v4850_v15 }
  0x2c   : > { %4712 = vmatpush3.bf16.msra.mxu1 %v4858_v40 }
  0x2d   : > { %4713 = vmatprep.subr.bf16.mxu1 %v5082_v19 }
  0x2e   : > { %631 = vmatpush1.bf16.msra.mxu0 %v4852_v16 }
  0x2f   : > { %4721 = vmatprep.subr.mxu0 %v5082_v19 }
  0x30   : > { %4714 = vmatpush3.bf16.msra.mxu1 %v4859_v41 }
  0x31   : > { %649 = vmatmul.mubr.bf16.vlgmr.msra.gmra.mrb[0].mxu0 %v438_v18  ;;  %4715 = vmatprep.subr.bf16.mxu1 %v5082_v19 }
  0x32   : > { %4723 = vmatprep.mubr.msk.f32.mxu0 %vm5083_vm0, %v5082_v19 }
  0x34   : > { %4716 = vmatpush3.bf16.msra.mxu1 %v4860_v42  ;;  %v4862_v42 = vld [vmem:[%s6349_s3 + $0x8] sm:$0xff]  }
  0x35   : > { %4761 = vmatprep.subr.bf16.mxu1 %v5082_v19 }
  0x37   : > { %4718 = vmatmul.mubr.bf16.vlgmr.msra.gmra.mrb[0].mxu1 %v438_v18 }
  0x38   : > { %4777 = vmatprep.mubr.msk.bf16.mxu1 %vm5083_vm0, %v5082_v19 }
 0x104   : > { %v650_v26 = vpop.f32.mrb[0].mxu0 }
 0x105   : > { %v652_v29 = vpop.f32.mrb[1].mxu0  ;;  %v5290_v33 = vadd.f32 %v650_v26, %v476_v28 }
 0x106   : > { %v5286_v30 = vadd.f32 %v652_v29, %v480_v25  ;;  %v654_v31 = vpop.f32.mrb[2].mxu0 }
 0x107   : > { %v655_v32 = vpop.f32.mrb[3].mxu0 }
 0x108   : > { %4722 = vmatpush3.xpose.msra.mxu0 %v5286_v30 }
 0x109   : > { %4726 = vmatprep.subr.mxu0 %v5082_v19 }
 0x10a   : > { %v691_v62 = vpop.f32.mrb[0].mxu1 }
 0x10b   : > { %4724 = vmatmul.mubr.msk.f32.vlgmr.msra.gmra.mrb[4].mxu0 %vm700_vm1, %v5290_v33  ;;  %v4719_v0 = vpop.f32.mrb[1].mxu1  ;;  %v692_v3 = vadd.f32 %v691_v62, %v484_v63  ;;  %v1508_v63 = vld [vmem:[%s6353_s7] sm:$0xff] }
 0x10c   : > { %4727 = vmatpush3.xpose.msra.mxu0 %v5286_v30  ;;  %4728 = vmatprep.mubr.msk.f32.mxu0 %vm5083_vm0, %v5082_v19  ;;  %v694_v1 = vpop.f32.mrb[2].mxu1  ;;  %v1516_v0 = vld [vmem:[%s6353_s7 + $0x40] sm:$0xff] }
 0x10d   : > { %4731 = vmatprep.subr.mxu0 %v5082_v19  ;;  %v4720_v4 = vpop.f32.mrb[3].mxu1  ;;  %v877_v5 = vsel %vm5301_vm4, %v692_v3, 0.0  ;;  %v788_v10 = vsel %vm700_vm1, %v692_v3, 0.0  ;;  %v1120_v13 = vsel %vm1034_vm10, %v692_v3, 0.0  ;;  %v1286_v34 = vsel %vm1198_vm11, %v692_v3, 0.0  ;;  %v1509_v1 = vld [vmem:[%s6353_s7 + $0x8] sm:$0xff] }
 0x10e   : > { %v4228_v3 = vcombine.low %v1508_v63, %v1516_v0  ;;  %v4229_v4 = vcombine.high %v1508_v63, %v1516_v0 }
 0x10f   : > { %4729 = vmatmul.mubr.msk.f32.vlgmr.msra.gmra.mrb[6].mxu0 %vm5301_vm4, %v5290_v33 }
 0x110   : > { %4733 = vmatprep.mubr.msk.f32.mxu0 %vm5083_vm0, %v5082_v19  ;;  %4732 = vmatpush3.msk.msra.mxu0 %vm882_vm6, %v877_v5  ;;  %v1524_v5 = vld [vmem:[%s6353_s7 + $0x80] sm:$0xff] }
 0x111   : > { %4736 = vmatprep.subr.mxu0 %v5082_v19 }
 0x1de   : > { %v771_v43 = vpop.f32.mrb[4].mxu0 }
 0x1df   : > { %v4725_v44 = vpop.f32.mrb[5].mxu0  ;;  %v775_v48 = vmul.f32 0.17677669, %v771_v43  ;;  %v4863_v43 = vld [vmem:[%s6349_s3 + $0x10] sm:$0xff]  }
 0x1e0   : > { %v4864_v44 = vld [vmem:[%s6349_s3 + $0x18] sm:$0xff]  }
 0x1e1   : > { %v777_v50 = vsel %vm776_vm5, %v775_v48, -inf }
 0x1e2   : > { %v861_v45 = vpop.f32.mrb[6].mxu0 }
 0x1e3   : > { %v865_v46 = vmul.f32 0.17677669, %v861_v45  ;;  %v4730_v47 = vpop.f32.mrb[7].mxu0  ;;  %v4865_v45 = vld [vmem:[%s6349_s3 + $0x20] sm:$0xff]  }
 0x1e4   : > { %v4867_v47 = vld [vmem:[%s6349_s3 + $0x30] sm:$0xff]  }
 0x1e5   : > { %v866_v49 = vsel %vm776_vm5, %v865_v46, -inf }
 0x1e6   : > { %867 = vmax.xlane.f32.xlu0 %v866_v49 }
 0x1ea   : > { %778 = vmax.xlane.f32.xlu0 %v777_v50 }
 0x273   : > { %v868_v51 = vpop.xlane.xlu0 %867 }
 0x274   : > { %v869_v52 = vsub.f32 %v865_v46, %v868_v51  ;;  %v4866_v46 = vld [vmem:[%s6349_s3 + $0x28] sm:$0xff]   ;;  %v4868_v51 = vld [vmem:[%s6349_s3 + $0x38] sm:$0xff]  }
 0x276   : > { %v870_v53 = vmul.f32 1.442695, %v869_v52 }
 0x277   : > { %v779_v54 = vpop.xlane.xlu0 %778 }
 0x278   : > { %4997 = vpow2.f32 %v870_v53  ;;  %v780_v55 = vsub.f32 %v775_v48, %v779_v54 }
 0x27a   : > { %v781_v56 = vmul.f32 1.442695, %v780_v55 }
 0x27c   : > { %4999 = vpow2.f32 %v781_v56 }
 0x282   : > { %v4998_v57 = vpop.eup %4997 }
 0x283   : > { %v872_v58 = vsel %vm776_vm5, %v4998_v57, 0.0 }
 0x284   : > { %873 = vadd.xlane.f32.xlu1 %v872_v58 }
 0x286   : > { %v5000_v59 = vpop.eup %4999 }
 0x287   : > { %v783_v60 = vsel %vm776_vm5, %v5000_v59, 0.0 }
 0x288   : > { %784 = vadd.xlane.f32.xlu1 %v783_v60 }
 0x311   : > { %v874_v6 = vpop.xlane.xlu1 %873 }
 0x312   : > { %5001 = vrcp.f32 %v874_v6  ;;  %v1532_v6 = vld [vmem:[%s6353_s7 + $0xc0] sm:$0xff] }
 0x315   : > { %v785_v7 = vpop.xlane.xlu1 %784 }
 0x316   : > { %5003 = vrcp.f32 %v785_v7 }
 0x31c   : > { %v5002_v8 = vpop.eup %5001 }
 0x31d   : > { %v876_v9 = vmul.f32 %v5002_v8, %v4998_v57 }
 0x31f   : > { %4734 = vmatmul.mubr.msk.f32.vlgmr.msra.gmra.mrb[8].mxu0 %vm878_vm7, %v876_v9  ;;  %v4245_v9 = vcombine.high %v1524_v5, %v1532_v6 }
 0x320   : > { %4737 = vmatpush3.msk.msra.mxu0 %vm882_vm6, %v788_v10  ;;  %4738 = vmatprep.mubr.msk.f32.mxu0 %vm5083_vm0, %v5082_v19  ;;  %v5004_v11 = vpop.eup %5003  ;;  %v1525_v10 = vld [vmem:[%s6353_s7 + $0x88] sm:$0xff] }
 0x321   : > { %4741 = vmatprep.subr.mxu0 %v5082_v19  ;;  %v787_v12 = vmul.f32 %v5004_v11, %v5000_v59  ;;  %v1533_v11 = vld [vmem:[%s6353_s7 + $0xc8] sm:$0xff] }
 0x327   : > { %4739 = vmatmul.mubr.msk.f32.vlgmr.msra.gmra.mrb[8].mxu0 %vm878_vm7, %v787_v12  ;;  %v1540_v12 = vld [vmem:[%s6353_s7 + $0x100] sm:$0xff] }
 0x328   : > { %4742 = vmatpush3.xpose.msra.mxu0 %v5286_v30  ;;  %4743 = vmatprep.mubr.msk.f32.mxu0 %vm5083_vm0, %v5082_v19 }
 0x329   : > { %4746 = vmatprep.subr.mxu0 %v5082_v19 }
 0x32b   : > { %4744 = vmatmul.mubr.msk.f32.vlgmr.msra.gmra.mrb[10].mxu0 %vm1034_vm10, %v5290_v33 }
 0x32c   : > { %4747 = vmatpush3.msk.msra.mxu0 %vm882_vm6, %v1120_v13  ;;  %4748 = vmatprep.mubr.msk.f32.mxu0 %vm5083_vm0, %v5082_v19  ;;  %v4247_v13 = vcombine.high %v1525_v10, %v1533_v11 }
 0x32d   : > { %4751 = vmatprep.subr.mxu0 %v5082_v19 }
 0x3fe   : > { %v1104_v14 = vpop.f32.mrb[10].mxu0 }
 0x3ff   : > { %v1108_v15 = vmul.f32 0.17677669, %v1104_v14  ;;  %v4745_v16 = vpop.f32.mrb[11].mxu0  ;;  %v1548_v14 = vld [vmem:[%s6353_s7 + $0x140] sm:$0xff] }
 0x400   : > { %v1549_v16 = vld [vmem:[%s6353_s7 + $0x148] sm:$0xff] }
 0x401   : > { %v1109_v18 = vsel %vm776_vm5, %v1108_v15, -inf }
 0x402   : > { %1110 = vmax.xlane.f32.xlu0 %v1109_v18  ;;  %v4244_v18 = vcombine.low %v1524_v5, %v1532_v6  ;;  %v1629_v5 = vld [vmem:[%s6353_s7 + $0x3c8] sm:$0xff] }
 0x48f   : > { %v1111_v20 = vpop.xlane.xlu0 %1110 }
 0x490   : > { %v1112_v23 = vsub.f32 %v1108_v15, %v1111_v20  ;;  %v1541_v15 = vld [vmem:[%s6353_s7 + $0x108] sm:$0xff]  ;;  %v4246_v20 = vcombine.low %v1525_v10, %v1533_v11  ;;  %v1518_v10 = vld [vmem:[%s6353_s7 + $0x50] sm:$0xff]  ;;  %v1511_v11 = vld [vmem:[%s6353_s7 + $0x18] sm:$0xff] }
 0x492   : > { %v1113_v25 = vmul.f32 1.442695, %v1112_v23  ;;  %v4261_v23 = vcombine.high %v1540_v12, %v1548_v14 }
 0x494   : > { %5005 = vpow2.f32 %v1113_v25  ;;  %v4263_v25 = vcombine.high %v1541_v15, %v1549_v16 }
 0x49e   : > { %v5006_v26 = vpop.eup %5005 }
 0x49f   : > { %v1115_v28 = vsel %vm776_vm5, %v5006_v26, 0.0 }
 0x4a0   : > { %1116 = vadd.xlane.f32.xlu1 %v1115_v28  ;;  %v4262_v28 = vcombine.low %v1541_v15, %v1549_v16 }
 0x52d   : > { %v1117_v29 = vpop.xlane.xlu1 %1116 }
 0x52e   : > { %5007 = vrcp.f32 %v1117_v29 }
 0x538   : > { %v5008_v31 = vpop.eup %5007 }
 0x539   : > { %v1119_v32 = vmul.f32 %v5008_v31, %v5006_v26  ;;  %v4260_v26 = vcombine.low %v1540_v12, %v1548_v14  ;;  %v1519_v14 = vld [vmem:[%s6353_s7 + $0x58] sm:$0xff] }
 0x53a   : > { %v4234_v15 = vcombine.low %v1511_v11, %v1519_v14  ;;  %v4235_v16 = vcombine.high %v1511_v11, %v1519_v14  ;;  %v1622_v14 = vld [vmem:[%s6353_s7 + $0x390] sm:$0xff] }
 0x53b   : > { %4749 = vmatmul.mubr.msk.f32.vlgmr.msra.gmra.mrb[8].mxu0 %vm878_vm7, %v1119_v32 }
 0x53c   : > { %4752 = vmatpush3.xpose.msra.mxu0 %v5286_v30  ;;  %4753 = vmatprep.mubr.msk.f32.mxu0 %vm5083_vm0, %v5082_v19 }
 0x53d   : > { %4756 = vmatprep.subr.mxu0 %v5082_v19 }
 0x53f   : > { %4754 = vmatmul.mubr.msk.f32.vlgmr.msra.gmra.mrb[12].mxu0 %vm1198_vm11, %v5290_v33  ;;  %v4861_v33 = vld [vmem:[%s6349_s3] sm:$0xff]  }
 0x540   : > { %4757 = vmatpush3.msk.msra.mxu0 %vm882_vm6, %v1286_v34  ;;  %4758 = vmatprep.mubr.msk.f32.mxu0 %vm5083_vm0, %v5082_v19 }
 0x541   : > { %4762 = vmatpush3.bf16.msra.mxu1 %v4861_v33  ;;  %2360 = vmatprep.subr.bf16.mxu0 %v4229_v4  ;;  %v1572_v33 = vld [vmem:[%s6353_s7 + $0x200] sm:$0xff]  ;;  %v1621_v4 = vld [vmem:[%s6353_s7 + $0x388] sm:$0xff] }
 0x542   : > { %4763 = vmatprep.subr.bf16.mxu1 %v5082_v19 }
 0x545   : > { %4764 = vmatpush3.bf16.msra.mxu1 %v4862_v42  ;;  %v1580_v42 = vld [vmem:[%s6353_s7 + $0x240] sm:$0xff] }
 0x546   : > { %4765 = vmatprep.subr.bf16.mxu1 %v5082_v19 }
 0x549   : > { %4766 = vmatpush3.bf16.msra.mxu1 %v4863_v43  ;;  %v1573_v43 = vld [vmem:[%s6353_s7 + $0x208] sm:$0xff] }
 0x54a   : > { %4767 = vmatprep.subr.bf16.mxu1 %v5082_v19 }
 0x54d   : > { %4768 = vmatpush3.bf16.msra.mxu1 %v4864_v44  ;;  %v4293_v44 = vcombine.high %v1572_v33, %v1580_v42 }
 0x54e   : > { %4769 = vmatprep.subr.bf16.mxu1 %v5082_v19 }
 0x551   : > { %4770 = vmatpush3.bf16.msra.mxu1 %v4865_v45  ;;  %v1581_v45 = vld [vmem:[%s6353_s7 + $0x248] sm:$0xff] }
 0x552   : > { %4771 = vmatprep.subr.bf16.mxu1 %v5082_v19 }
 0x555   : > { %4772 = vmatpush3.bf16.msra.mxu1 %v4866_v46  ;;  %v4292_v46 = vcombine.low %v1572_v33, %v1580_v42  ;;  %v1551_v33 = vld [vmem:[%s6353_s7 + $0x158] sm:$0xff] }
 0x556   : > { %4773 = vmatprep.subr.bf16.mxu1 %v5082_v19 }
 0x559   : > { %4774 = vmatpush3.bf16.msra.mxu1 %v4867_v47  ;;  %v4294_v47 = vcombine.low %v1573_v43, %v1581_v45 }
 0x55a   : > { %4775 = vmatprep.subr.bf16.mxu1 %v5082_v19  ;;  %v4217_v19 = vld [vmem:[%s6350_s4] ss:$0 sm:$0xff] }
 0x55d   : > { %4776 = vmatpush3.bf16.msra.mxu1 %v4868_v51  ;;  %v1589_v51 = vld [vmem:[%s6353_s7 + $0x288] sm:$0xff] }
 0x612   : > { %v1270_v35 = vpop.f32.mrb[12].mxu0 }
 0x613   : > { %v1274_v36 = vmul.f32 0.17677669, %v1270_v35  ;;  %v4755_v37 = vpop.f32.mrb[13].mxu0 }
 0x614   : > { %v1564_v37 = vld [vmem:[%s6353_s7 + $0x1c0] sm:$0xff] }
 0x615   : > { %v1275_v30 = vsel %vm776_vm5, %v1274_v36, -inf }
 0x616   : > { %1276 = vmax.xlane.f32.xlu0 %v1275_v30  ;;  %v1557_v30 = vld [vmem:[%s6353_s7 + $0x188] sm:$0xff] }
 0x6a3   : > { %v1277_v38 = vpop.xlane.xlu0 %1276 }
 0x6a4   : > { %v1278_v39 = vsub.f32 %v1274_v36, %v1277_v38  ;;  %v1556_v36 = vld [vmem:[%s6353_s7 + $0x180] sm:$0xff] }
 0x6a5   : > { %v4277_v38 = vcombine.high %v1556_v36, %v1564_v37 }
 0x6a6   : > { %v1279_v40 = vmul.f32 1.442695, %v1278_v39  ;;  %v1565_v39 = vld [vmem:[%s6353_s7 + $0x1c8] sm:$0xff] }
 0x6a8   : > { %5009 = vpow2.f32 %v1279_v40  ;;  %v4276_v40 = vcombine.low %v1556_v36, %v1564_v37  ;;  %v1527_v36 = vld [vmem:[%s6353_s7 + $0x98] sm:$0xff] }
 0x6b2   : > { %v5010_v27 = vpop.eup %5009 }
 0x6b3   : > { %v1281_v41 = vsel %vm776_vm5, %v5010_v27, 0.0 }
 0x6b4   : > { %1282 = vadd.xlane.f32.xlu1 %v1281_v41  ;;  %v4279_v41 = vcombine.high %v1557_v30, %v1565_v39 }
 0x741   : > { %v1283_v48 = vpop.xlane.xlu1 %1282 }
 0x742   : > { %5011 = vrcp.f32 %v1283_v48  ;;  %v4295_v48 = vcombine.high %v1573_v43, %v1581_v45 }
 0x74c   : > { %v5012_v49 = vpop.eup %5011 }
 0x74d   : > { %v1285_v50 = vmul.f32 %v5012_v49, %v5010_v27  ;;  %v4278_v27 = vcombine.low %v1557_v30, %v1565_v39  ;;  %v1588_v49 = vld [vmem:[%s6353_s7 + $0x280] sm:$0xff] }
 0x74f   : > { %4759 = vmatmul.mubr.msk.f32.vlgmr.msra.gmra.mrb[8].mxu0 %vm878_vm7, %v1285_v50  ;;  %v1596_v50 = vld [vmem:[%s6353_s7 + $0x2c0] sm:$0xff] }
 0x750   : > { %2392 = vmatprep.mubr.bf16.mxu0 %v5081_v2  ;;  %2361 = vmatpush1.bf16.msra.mxu0 %v4228_v3  ;;  %v1628_v3 = vld [vmem:[%s6353_s7 + $0x3c0] sm:$0xff] }
 0x751   : > { %2362 = vmatprep.subr.bf16.mxu0 %v4245_v9  ;;  %v1510_v9 = vld [vmem:[%s6353_s7 + $0x10] sm:$0xff] }
 0x752   : > { %v4232_v12 = vcombine.low %v1510_v9, %v1518_v10 }
 0x754   : > { %2363 = vmatpush1.bf16.msra.mxu0 %v4244_v18 }
 0x755   : > { %2364 = vmatprep.subr.bf16.mxu0 %v4261_v23 }
 0x758   : > { %2365 = vmatpush1.bf16.msra.mxu0 %v4260_v26  ;;  %v4226_v26 = vld [vmem:[%s6351_s5] ss:$0 sm:$0xff] }
 0x759   : > { %2366 = vmatprep.subr.bf16.mxu0 %v4277_v38 }
 0x75c   : > { %2367 = vmatpush1.bf16.msra.mxu0 %v4276_v40  ;;  %v1542_v40 = vld [vmem:[%s6353_s7 + $0x110] sm:$0xff] }
 0x75d   : > { %2368 = vmatprep.subr.bf16.mxu0 %v4293_v44 }
 0x760   : > { %2369 = vmatpush1.bf16.msra.mxu0 %v4292_v46  ;;  %v1558_v46 = vld [vmem:[%s6353_s7 + $0x190] sm:$0xff] }
 0x822   : > { %v1359_v52 = vpop.f32.mrb[8].mxu0 }
 0x823   : > { %v1364_v53 = vpack.c.bf16 %v1359_v52, %v1359_v52  ;;  %v4760_v54 = vpop.f32.mrb[9].mxu0  ;;  %v4309_v52 = vcombine.high %v1588_v49, %v1596_v50 }
 0x824   : > { %v4308_v54 = vcombine.low %v1588_v49, %v1596_v50  ;;  %v1567_v49 = vld [vmem:[%s6353_s7 + $0x1d8] sm:$0xff] }
 0x825   : > { %4778 = vmatmul.mubr.bf16.vlgmr.msra.gmra.mrb[4].mxu1 %v1364_v53  ;;  %v1597_v53 = vld [vmem:[%s6353_s7 + $0x2c8] sm:$0xff]  ;;  %2370 = vmatprep.subr.bf16.mxu0 %v4309_v52 }
 0x826   : > { %2433 = vmatprep.mubr.bf16.mxu1 %v5081_v2  ;;  %2371 = vmatpush1.bf16.msra.mxu0 %v4308_v54  ;;  %v1574_v54 = vld [vmem:[%s6353_s7 + $0x210] sm:$0xff] }
 0x8f8   : > { %v1470_v55 = vpop.f32.mrb[4].mxu1 }
 0x8f9   : > { %v1471_v56 = vadd.f32 %v4217_v19, %v1470_v55  ;;  %v4779_v57 = vpop.f32.mrb[5].mxu1  ;;  %v4310_v19 = vcombine.low %v1589_v51, %v1597_v53  ;;  %v4311_v55 = vcombine.high %v1589_v51, %v1597_v53 }
 0x8fa   : > { %v1473_v58 = vpop.f32.mrb[6].mxu1  ;;  %v1612_v57 = vld [vmem:[%s6353_s7 + $0x340] sm:$0xff] }
 0x8fb   : > { %v4780_v59 = vpop.f32.mrb[7].mxu1  ;;  %v1476_v60 = vadd.f32 %v1471_v56, %v5257_v17  ;;  %v1517_v17 = vld [vmem:[%s6353_s7 + $0x48] sm:$0xff]  ;;  %v1604_v56 = vld [vmem:[%s6353_s7 + $0x300] sm:$0xff] }
 0x8fc   : > { %v4230_v7 = vcombine.low %v1509_v1, %v1517_v17  ;;  %v4231_v8 = vcombine.high %v1509_v1, %v1517_v17  ;;  %v1605_v58 = vld [vmem:[%s6353_s7 + $0x308] sm:$0xff]  ;;  %v4325_v59 = vcombine.high %v1604_v56, %v1612_v57  ;;  %v1620_v1 = vld [vmem:[%s6353_s7 + $0x380] sm:$0xff] }
 0x8fd   : > { %v1479_v62 = vsel %vm882_vm6, %v1476_v60, 0.0  ;;  %v4341_v17 = vcombine.high %v1620_v1, %v1628_v3  ;;  %v4340_v6 = vcombine.low %v1620_v1, %v1628_v3  ;;  %v1599_v1 = vld [vmem:[%s6353_s7 + $0x2d8] sm:$0xff] }
 0x8fe   : > { %1480 = vadd.xlane.f32.xlu0 %v1479_v62  ;;  %2401 = vmatprep.subr.bf16.mxu1 %v4231_v8  ;;  %v4324_v62 = vcombine.low %v1604_v56, %v1612_v57  ;;  %v4343_v8 = vcombine.high %v1621_v4, %v1629_v5  ;;  %v1583_v56 = vld [vmem:[%s6353_s7 + $0x258] sm:$0xff] }
 0x8ff   : > { %2402 = vmatpush1.bf16.msra.mxu1 %v4230_v7  ;;  %2372 = vmatprep.subr.bf16.mxu0 %v4325_v59  ;;  %v4342_v7 = vcombine.low %v1621_v4, %v1629_v5 }
 0x900   : > { %2403 = vmatprep.subr.bf16.mxu1 %v4247_v13  ;;  %2373 = vmatpush1.bf16.msra.mxu0 %v4324_v62  ;;  %v4233_v13 = vcombine.high %v1510_v9, %v1518_v10  ;;  %v1590_v62 = vld [vmem:[%s6353_s7 + $0x290] sm:$0xff]  ;;  %v1615_v9 = vld [vmem:[%s6353_s7 + $0x358] sm:$0xff] }
 0x901   : > { %2374 = vmatprep.subr.bf16.mxu0 %v4341_v17 }
 0x903   : > { %2404 = vmatpush1.bf16.msra.mxu1 %v4246_v20 }
 0x904   : > { %2405 = vmatprep.subr.bf16.mxu1 %v4263_v25  ;;  %2375 = vmatpush1.bf16.msra.mxu0 %v4340_v6  ;;  %v1606_v6 = vld [vmem:[%s6353_s7 + $0x310] sm:$0xff] }
 0x905   : > { %2442 = vmatprep.subr.bf16.mxu0 %v4233_v13 }
 0x907   : > { %2406 = vmatpush1.bf16.msra.mxu1 %v4262_v28 }
 0x908   : > { %2407 = vmatprep.subr.bf16.mxu1 %v4279_v41  ;;  %v1543_v41 = vld [vmem:[%s6353_s7 + $0x118] sm:$0xff] }
 0x909   : > { %v4267_v45 = vcombine.high %v1543_v41, %v1551_v33  ;;  %v4266_v51 = vcombine.low %v1543_v41, %v1551_v33  ;;  %v1537_v41 = vld [vmem:[%s6353_s7 + $0xe8] sm:$0xff] }
 0x90b   : > { %2408 = vmatpush1.bf16.msra.mxu1 %v4278_v27  ;;  %v1550_v27 = vld [vmem:[%s6353_s7 + $0x150] sm:$0xff] }
 0x90c   : > { %2409 = vmatprep.subr.bf16.mxu1 %v4295_v48  ;;  %v4265_v44 = vcombine.high %v1542_v40, %v1550_v27  ;;  %v1559_v48 = vld [vmem:[%s6353_s7 + $0x198] sm:$0xff]  ;;  %v4264_v50 = vcombine.low %v1542_v40, %v1550_v27  ;;  %v1536_v40 = vld [vmem:[%s6353_s7 + $0xe0] sm:$0xff]  ;;  %v1529_v27 = vld [vmem:[%s6353_s7 + $0xa8] sm:$0xff] }
 0x90d   : > { %v4283_v53 = vcombine.high %v1559_v48, %v1567_v49 }
 0x90f   : > { %2410 = vmatpush1.bf16.msra.mxu1 %v4294_v47  ;;  %v1566_v47 = vld [vmem:[%s6353_s7 + $0x1d0] sm:$0xff] }
 0x910   : > { %2411 = vmatprep.subr.bf16.mxu1 %v4311_v55  ;;  %v4281_v52 = vcombine.high %v1558_v46, %v1566_v47  ;;  %v1575_v55 = vld [vmem:[%s6353_s7 + $0x218] sm:$0xff]  ;;  %v4280_v57 = vcombine.low %v1558_v46, %v1566_v47  ;;  %v1552_v46 = vld [vmem:[%s6353_s7 + $0x160] sm:$0xff]  ;;  %v1545_v47 = vld [vmem:[%s6353_s7 + $0x128] sm:$0xff] }
 0x911   : > { %v4298_v4 = vcombine.low %v1575_v55, %v1583_v56 }
 0x913   : > { %2412 = vmatpush1.bf16.msra.mxu1 %v4310_v19  ;;  %v1582_v19 = vld [vmem:[%s6353_s7 + $0x250] sm:$0xff] }
 0x914   : > { %v4297_v59 = vcombine.high %v1574_v54, %v1582_v19  ;;  %v4296_v3 = vcombine.low %v1574_v54, %v1582_v19  ;;  %v1568_v54 = vld [vmem:[%s6353_s7 + $0x1e0] sm:$0xff]  ;;  %v1561_v19 = vld [vmem:[%s6353_s7 + $0x1a8] sm:$0xff] }
 0x98b   : > { %v1481_v29 = vpop.xlane.xlu0 %1480 }
 0x98c   : > { %v1483_v31 = vmul.f32 0.0078125, %v1481_v29  ;;  %v4227_v29 = vld [vmem:[%s6352_s6] ss:$0 sm:$0xff] }
 0x98e   : > { %v5466_v32 = vsub.f32 %v1476_v60, %v1483_v31  ;;  %v1613_v60 = vld [vmem:[%s6353_s7 + $0x348] sm:$0xff] }
 0x98f   : > { %v4326_v63 = vcombine.low %v1605_v58, %v1613_v60  ;;  %v4327_v0 = vcombine.high %v1605_v58, %v1613_v60  ;;  %v4282_v58 = vcombine.low %v1559_v48, %v1567_v49  ;;  %v4299_v60 = vcombine.high %v1575_v55, %v1583_v56  ;;  %v1553_v48 = vld [vmem:[%s6353_s7 + $0x168] sm:$0xff] }
 0x990   : > { %v1485_v34 = vmul.f32 %v5466_v32, %v5466_v32  ;;  %v1569_v55 = vld [vmem:[%s6353_s7 + $0x1e8] sm:$0xff] }
 0x991   : > { %2413 = vmatprep.subr.bf16.mxu1 %v4327_v0  ;;  %v1591_v0 = vld [vmem:[%s6353_s7 + $0x298] sm:$0xff] }
 0x992   : > { %v1486_v35 = vsel %vm882_vm6, %v1485_v34, 0.0  ;;  %2414 = vmatpush1.bf16.msra.mxu1 %v4326_v63  ;;  %v1526_v34 = vld [vmem:[%s6353_s7 + $0x90] sm:$0xff]  ;;  %v4315_v5 = vcombine.high %v1591_v0, %v1599_v1  ;;  %v4314_v11 = vcombine.low %v1591_v0, %v1599_v1  ;;  %v1585_v0 = vld [vmem:[%s6353_s7 + $0x268] sm:$0xff] }
 0x993   : > { %1487 = vadd.xlane.f32.xlu1 %v1486_v35  ;;  %2415 = vmatprep.subr.bf16.mxu1 %v4343_v8  ;;  %v1534_v35 = vld [vmem:[%s6353_s7 + $0xd0] sm:$0xff]  ;;  %v1607_v8 = vld [vmem:[%s6353_s7 + $0x318] sm:$0xff] }
 0x994   : > { %v4249_v38 = vcombine.high %v1526_v34, %v1534_v35  ;;  %v4248_v42 = vcombine.low %v1526_v34, %v1534_v35  ;;  %v1598_v63 = vld [vmem:[%s6353_s7 + $0x2d0] sm:$0xff]  ;;  %v4331_v13 = vcombine.high %v1607_v8, %v1615_v9  ;;  %v1521_v34 = vld [vmem:[%s6353_s7 + $0x68] sm:$0xff] }
 0x995   : > { %v4313_v17 = vcombine.high %v1590_v62, %v1598_v63  ;;  %v4312_v10 = vcombine.low %v1590_v62, %v1598_v63  ;;  %v1584_v62 = vld [vmem:[%s6353_s7 + $0x260] sm:$0xff]  ;;  %v1577_v63 = vld [vmem:[%s6353_s7 + $0x228] sm:$0xff] }
 0x996   : > { %2416 = vmatpush1.bf16.msra.mxu1 %v4342_v7  ;;  %v1614_v7 = vld [vmem:[%s6353_s7 + $0x350] sm:$0xff] }
 0x997   : > { %2483 = vmatprep.subr.bf16.mxu1 %v4235_v16  ;;  %v1623_v16 = vld [vmem:[%s6353_s7 + $0x398] sm:$0xff] }
 0xa20   : > { %v1488_v18 = vpop.xlane.xlu1 %1487 }
 0xa21   : > { %v1489_v20 = vmul.f32 0.0078125, %v1488_v18  ;;  %v1631_v18 = vld [vmem:[%s6353_s7 + $0x3d8] sm:$0xff] }
 0xa23   : > { %v1490_v23 = vadd.f32 1e-05, %v1489_v20  ;;  %v4328_v20 = vcombine.low %v1606_v6, %v1614_v7 }
 0xa25   : > { %5013 = vrsqrt.f32 %v1490_v23  ;;  %v4330_v23 = vcombine.low %v1607_v8, %v1615_v9  ;;  %v1601_v8 = vld [vmem:[%s6353_s7 + $0x2e8] sm:$0xff] }
 0xa2f   : > { %v5014_v25 = vpop.eup %5013 }
 0xa30   : > { %v1492_v28 = vmul.f32 %v5014_v25, %v5466_v32  ;;  %v1535_v32 = vld [vmem:[%s6353_s7 + $0xd8] sm:$0xff] }
 0xa31   : > { %v4251_v39 = vcombine.high %v1527_v36, %v1535_v32  ;;  %v4250_v43 = vcombine.low %v1527_v36, %v1535_v32  ;;  %v4346_v36 = vcombine.low %v1623_v16, %v1631_v18 }
 0xa32   : > { %v1499_v31 = vmul.f32 %v4226_v26, %v1492_v28  ;;  %v4347_v26 = vcombine.high %v1623_v16, %v1631_v18  ;;  %v1512_v28 = vld [vmem:[%s6353_s7 + $0x20] sm:$0xff]  ;;  %v1617_v16 = vld [vmem:[%s6353_s7 + $0x368] sm:$0xff] }
 0xa34   : > { %v5562_v37 = vadd.f32 %v4227_v29, %v1499_v31  ;;  %v1520_v29 = vld [vmem:[%s6353_s7 + $0x60] sm:$0xff]  ;;  %v1513_v31 = vld [vmem:[%s6353_s7 + $0x28] sm:$0xff] }
 0xa35   : > { %v4237_v32 = vcombine.high %v1512_v28, %v1520_v29  ;;  %v4236_v33 = vcombine.low %v1512_v28, %v1520_v29  ;;  %v1632_v28 = vld [vmem:[%s6353_s7 + $0x3e0] sm:$0xff]  ;;  %v1625_v29 = vld [vmem:[%s6353_s7 + $0x3a8] sm:$0xff] }
 0xa36   : > { %v5566_v30 = vpack.c.bf16 %v5562_v37, %v5562_v37 }
 0xa38   : > { %2393 = vmatmul.mubr.bf16.vlgmr.msra.gmra.mrb[16].mxu0 %v5566_v30  ;;  %2434 = vmatmul.mubr.bf16.vlgmr.msra.gmra.mrb[8].mxu1 %v5566_v30 }
 0xa39   : > { %2443 = vmatpush1.bf16.msra.mxu0 %v4232_v12  ;;  %2484 = vmatpush1.bf16.msra.mxu1 %v4234_v15  ;;  %v4329_v12 = vcombine.high %v1606_v6, %v1614_v7  ;;  %v1630_v15 = vld [vmem:[%s6353_s7 + $0x3d0] sm:$0xff]  ;;  %v1600_v6 = vld [vmem:[%s6353_s7 + $0x2e0] sm:$0xff]  ;;  %v1593_v7 = vld [vmem:[%s6353_s7 + $0x2a8] sm:$0xff] }
 0xa3a   : > { %2444 = vmatprep.subr.bf16.mxu0 %v4249_v38  ;;  %2485 = vmatprep.subr.bf16.mxu1 %v4251_v39  ;;  %v4345_v25 = vcombine.high %v1622_v14, %v1630_v15  ;;  %v4344_v35 = vcombine.low %v1622_v14, %v1630_v15  ;;  %v4239_v38 = vcombine.high %v1513_v31, %v1521_v34  ;;  %v1528_v39 = vld [vmem:[%s6353_s7 + $0xa0] sm:$0xff]  ;;  %v1609_v15 = vld [vmem:[%s6353_s7 + $0x328] sm:$0xff] }
 0xa3b   : > { %2474 = vmatprep.mubr.bf16.mxu0 %v5081_v2  ;;  %2515 = vmatprep.mubr.bf16.mxu1 %v5081_v2  ;;  %v4252_v49 = vcombine.low %v1528_v39, %v1536_v40  ;;  %v1616_v14 = vld [vmem:[%s6353_s7 + $0x360] sm:$0xff] }
 0xa3d   : > { %2445 = vmatpush1.bf16.msra.mxu0 %v4248_v42  ;;  %2486 = vmatpush1.bf16.msra.mxu1 %v4250_v43  ;;  %v4238_v42 = vcombine.low %v1513_v31, %v1521_v34  ;;  %v4253_v43 = vcombine.high %v1528_v39, %v1536_v40  ;;  %v1633_v31 = vld [vmem:[%s6353_s7 + $0x3e8] sm:$0xff]  ;;  %v1522_v39 = vld [vmem:[%s6353_s7 + $0x70] sm:$0xff]  ;;  %v1515_v40 = vld [vmem:[%s6353_s7 + $0x38] sm:$0xff] }
 0xa3e   : > { %2446 = vmatprep.subr.bf16.mxu0 %v4265_v44  ;;  %2487 = vmatprep.subr.bf16.mxu1 %v4267_v45  ;;  %v4255_v44 = vcombine.high %v1529_v27, %v1537_v41  ;;  %v1544_v45 = vld [vmem:[%s6353_s7 + $0x120] sm:$0xff] }
 0xa3f   : > { %v4268_v56 = vcombine.low %v1544_v45, %v1552_v46 }
 0xa41   : > { %2447 = vmatpush1.bf16.msra.mxu0 %v4264_v50  ;;  %2488 = vmatpush1.bf16.msra.mxu1 %v4266_v51  ;;  %v4254_v50 = vcombine.low %v1529_v27, %v1537_v41  ;;  %v4269_v51 = vcombine.high %v1544_v45, %v1552_v46  ;;  %v1523_v27 = vld [vmem:[%s6353_s7 + $0x78] sm:$0xff]  ;;  %v1538_v45 = vld [vmem:[%s6353_s7 + $0xf0] sm:$0xff] }
 0xa42   : > { %2448 = vmatprep.subr.bf16.mxu0 %v4281_v52  ;;  %2489 = vmatprep.subr.bf16.mxu1 %v4283_v53  ;;  %v4271_v52 = vcombine.high %v1545_v47, %v1553_v48  ;;  %v1560_v53 = vld [vmem:[%s6353_s7 + $0x1a0] sm:$0xff]  ;;  %v1531_v46 = vld [vmem:[%s6353_s7 + $0xb8] sm:$0xff] }
 0xa43   : > { %v4284_v1 = vcombine.low %v1560_v53, %v1568_v54 }
 0xa45   : > { %2449 = vmatpush1.bf16.msra.mxu0 %v4280_v57  ;;  %2490 = vmatpush1.bf16.msra.mxu1 %v4282_v58  ;;  %v4270_v57 = vcombine.low %v1545_v47, %v1553_v48  ;;  %v4285_v58 = vcombine.high %v1560_v53, %v1568_v54  ;;  %v1539_v47 = vld [vmem:[%s6353_s7 + $0xf8] sm:$0xff]  ;;  %v1554_v53 = vld [vmem:[%s6353_s7 + $0x170] sm:$0xff] }
 0xa46   : > { %2450 = vmatprep.subr.bf16.mxu0 %v4297_v59  ;;  %2491 = vmatprep.subr.bf16.mxu1 %v4299_v60  ;;  %v4287_v59 = vcombine.high %v1561_v19, %v1569_v55  ;;  %v1576_v60 = vld [vmem:[%s6353_s7 + $0x220] sm:$0xff]  ;;  %v1547_v54 = vld [vmem:[%s6353_s7 + $0x138] sm:$0xff] }
 0xa47   : > { %v4300_v9 = vcombine.low %v1576_v60, %v1584_v62 }
 0xa49   : > { %2451 = vmatpush1.bf16.msra.mxu0 %v4296_v3  ;;  %2492 = vmatpush1.bf16.msra.mxu1 %v4298_v4  ;;  %v4286_v3 = vcombine.low %v1561_v19, %v1569_v55  ;;  %v4301_v4 = vcombine.high %v1576_v60, %v1584_v62  ;;  %v1555_v19 = vld [vmem:[%s6353_s7 + $0x178] sm:$0xff]  ;;  %v1570_v60 = vld [vmem:[%s6353_s7 + $0x1f0] sm:$0xff] }
 0xa4a   : > { %2452 = vmatprep.subr.bf16.mxu0 %v4313_v17  ;;  %2493 = vmatprep.subr.bf16.mxu1 %v4315_v5  ;;  %v4303_v17 = vcombine.high %v1577_v63, %v1585_v0  ;;  %v1592_v5 = vld [vmem:[%s6353_s7 + $0x2a0] sm:$0xff]  ;;  %v1563_v62 = vld [vmem:[%s6353_s7 + $0x1b8] sm:$0xff] }
 0xa4b   : > { %v4316_v18 = vcombine.low %v1592_v5, %v1600_v6 }
 0xa4d   : > { %2453 = vmatpush1.bf16.msra.mxu0 %v4312_v10  ;;  %2494 = vmatpush1.bf16.msra.mxu1 %v4314_v11  ;;  %v4302_v10 = vcombine.low %v1577_v63, %v1585_v0  ;;  %v4317_v11 = vcombine.high %v1592_v5, %v1600_v6  ;;  %v1571_v63 = vld [vmem:[%s6353_s7 + $0x1f8] sm:$0xff]  ;;  %v1586_v5 = vld [vmem:[%s6353_s7 + $0x270] sm:$0xff] }
 0xa4e   : > { %2454 = vmatprep.subr.bf16.mxu0 %v4329_v12  ;;  %2495 = vmatprep.subr.bf16.mxu1 %v4331_v13  ;;  %v4319_v12 = vcombine.high %v1593_v7, %v1601_v8  ;;  %v1608_v13 = vld [vmem:[%s6353_s7 + $0x320] sm:$0xff]  ;;  %v1587_v6 = vld [vmem:[%s6353_s7 + $0x278] sm:$0xff] }
 0xa4f   : > { %v4332_v34 = vcombine.low %v1608_v13, %v1616_v14 }
 0xa51   : > { %2455 = vmatpush1.bf16.msra.mxu0 %v4328_v20  ;;  %2496 = vmatpush1.bf16.msra.mxu1 %v4330_v23  ;;  %v4318_v20 = vcombine.low %v1593_v7, %v1601_v8  ;;  %v4333_v23 = vcombine.high %v1608_v13, %v1616_v14  ;;  %v4290_v8 = vcombine.low %v1563_v62, %v1571_v63  ;;  %v1595_v13 = vld [vmem:[%s6353_s7 + $0x2b8] sm:$0xff] }
 0xa52   : > { %2456 = vmatprep.subr.bf16.mxu0 %v4345_v25  ;;  %2497 = vmatprep.subr.bf16.mxu1 %v4347_v26  ;;  %v4335_v25 = vcombine.high %v1609_v15, %v1617_v16  ;;  %v1624_v26 = vld [vmem:[%s6353_s7 + $0x3a0] sm:$0xff]  ;;  %v1603_v14 = vld [vmem:[%s6353_s7 + $0x2f8] sm:$0xff] }
 0xa53   : > { %v4348_v41 = vcombine.low %v1624_v26, %v1632_v28 }
 0xa55   : > { %2457 = vmatpush1.bf16.msra.mxu0 %v4344_v35  ;;  %2498 = vmatpush1.bf16.msra.mxu1 %v4346_v36  ;;  %v4334_v35 = vcombine.low %v1609_v15, %v1617_v16  ;;  %v4349_v36 = vcombine.high %v1624_v26, %v1632_v28  ;;  %v1611_v26 = vld [vmem:[%s6353_s7 + $0x338] sm:$0xff] }
 0xa56   : > { %2524 = vmatprep.subr.bf16.mxu0 %v4237_v32  ;;  %2565 = vmatprep.subr.bf16.mxu1 %v4239_v38  ;;  %v4351_v32 = vcombine.high %v1625_v29, %v1633_v31  ;;  %v1514_v38 = vld [vmem:[%s6353_s7 + $0x30] sm:$0xff]  ;;  %v1619_v28 = vld [vmem:[%s6353_s7 + $0x378] sm:$0xff] }
 0xa57   : > { %v4240_v48 = vcombine.low %v1514_v38, %v1522_v39 }
 0xa58   : > { %2475 = vmatmul.mubr.bf16.vlgmr.msra.gmra.mrb[20].mxu0 %v5566_v30  ;;  %2516 = vmatmul.mubr.bf16.vlgmr.msra.gmra.mrb[12].mxu1 %v5566_v30 }
 0xa59   : > { %2525 = vmatpush1.bf16.msra.mxu0 %v4236_v33  ;;  %2566 = vmatpush1.bf16.msra.mxu1 %v4238_v42  ;;  %v4350_v33 = vcombine.low %v1625_v29, %v1633_v31  ;;  %v4241_v42 = vcombine.high %v1514_v38, %v1522_v39  ;;  %v4322_v31 = vcombine.low %v1595_v13, %v1603_v14  ;;  %v1627_v38 = vld [vmem:[%s6353_s7 + $0x3b8] sm:$0xff] }
 0xa5a   : > { %2526 = vmatprep.subr.bf16.mxu0 %v4253_v43  ;;  %2567 = vmatprep.subr.bf16.mxu1 %v4255_v44  ;;  %v4243_v43 = vcombine.high %v1515_v40, %v1523_v27  ;;  %v1530_v44 = vld [vmem:[%s6353_s7 + $0xb0] sm:$0xff]  ;;  %v1635_v39 = vld [vmem:[%s6353_s7 + $0x3f8] sm:$0xff] }
 0xa5b   : > { %2556 = vmatprep.mubr.bf16.mxu0 %v5081_v2  ;;  %2597 = vmatprep.mubr.bf16.mxu1 %v5081_v2  ;;  %v4256_v55 = vcombine.low %v1530_v44, %v1538_v45 }
 0xa5d   : > { %2527 = vmatpush1.bf16.msra.mxu0 %v4252_v49  ;;  %2568 = vmatpush1.bf16.msra.mxu1 %v4254_v50  ;;  %v4242_v49 = vcombine.low %v1515_v40, %v1523_v27  ;;  %v4257_v50 = vcombine.high %v1530_v44, %v1538_v45  ;;  %v4338_v27 = vcombine.low %v1611_v26, %v1619_v28  ;;  %v4869_v44 = vld [vmem:[%s6355_s9 + $0x40] sm:$0xff]  }
 0xa5e   : > { %2528 = vmatprep.subr.bf16.mxu0 %v4269_v51  ;;  %2569 = vmatprep.subr.bf16.mxu1 %v4271_v52  ;;  %v4259_v51 = vcombine.high %v1531_v46, %v1539_v47  ;;  %v1546_v52 = vld [vmem:[%s6353_s7 + $0x130] sm:$0xff]  ;;  %v4870_v45 = vld [vmem:[%s6355_s9 + $0xc0] sm:$0xff]  }
 0xa5f   : > { %v4272_v0 = vcombine.low %v1546_v52, %v1554_v53 }
 0xa61   : > { %2529 = vmatpush1.bf16.msra.mxu0 %v4268_v56  ;;  %2570 = vmatpush1.bf16.msra.mxu1 %v4270_v57  ;;  %v4258_v56 = vcombine.low %v1531_v46, %v1539_v47  ;;  %v4273_v57 = vcombine.high %v1546_v52, %v1554_v53  ;;  %v4871_v46 = vld [vmem:[%s6355_s9] sm:$0xff]   ;;  %v4877_v52 = vld [vmem:[%s6355_s9 + $0x50] sm:$0xff]  }
 0xa62   : > { %2530 = vmatprep.subr.bf16.mxu0 %v4285_v58  ;;  %2571 = vmatprep.subr.bf16.mxu1 %v4287_v59  ;;  %v4275_v58 = vcombine.high %v1547_v54, %v1555_v19  ;;  %v1562_v59 = vld [vmem:[%s6353_s7 + $0x1b0] sm:$0xff]  ;;  %v4872_v47 = vld [vmem:[%s6355_s9 + $0x80] sm:$0xff]  }
 0xa63   : > { %v4288_v7 = vcombine.low %v1562_v59, %v1570_v60  ;;  %v4879_v53 = vld [vmem:[%s6355_s9 + $0x10] sm:$0xff]  }
 0xa65   : > { %2531 = vmatpush1.bf16.msra.mxu0 %v4284_v1  ;;  %2572 = vmatpush1.bf16.msra.mxu1 %v4286_v3  ;;  %v4274_v1 = vcombine.low %v1547_v54, %v1555_v19  ;;  %v4289_v3 = vcombine.high %v1562_v59, %v1570_v60  ;;  %v4880_v54 = vld [vmem:[%s6355_s9 + $0x90] sm:$0xff]   ;;  %v4881_v19 = vld [vmem:[%s6355_s9 + $0x58] sm:$0xff]   ;;  %v4886_v59 = vld [vmem:[%s6355_s9 + $0xe0] sm:$0xff]  }
 0xa66   : > { %2532 = vmatprep.subr.bf16.mxu0 %v4301_v4  ;;  %2573 = vmatprep.subr.bf16.mxu1 %v4303_v17  ;;  %v4291_v4 = vcombine.high %v1563_v62, %v1571_v63  ;;  %v1578_v17 = vld [vmem:[%s6353_s7 + $0x230] sm:$0xff]  ;;  %v4887_v60 = vld [vmem:[%s6355_s9 + $0x20] sm:$0xff]   ;;  %v4889_v63 = vld [vmem:[%s6355_s9 + $0x68] sm:$0xff]  }
 0xa67   : > { %v4304_v15 = vcombine.low %v1578_v17, %v1586_v5  ;;  %v4888_v62 = vld [vmem:[%s6355_s9 + $0xa0] sm:$0xff]  }
 0xa69   : > { %2533 = vmatpush1.bf16.msra.mxu0 %v4300_v9  ;;  %2574 = vmatpush1.bf16.msra.mxu1 %v4302_v10  ;;  %v4305_v9 = vcombine.high %v1578_v17, %v1586_v5  ;;  %v4894_v17 = vld [vmem:[%s6355_s9 + $0xf0] sm:$0xff]  }
 0xa6a   : > { %2534 = vmatprep.subr.bf16.mxu0 %v4317_v11  ;;  %2575 = vmatprep.subr.bf16.mxu1 %v4319_v12  ;;  %v1594_v11 = vld [vmem:[%s6353_s7 + $0x2b0] sm:$0xff] }
 0xa6b   : > { %v1602_v12 = vld [vmem:[%s6353_s7 + $0x2f0] sm:$0xff] }
 0xa6c   : > { %v4320_v29 = vcombine.low %v1594_v11, %v1602_v12  ;;  %v4895_v5 = vld [vmem:[%s6355_s9 + $0x30] sm:$0xff]  }
 0xa6d   : > { %2535 = vmatpush1.bf16.msra.mxu0 %v4316_v18  ;;  %2576 = vmatpush1.bf16.msra.mxu1 %v4318_v20  ;;  %v4321_v18 = vcombine.high %v1594_v11, %v1602_v12  ;;  %v4323_v20 = vcombine.high %v1595_v13, %v1603_v14  ;;  %v4902_v11 = vld [vmem:[%s6355_s9 + $0x1c0] sm:$0xff]   ;;  %v1654_v13 = vsub.s32 3, %v5267_v21 }
 0xa6e   : > { %2536 = vmatprep.subr.bf16.mxu0 %v4333_v23  ;;  %2577 = vmatprep.subr.bf16.mxu1 %v4335_v25  ;;  %v1610_v23 = vld [vmem:[%s6353_s7 + $0x330] sm:$0xff]  ;;  %v5951_v12 = vld [vmem:[%s6354_s8] sm:$0xff] }
 0xa6f   : > { %v1618_v25 = vld [vmem:[%s6353_s7 + $0x370] sm:$0xff]  ;;  %v1643_v14 = vrot.slane %v5951_v12, %v5278_v24 }
 0xa70   : > { %v4336_v40 = vcombine.low %v1610_v23, %v1618_v25 }
 0xa71   : > { %2537 = vmatpush1.bf16.msra.mxu0 %v4332_v34  ;;  %2578 = vmatpush1.bf16.msra.mxu1 %v4334_v35  ;;  %v4337_v34 = vcombine.high %v1610_v23, %v1618_v25  ;;  %v4339_v35 = vcombine.high %v1611_v26, %v1619_v28 }
 0xa72   : > { %2538 = vmatprep.subr.bf16.mxu0 %v4349_v36  ;;  %2579 = vmatprep.subr.bf16.mxu1 %v4351_v32  ;;  %v1626_v36 = vld [vmem:[%s6353_s7 + $0x3b0] sm:$0xff] }
 0xa73   : > { %v1634_v32 = vld [vmem:[%s6353_s7 + $0x3f0] sm:$0xff] }
 0xa75   : > { %2539 = vmatpush1.bf16.msra.mxu0 %v4348_v41  ;;  %2580 = vmatpush1.bf16.msra.mxu1 %v4350_v33  ;;  %v4353_v41 = vcombine.high %v1626_v36, %v1634_v32  ;;  %v4355_v33 = vcombine.high %v1627_v38, %v1635_v39 }
 0xa76   : > { %2606 = vmatprep.subr.bf16.mxu0 %v4241_v42  ;;  %2647 = vmatprep.subr.bf16.mxu1 %v4243_v43  ;;  %v4352_v42 = vcombine.low %v1626_v36, %v1634_v32  ;;  %v4354_v43 = vcombine.low %v1627_v38, %v1635_v39 }
 0xa78   : > { %2557 = vmatmul.mubr.bf16.vlgmr.msra.gmra.mrb[24].mxu0 %v5566_v30  ;;  %2598 = vmatmul.mubr.bf16.vlgmr.msra.gmra.mrb[16].mxu1 %v5566_v30 }
 0xa79   : > { %2607 = vmatpush1.bf16.msra.mxu0 %v4240_v48  ;;  %2648 = vmatpush1.bf16.msra.mxu1 %v4242_v49  ;;  %v4873_v48 = vld [vmem:[%s6355_s9 + $0x48] sm:$0xff]  }
 0xa7a   : > { %2608 = vmatprep.subr.bf16.mxu0 %v4257_v50  ;;  %2649 = vmatprep.subr.bf16.mxu1 %v4259_v51  ;;  %v4874_v49 = vld [vmem:[%s6355_s9 + $0xc8] sm:$0xff]  }
 0xa7b   : > { %2638 = vmatprep.mubr.bf16.mxu0 %v5081_v2  ;;  %2679 = vmatprep.mubr.bf16.mxu1 %v5081_v2  ;;  %v1579_v2 = vld [vmem:[%s6353_s7 + $0x238] sm:$0xff]  ;;  %v4875_v50 = vld [vmem:[%s6355_s9 + $0x8] sm:$0xff]  }
 0xa7c   : > { %v4307_v10 = vcombine.high %v1579_v2, %v1587_v6  ;;  %v4306_v16 = vcombine.low %v1579_v2, %v1587_v6  ;;  %v4876_v51 = vld [vmem:[%s6355_s9 + $0x88] sm:$0xff]   ;;  %v4896_v2 = vld [vmem:[%s6355_s9 + $0xb0] sm:$0xff]   ;;  %v4897_v6 = vld [vmem:[%s6355_s9 + $0x78] sm:$0xff]  }
 0xa7d   : > { %2609 = vmatpush1.bf16.msra.mxu0 %v4256_v55  ;;  %2650 = vmatpush1.bf16.msra.mxu1 %v4258_v56  ;;  %v4882_v55 = vld [vmem:[%s6355_s9 + $0xd8] sm:$0xff]  }
 0xa7e   : > { %2610 = vmatprep.subr.bf16.mxu0 %v4273_v57  ;;  %2651 = vmatprep.subr.bf16.mxu1 %v4275_v58  ;;  %v4883_v56 = vld [vmem:[%s6355_s9 + $0x18] sm:$0xff]   ;;  %v4885_v58 = vld [vmem:[%s6355_s9 + $0x60] sm:$0xff]  }
 0xa7f   : > { %v4884_v57 = vld [vmem:[%s6355_s9 + $0x98] sm:$0xff]  }
 0xa81   : > { %2611 = vmatpush1.bf16.msra.mxu0 %v4272_v0  ;;  %2652 = vmatpush1.bf16.msra.mxu1 %v4274_v1  ;;  %v4890_v0 = vld [vmem:[%s6355_s9 + $0xe8] sm:$0xff]  }
 0xa82   : > { %2612 = vmatprep.subr.bf16.mxu0 %v4289_v3  ;;  %2653 = vmatprep.subr.bf16.mxu1 %v4291_v4  ;;  %v4891_v1 = vld [vmem:[%s6355_s9 + $0x28] sm:$0xff]   ;;  %v4893_v4 = vld [vmem:[%s6355_s9 + $0x70] sm:$0xff]  }
 0xa83   : > { %v4892_v3 = vld [vmem:[%s6355_s9 + $0xa8] sm:$0xff]  }
 0xa85   : > { %2613 = vmatpush1.bf16.msra.mxu0 %v4288_v7  ;;  %2654 = vmatpush1.bf16.msra.mxu1 %v4290_v8  ;;  %v4898_v7 = vld [vmem:[%s6355_s9 + $0xf8] sm:$0xff]  }
 0xa86   : > { %2614 = vmatprep.subr.bf16.mxu0 %v4305_v9  ;;  %2655 = vmatprep.subr.bf16.mxu1 %v4307_v10  ;;  %v4899_v8 = vld [vmem:[%s6355_s9 + $0x38] sm:$0xff]   ;;  %v4901_v10 = vld [vmem:[%s6355_s9 + $0x140] sm:$0xff]  }
 0xa87   : > { %v4900_v9 = vld [vmem:[%s6355_s9 + $0xb8] sm:$0xff]  }
 0xa89   : > { %2615 = vmatpush1.bf16.msra.mxu0 %v4304_v15  ;;  %2656 = vmatpush1.bf16.msra.mxu1 %v4306_v16  ;;  %v1651_v15 = vrot.slane %v5951_v12, %v5350_v61  ;;  %v1647_v16 = vrot.slane %v5951_v12, %v5270_v22 }
 0xa8a   : > { %2616 = vmatprep.subr.bf16.mxu0 %v4321_v18  ;;  %2657 = vmatprep.subr.bf16.mxu1 %v4323_v20  ;;  %v1655_v18 = vrot.slane %v5951_v12, %v1654_v13 }
 0xa8d   : > { %2617 = vmatpush1.bf16.msra.mxu0 %v4320_v29  ;;  %2658 = vmatpush1.bf16.msra.mxu1 %v4322_v31 }
 0xa8e   : > { %2618 = vmatprep.subr.bf16.mxu0 %v4337_v34  ;;  %2659 = vmatprep.subr.bf16.mxu1 %v4339_v35 }
 0xa91   : > { %2619 = vmatpush1.bf16.msra.mxu0 %v4336_v40  ;;  %2660 = vmatpush1.bf16.msra.mxu1 %v4338_v27 }
 0xa92   : > { %2620 = vmatprep.subr.bf16.mxu0 %v4353_v41  ;;  %2661 = vmatprep.subr.bf16.mxu1 %v4355_v33 }
 0xa95   : > { %2621 = vmatpush1.bf16.msra.mxu0 %v4352_v42  ;;  %2662 = vmatpush1.bf16.msra.mxu1 %v4354_v43  ;;  %v4903_v43 = vld [vmem:[%s6355_s9 + $0x100] sm:$0xff]  }
 0xa96   : > { %4525 = vmatprep.subr.bf16.mxu0 %v4869_v44  ;;  %4547 = vmatprep.subr.bf16.mxu1 %v4870_v45  ;;  %v4904_v44 = vld [vmem:[%s6355_s9 + $0x180] sm:$0xff]  }
 0xa98   : > { %2639 = vmatmul.mubr.bf16.vlgmr.msra.gmra.mrb[28].mxu0 %v5566_v30  ;;  %2680 = vmatmul.mubr.bf16.vlgmr.msra.gmra.mrb[20].mxu1 %v5566_v30  ;;  %v4878_v30 = vld [vmem:[%s6355_s9 + $0xd0] sm:$0xff]  }
 0xa99   : > { %4526 = vmatpush3.bf16.msra.mxu0 %v4871_v46  ;;  %4548 = vmatpush3.bf16.msra.mxu1 %v4872_v47  ;;  %v4905_v47 = vld [vmem:[%s6355_s9 + $0x148] sm:$0xff]  }
 0xa9a   : > { %4527 = vmatprep.subr.bf16.mxu0 %v4873_v48  ;;  %4549 = vmatprep.subr.bf16.mxu1 %v4874_v49  ;;  %v4906_v48 = vld [vmem:[%s6355_s9 + $0x1c8] sm:$0xff]  }
 0xa9b   : > { %v4907_v49 = vld [vmem:[%s6355_s9 + $0x108] sm:$0xff]  }
 0xa9d   : > { %4528 = vmatpush3.bf16.msra.mxu0 %v4875_v50  ;;  %4550 = vmatpush3.bf16.msra.mxu1 %v4876_v51  ;;  %v4908_v50 = vld [vmem:[%s6355_s9 + $0x188] sm:$0xff]   ;;  %v4909_v51 = vld [vmem:[%s6355_s9 + $0x150] sm:$0xff]  }
 0xa9e   : > { %4529 = vmatprep.subr.bf16.mxu0 %v4877_v52  ;;  %4551 = vmatprep.subr.bf16.mxu1 %v4878_v30  ;;  %v4910_v52 = vld [vmem:[%s6355_s9 + $0x1d0] sm:$0xff]  }
 0xa9f   : > { %v4911_v30 = vld [vmem:[%s6355_s9 + $0x110] sm:$0xff]  }
 0xaa1   : > { %4530 = vmatpush3.bf16.msra.mxu0 %v4879_v53  ;;  %4552 = vmatpush3.bf16.msra.mxu1 %v4880_v54  ;;  %v4912_v53 = vld [vmem:[%s6355_s9 + $0x190] sm:$0xff]   ;;  %v4913_v54 = vld [vmem:[%s6355_s9 + $0x158] sm:$0xff]  }
 0xaa2   : > { %4531 = vmatprep.subr.bf16.mxu0 %v4881_v19  ;;  %4553 = vmatprep.subr.bf16.mxu1 %v4882_v55  ;;  %v4914_v19 = vld [vmem:[%s6355_s9 + $0x1d8] sm:$0xff]  }
 0xaa3   : > { %v4915_v55 = vld [vmem:[%s6355_s9 + $0x118] sm:$0xff]  }
 0xaa5   : > { %4532 = vmatpush3.bf16.msra.mxu0 %v4883_v56  ;;  %4554 = vmatpush3.bf16.msra.mxu1 %v4884_v57  ;;  %v4916_v56 = vld [vmem:[%s6355_s9 + $0x198] sm:$0xff]   ;;  %v4917_v57 = vld [vmem:[%s6355_s9 + $0x160] sm:$0xff]  }
 0xaa6   : > { %4533 = vmatprep.subr.bf16.mxu0 %v4885_v58  ;;  %4555 = vmatprep.subr.bf16.mxu1 %v4886_v59  ;;  %v4918_v58 = vld [vmem:[%s6355_s9 + $0x1e0] sm:$0xff]  }
 0xaa7   : > { %v4919_v59 = vld [vmem:[%s6355_s9 + $0x120] sm:$0xff]  }
 0xaa9   : > { %4534 = vmatpush3.bf16.msra.mxu0 %v4887_v60  ;;  %4556 = vmatpush3.bf16.msra.mxu1 %v4888_v62  ;;  %v4920_v60 = vld [vmem:[%s6355_s9 + $0x1a0] sm:$0xff]   ;;  %v4921_v62 = vld [vmem:[%s6355_s9 + $0x168] sm:$0xff]  }
 0xaaa   : > { %4535 = vmatprep.subr.bf16.mxu0 %v4889_v63  ;;  %4557 = vmatprep.subr.bf16.mxu1 %v4890_v0  ;;  %v4922_v63 = vld [vmem:[%s6355_s9 + $0x1e8] sm:$0xff]   ;;  %v1658_v0 = vsub.s32 4, %v5267_v21 }
 0xaad   : > { %4536 = vmatpush3.bf16.msra.mxu0 %v4891_v1  ;;  %4558 = vmatpush3.bf16.msra.mxu1 %v4892_v3  ;;  %v1666_v1 = vsub.s32 6, %v5267_v21  ;;  %v4923_v3 = vld [vmem:[%s6355_s9 + $0x128] sm:$0xff]  }
 0xaae   : > { %4537 = vmatprep.subr.bf16.mxu0 %v4893_v4  ;;  %4559 = vmatprep.subr.bf16.mxu1 %v4894_v17  ;;  %v4924_v4 = vld [vmem:[%s6355_s9 + $0x1a8] sm:$0xff]   ;;  %v1662_v17 = vsub.s32 5, %v5267_v21 }
 0xab1   : > { %4538 = vmatpush3.bf16.msra.mxu0 %v4895_v5  ;;  %4560 = vmatpush3.bf16.msra.mxu1 %v4896_v2  ;;  %v1670_v5 = vsub.s32 7, %v5267_v21  ;;  %v4925_v2 = vld [vmem:[%s6355_s9 + $0x170] sm:$0xff]   ;;  %v4994_v21 = vld [vmem:[%s6355_s9 + $0x3f8] sm:$0xff]  }
 0xab2   : > { %4539 = vmatprep.subr.bf16.mxu0 %v4897_v6  ;;  %4561 = vmatprep.subr.bf16.mxu1 %v4898_v7  ;;  %v4926_v6 = vld [vmem:[%s6355_s9 + $0x1f0] sm:$0xff]   ;;  %v1659_v7 = vrot.slane %v5951_v12, %v1658_v0 }
 0xab5   : > { %4540 = vmatpush3.bf16.msra.mxu0 %v4899_v8  ;;  %4562 = vmatpush3.bf16.msra.mxu1 %v4900_v9  ;;  %v1667_v8 = vrot.slane %v5951_v12, %v1666_v1  ;;  %v1663_v9 = vrot.slane %v5951_v12, %v1662_v17 }
 0xab6   : > { %4569 = vmatprep.subr.bf16.mxu0 %v4901_v10  ;;  %4591 = vmatprep.subr.bf16.mxu1 %v4902_v11  ;;  %v1671_v10 = vrot.slane %v5951_v12, %v1670_v5  ;;  %v4927_v11 = vld [vmem:[%s6355_s9 + $0x130] sm:$0xff]  }
 0xb0b   : > { %v2394_v20 = vpop.f32.mrb[16].mxu0  ;;  %v2435_v23 = vpop.f32.mrb[8].mxu1 }
 0xb0c   : > { %v2395_v25 = vadd.f32 %v2394_v20, %v1643_v14  ;;  %v2436_v26 = vadd.f32 %v2435_v23, %v1651_v15  ;;  %v2396_v28 = vpop.f32.mrb[17].mxu0  ;;  %v2437_v29 = vpop.f32.mrb[9].mxu1  ;;  %v4928_v14 = vld [vmem:[%s6355_s9 + $0x1b0] sm:$0xff]   ;;  %v4929_v15 = vld [vmem:[%s6355_s9 + $0x178] sm:$0xff]  }
 0xb0d   : > { %v2397_v31 = vadd.f32 %v2396_v28, %v1647_v16  ;;  %v2438_v34 = vadd.f32 %v2437_v29, %v1655_v18  ;;  %v2398_v35 = vpop.f32.mrb[18].mxu0  ;;  %v2439_v36 = vpop.f32.mrb[10].mxu1  ;;  %v4930_v16 = vld [vmem:[%s6355_s9 + $0x1f8] sm:$0xff]  }
 0xb0e   : > { %v2688_v32 = vmax.f32 %v2395_v25, 0.0  ;;  %v2690_v38 = vmax.f32 %v2436_v26, 0.0  ;;  %v2399_v39 = vpop.f32.mrb[19].mxu0  ;;  %v2440_v40 = vpop.f32.mrb[11].mxu1  ;;  %v4931_v35 = vld [vmem:[%s6355_s9 + $0x138] sm:$0xff]  }
 0xb0f   : > { %v2689_v27 = vmax.f32 %v2397_v31, 0.0  ;;  %v2691_v41 = vmax.f32 %v2438_v34, 0.0  ;;  %v4932_v36 = vld [vmem:[%s6355_s9 + $0x1b8] sm:$0xff]  }
 0xb10   : > { %v2704_v45 = vpack.c.bf16 %v2688_v32, %v2688_v32  ;;  %v2706_v46 = vpack.c.bf16 %v2690_v38, %v2690_v38 }
 0xb11   : > { %v2705_v33 = vpack.c.bf16 %v2689_v27, %v2689_v27  ;;  %v2707_v42 = vpack.c.bf16 %v2691_v41, %v2691_v41  ;;  %v4933_v27 = vld [vmem:[%s6355_s9 + $0x240] sm:$0xff]  }
 0xb12   : > { %v4934_v41 = vld [vmem:[%s6355_s9 + $0x2c0] sm:$0xff]  }
 0xb13   : > { %3783 = vmatprep.mubr.bf16.mxu0 %v2705_v33  ;;  %3823 = vmatprep.mubr.bf16.mxu1 %v2707_v42 }
 0xb14   : > { %3784 = vmatmul.mubr.bf16.vlgmr.msra.gmra.mrb[32].mxu0 %v2704_v45  ;;  %3824 = vmatmul.mubr.bf16.vlgmr.msra.gmra.mrb[24].mxu1 %v2706_v46  ;;  %v4935_v45 = vld [vmem:[%s6355_s9 + $0x200] sm:$0xff]  }
 0xb15   : > { %4570 = vmatpush3.bf16.msra.mxu0 %v4903_v43  ;;  %4592 = vmatpush3.bf16.msra.mxu1 %v4904_v44  ;;  %v4936_v46 = vld [vmem:[%s6355_s9 + $0x280] sm:$0xff]  }
 0xb16   : > { %4571 = vmatprep.subr.bf16.mxu0 %v4905_v47  ;;  %4593 = vmatprep.subr.bf16.mxu1 %v4906_v48 }
 0xb19   : > { %4572 = vmatpush3.bf16.msra.mxu0 %v4907_v49  ;;  %4594 = vmatpush3.bf16.msra.mxu1 %v4908_v50  ;;  %v4937_v49 = vld [vmem:[%s6355_s9 + $0x248] sm:$0xff]  }
 0xb1a   : > { %4573 = vmatprep.subr.bf16.mxu0 %v4909_v51  ;;  %4595 = vmatprep.subr.bf16.mxu1 %v4910_v52  ;;  %v4938_v50 = vld [vmem:[%s6355_s9 + $0x2c8] sm:$0xff]  }
 0xb1b   : > { %v4939_v51 = vld [vmem:[%s6355_s9 + $0x208] sm:$0xff]  }
 0xb1c   : > { %v4940_v52 = vld [vmem:[%s6355_s9 + $0x288] sm:$0xff]  }
 0xb1d   : > { %4574 = vmatpush3.bf16.msra.mxu0 %v4911_v30  ;;  %4596 = vmatpush3.bf16.msra.mxu1 %v4912_v53  ;;  %v4941_v30 = vld [vmem:[%s6355_s9 + $0x250] sm:$0xff]  }
 0xb1e   : > { %4575 = vmatprep.subr.bf16.mxu0 %v4913_v54  ;;  %4597 = vmatprep.subr.bf16.mxu1 %v4914_v19  ;;  %v4942_v53 = vld [vmem:[%s6355_s9 + $0x2d0] sm:$0xff]  }
 0xb1f   : > { %v4943_v54 = vld [vmem:[%s6355_s9 + $0x210] sm:$0xff]  }
 0xb20   : > { %v4944_v19 = vld [vmem:[%s6355_s9 + $0x290] sm:$0xff]  }
 0xb21   : > { %4576 = vmatpush3.bf16.msra.mxu0 %v4915_v55  ;;  %4598 = vmatpush3.bf16.msra.mxu1 %v4916_v56  ;;  %v4945_v55 = vld [vmem:[%s6355_s9 + $0x258] sm:$0xff]  }
 0xb22   : > { %4577 = vmatprep.subr.bf16.mxu0 %v4917_v57  ;;  %4599 = vmatprep.subr.bf16.mxu1 %v4918_v58  ;;  %v4946_v56 = vld [vmem:[%s6355_s9 + $0x2d8] sm:$0xff]  }
 0xb23   : > { %v4947_v57 = vld [vmem:[%s6355_s9 + $0x218] sm:$0xff]  }
 0xb24   : > { %v4948_v58 = vld [vmem:[%s6355_s9 + $0x298] sm:$0xff]  }
 0xb25   : > { %4578 = vmatpush3.bf16.msra.mxu0 %v4919_v59  ;;  %4600 = vmatpush3.bf16.msra.mxu1 %v4920_v60  ;;  %v4949_v59 = vld [vmem:[%s6355_s9 + $0x260] sm:$0xff]  }
 0xb26   : > { %4579 = vmatprep.subr.bf16.mxu0 %v4921_v62  ;;  %4601 = vmatprep.subr.bf16.mxu1 %v4922_v63  ;;  %v4950_v60 = vld [vmem:[%s6355_s9 + $0x2e0] sm:$0xff]  }
 0xb27   : > { %v4951_v62 = vld [vmem:[%s6355_s9 + $0x220] sm:$0xff]  }
 0xb28   : > { %v4952_v63 = vld [vmem:[%s6355_s9 + $0x2a0] sm:$0xff]  }
 0xb29   : > { %4580 = vmatpush3.bf16.msra.mxu0 %v4923_v3  ;;  %4602 = vmatpush3.bf16.msra.mxu1 %v4924_v4  ;;  %v4953_v3 = vld [vmem:[%s6355_s9 + $0x268] sm:$0xff]  }
 0xb2a   : > { %4581 = vmatprep.subr.bf16.mxu0 %v4925_v2  ;;  %4603 = vmatprep.subr.bf16.mxu1 %v4926_v6  ;;  %v4954_v4 = vld [vmem:[%s6355_s9 + $0x2e8] sm:$0xff]  }
 0xb2b   : > { %v2476_v18 = vpop.f32.mrb[20].mxu0  ;;  %v2517_v12 = vpop.f32.mrb[12].mxu1  ;;  %v4955_v2 = vld [vmem:[%s6355_s9 + $0x228] sm:$0xff]  }
 0xb2c   : > { %v2477_v20 = vadd.f32 %v2476_v18, %v1659_v7  ;;  %v2518_v23 = vadd.f32 %v2517_v12, %v1667_v8  ;;  %v2478_v25 = vpop.f32.mrb[21].mxu0  ;;  %v2519_v26 = vpop.f32.mrb[13].mxu1  ;;  %v4956_v6 = vld [vmem:[%s6355_s9 + $0x2a8] sm:$0xff]   ;;  %v4957_v8 = vld [vmem:[%s6355_s9 + $0x270] sm:$0xff]  }
 0xb2d   : > { %v2479_v28 = vadd.f32 %v2478_v25, %v1663_v9  ;;  %v2520_v29 = vadd.f32 %v2519_v26, %v1671_v10  ;;  %v2480_v31 = vpop.f32.mrb[22].mxu0  ;;  %v2521_v34 = vpop.f32.mrb[14].mxu1  ;;  %4582 = vmatpush3.bf16.msra.mxu0 %v4927_v11  ;;  %4604 = vmatpush3.bf16.msra.mxu1 %v4928_v14  ;;  %v6144_v7 = vld [vmem:[%s6354_s8 + $0x8] sm:$0xff]  ;;  %v4958_v9 = vld [vmem:[%s6355_s9 + $0x2f0] sm:$0xff]  }
 0xb2e   : > { %v2692_v32 = vmax.f32 %v2477_v20, 0.0  ;;  %v2694_v38 = vmax.f32 %v2518_v23, 0.0  ;;  %v2481_v39 = vpop.f32.mrb[23].mxu0  ;;  %v2522_v40 = vpop.f32.mrb[15].mxu1  ;;  %4583 = vmatprep.subr.bf16.mxu0 %v4929_v15  ;;  %4605 = vmatprep.subr.bf16.mxu1 %v4930_v16  ;;  %v1675_v10 = vrot.slane %v6144_v7, %v5278_v24  ;;  %v1683_v11 = vrot.slane %v6144_v7, %v5350_v61  ;;  %v4959_v16 = vld [vmem:[%s6355_s9 + $0x230] sm:$0xff]   ;;  %v4961_v61 = vld [vmem:[%s6355_s9 + $0x278] sm:$0xff]  }
 0xb2f   : > { %v2693_v33 = vmax.f32 %v2479_v28, 0.0  ;;  %v2695_v42 = vmax.f32 %v2520_v29, 0.0  ;;  %v1679_v14 = vrot.slane %v6144_v7, %v5270_v22  ;;  %v1687_v15 = vrot.slane %v6144_v7, %v1654_v13  ;;  %v4960_v24 = vld [vmem:[%s6355_s9 + $0x2b0] sm:$0xff]   ;;  %v4962_v22 = vld [vmem:[%s6355_s9 + $0x2f8] sm:$0xff]   ;;  %v4965_v40 = vld [vmem:[%s6355_s9 + $0x340] sm:$0xff]  }
 0xb30   : > { %v2708_v47 = vpack.c.bf16 %v2692_v32, %v2692_v32  ;;  %v2710_v48 = vpack.c.bf16 %v2694_v38, %v2694_v38  ;;  %v4963_v34 = vld [vmem:[%s6355_s9 + $0x238] sm:$0xff]  }
 0xb31   : > { %v2709_v43 = vpack.c.bf16 %v2693_v33, %v2693_v33  ;;  %v2711_v44 = vpack.c.bf16 %v2695_v42, %v2695_v42  ;;  %4584 = vmatpush3.bf16.msra.mxu0 %v4931_v35  ;;  %4606 = vmatpush3.bf16.msra.mxu1 %v4932_v36  ;;  %v4964_v35 = vld [vmem:[%s6355_s9 + $0x2b8] sm:$0xff]  }
 0xb32   : > { %4613 = vmatprep.subr.bf16.mxu0 %v4933_v27  ;;  %4635 = vmatprep.subr.bf16.mxu1 %v4934_v41  ;;  %v4966_v27 = vld [vmem:[%s6355_s9 + $0x3c0] sm:$0xff]  }
 0xb33   : > { %3863 = vmatprep.mubr.bf16.mxu0 %v2709_v43  ;;  %3903 = vmatprep.mubr.bf16.mxu1 %v2711_v44  ;;  %v4967_v44 = vld [vmem:[%s6355_s9 + $0x300] sm:$0xff]  }
 0xb34   : > { %3864 = vmatmul.mubr.bf16.vlgmr.msra.gmra.mrb[36].mxu0 %v2708_v47  ;;  %3904 = vmatmul.mubr.bf16.vlgmr.msra.gmra.mrb[28].mxu1 %v2710_v48  ;;  %v4969_v48 = vld [vmem:[%s6355_s9 + $0x348] sm:$0xff]  }
 0xb35   : > { %4614 = vmatpush3.bf16.msra.mxu0 %v4935_v45  ;;  %4636 = vmatpush3.bf16.msra.mxu1 %v4936_v46  ;;  %v4968_v45 = vld [vmem:[%s6355_s9 + $0x380] sm:$0xff]  }
 0xb36   : > { %4615 = vmatprep.subr.bf16.mxu0 %v4937_v49  ;;  %4637 = vmatprep.subr.bf16.mxu1 %v4938_v50  ;;  %v4970_v49 = vld [vmem:[%s6355_s9 + $0x3c8] sm:$0xff]  }
 0xb37   : > { %v4971_v50 = vld [vmem:[%s6355_s9 + $0x308] sm:$0xff]  }
 0xb39   : > { %4616 = vmatpush3.bf16.msra.mxu0 %v4939_v51  ;;  %4638 = vmatpush3.bf16.msra.mxu1 %v4940_v52  ;;  %v4972_v51 = vld [vmem:[%s6355_s9 + $0x388] sm:$0xff]   ;;  %v4973_v52 = vld [vmem:[%s6355_s9 + $0x350] sm:$0xff]  }
 0xb3a   : > { %4617 = vmatprep.subr.bf16.mxu0 %v4941_v30  ;;  %4639 = vmatprep.subr.bf16.mxu1 %v4942_v53  ;;  %v4974_v30 = vld [vmem:[%s6355_s9 + $0x3d0] sm:$0xff]  }
 0xb3b   : > { %v4975_v53 = vld [vmem:[%s6355_s9 + $0x310] sm:$0xff]  }
 0xb3d   : > { %4618 = vmatpush3.bf16.msra.mxu0 %v4943_v54  ;;  %4640 = vmatpush3.bf16.msra.mxu1 %v4944_v19  ;;  %v4976_v54 = vld [vmem:[%s6355_s9 + $0x390] sm:$0xff]   ;;  %v4977_v19 = vld [vmem:[%s6355_s9 + $0x358] sm:$0xff]  }
 0xb3e   : > { %4619 = vmatprep.subr.bf16.mxu0 %v4945_v55  ;;  %4641 = vmatprep.subr.bf16.mxu1 %v4946_v56  ;;  %v4978_v55 = vld [vmem:[%s6355_s9 + $0x3d8] sm:$0xff]  }
 0xb3f   : > { %v4979_v56 = vld [vmem:[%s6355_s9 + $0x318] sm:$0xff]  }
 0xb41   : > { %4620 = vmatpush3.bf16.msra.mxu0 %v4947_v57  ;;  %4642 = vmatpush3.bf16.msra.mxu1 %v4948_v58  ;;  %v4980_v57 = vld [vmem:[%s6355_s9 + $0x398] sm:$0xff]   ;;  %v4981_v58 = vld [vmem:[%s6355_s9 + $0x360] sm:$0xff]  }
 0xb42   : > { %4621 = vmatprep.subr.bf16.mxu0 %v4949_v59  ;;  %4643 = vmatprep.subr.bf16.mxu1 %v4950_v60  ;;  %v4982_v59 = vld [vmem:[%s6355_s9 + $0x3e0] sm:$0xff]  }
 0xb43   : > { %v4983_v60 = vld [vmem:[%s6355_s9 + $0x320] sm:$0xff]  }
 0xb45   : > { %4622 = vmatpush3.bf16.msra.mxu0 %v4951_v62  ;;  %4644 = vmatpush3.bf16.msra.mxu1 %v4952_v63  ;;  %v4984_v62 = vld [vmem:[%s6355_s9 + $0x3a0] sm:$0xff]   ;;  %v4985_v63 = vld [vmem:[%s6355_s9 + $0x368] sm:$0xff]  }
 0xb46   : > { %4623 = vmatprep.subr.bf16.mxu0 %v4953_v3  ;;  %4645 = vmatprep.subr.bf16.mxu1 %v4954_v4  ;;  %v4986_v3 = vld [vmem:[%s6355_s9 + $0x3e8] sm:$0xff]  }
 0xb47   : > { %v4987_v4 = vld [vmem:[%s6355_s9 + $0x328] sm:$0xff]  }
 0xb49   : > { %4624 = vmatpush3.bf16.msra.mxu0 %v4955_v2  ;;  %4646 = vmatpush3.bf16.msra.mxu1 %v4956_v6  ;;  %v4988_v2 = vld [vmem:[%s6355_s9 + $0x3a8] sm:$0xff]   ;;  %v4989_v6 = vld [vmem:[%s6355_s9 + $0x370] sm:$0xff]  }
 0xb4a   : > { %4625 = vmatprep.subr.bf16.mxu0 %v4957_v8  ;;  %4647 = vmatprep.subr.bf16.mxu1 %v4958_v9  ;;  %v4990_v8 = vld [vmem:[%s6355_s9 + $0x3f0] sm:$0xff]   ;;  %v1691_v9 = vrot.slane %v6144_v7, %v1658_v0 }
 0xb4b   : > { %v2558_v18 = vpop.f32.mrb[24].mxu0  ;;  %v2599_v13 = vpop.f32.mrb[16].mxu1  ;;  %v4992_v0 = vld [vmem:[%s6355_s9 + $0x3b0] sm:$0xff]  }
 0xb4c   : > { %v2559_v12 = vadd.f32 %v2558_v18, %v1675_v10  ;;  %v2600_v20 = vadd.f32 %v2599_v13, %v1683_v11  ;;  %v2560_v23 = vpop.f32.mrb[25].mxu0  ;;  %v2601_v25 = vpop.f32.mrb[17].mxu1  ;;  %v1699_v10 = vrot.slane %v6144_v7, %v1666_v1  ;;  %v1695_v11 = vrot.slane %v6144_v7, %v1662_v17  ;;  %v4993_v1 = vld [vmem:[%s6355_s9 + $0x378] sm:$0xff]  }
 0xb4d   : > { %v2561_v26 = vadd.f32 %v2560_v23, %v1679_v14  ;;  %v2602_v28 = vadd.f32 %v2601_v25, %v1687_v15  ;;  %v2562_v29 = vpop.f32.mrb[26].mxu0  ;;  %v2603_v31 = vpop.f32.mrb[18].mxu1  ;;  %4626 = vmatpush3.bf16.msra.mxu0 %v4959_v16  ;;  %4648 = vmatpush3.bf16.msra.mxu1 %v4960_v24  ;;  %v1703_v14 = vrot.slane %v6144_v7, %v1670_v5  ;;  %v4991_v15 = vld [vmem:[%s6355_s9 + $0x330] sm:$0xff]   ;;  %v4996_v23 = vld [vmem:[%s6355_s9 + $0x3b8] sm:$0xff]  }
 0xb4e   : > { %v2696_v36 = vmax.f32 %v2559_v12, 0.0  ;;  %v2698_v32 = vmax.f32 %v2600_v20, 0.0  ;;  %v2563_v38 = vpop.f32.mrb[27].mxu0  ;;  %v2604_v39 = vpop.f32.mrb[19].mxu1  ;;  %4627 = vmatprep.subr.bf16.mxu0 %v4961_v61  ;;  %4649 = vmatprep.subr.bf16.mxu1 %v4962_v22  ;;  %v4995_v20 = vld [vmem:[%s6355_s9 + $0x338] sm:$0xff]  }
 0xb4f   : > { %v2697_v41 = vmax.f32 %v2561_v26, 0.0  ;;  %v2699_v33 = vmax.f32 %v2602_v28, 0.0 }
 0xb50   : > { %v2712_v46 = vpack.c.bf16 %v2696_v36, %v2696_v36  ;;  %v2714_v47 = vpack.c.bf16 %v2698_v32, %v2698_v32 }
 0xb51   : > { %v2713_v42 = vpack.c.bf16 %v2697_v41, %v2697_v41  ;;  %v2715_v43 = vpack.c.bf16 %v2699_v33, %v2699_v33  ;;  %4628 = vmatpush3.bf16.msra.mxu0 %v4963_v34  ;;  %4650 = vmatpush3.bf16.msra.mxu1 %v4964_v35 }
 0xb52   : > { %4657 = vmatprep.subr.bf16.mxu0 %v4965_v40  ;;  %4679 = vmatprep.subr.bf16.mxu1 %v4966_v27  ;;  %v4356_v27 = vld [vmem:[%s6356_s10] ss:$0 sm:$0xff] }
 0xb53   : > { %3943 = vmatprep.mubr.bf16.mxu0 %v2713_v42  ;;  %3983 = vmatprep.mubr.bf16.mxu1 %v2715_v43 }
 0xb54   : > { %3944 = vmatmul.mubr.bf16.vlgmr.msra.gmra.mrb[40].mxu0 %v2712_v46  ;;  %3984 = vmatmul.mubr.bf16.vlgmr.msra.gmra.mrb[32].mxu1 %v2714_v47 }
 0xb55   : > { %4658 = vmatpush3.bf16.msra.mxu0 %v4967_v44  ;;  %4680 = vmatpush3.bf16.msra.mxu1 %v4968_v45 }
 0xb56   : > { %4659 = vmatprep.subr.bf16.mxu0 %v4969_v48  ;;  %4681 = vmatprep.subr.bf16.mxu1 %v4970_v49 }
 0xb59   : > { %4660 = vmatpush3.bf16.msra.mxu0 %v4971_v50  ;;  %4682 = vmatpush3.bf16.msra.mxu1 %v4972_v51 }
 0xb5a   : > { %4661 = vmatprep.subr.bf16.mxu0 %v4973_v52  ;;  %4683 = vmatprep.subr.bf16.mxu1 %v4974_v30 }
 0xb5d   : > { %4662 = vmatpush3.bf16.msra.mxu0 %v4975_v53  ;;  %4684 = vmatpush3.bf16.msra.mxu1 %v4976_v54 }
 0xb5e   : > { %4663 = vmatprep.subr.bf16.mxu0 %v4977_v19  ;;  %4685 = vmatprep.subr.bf16.mxu1 %v4978_v55 }
 0xb61   : > { %4664 = vmatpush3.bf16.msra.mxu0 %v4979_v56  ;;  %4686 = vmatpush3.bf16.msra.mxu1 %v4980_v57 }
 0xb62   : > { %4665 = vmatprep.subr.bf16.mxu0 %v4981_v58  ;;  %4687 = vmatprep.subr.bf16.mxu1 %v4982_v59 }
 0xb65   : > { %4666 = vmatpush3.bf16.msra.mxu0 %v4983_v60  ;;  %4688 = vmatpush3.bf16.msra.mxu1 %v4984_v62 }
 0xb66   : > { %4667 = vmatprep.subr.bf16.mxu0 %v4985_v63  ;;  %4689 = vmatprep.subr.bf16.mxu1 %v4986_v3 }
 0xb69   : > { %4668 = vmatpush3.bf16.msra.mxu0 %v4987_v4  ;;  %4690 = vmatpush3.bf16.msra.mxu1 %v4988_v2 }
 0xb6a   : > { %4669 = vmatprep.subr.bf16.mxu0 %v4989_v6  ;;  %4691 = vmatprep.subr.bf16.mxu1 %v4990_v8 }
 0xb6b   : > { %v2640_v17 = vpop.f32.mrb[28].mxu0  ;;  %v2681_v5 = vpop.f32.mrb[20].mxu1 }
 0xb6c   : > { %v2641_v7 = vadd.f32 %v2640_v17, %v1691_v9  ;;  %v2682_v16 = vadd.f32 %v2681_v5, %v1699_v10  ;;  %v2642_v24 = vpop.f32.mrb[29].mxu0  ;;  %v2683_v61 = vpop.f32.mrb[21].mxu1 }
 0xb6d   : > { %v2643_v22 = vadd.f32 %v2642_v24, %v1695_v11  ;;  %v2684_v18 = vadd.f32 %v2683_v61, %v1703_v14  ;;  %v2644_v13 = vpop.f32.mrb[30].mxu0  ;;  %v2685_v12 = vpop.f32.mrb[22].mxu1  ;;  %4670 = vmatpush3.bf16.msra.mxu0 %v4991_v15  ;;  %4692 = vmatpush3.bf16.msra.mxu1 %v4992_v0 }
 0xb6e   : > { %v2700_v25 = vmax.f32 %v2641_v7, 0.0  ;;  %v2702_v26 = vmax.f32 %v2682_v16, 0.0  ;;  %v2645_v28 = vpop.f32.mrb[31].mxu0  ;;  %v2686_v29 = vpop.f32.mrb[23].mxu1  ;;  %4671 = vmatprep.subr.bf16.mxu0 %v4993_v1  ;;  %4693 = vmatprep.subr.bf16.mxu1 %v4994_v21 }
 0xb6f   : > { %v2701_v31 = vmax.f32 %v2643_v22, 0.0  ;;  %v2703_v34 = vmax.f32 %v2684_v18, 0.0 }
 0xb70   : > { %v2716_v32 = vpack.c.bf16 %v2700_v25, %v2700_v25  ;;  %v2718_v38 = vpack.c.bf16 %v2702_v26, %v2702_v26 }
 0xb71   : > { %v2717_v35 = vpack.c.bf16 %v2701_v31, %v2701_v31  ;;  %v2719_v36 = vpack.c.bf16 %v2703_v34, %v2703_v34  ;;  %4672 = vmatpush3.bf16.msra.mxu0 %v4995_v20  ;;  %4694 = vmatpush3.bf16.msra.mxu1 %v4996_v23 }
 0xb73   : > { %4023 = vmatprep.mubr.bf16.mxu0 %v2717_v35  ;;  %4063 = vmatprep.mubr.bf16.mxu1 %v2719_v36 }
 0xb74   : > { %4024 = vmatmul.mubr.bf16.vlgmr.msra.gmra.mrb[44].mxu0 %v2716_v32  ;;  %4064 = vmatmul.mubr.bf16.vlgmr.msra.gmra.mrb[36].mxu1 %v2718_v38  ;;  %v4486_v32 = vld [vmem:[%s6358_s12] ss:$0 sm:$0xff] }
 0xbe7   : > { %v4541_v39 = vpop.f32.mrb[32].mxu0  ;;  %v4563_v40 = vpop.f32.mrb[24].mxu1 }
 0xbe8   : > { %v4542_v41 = vpop.f32.mrb[33].mxu0  ;;  %v4564_v33 = vpop.f32.mrb[25].mxu1 }
 0xbe9   : > { %v4543_v42 = vadd.f32 %v4542_v41, %v4541_v39  ;;  %v4565_v43 = vadd.f32 %v4564_v33, %v4563_v40  ;;  %v4544_v44 = vpop.f32.mrb[34].mxu0  ;;  %v4566_v45 = vpop.f32.mrb[26].mxu1 }
 0xbea   : > { %v4545_v46 = vpop.f32.mrb[35].mxu0  ;;  %v4567_v47 = vpop.f32.mrb[27].mxu1 }
 0xbeb   : > { %v3786_v48 = vadd.f32 %v4543_v42, %v4356_v27 }
 0xbed   : > { %v3826_v49 = vadd.f32 %v4565_v43, %v3786_v48 }
 0xc07   : > { %v4585_v50 = vpop.f32.mrb[36].mxu0  ;;  %v4607_v51 = vpop.f32.mrb[28].mxu1 }
 0xc08   : > { %v4586_v52 = vpop.f32.mrb[37].mxu0  ;;  %v4608_v30 = vpop.f32.mrb[29].mxu1 }
 0xc09   : > { %v4587_v53 = vadd.f32 %v4586_v52, %v4585_v50  ;;  %v4609_v54 = vadd.f32 %v4608_v30, %v4607_v51  ;;  %v4588_v19 = vpop.f32.mrb[38].mxu0  ;;  %v4610_v55 = vpop.f32.mrb[30].mxu1 }
 0xc0a   : > { %v4589_v56 = vpop.f32.mrb[39].mxu0  ;;  %v4611_v57 = vpop.f32.mrb[31].mxu1 }
 0xc0b   : > { %v3866_v58 = vadd.f32 %v4587_v53, %v3826_v49 }
 0xc0d   : > { %v3906_v59 = vadd.f32 %v4609_v54, %v3866_v58 }
 0xc27   : > { %v4629_v60 = vpop.f32.mrb[40].mxu0  ;;  %v4651_v62 = vpop.f32.mrb[32].mxu1 }
 0xc28   : > { %v4630_v63 = vpop.f32.mrb[41].mxu0  ;;  %v4652_v3 = vpop.f32.mrb[33].mxu1 }
 0xc29   : > { %v4631_v4 = vadd.f32 %v4630_v63, %v4629_v60  ;;  %v4653_v2 = vadd.f32 %v4652_v3, %v4651_v62  ;;  %v4632_v6 = vpop.f32.mrb[42].mxu0  ;;  %v4654_v8 = vpop.f32.mrb[34].mxu1 }
 0xc2a   : > { %v4633_v9 = vpop.f32.mrb[43].mxu0  ;;  %v4655_v10 = vpop.f32.mrb[35].mxu1 }
 0xc2b   : > { %v3946_v11 = vadd.f32 %v4631_v4, %v3906_v59 }
 0xc2d   : > { %v3986_v14 = vadd.f32 %v4653_v2, %v3946_v11 }
 0xc47   : > { %v4673_v15 = vpop.f32.mrb[44].mxu0  ;;  %v4695_v0 = vpop.f32.mrb[36].mxu1 }
 0xc48   : > { %v4674_v1 = vpop.f32.mrb[45].mxu0  ;;  %v4696_v21 = vpop.f32.mrb[37].mxu1 }
 0xc49   : > { %v4675_v17 = vadd.f32 %v4674_v1, %v4673_v15  ;;  %v4697_v5 = vadd.f32 %v4696_v21, %v4695_v0  ;;  %v4676_v7 = vpop.f32.mrb[46].mxu0  ;;  %v4698_v16 = vpop.f32.mrb[38].mxu1 }
 0xc4a   : > { %v4677_v24 = vpop.f32.mrb[47].mxu0  ;;  %v4699_v61 = vpop.f32.mrb[39].mxu1 }
 0xc4b   : > { %v4026_v22 = vadd.f32 %v4675_v17, %v3986_v14 }
 0xc4d   : > { %v4066_v18 = vadd.f32 %v4697_v5, %v4026_v22 }
 0xc4f   : > { %v4071_v13 = vadd.f32 %v4066_v18, %v5562_v37  ;;  %v4485_v37 = vld [vmem:[%s6357_s11] ss:$0 sm:$0xff] }
 0xc51   : > { %v4074_v12 = vsel %vm882_vm6, %v4071_v13, 0.0 }
 0xc52   : > { %4075 = vadd.xlane.f32.xlu0 %v4074_v12 }
 0xcdf   : > { %v4076_v20 = vpop.xlane.xlu0 %4075 }
 0xce0   : > { %v4077_v23 = vmul.f32 0.0078125, %v4076_v20 }
 0xce2   : > { %v4078_v25 = vsub.f32 %v4071_v13, %v4077_v23 }
 0xce4   : > { %v4079_v26 = vmul.f32 %v4078_v25, %v4078_v25 }
 0xce6   : > { %v4080_v28 = vsel %vm882_vm6, %v4079_v26, 0.0 }
 0xce7   : > { %4081 = vadd.xlane.f32.xlu1 %v4080_v28 }
 0xd74   : > { %v4082_v29 = vpop.xlane.xlu1 %4081 }
 0xd75   : > { %v4083_v31 = vmul.f32 0.0078125, %v4082_v29 }
 0xd77   : > { %v4084_v34 = vadd.f32 1e-05, %v4083_v31 }
 0xd79   : > { %5015 = vrsqrt.f32 %v4084_v34 }
 0xd83   : > { %v5016_v35 = vpop.eup %5015 }
 0xd84   : > { %v4086_v36 = vmul.f32 %v5016_v35, %v4078_v25 }
 0xd86   : > { %v4093_v38 = vmul.f32 %v4485_v37, %v4086_v36 }
 0xd88   : > { %v4100_v39 = vadd.f32 %v4486_v32, %v4093_v38 }
 0xd8a   : > { %4101 = vst [vmem:[%s431_s14] sm:$0xf] %v4100_v39 }
 0xd8b   : > { %5030 = shalt.err (!%p5027_p3)
}
 0xd8c   : > { %s5031_s20 = scalar_lea.hbm %s6304_s19, 64  ;;  %s5035_s14 = scalar_lea.hbm %s6359_s13, 128 }
 0xd8d   : > { %p5032_p4 = scmp.ne.s32.totalorder %s6304_s19, %s5031_s20  ;;  %p5036_p9 = scmp.lt.u32.totalorder %s6304_s19, %s6359_s13 }
 0xd8e   : > { %p5037_p10 = scmp.lt.u32.totalorder %s5035_s14, %s5031_s20  ;;  %p5039_p12 = scmp.lt.u32.totalorder %s5031_s20, %s6304_s19 }
 0xd8f   : > { %p5033_p7 = pnand %p5032_p4, %p5193_p5 }
 0xd90   : > { %p5038_p11 = por %p5037_p10, %p5036_p9 }
 0xd91   : > { %p5034_p8 = pneg %p5033_p7 }
 0xd92   : > { %p5040_p13 = por %p5039_p12, %p5038_p11 }
 0xd94   : > { %p5041_p0 = pnand %p5040_p13, %p5034_p8 }
 0xd96   : > { %5044 = shalt.err (!%p5041_p0)
}
 0xd97   : > { %4787 = dma.vmem_to_hbm [thread:$0]  (%p5193_p5), %s6306_s22, 64, %s6304_s19, %s4103_s17  }
 0xd98 PF: > { %p4793_p1 = scmp.ge.s32.totalorder %s5079_s28, 2  ;;  %s4128_s29 = sand.u32 1, %s5067_s25  }
 0xd99   : > { %s4129_s21 = scalar_lea.sflag [#allocation3], %s4128_s29 }
 0xd9a   : > { %p4790_p2 = pnand %p4793_p1, %p5197_p6 }
 0xd9c   : > { %5062 = dma.done.wait (!%p4790_p2), %s4129_s21, 64  }
 0xd9d   : > { %5064 = vsyncadd (!%p4790_p2), %s4129_s21, 4294967232  ;;  %s6373_s28 = sld [smem:[#allocation6_spill]]  ;;  %s6374_s24 = sld [smem:[#allocation5_spill]] }
 0xd9e   : > { %s6375_s27 = sld [smem:[#allocation7_spill]]  ;;  %s6376_s25 = smov %s5071_s26 }
 0xda3   : > { %p23_p3 = scmp.ge.s32.totalorder %s6373_s28, 4   ;;  %s6377_s26 = smov %s6374_s24 }
 0xda5   :  { %25 = sbr.rel (!%p23_p3) target bundleno = 3 (0x3), region = 107 }
 0xdac   :  { %4134 = vsyncpa [#allocation3], 1 }
 0xdad   :  { %4136 = vsyncpa [#allocation3 + $0x1], 1 }

</bundles_post_ra>
